<compile_context>
chip_gen: v7x
topology: tpu7x:2x2x1
jax: 0.10.0
libtpu: 0.0.40
codegen_flags: <defaults>
</compile_context>

<pallas_src>
import jax
import jax.numpy as jnp
from jax import lax
from jax.experimental import pallas as pl
from jax.experimental.pallas import tpu as pltpu

LN_EPS = 1e-5

# Hidden layer sizes fixed by the module definition, plus their lane-aligned padding.
HIDDEN = [1000, 500, 250, 125, 64]
HIDDEN_PAD = [1024, 512, 256, 128, 128]
OUT_DIM = 4
OUT_PAD = 128          # lane-dense output slab, sliced back to OUT_DIM in the wrapper
TILE_M = 128           # batch tile


def _ln_relu(z, gamma, beta, true_dim, pad_dim):
    """Exact LayerNorm over `true_dim` features on a `pad_dim`-wide tile + ReLU.

    Assumes columns >= true_dim of z are exactly zero, and gamma/beta are
    zero-padded, so padded columns stay exactly zero on output.
    """
    inv_n = 1.0 / float(true_dim)
    mu = jnp.sum(z, axis=-1, keepdims=True) * inv_n
    d = z - mu
    ss = jnp.sum(d * d, axis=-1, keepdims=True)
    n_pad = pad_dim - true_dim
    if n_pad:
        # Each padded (zero) column contributed (0 - mu)^2 = mu^2 to ss; remove it.
        ss = ss - float(n_pad) * (mu * mu)
    z = d * lax.rsqrt(ss * inv_n + LN_EPS) * gamma + beta
    return jnp.maximum(z, 0.0)


def mlp_juno_kernel(
    x_ref,
    w1, b1, g1, be1,
    w2, b2, g2, be2,
    w3, b3, g3, be3,
    w4, b4, g4, be4,
    w5, b5, g5, be5,
    w6, b6,
    o_ref,
):
    # Weights are bf16; activations are cast to bf16 for the MXU, while LayerNorm
    # statistics and residual math stay in f32.
    h = x_ref[...].astype(jnp.bfloat16)

    hidden_layers = [
        (w1, b1, g1, be1),
        (w2, b2, g2, be2),
        (w3, b3, g3, be3),
        (w4, b4, g4, be4),
        (w5, b5, g5, be5),
    ]
    # 5 x (Linear -> LayerNorm -> ReLU [-> Dropout==identity in eval])
    for li, (w, b, g, be) in enumerate(hidden_layers):
        z = jnp.dot(h, w[...], preferred_element_type=jnp.float32) + b[...]
        z = _ln_relu(z, g[...], be[...], HIDDEN[li], HIDDEN_PAD[li])
        h = z.astype(jnp.bfloat16)

    # Output head: Linear(64, 4), zero-padded to 128 lanes for unmasked stores.
    o_ref[...] = (jnp.dot(h, w6[...], preferred_element_type=jnp.float32)
                  + b6[...]).astype(o_ref.dtype)


def init_params(input_shape, key):
    """PyTorch-equivalent (unpadded, f32) parameters for MLP_JUNO's layer shapes."""
    dims = [input_shape] + HIDDEN + [OUT_DIM]
    layers = []
    for i in range(len(dims) - 1):
        d_in, d_out = dims[i], dims[i + 1]
        key, kw, kb = jax.random.split(key, 3)
        bound = 1.0 / float(d_in) ** 0.5
        W = jax.random.uniform(kw, (d_in, d_out), jnp.float32, -bound, bound)
        b = jax.random.uniform(kb, (d_out,), jnp.float32, -bound, bound)
        if i < len(dims) - 2:
            gamma = jnp.ones((d_out,), jnp.float32)
            beta = jnp.zeros((d_out,), jnp.float32)
            layers.append((W, b, gamma, beta))
        else:
            layers.append((W, b))
    return layers


def pack_params(layers, input_shape):
    """Pad to lane-aligned dims and cast weights to bf16 for the kernel."""
    in_pads = [input_shape] + HIDDEN_PAD        # padded input dim per layer
    out_pads = HIDDEN_PAD + [OUT_PAD]           # padded output dim per layer
    flat = []
    for li, layer in enumerate(layers):
        W, b = layer[0], layer[1]
        d_in, d_out = W.shape
        pad_in, pad_out = in_pads[li], out_pads[li]
        Wp = jnp.pad(W, ((0, pad_in - d_in), (0, pad_out - d_out))).astype(jnp.bfloat16)
        bp = jnp.pad(b, (0, pad_out - d_out)).reshape(1, pad_out).astype(jnp.float32)
        flat.extend([Wp, bp])
        if len(layer) == 4:
            g, be = layer[2], layer[3]
            gp = jnp.pad(g, (0, pad_out - d_out)).reshape(1, pad_out).astype(jnp.float32)
            bep = jnp.pad(be, (0, pad_out - d_out)).reshape(1, pad_out).astype(jnp.float32)
            flat.extend([gp, bep])
    return flat


def mlp_juno_forward(x, packed_params):
    """Run the fused Pallas kernel. x: (batch, input_shape) float32."""
    B, D_in = x.shape
    B_pad = ((B + TILE_M - 1) // TILE_M) * TILE_M
    if B_pad != B:
        x = jnp.pad(x, ((0, B_pad - B), (0, 0)))

    flat_args = [x] + list(packed_params)
    grid = (B_pad // TILE_M,)

    # x / out are tiled over the batch axis; all weights use a constant index_map so
    # they are DMA'd once and stay resident in VMEM across grid steps.
    in_specs = [pl.BlockSpec((TILE_M, D_in), lambda i: (i, 0))]
    for a in flat_args[1:]:
        in_specs.append(pl.BlockSpec(a.shape, lambda i: (0, 0)))
    out_specs = pl.BlockSpec((TILE_M, OUT_PAD), lambda i: (i, 0))
    out_shape = jax.ShapeDtypeStruct((B_pad, OUT_PAD), jnp.float32)

    # Advisory cost estimate for the XLA scheduler (this call is latency-bound).
    dims_pad = [D_in] + HIDDEN_PAD + [OUT_PAD]
    flops = 2 * B_pad * sum(a * b for a, b in zip(dims_pad[:-1], dims_pad[1:]))
    bytes_accessed = (sum(int(a.size) * a.dtype.itemsize for a in flat_args)
                      + B_pad * OUT_PAD * 4)
    cost = pl.CostEstimate(flops=flops,
                           transcendentals=B_pad * len(HIDDEN),   # rsqrt per LN row
                           bytes_accessed=bytes_accessed)

    out = pl.pallas_call(
        mlp_juno_kernel,
        out_shape=out_shape,
        grid=grid,
        in_specs=in_specs,
        out_specs=out_specs,
        compiler_params=pltpu.CompilerParams(
            dimension_semantics=("parallel",),          # megacore on v7x
            vmem_limit_bytes=32 * 1024 * 1024,          # portable: <= v7x 64 MiB VMEM
        ),
        cost_estimate=cost,
    )(*flat_args)

    return out[:B, :OUT_DIM]


def mlp_juno_reference(x, layers):
    """Pure-JAX reference on the unpadded params (bf16 weights/activations, f32 acc)."""
    h = x
    for (W, b, g, be) in layers[:-1]:
        z = jnp.dot(h.astype(jnp.bfloat16), W.astype(jnp.bfloat16),
                    preferred_element_type=jnp.float32) + b
        mu = jnp.mean(z, axis=-1, keepdims=True)
        var = jnp.mean((z - mu) ** 2, axis=-1, keepdims=True)
        z = (z - mu) / jnp.sqrt(var + LN_EPS) * g + be
        h = jnp.maximum(z, 0.0)
    W, b = layers[-1]
    return jnp.dot(h.astype(jnp.bfloat16), W.astype(jnp.bfloat16),
                   preferred_element_type=jnp.float32) + b


if __name__ == "__main__":
    key = jax.random.PRNGKey(0)
    k_x, k_p = jax.random.split(key)

    batch = 256          # 2 batch tiles of TILE_M=128 -> exercises the grid/pipeline
    input_shape = 32     # small synthetic PMT feature dimension
    x = jax.random.normal(k_x, (batch, input_shape), jnp.float32)

    layers = init_params(input_shape, k_p)
    packed = pack_params(layers, input_shape)

    out = mlp_juno_forward(x, packed)
    out = jax.block_until_ready(out)

    ref = mlp_juno_reference(x, layers)
    assert out.shape == (batch, OUT_DIM), out.shape
    max_err = float(jnp.max(jnp.abs(out - ref)))
    assert jnp.allclose(out, ref, atol=2e-2, rtol=2e-2), max_err

    print("KERNEL_OK")
</pallas_src>

<mosaic_0001>
module attributes {stable_mosaic.version = 11 : i64} {
  func.func @mlp_juno_kernel(%arg0: i32, %arg1: memref<128x32xf32, #tpu.memory_space<vmem>>, %arg2: memref<32x1024xbf16, #tpu.memory_space<vmem>>, %arg3: memref<1x1024xf32, #tpu.memory_space<vmem>>, %arg4: memref<1x1024xf32, #tpu.memory_space<vmem>>, %arg5: memref<1x1024xf32, #tpu.memory_space<vmem>>, %arg6: memref<1024x512xbf16, #tpu.memory_space<vmem>>, %arg7: memref<1x512xf32, #tpu.memory_space<vmem>>, %arg8: memref<1x512xf32, #tpu.memory_space<vmem>>, %arg9: memref<1x512xf32, #tpu.memory_space<vmem>>, %arg10: memref<512x256xbf16, #tpu.memory_space<vmem>>, %arg11: memref<1x256xf32, #tpu.memory_space<vmem>>, %arg12: memref<1x256xf32, #tpu.memory_space<vmem>>, %arg13: memref<1x256xf32, #tpu.memory_space<vmem>>, %arg14: memref<256x128xbf16, #tpu.memory_space<vmem>>, %arg15: memref<1x128xf32, #tpu.memory_space<vmem>>, %arg16: memref<1x128xf32, #tpu.memory_space<vmem>>, %arg17: memref<1x128xf32, #tpu.memory_space<vmem>>, %arg18: memref<128x128xbf16, #tpu.memory_space<vmem>>, %arg19: memref<1x128xf32, #tpu.memory_space<vmem>>, %arg20: memref<1x128xf32, #tpu.memory_space<vmem>>, %arg21: memref<1x128xf32, #tpu.memory_space<vmem>>, %arg22: memref<128x128xbf16, #tpu.memory_space<vmem>>, %arg23: memref<1x128xf32, #tpu.memory_space<vmem>>, %arg24: memref<128x128xf32, #tpu.memory_space<vmem>>) attributes {dimension_semantics = [#tpu.dimension_semantics<parallel>], iteration_bounds = array<i64: 2>, scalar_prefetch = 0 : i64, scratch_operands = 0 : i64, tpu.core_type = #tpu.core_type<tc>, window_params = [{transform_indices = @transform_0, window_bounds = array<i64: 128, 32>}, {pipeline_mode = #tpu.pipeline_mode<synchronous>, transform_indices = @transform_1, window_bounds = array<i64: 32, 1024>}, {pipeline_mode = #tpu.pipeline_mode<synchronous>, transform_indices = @transform_2, window_bounds = array<i64: 1, 1024>}, {pipeline_mode = #tpu.pipeline_mode<synchronous>, transform_indices = @transform_3, window_bounds = array<i64: 1, 1024>}, {pipeline_mode = #tpu.pipeline_mode<synchronous>, transform_indices = @transform_4, window_bounds = array<i64: 1, 1024>}, {pipeline_mode = #tpu.pipeline_mode<synchronous>, transform_indices = @transform_5, window_bounds = array<i64: 1024, 512>}, {pipeline_mode = #tpu.pipeline_mode<synchronous>, transform_indices = @transform_6, window_bounds = array<i64: 1, 512>}, {pipeline_mode = #tpu.pipeline_mode<synchronous>, transform_indices = @transform_7, window_bounds = array<i64: 1, 512>}, {pipeline_mode = #tpu.pipeline_mode<synchronous>, transform_indices = @transform_8, window_bounds = array<i64: 1, 512>}, {pipeline_mode = #tpu.pipeline_mode<synchronous>, transform_indices = @transform_9, window_bounds = array<i64: 512, 256>}, {pipeline_mode = #tpu.pipeline_mode<synchronous>, transform_indices = @transform_10, window_bounds = array<i64: 1, 256>}, {pipeline_mode = #tpu.pipeline_mode<synchronous>, transform_indices = @transform_11, window_bounds = array<i64: 1, 256>}, {pipeline_mode = #tpu.pipeline_mode<synchronous>, transform_indices = @transform_12, window_bounds = array<i64: 1, 256>}, {pipeline_mode = #tpu.pipeline_mode<synchronous>, transform_indices = @transform_13, window_bounds = array<i64: 256, 128>}, {pipeline_mode = #tpu.pipeline_mode<synchronous>, transform_indices = @transform_14, window_bounds = array<i64: 1, 128>}, {pipeline_mode = #tpu.pipeline_mode<synchronous>, transform_indices = @transform_15, window_bounds = array<i64: 1, 128>}, {pipeline_mode = #tpu.pipeline_mode<synchronous>, transform_indices = @transform_16, window_bounds = array<i64: 1, 128>}, {pipeline_mode = #tpu.pipeline_mode<synchronous>, transform_indices = @transform_17, window_bounds = array<i64: 128, 128>}, {pipeline_mode = #tpu.pipeline_mode<synchronous>, transform_indices = @transform_18, window_bounds = array<i64: 1, 128>}, {pipeline_mode = #tpu.pipeline_mode<synchronous>, transform_indices = @transform_19, window_bounds = array<i64: 1, 128>}, {pipeline_mode = #tpu.pipeline_mode<synchronous>, transform_indices = @transform_20, window_bounds = array<i64: 1, 128>}, {pipeline_mode = #tpu.pipeline_mode<synchronous>, transform_indices = @transform_21, window_bounds = array<i64: 128, 128>}, {pipeline_mode = #tpu.pipeline_mode<synchronous>, transform_indices = @transform_22, window_bounds = array<i64: 1, 128>}, {transform_indices = @transform_23, window_bounds = array<i64: 128, 128>}]} {
    %c0 = arith.constant 0 : index
    %c0_0 = arith.constant 0 : index
    %0 = vector.load %arg1[%c0, %c0_0] : memref<128x32xf32, #tpu.memory_space<vmem>>, vector<128x32xf32>
    %1 = arith.truncf %0 : vector<128x32xf32> to vector<128x32xbf16>
    %c0_1 = arith.constant 0 : index
    %c0_2 = arith.constant 0 : index
    %2 = vector.load %arg2[%c0_1, %c0_2] : memref<32x1024xbf16, #tpu.memory_space<vmem>>, vector<32x1024xbf16>
    %cst = arith.constant dense<0.000000e+00> : vector<128x1024xf32>
    %3 = tpu.matmul %1, %2, %cst {dimension_numbers = #tpu.dot_dimension_numbers<[1], [0], [0], [1], [0, 0, 1, 1], [], []>} : vector<128x32xbf16>, vector<32x1024xbf16>, vector<128x1024xf32> -> vector<128x1024xf32>
    %c0_3 = arith.constant 0 : index
    %c0_4 = arith.constant 0 : index
    %4 = vector.load %arg3[%c0_3, %c0_4] : memref<1x1024xf32, #tpu.memory_space<vmem>>, vector<1x1024xf32>
    %5 = vector.broadcast %4 : vector<1x1024xf32> to vector<128x1024xf32>
    %6 = arith.addf %3, %5 : vector<128x1024xf32>
    %c0_5 = arith.constant 0 : index
    %c0_6 = arith.constant 0 : index
    %7 = vector.load %arg4[%c0_5, %c0_6] : memref<1x1024xf32, #tpu.memory_space<vmem>>, vector<1x1024xf32>
    %c0_7 = arith.constant 0 : index
    %c0_8 = arith.constant 0 : index
    %8 = vector.load %arg5[%c0_7, %c0_8] : memref<1x1024xf32, #tpu.memory_space<vmem>>, vector<1x1024xf32>
    %cst_9 = arith.constant dense<0.000000e+00> : vector<128xf32>
    %9 = vector.multi_reduction <add>, %6, %cst_9 [1] : vector<128x1024xf32> to vector<128xf32>
    %10 = vector.shape_cast %9 : vector<128xf32> to vector<128x1xf32>
    %cst_10 = arith.constant 1.000000e-03 : f32
    %11 = vector.broadcast %cst_10 : f32 to vector<128x1xf32>
    %12 = arith.mulf %10, %11 : vector<128x1xf32>
    %13 = vector.broadcast %12 : vector<128x1xf32> to vector<128x1024xf32>
    %14 = arith.subf %6, %13 : vector<128x1024xf32>
    %15 = arith.mulf %14, %14 : vector<128x1024xf32>
    %cst_11 = arith.constant dense<0.000000e+00> : vector<128xf32>
    %16 = vector.multi_reduction <add>, %15, %cst_11 [1] : vector<128x1024xf32> to vector<128xf32>
    %17 = vector.shape_cast %16 : vector<128xf32> to vector<128x1xf32>
    %18 = arith.mulf %12, %12 : vector<128x1xf32>
    %cst_12 = arith.constant 2.400000e+01 : f32
    %19 = vector.broadcast %cst_12 : f32 to vector<128x1xf32>
    %20 = arith.mulf %19, %18 : vector<128x1xf32>
    %21 = arith.subf %17, %20 : vector<128x1xf32>
    %cst_13 = arith.constant 1.000000e-03 : f32
    %22 = vector.broadcast %cst_13 : f32 to vector<128x1xf32>
    %23 = arith.mulf %21, %22 : vector<128x1xf32>
    %cst_14 = arith.constant 9.99999974E-6 : f32
    %24 = vector.broadcast %cst_14 : f32 to vector<128x1xf32>
    %25 = arith.addf %23, %24 : vector<128x1xf32>
    %26 = math.rsqrt %25 : vector<128x1xf32>
    %27 = vector.broadcast %26 : vector<128x1xf32> to vector<128x1024xf32>
    %28 = arith.mulf %14, %27 : vector<128x1024xf32>
    %29 = vector.broadcast %7 : vector<1x1024xf32> to vector<128x1024xf32>
    %30 = arith.mulf %28, %29 : vector<128x1024xf32>
    %31 = vector.broadcast %8 : vector<1x1024xf32> to vector<128x1024xf32>
    %32 = arith.addf %30, %31 : vector<128x1024xf32>
    %cst_15 = arith.constant 0.000000e+00 : f32
    %33 = vector.broadcast %cst_15 : f32 to vector<128x1024xf32>
    %34 = arith.maximumf %32, %33 : vector<128x1024xf32>
    %35 = arith.truncf %34 : vector<128x1024xf32> to vector<128x1024xbf16>
    %c0_16 = arith.constant 0 : index
    %c0_17 = arith.constant 0 : index
    %36 = vector.load %arg6[%c0_16, %c0_17] : memref<1024x512xbf16, #tpu.memory_space<vmem>>, vector<1024x512xbf16>
    %cst_18 = arith.constant dense<0.000000e+00> : vector<128x512xf32>
    %37 = tpu.matmul %35, %36, %cst_18 {dimension_numbers = #tpu.dot_dimension_numbers<[1], [0], [0], [1], [0, 0, 1, 1], [], []>} : vector<128x1024xbf16>, vector<1024x512xbf16>, vector<128x512xf32> -> vector<128x512xf32>
    %c0_19 = arith.constant 0 : index
    %c0_20 = arith.constant 0 : index
    %38 = vector.load %arg7[%c0_19, %c0_20] : memref<1x512xf32, #tpu.memory_space<vmem>>, vector<1x512xf32>
    %39 = vector.broadcast %38 : vector<1x512xf32> to vector<128x512xf32>
    %40 = arith.addf %37, %39 : vector<128x512xf32>
    %c0_21 = arith.constant 0 : index
    %c0_22 = arith.constant 0 : index
    %41 = vector.load %arg8[%c0_21, %c0_22] : memref<1x512xf32, #tpu.memory_space<vmem>>, vector<1x512xf32>
    %c0_23 = arith.constant 0 : index
    %c0_24 = arith.constant 0 : index
    %42 = vector.load %arg9[%c0_23, %c0_24] : memref<1x512xf32, #tpu.memory_space<vmem>>, vector<1x512xf32>
    %cst_25 = arith.constant dense<0.000000e+00> : vector<128xf32>
    %43 = vector.multi_reduction <add>, %40, %cst_25 [1] : vector<128x512xf32> to vector<128xf32>
    %44 = vector.shape_cast %43 : vector<128xf32> to vector<128x1xf32>
    %cst_26 = arith.constant 2.000000e-03 : f32
    %45 = vector.broadcast %cst_26 : f32 to vector<128x1xf32>
    %46 = arith.mulf %44, %45 : vector<128x1xf32>
    %47 = vector.broadcast %46 : vector<128x1xf32> to vector<128x512xf32>
    %48 = arith.subf %40, %47 : vector<128x512xf32>
    %49 = arith.mulf %48, %48 : vector<128x512xf32>
    %cst_27 = arith.constant dense<0.000000e+00> : vector<128xf32>
    %50 = vector.multi_reduction <add>, %49, %cst_27 [1] : vector<128x512xf32> to vector<128xf32>
    %51 = vector.shape_cast %50 : vector<128xf32> to vector<128x1xf32>
    %52 = arith.mulf %46, %46 : vector<128x1xf32>
    %cst_28 = arith.constant 1.200000e+01 : f32
    %53 = vector.broadcast %cst_28 : f32 to vector<128x1xf32>
    %54 = arith.mulf %53, %52 : vector<128x1xf32>
    %55 = arith.subf %51, %54 : vector<128x1xf32>
    %cst_29 = arith.constant 2.000000e-03 : f32
    %56 = vector.broadcast %cst_29 : f32 to vector<128x1xf32>
    %57 = arith.mulf %55, %56 : vector<128x1xf32>
    %cst_30 = arith.constant 9.99999974E-6 : f32
    %58 = vector.broadcast %cst_30 : f32 to vector<128x1xf32>
    %59 = arith.addf %57, %58 : vector<128x1xf32>
    %60 = math.rsqrt %59 : vector<128x1xf32>
    %61 = vector.broadcast %60 : vector<128x1xf32> to vector<128x512xf32>
    %62 = arith.mulf %48, %61 : vector<128x512xf32>
    %63 = vector.broadcast %41 : vector<1x512xf32> to vector<128x512xf32>
    %64 = arith.mulf %62, %63 : vector<128x512xf32>
    %65 = vector.broadcast %42 : vector<1x512xf32> to vector<128x512xf32>
    %66 = arith.addf %64, %65 : vector<128x512xf32>
    %cst_31 = arith.constant 0.000000e+00 : f32
    %67 = vector.broadcast %cst_31 : f32 to vector<128x512xf32>
    %68 = arith.maximumf %66, %67 : vector<128x512xf32>
    %69 = arith.truncf %68 : vector<128x512xf32> to vector<128x512xbf16>
    %c0_32 = arith.constant 0 : index
    %c0_33 = arith.constant 0 : index
    %70 = vector.load %arg10[%c0_32, %c0_33] : memref<512x256xbf16, #tpu.memory_space<vmem>>, vector<512x256xbf16>
    %cst_34 = arith.constant dense<0.000000e+00> : vector<128x256xf32>
    %71 = tpu.matmul %69, %70, %cst_34 {dimension_numbers = #tpu.dot_dimension_numbers<[1], [0], [0], [1], [0, 0, 1, 1], [], []>} : vector<128x512xbf16>, vector<512x256xbf16>, vector<128x256xf32> -> vector<128x256xf32>
    %c0_35 = arith.constant 0 : index
    %c0_36 = arith.constant 0 : index
    %72 = vector.load %arg11[%c0_35, %c0_36] : memref<1x256xf32, #tpu.memory_space<vmem>>, vector<1x256xf32>
    %73 = vector.broadcast %72 : vector<1x256xf32> to vector<128x256xf32>
    %74 = arith.addf %71, %73 : vector<128x256xf32>
    %c0_37 = arith.constant 0 : index
    %c0_38 = arith.constant 0 : index
    %75 = vector.load %arg12[%c0_37, %c0_38] : memref<1x256xf32, #tpu.memory_space<vmem>>, vector<1x256xf32>
    %c0_39 = arith.constant 0 : index
    %c0_40 = arith.constant 0 : index
    %76 = vector.load %arg13[%c0_39, %c0_40] : memref<1x256xf32, #tpu.memory_space<vmem>>, vector<1x256xf32>
    %cst_41 = arith.constant dense<0.000000e+00> : vector<128xf32>
    %77 = vector.multi_reduction <add>, %74, %cst_41 [1] : vector<128x256xf32> to vector<128xf32>
    %78 = vector.shape_cast %77 : vector<128xf32> to vector<128x1xf32>
    %cst_42 = arith.constant 4.000000e-03 : f32
    %79 = vector.broadcast %cst_42 : f32 to vector<128x1xf32>
    %80 = arith.mulf %78, %79 : vector<128x1xf32>
    %81 = vector.broadcast %80 : vector<128x1xf32> to vector<128x256xf32>
    %82 = arith.subf %74, %81 : vector<128x256xf32>
    %83 = arith.mulf %82, %82 : vector<128x256xf32>
    %cst_43 = arith.constant dense<0.000000e+00> : vector<128xf32>
    %84 = vector.multi_reduction <add>, %83, %cst_43 [1] : vector<128x256xf32> to vector<128xf32>
    %85 = vector.shape_cast %84 : vector<128xf32> to vector<128x1xf32>
    %86 = arith.mulf %80, %80 : vector<128x1xf32>
    %cst_44 = arith.constant 6.000000e+00 : f32
    %87 = vector.broadcast %cst_44 : f32 to vector<128x1xf32>
    %88 = arith.mulf %87, %86 : vector<128x1xf32>
    %89 = arith.subf %85, %88 : vector<128x1xf32>
    %cst_45 = arith.constant 4.000000e-03 : f32
    %90 = vector.broadcast %cst_45 : f32 to vector<128x1xf32>
    %91 = arith.mulf %89, %90 : vector<128x1xf32>
    %cst_46 = arith.constant 9.99999974E-6 : f32
    %92 = vector.broadcast %cst_46 : f32 to vector<128x1xf32>
    %93 = arith.addf %91, %92 : vector<128x1xf32>
    %94 = math.rsqrt %93 : vector<128x1xf32>
    %95 = vector.broadcast %94 : vector<128x1xf32> to vector<128x256xf32>
    %96 = arith.mulf %82, %95 : vector<128x256xf32>
    %97 = vector.broadcast %75 : vector<1x256xf32> to vector<128x256xf32>
    %98 = arith.mulf %96, %97 : vector<128x256xf32>
    %99 = vector.broadcast %76 : vector<1x256xf32> to vector<128x256xf32>
    %100 = arith.addf %98, %99 : vector<128x256xf32>
    %cst_47 = arith.constant 0.000000e+00 : f32
    %101 = vector.broadcast %cst_47 : f32 to vector<128x256xf32>
    %102 = arith.maximumf %100, %101 : vector<128x256xf32>
    %103 = arith.truncf %102 : vector<128x256xf32> to vector<128x256xbf16>
    %c0_48 = arith.constant 0 : index
    %c0_49 = arith.constant 0 : index
    %104 = vector.load %arg14[%c0_48, %c0_49] : memref<256x128xbf16, #tpu.memory_space<vmem>>, vector<256x128xbf16>
    %cst_50 = arith.constant dense<0.000000e+00> : vector<128x128xf32>
    %105 = tpu.matmul %103, %104, %cst_50 {dimension_numbers = #tpu.dot_dimension_numbers<[1], [0], [0], [1], [0, 0, 1, 1], [], []>} : vector<128x256xbf16>, vector<256x128xbf16>, vector<128x128xf32> -> vector<128x128xf32>
    %c0_51 = arith.constant 0 : index
    %c0_52 = arith.constant 0 : index
    %106 = vector.load %arg15[%c0_51, %c0_52] : memref<1x128xf32, #tpu.memory_space<vmem>>, vector<1x128xf32>
    %107 = vector.broadcast %106 : vector<1x128xf32> to vector<128x128xf32>
    %108 = arith.addf %105, %107 : vector<128x128xf32>
    %c0_53 = arith.constant 0 : index
    %c0_54 = arith.constant 0 : index
    %109 = vector.load %arg16[%c0_53, %c0_54] : memref<1x128xf32, #tpu.memory_space<vmem>>, vector<1x128xf32>
    %c0_55 = arith.constant 0 : index
    %c0_56 = arith.constant 0 : index
    %110 = vector.load %arg17[%c0_55, %c0_56] : memref<1x128xf32, #tpu.memory_space<vmem>>, vector<1x128xf32>
    %cst_57 = arith.constant dense<0.000000e+00> : vector<128xf32>
    %111 = vector.multi_reduction <add>, %108, %cst_57 [1] : vector<128x128xf32> to vector<128xf32>
    %112 = vector.shape_cast %111 : vector<128xf32> to vector<128x1xf32>
    %cst_58 = arith.constant 8.000000e-03 : f32
    %113 = vector.broadcast %cst_58 : f32 to vector<128x1xf32>
    %114 = arith.mulf %112, %113 : vector<128x1xf32>
    %115 = vector.broadcast %114 : vector<128x1xf32> to vector<128x128xf32>
    %116 = arith.subf %108, %115 : vector<128x128xf32>
    %117 = arith.mulf %116, %116 : vector<128x128xf32>
    %cst_59 = arith.constant dense<0.000000e+00> : vector<128xf32>
    %118 = vector.multi_reduction <add>, %117, %cst_59 [1] : vector<128x128xf32> to vector<128xf32>
    %119 = vector.shape_cast %118 : vector<128xf32> to vector<128x1xf32>
    %120 = arith.mulf %114, %114 : vector<128x1xf32>
    %cst_60 = arith.constant 3.000000e+00 : f32
    %121 = vector.broadcast %cst_60 : f32 to vector<128x1xf32>
    %122 = arith.mulf %121, %120 : vector<128x1xf32>
    %123 = arith.subf %119, %122 : vector<128x1xf32>
    %cst_61 = arith.constant 8.000000e-03 : f32
    %124 = vector.broadcast %cst_61 : f32 to vector<128x1xf32>
    %125 = arith.mulf %123, %124 : vector<128x1xf32>
    %cst_62 = arith.constant 9.99999974E-6 : f32
    %126 = vector.broadcast %cst_62 : f32 to vector<128x1xf32>
    %127 = arith.addf %125, %126 : vector<128x1xf32>
    %128 = math.rsqrt %127 : vector<128x1xf32>
    %129 = vector.broadcast %128 : vector<128x1xf32> to vector<128x128xf32>
    %130 = arith.mulf %116, %129 : vector<128x128xf32>
    %131 = vector.broadcast %109 : vector<1x128xf32> to vector<128x128xf32>
    %132 = arith.mulf %130, %131 : vector<128x128xf32>
    %133 = vector.broadcast %110 : vector<1x128xf32> to vector<128x128xf32>
    %134 = arith.addf %132, %133 : vector<128x128xf32>
    %cst_63 = arith.constant 0.000000e+00 : f32
    %135 = vector.broadcast %cst_63 : f32 to vector<128x128xf32>
    %136 = arith.maximumf %134, %135 : vector<128x128xf32>
    %137 = arith.truncf %136 : vector<128x128xf32> to vector<128x128xbf16>
    %c0_64 = arith.constant 0 : index
    %c0_65 = arith.constant 0 : index
    %138 = vector.load %arg18[%c0_64, %c0_65] : memref<128x128xbf16, #tpu.memory_space<vmem>>, vector<128x128xbf16>
    %cst_66 = arith.constant dense<0.000000e+00> : vector<128x128xf32>
    %139 = tpu.matmul %137, %138, %cst_66 {dimension_numbers = #tpu.dot_dimension_numbers<[1], [0], [0], [1], [0, 0, 1, 1], [], []>} : vector<128x128xbf16>, vector<128x128xbf16>, vector<128x128xf32> -> vector<128x128xf32>
    %c0_67 = arith.constant 0 : index
    %c0_68 = arith.constant 0 : index
    %140 = vector.load %arg19[%c0_67, %c0_68] : memref<1x128xf32, #tpu.memory_space<vmem>>, vector<1x128xf32>
    %141 = vector.broadcast %140 : vector<1x128xf32> to vector<128x128xf32>
    %142 = arith.addf %139, %141 : vector<128x128xf32>
    %c0_69 = arith.constant 0 : index
    %c0_70 = arith.constant 0 : index
    %143 = vector.load %arg20[%c0_69, %c0_70] : memref<1x128xf32, #tpu.memory_space<vmem>>, vector<1x128xf32>
    %c0_71 = arith.constant 0 : index
    %c0_72 = arith.constant 0 : index
    %144 = vector.load %arg21[%c0_71, %c0_72] : memref<1x128xf32, #tpu.memory_space<vmem>>, vector<1x128xf32>
    %cst_73 = arith.constant dense<0.000000e+00> : vector<128xf32>
    %145 = vector.multi_reduction <add>, %142, %cst_73 [1] : vector<128x128xf32> to vector<128xf32>
    %146 = vector.shape_cast %145 : vector<128xf32> to vector<128x1xf32>
    %cst_74 = arith.constant 1.562500e-02 : f32
    %147 = vector.broadcast %cst_74 : f32 to vector<128x1xf32>
    %148 = arith.mulf %146, %147 : vector<128x1xf32>
    %149 = vector.broadcast %148 : vector<128x1xf32> to vector<128x128xf32>
    %150 = arith.subf %142, %149 : vector<128x128xf32>
    %151 = arith.mulf %150, %150 : vector<128x128xf32>
    %cst_75 = arith.constant dense<0.000000e+00> : vector<128xf32>
    %152 = vector.multi_reduction <add>, %151, %cst_75 [1] : vector<128x128xf32> to vector<128xf32>
    %153 = vector.shape_cast %152 : vector<128xf32> to vector<128x1xf32>
    %154 = arith.mulf %148, %148 : vector<128x1xf32>
    %cst_76 = arith.constant 6.400000e+01 : f32
    %155 = vector.broadcast %cst_76 : f32 to vector<128x1xf32>
    %156 = arith.mulf %155, %154 : vector<128x1xf32>
    %157 = arith.subf %153, %156 : vector<128x1xf32>
    %cst_77 = arith.constant 1.562500e-02 : f32
    %158 = vector.broadcast %cst_77 : f32 to vector<128x1xf32>
    %159 = arith.mulf %157, %158 : vector<128x1xf32>
    %cst_78 = arith.constant 9.99999974E-6 : f32
    %160 = vector.broadcast %cst_78 : f32 to vector<128x1xf32>
    %161 = arith.addf %159, %160 : vector<128x1xf32>
    %162 = math.rsqrt %161 : vector<128x1xf32>
    %163 = vector.broadcast %162 : vector<128x1xf32> to vector<128x128xf32>
    %164 = arith.mulf %150, %163 : vector<128x128xf32>
    %165 = vector.broadcast %143 : vector<1x128xf32> to vector<128x128xf32>
    %166 = arith.mulf %164, %165 : vector<128x128xf32>
    %167 = vector.broadcast %144 : vector<1x128xf32> to vector<128x128xf32>
    %168 = arith.addf %166, %167 : vector<128x128xf32>
    %cst_79 = arith.constant 0.000000e+00 : f32
    %169 = vector.broadcast %cst_79 : f32 to vector<128x128xf32>
    %170 = arith.maximumf %168, %169 : vector<128x128xf32>
    %171 = arith.truncf %170 : vector<128x128xf32> to vector<128x128xbf16>
    %c0_80 = arith.constant 0 : index
    %c0_81 = arith.constant 0 : index
    %172 = vector.load %arg22[%c0_80, %c0_81] : memref<128x128xbf16, #tpu.memory_space<vmem>>, vector<128x128xbf16>
    %cst_82 = arith.constant dense<0.000000e+00> : vector<128x128xf32>
    %173 = tpu.matmul %171, %172, %cst_82 {dimension_numbers = #tpu.dot_dimension_numbers<[1], [0], [0], [1], [0, 0, 1, 1], [], []>} : vector<128x128xbf16>, vector<128x128xbf16>, vector<128x128xf32> -> vector<128x128xf32>
    %c0_83 = arith.constant 0 : index
    %c0_84 = arith.constant 0 : index
    %174 = vector.load %arg23[%c0_83, %c0_84] : memref<1x128xf32, #tpu.memory_space<vmem>>, vector<1x128xf32>
    %175 = vector.broadcast %174 : vector<1x128xf32> to vector<128x128xf32>
    %176 = arith.addf %173, %175 : vector<128x128xf32>
    %c0_85 = arith.constant 0 : index
    %c0_86 = arith.constant 0 : index
    %177 = vector.load %arg24[%c0_85, %c0_86] : memref<128x128xf32, #tpu.memory_space<vmem>>, vector<128x128xf32>
    tpu.vector_store %arg24[%c0_85, %c0_86], %176 {strides = array<i32>} : memref<128x128xf32, #tpu.memory_space<vmem>>, vector<128x128xf32>,
    return
  }
  func.func @transform_0(%arg0: i32) -> (i32, i32) {
    %c0_i32 = arith.constant 0 : i32
    %c0_i32_0 = arith.constant 0 : i32
    return %arg0, %c0_i32 : i32, i32
  }
  func.func @transform_1(%arg0: i32) -> (i32, i32) {
    %c0_i32 = arith.constant 0 : i32
    %c0_i32_0 = arith.constant 0 : i32
    %c0_i32_1 = arith.constant 0 : i32
    return %c0_i32, %c0_i32_0 : i32, i32
  }
  func.func @transform_2(%arg0: i32) -> (i32, i32) {
    %c0_i32 = arith.constant 0 : i32
    %c0_i32_0 = arith.constant 0 : i32
    %c0_i32_1 = arith.constant 0 : i32
    return %c0_i32, %c0_i32_0 : i32, i32
  }
  func.func @transform_3(%arg0: i32) -> (i32, i32) {
    %c0_i32 = arith.constant 0 : i32
    %c0_i32_0 = arith.constant 0 : i32
    %c0_i32_1 = arith.constant 0 : i32
    return %c0_i32, %c0_i32_0 : i32, i32
  }
  func.func @transform_4(%arg0: i32) -> (i32, i32) {
    %c0_i32 = arith.constant 0 : i32
    %c0_i32_0 = arith.constant 0 : i32
    %c0_i32_1 = arith.constant 0 : i32
    return %c0_i32, %c0_i32_0 : i32, i32
  }
  func.func @transform_5(%arg0: i32) -> (i32, i32) {
    %c0_i32 = arith.constant 0 : i32
    %c0_i32_0 = arith.constant 0 : i32
    %c0_i32_1 = arith.constant 0 : i32
    return %c0_i32, %c0_i32_0 : i32, i32
  }
  func.func @transform_6(%arg0: i32) -> (i32, i32) {
    %c0_i32 = arith.constant 0 : i32
    %c0_i32_0 = arith.constant 0 : i32
    %c0_i32_1 = arith.constant 0 : i32
    return %c0_i32, %c0_i32_0 : i32, i32
  }
  func.func @transform_7(%arg0: i32) -> (i32, i32) {
    %c0_i32 = arith.constant 0 : i32
    %c0_i32_0 = arith.constant 0 : i32
    %c0_i32_1 = arith.constant 0 : i32
    return %c0_i32, %c0_i32_0 : i32, i32
  }
  func.func @transform_8(%arg0: i32) -> (i32, i32) {
    %c0_i32 = arith.constant 0 : i32
    %c0_i32_0 = arith.constant 0 : i32
    %c0_i32_1 = arith.constant 0 : i32
    return %c0_i32, %c0_i32_0 : i32, i32
  }
  func.func @transform_9(%arg0: i32) -> (i32, i32) {
    %c0_i32 = arith.constant 0 : i32
    %c0_i32_0 = arith.constant 0 : i32
    %c0_i32_1 = arith.constant 0 : i32
    return %c0_i32, %c0_i32_0 : i32, i32
  }
  func.func @transform_10(%arg0: i32) -> (i32, i32) {
    %c0_i32 = arith.constant 0 : i32
    %c0_i32_0 = arith.constant 0 : i32
    %c0_i32_1 = arith.constant 0 : i32
    return %c0_i32, %c0_i32_0 : i32, i32
  }
  func.func @transform_11(%arg0: i32) -> (i32, i32) {
    %c0_i32 = arith.constant 0 : i32
    %c0_i32_0 = arith.constant 0 : i32
    %c0_i32_1 = arith.constant 0 : i32
    return %c0_i32, %c0_i32_0 : i32, i32
  }
  func.func @transform_12(%arg0: i32) -> (i32, i32) {
    %c0_i32 = arith.constant 0 : i32
    %c0_i32_0 = arith.constant 0 : i32
    %c0_i32_1 = arith.constant 0 : i32
    return %c0_i32, %c0_i32_0 : i32, i32
  }
  func.func @transform_13(%arg0: i32) -> (i32, i32) {
    %c0_i32 = arith.constant 0 : i32
    %c0_i32_0 = arith.constant 0 : i32
    %c0_i32_1 = arith.constant 0 : i32
    return %c0_i32, %c0_i32_0 : i32, i32
  }
  func.func @transform_14(%arg0: i32) -> (i32, i32) {
    %c0_i32 = arith.constant 0 : i32
    %c0_i32_0 = arith.constant 0 : i32
    %c0_i32_1 = arith.constant 0 : i32
    return %c0_i32, %c0_i32_0 : i32, i32
  }
  func.func @transform_15(%arg0: i32) -> (i32, i32) {
    %c0_i32 = arith.constant 0 : i32
    %c0_i32_0 = arith.constant 0 : i32
    %c0_i32_1 = arith.constant 0 : i32
    return %c0_i32, %c0_i32_0 : i32, i32
  }
  func.func @transform_16(%arg0: i32) -> (i32, i32) {
    %c0_i32 = arith.constant 0 : i32
    %c0_i32_0 = arith.constant 0 : i32
    %c0_i32_1 = arith.constant 0 : i32
    return %c0_i32, %c0_i32_0 : i32, i32
  }
  func.func @transform_17(%arg0: i32) -> (i32, i32) {
    %c0_i32 = arith.constant 0 : i32
    %c0_i32_0 = arith.constant 0 : i32
    %c0_i32_1 = arith.constant 0 : i32
    return %c0_i32, %c0_i32_0 : i32, i32
  }
  func.func @transform_18(%arg0: i32) -> (i32, i32) {
    %c0_i32 = arith.constant 0 : i32
    %c0_i32_0 = arith.constant 0 : i32
    %c0_i32_1 = arith.constant 0 : i32
    return %c0_i32, %c0_i32_0 : i32, i32
  }
  func.func @transform_19(%arg0: i32) -> (i32, i32) {
    %c0_i32 = arith.constant 0 : i32
    %c0_i32_0 = arith.constant 0 : i32
    %c0_i32_1 = arith.constant 0 : i32
    return %c0_i32, %c0_i32_0 : i32, i32
  }
  func.func @transform_20(%arg0: i32) -> (i32, i32) {
    %c0_i32 = arith.constant 0 : i32
    %c0_i32_0 = arith.constant 0 : i32
    %c0_i32_1 = arith.constant 0 : i32
    return %c0_i32, %c0_i32_0 : i32, i32
  }
  func.func @transform_21(%arg0: i32) -> (i32, i32) {
    %c0_i32 = arith.constant 0 : i32
    %c0_i32_0 = arith.constant 0 : i32
    %c0_i32_1 = arith.constant 0 : i32
    return %c0_i32, %c0_i32_0 : i32, i32
  }
  func.func @transform_22(%arg0: i32) -> (i32, i32) {
    %c0_i32 = arith.constant 0 : i32
    %c0_i32_0 = arith.constant 0 : i32
    %c0_i32_1 = arith.constant 0 : i32
    return %c0_i32, %c0_i32_0 : i32, i32
  }
  func.func @transform_23(%arg0: i32) -> (i32, i32) {
    %c0_i32 = arith.constant 0 : i32
    %c0_i32_0 = arith.constant 0 : i32
    return %arg0, %c0_i32 : i32, i32
  }
}

</mosaic_0001>

<bundles_post_ra>
// kernel: tpu_custom_call.1
= control target key start
LH: loop header
LB: loop body
LE: loop exit
PB: predicated region body
PF: predicated region fallthrough
CT: control target
= control target key end

     0   :  { %s15934_s0 = inlined_call_operand.vmem [shape: f32[256,32], index: 0, kind: input, shape index: {}]   ;;  %s15935_s1 = inlined_call_operand.vmem [shape: bf16[32,1024], index: 1, kind: input, shape index: {}]   ;;  %s15936_s2 = inlined_call_operand.hbm [shape: f32[1,1024], index: 2, kind: input, shape index: {}]   ;;  %s15937_s3 = inlined_call_operand.hbm [shape: f32[1,1024], index: 3, kind: input, shape index: {}]   ;;  %s15938_s4 = inlined_call_operand.hbm [shape: f32[1,1024], index: 4, kind: input, shape index: {}]   ;;  %s15939_s5 = inlined_call_operand.hbm [shape: bf16[1024,512], index: 5, kind: input, shape index: {}]   ;;  %s15940_s6 = inlined_call_operand.vmem [shape: f32[1,512], index: 6, kind: input, shape index: {}]   ;;  %s15941_s7 = inlined_call_operand.hbm [shape: f32[1,512], index: 7, kind: input, shape index: {}]   ;;  %s15942_s8 = inlined_call_operand.hbm [shape: f32[1,512], index: 8, kind: input, shape index: {}]   ;;  %s15943_s9 = inlined_call_operand.hbm [shape: bf16[512,256], index: 9, kind: input, shape index: {}]   ;;  %s15944_s10 = inlined_call_operand.hbm [shape: f32[1,256], index: 10, kind: input, shape index: {}]   ;;  %s15945_s11 = inlined_call_operand.hbm [shape: f32[1,256], index: 11, kind: input, shape index: {}]   ;;  %s15946_s12 = inlined_call_operand.hbm [shape: f32[1,256], index: 12, kind: input, shape index: {}]   ;;  %s15947_s13 = inlined_call_operand.vmem [shape: bf16[256,128], index: 13, kind: input, shape index: {}]   ;;  %s15948_s14 = inlined_call_operand.hbm [shape: f32[1,128], index: 14, kind: input, shape index: {}]   ;;  %s15949_s15 = inlined_call_operand.hbm [shape: f32[1,128], index: 15, kind: input, shape index: {}]   ;;  %s15950_s16 = inlined_call_operand.hbm [shape: f32[1,128], index: 16, kind: input, shape index: {}]   ;;  %s15951_s17 = inlined_call_operand.vmem [shape: bf16[128,128], index: 17, kind: input, shape index: {}]   ;;  %s15952_s18 = inlined_call_operand.hbm [shape: f32[1,128], index: 18, kind: input, shape index: {}]   ;;  %s15953_s19 = inlined_call_operand.hbm [shape: f32[1,128], index: 19, kind: input, shape index: {}]   ;;  %s15954_s20 = inlined_call_operand.vmem [shape: f32[1,128], index: 20, kind: input, shape index: {}]   ;;  %s15955_s21 = inlined_call_operand.vmem [shape: bf16[128,128], index: 21, kind: input, shape index: {}]   ;;  %s15956_s22 = inlined_call_operand.vmem [shape: f32[1,128], index: 22, kind: input, shape index: {}]   ;;  %s15957_s23 = inlined_call_operand.hbm [shape: f32[256,128], index: 23, kind: output, shape index: {}]  }
   0x1   :  { %16245 = sst [smem:[#allocation158_spill]] %s15934_s0 }
   0x2   :  { %16246 = sst [smem:[#allocation159_spill]] %s15935_s1 }
   0x3   :  { %16247 = sst [smem:[#allocation160_spill]] %s15936_s2 }
   0x4   :  { %16248 = sst [smem:[#allocation161_spill]] %s15937_s3 }
   0x5   :  { %16249 = sst [smem:[#allocation162_spill]] %s15938_s4 }
   0x6   :  { %16250 = sst [smem:[#allocation163_spill]] %s15939_s5 }
   0x7   :  { %16251 = sst [smem:[#allocation164_spill]] %s15940_s6 }
   0x8   :  { %16252 = sst [smem:[#allocation165_spill]] %s15941_s7 }
   0x9   :  { %16253 = sst [smem:[#allocation166_spill]] %s15942_s8 }
   0xa   :  { %16254 = sst [smem:[#allocation167_spill]] %s15944_s10 }
   0xb   :  { %16255 = sst [smem:[#allocation168_spill]] %s15946_s12 }
   0xc   :  { %16256 = sst [smem:[#allocation169_spill]] %s15949_s15 }
   0xd   :  { %16257 = sst [smem:[#allocation170_spill]] %s15954_s20 }
   0xe   :  { %16258 = sst [smem:[#allocation171_spill]] %s15956_s22 }
   0xf   :  { %16259 = sst [smem:[#allocation172_spill]] %s15957_s23 }
  0x10   :  { %28 = vsyncpa [#allocation3], 0 }
  0x11   :  { %29 = vsyncpa [#allocation6], 0 }
  0x12   :  { %30 = vsyncpa [#allocation9], 0 }
  0x13   :  { %31 = vsyncpa [#allocation12], 0 }
  0x14   :  { %32 = vsyncpa [#allocation15], 0 }
  0x15   :  { %33 = vsyncpa [#allocation18], 0 }
  0x16   :  { %34 = vsyncpa [#allocation21], 0 }
  0x17   :  { %35 = vsyncpa [#allocation24], 0 }
  0x18   :  { %36 = vsyncpa [#allocation4], 0 }
  0x19   :  { %38 = vsyncpa [#allocation4 + $0x1], 0  ;;  %s10969_s4 = smov 0   ;;  %s10971_s30 = smov 0  }
  0x1a   :  { %s10973_s24 = smov 0   ;;  %s10975_s25 = smov 0  }
  0x1b LB: > { %16260 = sst [smem:[#allocation36_spill]] %s10812_s4  ;;  %s10990_s5 = sadd.s32 4294967295, %s10824_s25   ;;  %s10824_s25 = sphi %s10975_s25, %s16848_s25   ;;  %s10820_s24 = sphi %s10973_s24, %s16851_s24   ;;  %s10816_s30 = sphi %s10971_s30, %s16850_s30   ;;  %s10812_s4 = sphi %s10969_s4, %s16849_s4  }
  0x1c   : > { %16261 = sst [smem:[#allocation37_spill]] %s10816_s30  ;;  %s8509_s1 = sadd.s32 4294967294, %s10824_s25  }
  0x1d   : > { %16262 = sst [smem:[#allocation38_spill]] %s10820_s24  ;;  %s10994_s26 = sadd.s32 1, %s10824_s25  }
  0x1e   : > { %16263 = sst [smem:[#allocation39_spill]] %s10824_s25  ;;  %s539_s2 = sadd.s32 1, %s10820_s24 }
  0x1f   : > { %16264 = sst [smem:[#allocation40_spill]] %s10994_s26  ;;  %s536_s6 = ssub.s32 %s10824_s25, %s10994_s26 }
  0x20   : > { %p549_p0 = scmp.ne.s32.totalorder %s10820_s24, %s10816_s30  ;;  %p537_p1 = scmp.eq.s32.totalorder %s536_s6, 0 }
  0x21   : > { %p550_p2 = scmp.eq.s32.totalorder %s10990_s5, 1  ;;  %p555_p3 = scmp.ne.s32.totalorder %s10816_s30, %s10812_s4 }
  0x22   : > { %p556_p4 = scmp.eq.s32.totalorder %s8509_s1, 1  ;;  %p8510_p7 = scmp.ge.s32.totalorder %s10824_s25, 1 }
  0x23   : > { %s11005_s27 = scalar_select %p537_p1, %s10820_s24, %s539_s2  }
  0x24   : > { %p11007_p5 = por %p550_p2, %p549_p0  ;;  %p11011_p6 = por %p556_p4, %p555_p3 }
  0x25   : > { %16265 = sst [smem:[#allocation41_spill]] %s11005_s27  ;;  %p563_p8 = scmp.lt.s32.totalorder %s10824_s25, 3 }
  0x26   : > { %s16266_s7 = scalar_select %p11007_p5, 1, 0 }
  0x27   : > { %s16268_s28 = scalar_select %p11011_p6, 1, 0 }
  0x28   : > { %16267 = sst [smem:[#allocation42_spill]] %s16266_s7  ;;  %p15973_p9 = scmp.eq.s32.totalorder %s10990_s5, 0 }
  0x29   : > { %16269 = sst [smem:[#allocation43_spill]] %s16268_s28  ;;  %p11018_p10 = pnand %p8510_p7, %p563_p8 }
  0x2a   : > { %s10826_s3 = smov [#allocation5]   ;;  %s10827_s1 = smov [#allocation8]  }
  0x2b   : > { %s16270_s29 = scalar_select %p11018_p10, 1, 0 }
  0x2c   : > { %s590_s0 = sshll.u32 %s10826_s3, 4  ;;  %p9501_p11 = pneg %p11018_p10  ;;  %s591_s0 = int_to_ptr.vmem [resolvable:$true] %s590_s0 }
  0x2d   : > { %s611_s2 = sshll.u32 %s10827_s1, 4  ;;  %s10828_s27 = smov [#allocation11]   ;;  %s11030_s2 = int_to_ptr.vmem [resolvable:$true] %s611_s2 }
  0x2e   : > { %p11026_p12 = pnand %p15973_p9, %p9501_p11  ;;  %s11032_s24 = sshll.u32 %s10828_s27, 4  ;;  %s640_s24 = int_to_ptr.vmem [resolvable:$true] %s11032_s24 }
  0x2f   : > { %s16272_s4 = sld [smem:[#allocation161_spill]] }
  0x30   : > { %p11042_p0 = pneg %p11026_p12 }
  0x35   : > { %s16273_s23 = smov %s16272_s4  ;;  %s10310_s3 = scalar_lea.hbm %s16272_s4, 128 }
  0x36   : > { %p10311_p13 = scmp.ne.s32.totalorder %s16273_s23, %s10310_s3  ;;  %p10317_p3 = scmp.lt.u32.totalorder %s10310_s3, %s16273_s23 }
  0x38   : > { %p10313_p1 = pnand %p11042_p0, %p10311_p13 }
  0x3a   : > { %p10314_p2 = pneg %p10313_p1 }
  0x3c   : > { %p10319_p4 = pnand %p10317_p3, %p10314_p2 }
  0x3e   : > { %10322 = shalt.err (!%p10319_p4)
}
  0x3f   : > { %s10323_s4 = scalar_lea.vmem %s591_s0, 128  ;;  %p10331_p9 = scmp.lt.s32.totalorder %s591_s0, %s591_s0 }
  0x40   : > { %p10324_p7 = scmp.ne.s32.totalorder %s591_s0, %s10323_s4  ;;  %p10332_p6 = scmp.lt.s32.totalorder %s10323_s4, %s10323_s4 }
  0x42   : > { %p10326_p8 = pnand %p10324_p7, %p11042_p0  ;;  %p10333_p5 = por %p10332_p6, %p10331_p9 }
  0x44   : > { %p10327_p11 = pneg %p10326_p8 }
  0x46   : > { %p10334_p10 = pnand %p10333_p5, %p10327_p11 }
  0x48   : > { %10337 = shalt.err (!%p10334_p10)
}
  0x49   : > { %9507 = dma.hbm_to_vmem [thread:$0]  (!%p11026_p12), %s16273_s23, 128, %s591_s0, [#allocation6]  }
  0x4a   : > { %s16275_s28 = sld [smem:[#allocation163_spill]] }
  0x50   : > { %s10338_s3 = scalar_lea.hbm %s16275_s28, 32768 }
  0x51   : > { %p10339_p13 = scmp.ne.s32.totalorder %s16275_s28, %s10338_s3  ;;  %p10345_p5 = scmp.lt.u32.totalorder %s10338_s3, %s16275_s28 }
  0x53   : > { %p10341_p1 = pnand %p10339_p13, %p11042_p0 }
  0x55   : > { %p10342_p6 = pneg %p10341_p1 }
  0x57   : > { %p10347_p9 = pnand %p10345_p5, %p10342_p6 }
  0x59   : > { %10350 = shalt.err (!%p10347_p9)
}
  0x5a   : > { %s10351_s0 = scalar_lea.vmem %s11030_s2, 32768  ;;  %p10359_p4 = scmp.lt.s32.totalorder %s11030_s2, %s11030_s2 }
  0x5b   : > { %p10352_p10 = scmp.ne.s32.totalorder %s11030_s2, %s10351_s0  ;;  %p10360_p7 = scmp.lt.s32.totalorder %s10351_s0, %s10351_s0 }
  0x5d   : > { %p10354_p2 = pnand %p10352_p10, %p11042_p0  ;;  %p10361_p8 = por %p10360_p7, %p10359_p4 }
  0x5f   : > { %p10355_p3 = pneg %p10354_p2 }
  0x61   : > { %p10362_p11 = pnand %p10361_p8, %p10355_p3 }
  0x63   : > { %10365 = shalt.err (!%p10362_p11)
}
  0x64   : > { %s10829_s30 = smov 256   ;;  %s10830_s20 = smov 16  }
  0x65   : > { %9513 = dma.hbm_to_vmem [thread:$0]  (!%p11026_p12), %s16275_s28, 32768, %s11030_s2, [#allocation9], %s10829_s30, %s10829_s30, %s10830_s20  }
  0x66   : > { %s16276_s8 = sld [smem:[#allocation166_spill]] }
  0x6c   : > { %s10366_s3 = scalar_lea.hbm %s16276_s8, 64 }
  0x6d   : > { %p10367_p13 = scmp.ne.s32.totalorder %s16276_s8, %s10366_s3  ;;  %p10373_p5 = scmp.lt.u32.totalorder %s10366_s3, %s16276_s8 }
  0x6f   : > { %p10369_p1 = pnand %p10367_p13, %p11042_p0 }
  0x71   : > { %p10370_p6 = pneg %p10369_p1 }
  0x73   : > { %p10375_p9 = pnand %p10373_p5, %p10370_p6 }
  0x75   : > { %10378 = shalt.err (!%p10375_p9)
}
  0x76   : > { %s10379_s25 = scalar_lea.vmem %s640_s24, 64  ;;  %p10387_p4 = scmp.lt.s32.totalorder %s640_s24, %s640_s24 }
  0x77   : > { %p10380_p10 = scmp.ne.s32.totalorder %s640_s24, %s10379_s25  ;;  %p10388_p7 = scmp.lt.s32.totalorder %s10379_s25, %s10379_s25 }
  0x79   : > { %p10382_p2 = pnand %p10380_p10, %p11042_p0  ;;  %p10389_p8 = por %p10388_p7, %p10387_p4 }
  0x7b   : > { %p10383_p3 = pneg %p10382_p2 }
  0x7d   : > { %p10390_p11 = pnand %p10389_p8, %p10383_p3 }
  0x7f   : > { %10393 = shalt.err (!%p10390_p11)
}
  0x80   : > { %9519 = dma.hbm_to_vmem [thread:$0]  (!%p11026_p12), %s16276_s8, 64, %s640_s24, [#allocation12]  }
  0x81   : > { %s10831_s23 = smov [#allocation14]   ;;  %s10832_s26 = smov [#allocation17]  }
  0x82   : > { %s663_s20 = sshll.u32 %s10831_s23, 4  ;;  %s685_s22 = sshll.u32 %s10832_s26, 4  ;;  %s664_s20 = int_to_ptr.vmem [resolvable:$true] %s663_s20  ;;  %s686_s22 = int_to_ptr.vmem [resolvable:$true] %s685_s22 }
  0x83   : > { %s16277_s10 = sld [smem:[#allocation167_spill]] }
  0x89   : > { %s10394_s27 = scalar_lea.hbm %s16277_s10, 32 }
  0x8a   : > { %p10395_p13 = scmp.ne.s32.totalorder %s16277_s10, %s10394_s27  ;;  %p10401_p5 = scmp.lt.u32.totalorder %s10394_s27, %s16277_s10 }
  0x8c   : > { %p10397_p1 = pnand %p10395_p13, %p11042_p0 }
  0x8e   : > { %p10398_p6 = pneg %p10397_p1 }
  0x90   : > { %p10403_p9 = pnand %p10401_p5, %p10398_p6 }
  0x92   : > { %10406 = shalt.err (!%p10403_p9)
}
  0x93   : > { %s10407_s24 = scalar_lea.vmem %s664_s20, 32  ;;  %p10415_p4 = scmp.lt.s32.totalorder %s664_s20, %s664_s20 }
  0x94   : > { %p10408_p10 = scmp.ne.s32.totalorder %s664_s20, %s10407_s24  ;;  %p10416_p7 = scmp.lt.s32.totalorder %s10407_s24, %s10407_s24 }
  0x96   : > { %p10410_p2 = pnand %p10408_p10, %p11042_p0  ;;  %p10417_p8 = por %p10416_p7, %p10415_p4 }
  0x98   : > { %p10411_p3 = pneg %p10410_p2 }
  0x9a   : > { %p10418_p11 = pnand %p10417_p8, %p10411_p3 }
  0x9c   : > { %10421 = shalt.err (!%p10418_p11)
}
  0x9d   : > { %9525 = dma.hbm_to_vmem [thread:$0]  (!%p11026_p12), %s16277_s10, 32, %s664_s20, [#allocation15]  }
  0x9e   : > { %s16278_s12 = sld [smem:[#allocation168_spill]] }
  0xa4   : > { %s10422_s3 = scalar_lea.hbm %s16278_s12, 32 }
  0xa5   : > { %p10423_p13 = scmp.ne.s32.totalorder %s16278_s12, %s10422_s3  ;;  %p10429_p5 = scmp.lt.u32.totalorder %s10422_s3, %s16278_s12 }
  0xa7   : > { %p10425_p1 = pnand %p10423_p13, %p11042_p0 }
  0xa9   : > { %p10426_p6 = pneg %p10425_p1 }
  0xab   : > { %p10431_p9 = pnand %p10429_p5, %p10426_p6 }
  0xad   : > { %10434 = shalt.err (!%p10431_p9)
}
  0xae   : > { %s10435_s2 = scalar_lea.vmem %s686_s22, 32  ;;  %p10443_p4 = scmp.lt.s32.totalorder %s686_s22, %s686_s22 }
  0xaf   : > { %p10436_p10 = scmp.ne.s32.totalorder %s686_s22, %s10435_s2  ;;  %p10444_p7 = scmp.lt.s32.totalorder %s10435_s2, %s10435_s2 }
  0xb1   : > { %p10438_p2 = pnand %p10436_p10, %p11042_p0  ;;  %p10445_p8 = por %p10444_p7, %p10443_p4 }
  0xb3   : > { %p10439_p3 = pneg %p10438_p2 }
  0xb5   : > { %p10446_p11 = pnand %p10445_p8, %p10439_p3 }
  0xb7   : > { %10449 = shalt.err (!%p10446_p11)
}
  0xb8   : > { %9531 = dma.hbm_to_vmem [thread:$0]  (!%p11026_p12), %s16278_s12, 32, %s686_s22, [#allocation18]  }
  0xb9   : > { %s10833_s30 = smov [#allocation20]   ;;  %s10834_s26 = smov [#allocation23]  }
  0xba   : > { %s710_s23 = sshll.u32 %s10833_s30, 4  ;;  %s735_s7 = sshll.u32 %s10834_s26, 4  ;;  %s711_s23 = int_to_ptr.vmem [resolvable:$true] %s710_s23  ;;  %s736_s7 = int_to_ptr.vmem [resolvable:$true] %s735_s7 }
  0xbb   : > { %s16279_s15 = sld [smem:[#allocation169_spill]] }
  0xc1   : > { %s10450_s4 = scalar_lea.hbm %s16279_s15, 16 }
  0xc2   : > { %p10451_p13 = scmp.ne.s32.totalorder %s16279_s15, %s10450_s4  ;;  %p10457_p5 = scmp.lt.u32.totalorder %s10450_s4, %s16279_s15 }
  0xc4   : > { %p10453_p1 = pnand %p10451_p13, %p11042_p0 }
  0xc6   : > { %p10454_p6 = pneg %p10453_p1 }
  0xc8   : > { %p10459_p9 = pnand %p10457_p5, %p10454_p6 }
  0xca   : > { %10462 = shalt.err (!%p10459_p9)
}
  0xcb   : > { %s10463_s22 = scalar_lea.vmem %s711_s23, 16  ;;  %s10470_s24 = scalar_lea.vmem %s711_s23, 32 }
  0xcc   : > { %p10464_p10 = scmp.ne.s32.totalorder %s711_s23, %s10463_s22  ;;  %p10471_p4 = scmp.lt.s32.totalorder %s711_s23, %s711_s23 }
  0xcd   : > { %p10472_p7 = scmp.lt.s32.totalorder %s10470_s24, %s10463_s22 }
  0xce   : > { %p10466_p2 = pnand %p10464_p10, %p11042_p0 }
  0xcf   : > { %p10473_p8 = por %p10472_p7, %p10471_p4 }
  0xd0   : > { %p10467_p3 = pneg %p10466_p2 }
  0xd2   : > { %p10474_p11 = pnand %p10473_p8, %p10467_p3 }
  0xd4   : > { %10477 = shalt.err (!%p10474_p11)
}
  0xd5   : > { %9537 = dma.hbm_to_vmem [thread:$0]  (!%p11026_p12), %s16279_s15, 16, %s711_s23, [#allocation21]  }
  0xd6   : > { %s10478_s4 = scalar_lea.hbm %s15952_s18, 16 }
  0xd7   : > { %p10479_p13 = scmp.ne.s32.totalorder %s15952_s18, %s10478_s4  ;;  %p10485_p5 = scmp.lt.u32.totalorder %s10478_s4, %s15952_s18 }
  0xd9   : > { %p10481_p1 = pnand %p10479_p13, %p11042_p0 }
  0xdb   : > { %p10482_p6 = pneg %p10481_p1 }
  0xdd   : > { %p10487_p9 = pnand %p10485_p5, %p10482_p6 }
  0xdf   : > { %10490 = shalt.err (!%p10487_p9)
}
  0xe0   : > { %s10491_s22 = scalar_lea.vmem %s736_s7, 16  ;;  %s10498_s23 = scalar_lea.vmem %s736_s7, 32 }
  0xe1   : > { %p10492_p10 = scmp.ne.s32.totalorder %s736_s7, %s10491_s22  ;;  %p10499_p4 = scmp.lt.s32.totalorder %s736_s7, %s736_s7 }
  0xe2   : > { %p10500_p7 = scmp.lt.s32.totalorder %s10498_s23, %s10491_s22 }
  0xe3   : > { %p10494_p2 = pnand %p10492_p10, %p11042_p0 }
  0xe4   : > { %p10501_p8 = por %p10500_p7, %p10499_p4 }
  0xe5   : > { %p10495_p3 = pneg %p10494_p2 }
  0xe7   : > { %p10502_p11 = pnand %p10501_p8, %p10495_p3 }
  0xe9   : > { %10505 = shalt.err (!%p10502_p11)
}
  0xea   : > { %9543 = dma.hbm_to_vmem [thread:$0]  (!%p11026_p12), %s15952_s18, 16, %s736_s7, [#allocation24]  }
  0xeb   : > { %s10835_s26 = smov [#allocation2]   ;;  %s10836_s27 = smov [#allocation7]  }
  0xec   : > { %s579_s3 = sshll.u32 %s10835_s26, 4  ;;  %s601_s4 = sshll.u32 %s10836_s27, 4  ;;  %s580_s3 = int_to_ptr.vmem [resolvable:$true] %s579_s3  ;;  %s602_s4 = int_to_ptr.vmem [resolvable:$true] %s601_s4 }
  0xed   : > { %s16280_s2 = sld [smem:[#allocation160_spill]] }
  0xf3   : > { %s10506_s20 = scalar_lea.hbm %s16280_s2, 128 }
  0xf4   : > { %p10507_p13 = scmp.ne.s32.totalorder %s16280_s2, %s10506_s20  ;;  %p10513_p5 = scmp.lt.u32.totalorder %s10506_s20, %s16280_s2 }
  0xf6   : > { %p10509_p1 = pnand %p10507_p13, %p11042_p0 }
  0xf8   : > { %p10510_p6 = pneg %p10509_p1 }
  0xfa   : > { %p10515_p9 = pnand %p10513_p5, %p10510_p6 }
  0xfc   : > { %10518 = shalt.err (!%p10515_p9)
}
  0xfd   : > { %s10519_s7 = scalar_lea.vmem %s580_s3, 128  ;;  %p10527_p4 = scmp.lt.s32.totalorder %s580_s3, %s580_s3 }
  0xfe   : > { %p10520_p10 = scmp.ne.s32.totalorder %s580_s3, %s10519_s7  ;;  %p10528_p7 = scmp.lt.s32.totalorder %s10519_s7, %s10519_s7 }
 0x100   : > { %p10522_p2 = pnand %p10520_p10, %p11042_p0  ;;  %p10529_p8 = por %p10528_p7, %p10527_p4 }
 0x102   : > { %p10523_p3 = pneg %p10522_p2 }
 0x104   : > { %p10530_p11 = pnand %p10529_p8, %p10523_p3 }
 0x106   : > { %10533 = shalt.err (!%p10530_p11)
}
 0x107   : > { %9504 = dma.hbm_to_vmem [thread:$0]  (!%p11026_p12), %s16280_s2, 128, %s580_s3, [#allocation3]  }
 0x108   : > { %s16281_s0 = sld [smem:[#allocation162_spill]] }
 0x10e   : > { %s10534_s25 = scalar_lea.hbm %s16281_s0, 128 }
 0x10f   : > { %p10535_p13 = scmp.ne.s32.totalorder %s16281_s0, %s10534_s25  ;;  %p10541_p5 = scmp.lt.u32.totalorder %s10534_s25, %s16281_s0 }
 0x111   : > { %p10537_p1 = pnand %p10535_p13, %p11042_p0 }
 0x113   : > { %p10538_p6 = pneg %p10537_p1 }
 0x115   : > { %p10543_p9 = pnand %p10541_p5, %p10538_p6 }
 0x117   : > { %10546 = shalt.err (!%p10543_p9)
}
 0x118   : > { %s10547_s7 = scalar_lea.vmem %s602_s4, 128  ;;  %p10555_p4 = scmp.lt.s32.totalorder %s602_s4, %s602_s4 }
 0x119   : > { %p10548_p10 = scmp.ne.s32.totalorder %s602_s4, %s10547_s7  ;;  %p10556_p7 = scmp.lt.s32.totalorder %s10547_s7, %s10547_s7 }
 0x11b   : > { %p10550_p2 = pnand %p10548_p10, %p11042_p0  ;;  %p10557_p8 = por %p10556_p7, %p10555_p4 }
 0x11d   : > { %p10551_p3 = pneg %p10550_p2 }
 0x11f   : > { %p10558_p11 = pnand %p10557_p8, %p10551_p3 }
 0x121   : > { %10561 = shalt.err (!%p10558_p11)
}
 0x122   : > { %9510 = dma.hbm_to_vmem [thread:$0]  (!%p11026_p12), %s16281_s0, 128, %s602_s4, [#allocation6]  }
 0x123   : > { %s10837_s26 = smov [#allocation10]   ;;  %s10838_s27 = smov [#allocation13]  }
 0x124   : > { %s628_s8 = sshll.u32 %s10837_s26, 4  ;;  %s649_s25 = sshll.u32 %s10838_s27, 4  ;;  %s629_s8 = int_to_ptr.vmem [resolvable:$true] %s628_s8  ;;  %s650_s25 = int_to_ptr.vmem [resolvable:$true] %s649_s25 }
 0x125   : > { %s16282_s23 = sld [smem:[#allocation165_spill]] }
 0x12b   : > { %s10562_s24 = scalar_lea.hbm %s16282_s23, 64 }
 0x12c   : > { %p10563_p13 = scmp.ne.s32.totalorder %s16282_s23, %s10562_s24  ;;  %p10569_p5 = scmp.lt.u32.totalorder %s10562_s24, %s16282_s23 }
 0x12e   : > { %p10565_p1 = pnand %p10563_p13, %p11042_p0 }
 0x130   : > { %p10566_p6 = pneg %p10565_p1 }
 0x132   : > { %p10571_p9 = pnand %p10569_p5, %p10566_p6 }
 0x134   : > { %10574 = shalt.err (!%p10571_p9)
}
 0x135   : > { %s10575_s4 = scalar_lea.vmem %s629_s8, 64  ;;  %p10583_p4 = scmp.lt.s32.totalorder %s629_s8, %s629_s8 }
 0x136   : > { %p10576_p10 = scmp.ne.s32.totalorder %s629_s8, %s10575_s4  ;;  %p10584_p7 = scmp.lt.s32.totalorder %s10575_s4, %s10575_s4 }
 0x138   : > { %p10578_p2 = pnand %p10576_p10, %p11042_p0  ;;  %p10585_p8 = por %p10584_p7, %p10583_p4 }
 0x13a   : > { %p10579_p3 = pneg %p10578_p2 }
 0x13c   : > { %p10586_p11 = pnand %p10585_p8, %p10579_p3 }
 0x13e   : > { %10589 = shalt.err (!%p10586_p11)
}
 0x13f   : > { %9516 = dma.hbm_to_vmem [thread:$0]  (!%p11026_p12), %s16282_s23, 64, %s629_s8, [#allocation9]  }
 0x140   : > { %s10590_s27 = scalar_lea.hbm %s15943_s9, 8192 }
 0x141   : > { %p10591_p13 = scmp.ne.s32.totalorder %s15943_s9, %s10590_s27  ;;  %p10597_p5 = scmp.lt.u32.totalorder %s10590_s27, %s15943_s9 }
 0x143   : > { %p10593_p1 = pnand %p10591_p13, %p11042_p0 }
 0x145   : > { %p10594_p6 = pneg %p10593_p1 }
 0x147   : > { %p10599_p9 = pnand %p10597_p5, %p10594_p6 }
 0x149   : > { %10602 = shalt.err (!%p10599_p9)
}
 0x14a   : > { %s10603_s3 = scalar_lea.vmem %s650_s25, 8192  ;;  %p10611_p4 = scmp.lt.s32.totalorder %s650_s25, %s650_s25 }
 0x14b   : > { %p10604_p10 = scmp.ne.s32.totalorder %s650_s25, %s10603_s3  ;;  %p10612_p7 = scmp.lt.s32.totalorder %s10603_s3, %s10603_s3 }
 0x14d   : > { %p10606_p2 = pnand %p10604_p10, %p11042_p0  ;;  %p10613_p8 = por %p10612_p7, %p10611_p4 }
 0x14f   : > { %p10607_p3 = pneg %p10606_p2 }
 0x151   : > { %p10614_p11 = pnand %p10613_p8, %p10607_p3 }
 0x153   : > { %10617 = shalt.err (!%p10614_p11)
}
 0x154   : > { %s10839_s8 = smov 128   ;;  %s10840_s4 = smov 8  }
 0x155   : > { %9522 = dma.hbm_to_vmem [thread:$0]  (!%p11026_p12), %s15943_s9, 8192, %s650_s25, [#allocation12], %s10839_s8, %s10839_s8, %s10840_s4  }
 0x156   : > { %s10841_s10 = smov [#allocation16]   ;;  %s10842_s27 = smov [#allocation19]  }
 0x157   : > { %s674_s26 = sshll.u32 %s10841_s10, 4  ;;  %s699_s20 = sshll.u32 %s10842_s27, 4  ;;  %s675_s26 = int_to_ptr.vmem [resolvable:$true] %s674_s26  ;;  %s700_s20 = int_to_ptr.vmem [resolvable:$true] %s699_s20 }
 0x158   : > { %s10618_s7 = scalar_lea.hbm %s15945_s11, 32 }
 0x159   : > { %p10619_p13 = scmp.ne.s32.totalorder %s15945_s11, %s10618_s7  ;;  %p10625_p5 = scmp.lt.u32.totalorder %s10618_s7, %s15945_s11 }
 0x15b   : > { %p10621_p1 = pnand %p10619_p13, %p11042_p0 }
 0x15d   : > { %p10622_p6 = pneg %p10621_p1 }
 0x15f   : > { %p10627_p9 = pnand %p10625_p5, %p10622_p6 }
 0x161   : > { %10630 = shalt.err (!%p10627_p9)
}
 0x162   : > { %s10631_s25 = scalar_lea.vmem %s675_s26, 32  ;;  %p10639_p4 = scmp.lt.s32.totalorder %s675_s26, %s675_s26 }
 0x163   : > { %p10632_p10 = scmp.ne.s32.totalorder %s675_s26, %s10631_s25  ;;  %p10640_p7 = scmp.lt.s32.totalorder %s10631_s25, %s10631_s25 }
 0x165   : > { %p10634_p2 = pnand %p10632_p10, %p11042_p0  ;;  %p10641_p8 = por %p10640_p7, %p10639_p4 }
 0x167   : > { %p10635_p3 = pneg %p10634_p2 }
 0x169   : > { %p10642_p11 = pnand %p10641_p8, %p10635_p3 }
 0x16b   : > { %10645 = shalt.err (!%p10642_p11)
}
 0x16c   : > { %9528 = dma.hbm_to_vmem [thread:$0]  (!%p11026_p12), %s15945_s11, 32, %s675_s26, [#allocation15]  }
 0x16d   : > { %s10646_s4 = scalar_lea.hbm %s15948_s14, 16 }
 0x16e   : > { %p10647_p13 = scmp.ne.s32.totalorder %s15948_s14, %s10646_s4  ;;  %p10653_p5 = scmp.lt.u32.totalorder %s10646_s4, %s15948_s14 }
 0x170   : > { %p10649_p1 = pnand %p10647_p13, %p11042_p0 }
 0x172   : > { %p10650_p6 = pneg %p10649_p1 }
 0x174   : > { %p10655_p9 = pnand %p10653_p5, %p10650_p6 }
 0x176   : > { %10658 = shalt.err (!%p10655_p9)
}
 0x177   : > { %s10659_s22 = scalar_lea.vmem %s700_s20, 16  ;;  %s10666_s26 = scalar_lea.vmem %s700_s20, 32 }
 0x178   : > { %p10660_p10 = scmp.ne.s32.totalorder %s700_s20, %s10659_s22  ;;  %p10667_p4 = scmp.lt.s32.totalorder %s700_s20, %s700_s20 }
 0x179   : > { %p10668_p7 = scmp.lt.s32.totalorder %s10666_s26, %s10659_s22 }
 0x17a   : > { %p10662_p2 = pnand %p10660_p10, %p11042_p0 }
 0x17b   : > { %p10669_p8 = por %p10668_p7, %p10667_p4 }
 0x17c   : > { %p10663_p3 = pneg %p10662_p2 }
 0x17e   : > { %p10670_p11 = pnand %p10669_p8, %p10663_p3 }
 0x180   : > { %10673 = shalt.err (!%p10670_p11)
}
 0x181   : > { %9534 = dma.hbm_to_vmem [thread:$0]  (!%p11026_p12), %s15948_s14, 16, %s700_s20, [#allocation18]  }
 0x182   : > { %s10843_s3 = smov [#allocation22]   ;;  %s10844_s0 = smov [#allocation25]  }
 0x183   : > { %s721_s25 = sshll.u32 %s10843_s3, 4  ;;  %s746_s8 = sshll.u32 %s10844_s0, 4  ;;  %s722_s25 = int_to_ptr.vmem [resolvable:$true] %s721_s25  ;;  %s747_s8 = int_to_ptr.vmem [resolvable:$true] %s746_s8 }
 0x184   : > { %s10674_s4 = scalar_lea.hbm %s15950_s16, 16 }
 0x185   : > { %p10675_p13 = scmp.ne.s32.totalorder %s15950_s16, %s10674_s4  ;;  %p10681_p5 = scmp.lt.u32.totalorder %s10674_s4, %s15950_s16 }
 0x187   : > { %p10677_p1 = pnand %p10675_p13, %p11042_p0 }
 0x189   : > { %p10678_p6 = pneg %p10677_p1 }
 0x18b   : > { %p10683_p9 = pnand %p10681_p5, %p10678_p6 }
 0x18d   : > { %10686 = shalt.err (!%p10683_p9)
}
 0x18e   : > { %s10687_s20 = scalar_lea.vmem %s722_s25, 16  ;;  %s10694_s22 = scalar_lea.vmem %s722_s25, 32 }
 0x18f   : > { %p10688_p10 = scmp.ne.s32.totalorder %s722_s25, %s10687_s20  ;;  %p10695_p4 = scmp.lt.s32.totalorder %s722_s25, %s722_s25 }
 0x190   : > { %p10696_p7 = scmp.lt.s32.totalorder %s10694_s22, %s10687_s20 }
 0x191   : > { %p10690_p2 = pnand %p10688_p10, %p11042_p0 }
 0x192   : > { %p10697_p8 = por %p10696_p7, %p10695_p4 }
 0x193   : > { %p10691_p3 = pneg %p10690_p2 }
 0x195   : > { %p10698_p11 = pnand %p10697_p8, %p10691_p3 }
 0x197   : > { %10701 = shalt.err (!%p10698_p11)
}
 0x198   : > { %9540 = dma.hbm_to_vmem [thread:$0]  (!%p11026_p12), %s15950_s16, 16, %s722_s25, [#allocation21]  }
 0x199   : > { %s10702_s0 = scalar_lea.hbm %s15953_s19, 16 }
 0x19a   : > { %p10703_p13 = scmp.ne.s32.totalorder %s15953_s19, %s10702_s0  ;;  %p10709_p5 = scmp.lt.u32.totalorder %s10702_s0, %s15953_s19 }
 0x19c   : > { %p10705_p1 = pnand %p10703_p13, %p11042_p0 }
 0x19e   : > { %p10706_p6 = pneg %p10705_p1 }
 0x1a0   : > { %p10711_p9 = pnand %p10709_p5, %p10706_p6 }
 0x1a2   : > { %10714 = shalt.err (!%p10711_p9)
}
 0x1a3   : > { %s10715_s30 = scalar_lea.vmem %s747_s8, 16  ;;  %s10722_s25 = scalar_lea.vmem %s747_s8, 32 }
 0x1a4   : > { %p10716_p10 = scmp.ne.s32.totalorder %s747_s8, %s10715_s30  ;;  %p10723_p4 = scmp.lt.s32.totalorder %s747_s8, %s747_s8 }
 0x1a5   : > { %p10724_p7 = scmp.lt.s32.totalorder %s10722_s25, %s10715_s30 }
 0x1a6   : > { %p10718_p2 = pnand %p10716_p10, %p11042_p0 }
 0x1a7   : > { %p10725_p8 = por %p10724_p7, %p10723_p4 }
 0x1a8   : > { %p10719_p3 = pneg %p10718_p2 }
 0x1aa   : > { %p10726_p11 = pnand %p10725_p8, %p10719_p3 }
 0x1ac   : > { %10729 = shalt.err (!%p10726_p11)
}
 0x1ad   : > { %9546 = dma.hbm_to_vmem [thread:$0]  (!%p11026_p12), %s15953_s19, 16, %s747_s8, [#allocation24]  }
 0x1ae   : > { %p16283_p13 = scmp.ne.s32.totalorder %s16270_s29, 0 }
 0x1b0   : > { %777 = sbr.rel (%p16283_p13) target bundleno = 3844 (0xf04), region = 112 }
 0x1b7   : > { %p16284_p1 = scmp.eq.s32.totalorder %s10990_s5, 0 }
 0x1b9   : > { %10775 = dma.done.wait (%p16284_p1), [#allocation3], 128   ;;  %p16285_p0 = pmov %p16284_p1 }
 0x1bb   : > { %10777 = vsyncadd (%p16285_p0), [#allocation3], 4294967168  ;;  %p16286_p6 = pmov %p16285_p0 }
 0x1bc   : > { %p16287_p5 = pmov %p16285_p0 }
 0x1bd   : > { %10779 = dma.done.wait (%p16286_p6), [#allocation6], 256  }
 0x1be   : > { %10781 = vsyncadd (%p16287_p5), [#allocation6], 4294967040  ;;  %p16288_p9 = pmov %p16285_p0 }
 0x1bf   : > { %p16289_p12 = pmov %p16285_p0 }
 0x1c0   : > { %10783 = dma.done.wait (%p16288_p9), [#allocation9], 32832  }
 0x1c1   : > { %10785 = vsyncadd (%p16289_p12), [#allocation9], 4294934464  ;;  %p16290_p10 = pmov %p16285_p0 }
 0x1c2   : > { %p16291_p2 = pmov %p16285_p0 }
 0x1c3   : > { %10787 = dma.done.wait (%p16290_p10), [#allocation12], 8256  }
 0x1c4   : > { %10789 = vsyncadd (%p16291_p2), [#allocation12], 4294959040  ;;  %p16292_p3 = pmov %p16285_p0 }
 0x1c5   : > { %p16293_p4 = pmov %p16285_p0 }
 0x1c6   : > { %10791 = dma.done.wait (%p16292_p3), [#allocation15], 64  }
 0x1c7   : > { %10793 = vsyncadd (%p16293_p4), [#allocation15], 4294967232  ;;  %p16294_p7 = pmov %p16285_p0 }
 0x1c8   : > { %p16295_p8 = pmov %p16285_p0 }
 0x1c9   : > { %10795 = dma.done.wait (%p16294_p7), [#allocation18], 48  }
 0x1ca   : > { %10797 = vsyncadd (%p16295_p8), [#allocation18], 4294967248  ;;  %p16296_p11 = pmov %p16285_p0 }
 0x1cb   : > { %p16297_p13 = pmov %p16285_p0 }
 0x1cc   : > { %10799 = dma.done.wait (%p16296_p11), [#allocation21], 32  }
 0x1cd   : > { %10801 = vsyncadd (%p16297_p13), [#allocation21], 4294967264  ;;  %p16298_p1 = pmov %p16285_p0 }
 0x1cf   : > { %10803 = dma.done.wait (%p16298_p1), [#allocation24], 32  }
 0x1d0   : > { %10805 = vsyncadd (%p16285_p0), [#allocation24], 4294967264  ;;  %s8544_s29 = sshll.u32 %s10990_s5, 4  ;;  %v10845_v0 = vmov 0   ;;  %s16299_s20 = sld [smem:[#allocation159_spill]]  ;;  %vm1067_vm0 = vcmask 261120  }
 0x1d1   : > { %1124 = vmatprep.mubr.bf16.mxu0 %v10845_v0  ;;  %p898_p6 = scmp.lt.s32.totalorder %s8544_s29, 31  ;;  %1237 = vmatprep.mubr.bf16.mxu1 %v10845_v0  ;;  %s16300_s12 = sld [smem:[#allocation158_spill]] }
 0x1d2   : > { %s16723_s22 = sld [smem:[#allocation164_spill]]  ;;  %s16840_s26 = sld [smem:[#allocation171_spill]] }
 0x1d3   : > { %s16853_s29 = smov (!%p898_p6, %s8544_s29), 31  ;;  %s8958_s7 = sshll.u32 %s10990_s5, 11 }
 0x1d4   : > { %s8545_s6 = sshll.u32 %s16853_s29, 3  ;;  %s16838_s29 = sld [smem:[#allocation170_spill]] }
 0x1d5   : > { %s16841_s0 = sld [smem:[#allocation42_spill]]  ;;  %s16842_s2 = sld [smem:[#allocation172_spill]] }
 0x1d6   : > { %v929_v1 = vld [vmem:[%s16299_s20] sm:$0xff]  ;;  %v930_v3 = vld [vmem:[%s16299_s20 + $0x8] sm:$0xff]  ;;  %v931_v16 = vld [vmem:[%s16299_s20 + $0x10] sm:$0xff]  ;;  %s10846_s10 = smov [#allocation26]  }
 0x1d7   : > { %v933_v2 = vld [vmem:[%s16299_s20 + $0x20] sm:$0xff]  ;;  %s11365_s15 = scalar_lea.vmem %s16300_s12, %s8545_s6  ;;  %v934_v6 = vld [vmem:[%s16299_s20 + $0x28] sm:$0xff]  ;;  %v935_v17 = vld [vmem:[%s16299_s20 + $0x30] sm:$0xff]  ;;  %s16839_s6 = sld [smem:[#allocation37_spill]] }
 0x1d8   : > { %v8547_v4 = vcombine.high %v929_v1, %v933_v2  ;;  %v8546_v5 = vcombine.low %v929_v1, %v933_v2  ;;  %v937_v7 = vld [vmem:[%s16299_s20 + $0x40] sm:$0xff]  ;;  %v8549_v9 = vcombine.high %v930_v3, %v934_v6  ;;  %v8548_v10 = vcombine.low %v930_v3, %v934_v6  ;;  %v938_v12 = vld [vmem:[%s16299_s20 + $0x48] sm:$0xff]  ;;  %v932_v20 = vld [vmem:[%s16299_s20 + $0x18] sm:$0xff]  ;;  %s10734_s27 = sshll.u32 %s10846_s10, 4  ;;  %s10735_s27 = int_to_ptr.vmem [resolvable:$false] %s10734_s27 }
 0x1d9   : > { %v941_v8 = vld [vmem:[%s16299_s20 + $0x60] sm:$0xff]  ;;  %v942_v13 = vld [vmem:[%s16299_s20 + $0x68] sm:$0xff]  ;;  %v936_v21 = vld [vmem:[%s16299_s20 + $0x38] sm:$0xff]  ;;  %v8551_v23 = vcombine.high %v931_v16, %v935_v17  ;;  %v8550_v28 = vcombine.low %v931_v16, %v935_v17 }
 0x1da   : > { %v8555_v11 = vcombine.high %v937_v7, %v941_v8  ;;  %1092 = vmatprep.subr.bf16.mxu0 %v8547_v4  ;;  %v8557_v14 = vcombine.high %v938_v12, %v942_v13  ;;  %v905_v15 = vld [vmem:[%s11365_s15] sm:$0xff]  ;;  %1205 = vmatprep.subr.bf16.mxu1 %v8549_v9  ;;  %v8554_v18 = vcombine.low %v937_v7, %v941_v8  ;;  %v906_v19 = vld [vmem:[%s11365_s15 + $0x8] sm:$0xff]  ;;  %v939_v26 = vld [vmem:[%s16299_s20 + $0x50] sm:$0xff] }
 0x1db   : > { %1093 = vmatpush1.bf16.msra.mxu0 %v8546_v5  ;;  %1206 = vmatpush1.bf16.msra.mxu1 %v8548_v10  ;;  %v8556_v22 = vcombine.low %v938_v12, %v942_v13  ;;  %v8553_v24 = vcombine.high %v932_v20, %v936_v21  ;;  %v11396_v25 = vpack.c.bf16 %v906_v19, %v905_v15  ;;  %v943_v27 = vld [vmem:[%s16299_s20 + $0x70] sm:$0xff]  ;;  %v940_v29 = vld [vmem:[%s16299_s20 + $0x58] sm:$0xff]  ;;  %v909_v39 = vld [vmem:[%s11365_s15 + $0x20] sm:$0xff]  ;;  %s15884_s30 = scalar_lea.hbm %s16842_s2, %s8958_s7  ;;  %p16843_p9 = scmp.ne.s32.totalorder %s16841_s0, 0 }
 0x1dc   : > { %1094 = vmatprep.subr.bf16.mxu0 %v8555_v11  ;;  %1207 = vmatprep.subr.bf16.mxu1 %v8557_v14  ;;  %v944_v30 = vld [vmem:[%s16299_s20 + $0x78] sm:$0xff]  ;;  %v8552_v31 = vcombine.low %v932_v20, %v936_v21  ;;  %v907_v32 = vld [vmem:[%s11365_s15 + $0x10] sm:$0xff]  ;;  %v8559_v34 = vcombine.high %v939_v26, %v943_v27  ;;  %v8558_v36 = vcombine.low %v939_v26, %v943_v27  ;;  %v910_v40 = vld [vmem:[%s11365_s15 + $0x28] sm:$0xff] }
 0x1dd   : > { %v908_v33 = vld [vmem:[%s11365_s15 + $0x18] sm:$0xff]  ;;  %v8561_v35 = vcombine.high %v940_v29, %v944_v30  ;;  %v8560_v37 = vcombine.low %v940_v29, %v944_v30  ;;  %v923_v41 = vpack.c.bf16 %v910_v40, %v909_v39  ;;  %v911_v42 = vld [vmem:[%s11365_s15 + $0x30] sm:$0xff]  ;;  %v913_v45 = vld [vmem:[%s11365_s15 + $0x40] sm:$0xff]  ;;  %s894_s1 = sand.u32 1, %s16839_s6  }
 0x1de   : > { %v922_v38 = vpack.c.bf16 %v908_v33, %v907_v32  ;;  %v912_v43 = vld [vmem:[%s11365_s15 + $0x38] sm:$0xff]  ;;  %v914_v46 = vld [vmem:[%s11365_s15 + $0x48] sm:$0xff]  ;;  %v915_v48 = vld [vmem:[%s11365_s15 + $0x50] sm:$0xff]  ;;  %v947_v33 = vlaneseq  ;;  %s15893_s5 = scalar_lea.sflag [#allocation4], %s894_s1 }
 0x1df   : > { %1095 = vmatpush1.bf16.msra.mxu0 %v8554_v18  ;;  %1208 = vmatpush1.bf16.msra.mxu1 %v8556_v22  ;;  %v924_v44 = vpack.c.bf16 %v912_v43, %v911_v42  ;;  %v925_v47 = vpack.c.bf16 %v914_v46, %v913_v45  ;;  %v916_v49 = vld [vmem:[%s11365_s15 + $0x58] sm:$0xff]  ;;  %v917_v51 = vld [vmem:[%s11365_s15 + $0x60] sm:$0xff]  ;;  %v918_v52 = vld [vmem:[%s11365_s15 + $0x68] sm:$0xff] }
 0x1e0   : > { %1318 = vmatprep.subr.bf16.mxu0 %v8551_v23  ;;  %1431 = vmatprep.subr.bf16.mxu1 %v8553_v24  ;;  %v926_v50 = vpack.c.bf16 %v916_v49, %v915_v48  ;;  %v927_v53 = vpack.c.bf16 %v918_v52, %v917_v51  ;;  %v919_v54 = vld [vmem:[%s11365_s15 + $0x70] sm:$0xff]  ;;  %v920_v55 = vld [vmem:[%s11365_s15 + $0x78] sm:$0xff]  ;;  %v945_v45 = vld [vmem:[#allocation2] sm:$0xff]  ;;  %s8543_s15 = sshll.u32 %s894_s1, 7 }
 0x1e1   : > { %v928_v56 = vpack.c.bf16 %v920_v55, %v919_v54  ;;  %s15864_s24 = scalar_lea.vmem [#allocation26], %s8543_s15 }
 0x1e2   : > { %8562 = vmatmul.mubr.msk.bf16.vlgmr.msra.gmra.mrb[0].mxu0 %vm1067_vm0, %v11396_v25  ;;  %8570 = vmatmul.mubr.msk.bf16.vlgmr.msra.gmra.mrb[0].mxu1 %vm1067_vm0, %v11396_v25  ;;  %s8302_s3 = sshll.u32 %s15864_s24, 4  ;;  %s15886_s3 = int_to_ptr.vmem [resolvable:$true] %s8302_s3 }
 0x1e3   : > { %1319 = vmatpush1.bf16.msra.mxu0 %v8550_v28  ;;  %1432 = vmatpush1.bf16.msra.mxu1 %v8552_v31  ;;  %s10730_s25 = scalar_lea.vmem %s15886_s3, 2048  ;;  %p10737_p2 = scmp.lt.s32.totalorder %s15886_s3, %s10735_s27 }
 0x1e4   : > { %1134 = vmatprep.mubr.bf16.mxu0 %v10845_v0  ;;  %1247 = vmatprep.mubr.bf16.mxu1 %v10845_v0  ;;  %p10731_p5 = scmp.ne.s32.totalorder %s15886_s3, %s10730_s25 }
 0x1e5   : > { %1320 = vmatprep.subr.bf16.mxu0 %v8559_v34  ;;  %1433 = vmatprep.subr.bf16.mxu1 %v8561_v35  ;;  %v948_v35 = vshrl.u32 %v947_v33, 7 }
 0x1e6   : > { %p10732_p12 = pnand %p10731_p5, %p16843_p9 }
 0x1e7   : > { %1321 = vmatpush1.bf16.msra.mxu0 %v8558_v36  ;;  %1434 = vmatpush1.bf16.msra.mxu1 %v8560_v37  ;;  %v11586_v43 = vsub.s32 0, %v948_v35  ;;  %v11590_v46 = vsub.s32 2, %v948_v35  ;;  %v11615_v33 = vsub.s32 3, %v948_v35 }
 0x1e8   : > { %p10733_p10 = pneg %p10732_p12 }
 0x1e9   : > { %16302 = vst [vmem:[#allocation45_spill] sm:$0xff] %v11586_v43  ;;  %16304 = vst [vmem:[#allocation47_spill] sm:$0xff] %v11590_v46  ;;  %v11595_v48 = vrot.slane %v945_v45, %v11586_v43 }
 0x1ea   : > { %8563 = vmatmul.mubr.msk.bf16.gmra.mrb[4].mxu0 %vm1067_vm0, %v922_v38  ;;  %8571 = vmatmul.mubr.msk.bf16.gmra.mrb[4].mxu1 %vm1067_vm0, %v922_v38  ;;  %16310 = vst [vmem:[#allocation53_spill] sm:$0xff] %v11615_v33 }
 0x1eb   : > { %1144 = vmatprep.mubr.bf16.mxu0 %v10845_v0  ;;  %1257 = vmatprep.mubr.bf16.mxu1 %v10845_v0 }
 0x1f2   : > { %8564 = vmatmul.mubr.msk.bf16.gmra.mrb[8].mxu0 %vm1067_vm0, %v923_v41  ;;  %8572 = vmatmul.mubr.msk.bf16.gmra.mrb[8].mxu1 %vm1067_vm0, %v923_v41 }
 0x1f3   : > { %1154 = vmatprep.mubr.bf16.mxu0 %v10845_v0  ;;  %1267 = vmatprep.mubr.bf16.mxu1 %v10845_v0 }
 0x1fa   : > { %8565 = vmatmul.mubr.msk.bf16.gmra.mrb[12].mxu0 %vm1067_vm0, %v924_v44  ;;  %8573 = vmatmul.mubr.msk.bf16.gmra.mrb[12].mxu1 %vm1067_vm0, %v924_v44 }
 0x1fb   : > { %1164 = vmatprep.mubr.bf16.mxu0 %v10845_v0  ;;  %1277 = vmatprep.mubr.bf16.mxu1 %v10845_v0 }
 0x202   : > { %8566 = vmatmul.mubr.msk.bf16.gmra.mrb[16].mxu0 %vm1067_vm0, %v925_v47  ;;  %8574 = vmatmul.mubr.msk.bf16.gmra.mrb[16].mxu1 %vm1067_vm0, %v925_v47 }
 0x203   : > { %1174 = vmatprep.mubr.bf16.mxu0 %v10845_v0  ;;  %1287 = vmatprep.mubr.bf16.mxu1 %v10845_v0 }
 0x20a   : > { %8567 = vmatmul.mubr.msk.bf16.gmra.mrb[20].mxu0 %vm1067_vm0, %v926_v50  ;;  %8575 = vmatmul.mubr.msk.bf16.gmra.mrb[20].mxu1 %vm1067_vm0, %v926_v50 }
 0x20b   : > { %1184 = vmatprep.mubr.bf16.mxu0 %v10845_v0  ;;  %1297 = vmatprep.mubr.bf16.mxu1 %v10845_v0 }
 0x212   : > { %8568 = vmatmul.mubr.msk.bf16.gmra.mrb[24].mxu0 %vm1067_vm0, %v927_v53  ;;  %8576 = vmatmul.mubr.msk.bf16.gmra.mrb[24].mxu1 %vm1067_vm0, %v927_v53 }
 0x213   : > { %1194 = vmatprep.mubr.bf16.mxu0 %v10845_v0  ;;  %1307 = vmatprep.mubr.bf16.mxu1 %v10845_v0 }
 0x21a   : > { %8569 = vmatmul.mubr.msk.bf16.gmra.mrb[28].mxu0 %vm1067_vm0, %v928_v56  ;;  %8577 = vmatmul.mubr.msk.bf16.gmra.mrb[28].mxu1 %vm1067_vm0, %v928_v56 }
 0x21b   : > { %1350 = vmatprep.mubr.bf16.mxu0 %v10845_v0  ;;  %1463 = vmatprep.mubr.bf16.mxu1 %v10845_v0 }
 0x222   : > { %8578 = vmatmul.mubr.msk.bf16.vlgmr.msra.gmra.mrb[32].mxu0 %vm1067_vm0, %v11396_v25  ;;  %8586 = vmatmul.mubr.msk.bf16.vlgmr.msra.gmra.mrb[32].mxu1 %vm1067_vm0, %v11396_v25 }
 0x223   : > { %1360 = vmatprep.mubr.bf16.mxu0 %v10845_v0  ;;  %1473 = vmatprep.mubr.bf16.mxu1 %v10845_v0 }
 0x22a   : > { %8579 = vmatmul.mubr.msk.bf16.gmra.mrb[36].mxu0 %vm1067_vm0, %v922_v38  ;;  %8587 = vmatmul.mubr.msk.bf16.gmra.mrb[36].mxu1 %vm1067_vm0, %v922_v38 }
 0x22b   : > { %1370 = vmatprep.mubr.bf16.mxu0 %v10845_v0  ;;  %1483 = vmatprep.mubr.bf16.mxu1 %v10845_v0 }
 0x232   : > { %8580 = vmatmul.mubr.msk.bf16.gmra.mrb[40].mxu0 %vm1067_vm0, %v923_v41  ;;  %8588 = vmatmul.mubr.msk.bf16.gmra.mrb[40].mxu1 %vm1067_vm0, %v923_v41 }
 0x233   : > { %1380 = vmatprep.mubr.bf16.mxu0 %v10845_v0  ;;  %1493 = vmatprep.mubr.bf16.mxu1 %v10845_v0 }
 0x23a   : > { %8581 = vmatmul.mubr.msk.bf16.gmra.mrb[44].mxu0 %vm1067_vm0, %v924_v44  ;;  %8589 = vmatmul.mubr.msk.bf16.gmra.mrb[44].mxu1 %vm1067_vm0, %v924_v44  ;;  %v11588_v44 = vsub.s32 1, %v948_v35 }
 0x23b   : > { %1390 = vmatprep.mubr.bf16.mxu0 %v10845_v0  ;;  %1503 = vmatprep.mubr.bf16.mxu1 %v10845_v0 }
 0x23c   : > { %16303 = vst [vmem:[#allocation46_spill] sm:$0xff] %v11588_v44  ;;  %v11598_v49 = vrot.slane %v945_v45, %v11588_v44 }
 0x242   : > { %8582 = vmatmul.mubr.msk.bf16.gmra.mrb[48].mxu0 %vm1067_vm0, %v925_v47  ;;  %8590 = vmatmul.mubr.msk.bf16.gmra.mrb[48].mxu1 %vm1067_vm0, %v925_v47 }
 0x243   : > { %1400 = vmatprep.mubr.bf16.mxu0 %v10845_v0  ;;  %1513 = vmatprep.mubr.bf16.mxu1 %v10845_v0 }
 0x24a   : > { %8583 = vmatmul.mubr.msk.bf16.gmra.mrb[52].mxu0 %vm1067_vm0, %v926_v50  ;;  %8591 = vmatmul.mubr.msk.bf16.gmra.mrb[52].mxu1 %vm1067_vm0, %v926_v50 }
 0x24b   : > { %1410 = vmatprep.mubr.bf16.mxu0 %v10845_v0  ;;  %1523 = vmatprep.mubr.bf16.mxu1 %v10845_v0 }
 0x252   : > { %8584 = vmatmul.mubr.msk.bf16.gmra.mrb[56].mxu0 %vm1067_vm0, %v927_v53  ;;  %8592 = vmatmul.mubr.msk.bf16.gmra.mrb[56].mxu1 %vm1067_vm0, %v927_v53 }
 0x253   : > { %1420 = vmatprep.mubr.bf16.mxu0 %v10845_v0  ;;  %1533 = vmatprep.mubr.bf16.mxu1 %v10845_v0 }
 0x25a   : > { %8585 = vmatmul.mubr.msk.bf16.gmra.mrb[60].mxu0 %vm1067_vm0, %v928_v56  ;;  %8593 = vmatmul.mubr.msk.bf16.gmra.mrb[60].mxu1 %vm1067_vm0, %v928_v56  ;;  %v11613_v56 = vrot.slane %v945_v45, %v11590_v46 }
 0x2b5   : > { %v11490_v57 = vpop.f32.mrb[0].mxu0  ;;  %v11494_v59 = vpop.f32.mrb[0].mxu1 }
 0x2b6   : > { %v11492_v58 = vpop.f32.mrb[1].mxu0  ;;  %v11498_v61 = vpop.f32.mrb[1].mxu1  ;;  %v11621_v44 = vadd.f32 %v11490_v57, %v11595_v48  ;;  %v11642_v57 = vsub.s32 5, %v948_v35 }
 0x2b7   : > { %v11496_v60 = vpop.f32.mrb[2].mxu0  ;;  %v11502_v63 = vpop.f32.mrb[2].mxu1 }
 0x2b8   : > { %v11500_v62 = vpop.f32.mrb[3].mxu0  ;;  %v11504_v1 = vpop.f32.mrb[3].mxu1  ;;  %16312 = vst [vmem:[#allocation55_spill] sm:$0xff] %v11621_v44  ;;  %16318 = vst [vmem:[#allocation61_spill] sm:$0xff] %v11642_v57 }
 0x2b9   : > { %v11633_v46 = vadd.f32 %v11500_v62, %v11598_v49 }
 0x2bb   : > { %16315 = vst [vmem:[#allocation58_spill] sm:$0xff] %v11633_v46 }
 0x2bd   : > { %v11506_v0 = vpop.f32.mrb[4].mxu0  ;;  %v11510_v3 = vpop.f32.mrb[4].mxu1 }
 0x2be   : > { %v11508_v2 = vpop.f32.mrb[5].mxu0  ;;  %v11514_v5 = vpop.f32.mrb[5].mxu1 }
 0x2bf   : > { %v11512_v4 = vpop.f32.mrb[6].mxu0  ;;  %v11518_v7 = vpop.f32.mrb[6].mxu1 }
 0x2c0   : > { %v11516_v6 = vpop.f32.mrb[7].mxu0  ;;  %v11520_v8 = vpop.f32.mrb[7].mxu1 }
 0x2c5   : > { %v11522_v9 = vpop.f32.mrb[8].mxu0  ;;  %v11526_v11 = vpop.f32.mrb[8].mxu1 }
 0x2c6   : > { %v11524_v10 = vpop.f32.mrb[9].mxu0  ;;  %v11530_v13 = vpop.f32.mrb[9].mxu1 }
 0x2c7   : > { %v11528_v12 = vpop.f32.mrb[10].mxu0  ;;  %v11534_v15 = vpop.f32.mrb[10].mxu1 }
 0x2c8   : > { %v11532_v14 = vpop.f32.mrb[11].mxu0  ;;  %v11536_v16 = vpop.f32.mrb[11].mxu1 }
 0x2cd   : > { %v11538_v17 = vpop.f32.mrb[12].mxu0  ;;  %v11542_v19 = vpop.f32.mrb[12].mxu1 }
 0x2ce   : > { %v11540_v18 = vpop.f32.mrb[13].mxu0  ;;  %v11546_v21 = vpop.f32.mrb[13].mxu1 }
 0x2cf   : > { %v11544_v20 = vpop.f32.mrb[14].mxu0  ;;  %v11550_v23 = vpop.f32.mrb[14].mxu1 }
 0x2d0   : > { %v11548_v22 = vpop.f32.mrb[15].mxu0  ;;  %v11552_v24 = vpop.f32.mrb[15].mxu1 }
 0x2d5   : > { %v11554_v25 = vpop.f32.mrb[16].mxu0  ;;  %v11558_v27 = vpop.f32.mrb[16].mxu1 }
 0x2d6   : > { %v11556_v26 = vpop.f32.mrb[17].mxu0  ;;  %v11562_v29 = vpop.f32.mrb[17].mxu1 }
 0x2d7   : > { %v11560_v28 = vpop.f32.mrb[18].mxu0  ;;  %v11566_v31 = vpop.f32.mrb[18].mxu1 }
 0x2d8   : > { %v11564_v30 = vpop.f32.mrb[19].mxu0  ;;  %v11568_v32 = vpop.f32.mrb[19].mxu1 }
 0x2dd   : > { %v11570_v34 = vpop.f32.mrb[20].mxu0  ;;  %v11574_v37 = vpop.f32.mrb[20].mxu1 }
 0x2de   : > { %v11572_v36 = vpop.f32.mrb[21].mxu0  ;;  %v11578_v39 = vpop.f32.mrb[21].mxu1 }
 0x2df   : > { %v11576_v38 = vpop.f32.mrb[22].mxu0  ;;  %v11582_v41 = vpop.f32.mrb[22].mxu1 }
 0x2e0   : > { %v11580_v40 = vpop.f32.mrb[23].mxu0  ;;  %v11584_v42 = vpop.f32.mrb[23].mxu1 }
 0x2e1   : > { %16301 = vst [vmem:[#allocation44_spill] sm:$0xff] %v11584_v42  ;;  %v11662_v42 = vadd.f32 %v11506_v0, %v11595_v48 }
 0x2e3   : > { %16323 = vst [vmem:[#allocation66_spill] sm:$0xff] %v11662_v42 }
 0x2e5   : > { %v11592_v47 = vpop.f32.mrb[24].mxu0  ;;  %v11602_v51 = vpop.f32.mrb[24].mxu1 }
 0x2e6   : > { %v11600_v50 = vpop.f32.mrb[25].mxu0  ;;  %16305 = vst [vmem:[#allocation48_spill] sm:$0xff] %v11602_v51  ;;  %v11606_v53 = vpop.f32.mrb[25].mxu1  ;;  %v11625_v51 = vadd.f32 %v11492_v58, %v11598_v49 }
 0x2e7   : > { %v11604_v52 = vpop.f32.mrb[26].mxu0  ;;  %16307 = vst [vmem:[#allocation50_spill] sm:$0xff] %v11606_v53  ;;  %v11610_v55 = vpop.f32.mrb[26].mxu1  ;;  %v11629_v53 = vadd.f32 %v11496_v60, %v11595_v48  ;;  %v11648_v60 = vadd.f32 %v11494_v59, %v11613_v56  ;;  %v11670_v59 = vadd.f32 %v11512_v4, %v11595_v48  ;;  %v11691_v4 = vsub.s32 7, %v948_v35 }
 0x2e8   : > { %16306 = vst [vmem:[#allocation49_spill] sm:$0xff] %v11604_v52  ;;  %v11608_v54 = vpop.f32.mrb[27].mxu0  ;;  %16309 = vst [vmem:[#allocation52_spill] sm:$0xff] %v11610_v55  ;;  %v11617_v43 = vpop.f32.mrb[27].mxu1  ;;  %v11636_v55 = vrot.slane %v945_v45, %v11615_v33  ;;  %v1546_v58 = vadd.f32 %v11625_v51, %v11621_v44  ;;  %v11654_v33 = vadd.f32 %v11502_v63, %v11613_v56 }
 0x2e9   : > { %16308 = vst [vmem:[#allocation51_spill] sm:$0xff] %v11608_v54  ;;  %16311 = vst [vmem:[#allocation54_spill] sm:$0xff] %v11617_v43  ;;  %v11640_v54 = vsub.s32 4, %v948_v35  ;;  %v1555_v62 = vadd.f32 %v11633_v46, %v11629_v53  ;;  %v11674_v63 = vadd.f32 %v11516_v6, %v11598_v49 }
 0x2ea   : > { %16313 = vst [vmem:[#allocation56_spill] sm:$0xff] %v11625_v51  ;;  %16314 = vst [vmem:[#allocation57_spill] sm:$0xff] %v11629_v53  ;;  %v11666_v51 = vadd.f32 %v11508_v2, %v11598_v49  ;;  %v1547_v6 = vadd.f32 %v1546_v58, %v11648_v60  ;;  %v11712_v58 = vadd.f32 %v11518_v7, %v11613_v56 }
 0x2eb   : > { %16317 = vst [vmem:[#allocation60_spill] sm:$0xff] %v11640_v54  ;;  %16319 = vst [vmem:[#allocation62_spill] sm:$0xff] %v11648_v60 }
 0x2ec   : > { %16320 = vst [vmem:[#allocation63_spill] sm:$0xff] %v11654_v33  ;;  %16324 = vst [vmem:[#allocation67_spill] sm:$0xff] %v11666_v51 }
 0x2ed   : > { %v11638_v43 = vpop.f32.mrb[28].mxu0  ;;  %16325 = vst [vmem:[#allocation68_spill] sm:$0xff] %v11670_v59  ;;  %16326 = vst [vmem:[#allocation69_spill] sm:$0xff] %v11674_v63 }
 0x2ee   : > { %16316 = vst [vmem:[#allocation59_spill] sm:$0xff] %v11638_v43  ;;  %v11656_v52 = vpop.f32.mrb[29].mxu0  ;;  %v11658_v43 = vpop.f32.mrb[28].mxu1  ;;  %16332 = vst [vmem:[#allocation75_spill] sm:$0xff] %v11691_v4 }
 0x2ef   : > { %16321 = vst [vmem:[#allocation64_spill] sm:$0xff] %v11656_v52  ;;  %16322 = vst [vmem:[#allocation65_spill] sm:$0xff] %v11658_v43  ;;  %v11676_v46 = vpop.f32.mrb[30].mxu0  ;;  %v11678_v53 = vpop.f32.mrb[29].mxu1  ;;  %v11684_v43 = vsub.s32 6, %v948_v35  ;;  %v11689_v52 = vrot.slane %v945_v45, %v11640_v54  ;;  %v11706_v54 = vadd.f32 %v11510_v3, %v11613_v56  ;;  %v1573_v35 = vadd.f32 %v11674_v63, %v11670_v59 }
 0x2f0   : > { %16327 = vst [vmem:[#allocation70_spill] sm:$0xff] %v11676_v46  ;;  %16328 = vst [vmem:[#allocation71_spill] sm:$0xff] %v11678_v53  ;;  %v11680_v44 = vpop.f32.mrb[31].mxu0  ;;  %v11682_v0 = vpop.f32.mrb[30].mxu1  ;;  %v11696_v46 = vadd.f32 %v11498_v61, %v11636_v55  ;;  %v1556_v53 = vadd.f32 %v1555_v62, %v11654_v33  ;;  %v11716_v61 = vadd.f32 %v11504_v1, %v11636_v55 }
 0x2f1   : > { %16329 = vst [vmem:[#allocation72_spill] sm:$0xff] %v11680_v44  ;;  %16330 = vst [vmem:[#allocation73_spill] sm:$0xff] %v11682_v0  ;;  %v11686_v2 = vpop.f32.mrb[31].mxu1  ;;  %v11700_v44 = vrot.slane %v945_v45, %v11642_v57  ;;  %v1564_v0 = vadd.f32 %v11666_v51, %v11662_v42  ;;  %v11719_v62 = vrot.slane %v945_v45, %v11684_v43 }
 0x2f2   : > { %16331 = vst [vmem:[#allocation74_spill] sm:$0xff] %v11684_v43  ;;  %16333 = vst [vmem:[#allocation76_spill] sm:$0xff] %v11696_v46  ;;  %v11722_v51 = vrot.slane %v945_v45, %v11691_v4  ;;  %v1548_v3 = vadd.f32 %v1547_v6, %v11696_v46  ;;  %v1557_v42 = vadd.f32 %v1556_v53, %v11716_v61 }
 0x2f3   : > { %16334 = vst [vmem:[#allocation77_spill] sm:$0xff] %v11706_v54  ;;  %16335 = vst [vmem:[#allocation78_spill] sm:$0xff] %v11712_v58  ;;  %v11728_v63 = vadd.f32 %v11514_v5, %v11636_v55  ;;  %v1565_v43 = vadd.f32 %v1564_v0, %v11706_v54  ;;  %v1574_v33 = vadd.f32 %v1573_v35, %v11712_v58 }
 0x2f4   : > { %16336 = vst [vmem:[#allocation79_spill] sm:$0xff] %v11716_v61  ;;  %v11737_v45 = vadd.f32 %v11520_v8, %v11636_v55  ;;  %v11744_v5 = vadd.f32 %v11522_v9, %v11595_v48  ;;  %v11759_v58 = vadd.f32 %v11528_v12, %v11595_v48  ;;  %v11763_v9 = vadd.f32 %v11532_v14, %v11598_v49 }
 0x2f5   : > { %v1352_v57 = vpop.f32.mrb[32].mxu0  ;;  %16337 = vst [vmem:[#allocation80_spill] sm:$0xff] %v11728_v63  ;;  %v1465_v59 = vpop.f32.mrb[32].mxu1 }
 0x2f6   : > { %v11731_v7 = vadd.f32 %v1352_v57, %v11689_v52  ;;  %v1354_v1 = vpop.f32.mrb[33].mxu0  ;;  %16339 = vst [vmem:[#allocation82_spill] sm:$0xff] %v11737_v45  ;;  %v1467_v4 = vpop.f32.mrb[33].mxu1  ;;  %16340 = vst [vmem:[#allocation83_spill] sm:$0xff] %v11744_v5  ;;  %v11751_v0 = vadd.f32 %v1465_v59, %v11719_v62 }
 0x2f7   : > { %v11740_v6 = vadd.f32 %v1354_v1, %v11700_v44  ;;  %v1356_v53 = vpop.f32.mrb[34].mxu0  ;;  %v1469_v8 = vpop.f32.mrb[34].mxu1  ;;  %v11755_v1 = vadd.f32 %v11524_v10, %v11598_v49  ;;  %16342 = vst [vmem:[#allocation85_spill] sm:$0xff] %v11759_v58  ;;  %16343 = vst [vmem:[#allocation86_spill] sm:$0xff] %v11763_v9  ;;  %v1575_v10 = vadd.f32 %v1574_v33, %v11737_v45 }
 0x2f8   : > { %16338 = vst [vmem:[#allocation81_spill] sm:$0xff] %v11731_v7  ;;  %v1549_v57 = vadd.f32 %v1548_v3, %v11731_v7  ;;  %v11748_v61 = vadd.f32 %v1356_v53, %v11689_v52  ;;  %v1358_v35 = vpop.f32.mrb[35].mxu0  ;;  %v1471_v53 = vpop.f32.mrb[35].mxu1  ;;  %v1566_v7 = vadd.f32 %v1565_v43, %v11728_v63  ;;  %v11774_v12 = vadd.f32 %v1467_v4, %v11722_v51 }
 0x2f9   : > { %16341 = vst [vmem:[#allocation84_spill] sm:$0xff] %v11755_v1  ;;  %v11766_v3 = vadd.f32 %v1358_v35, %v11700_v44  ;;  %v11777_v14 = vadd.f32 %v1469_v8, %v11719_v62  ;;  %v1582_v60 = vadd.f32 %v11755_v1, %v11744_v5  ;;  %v1591_v43 = vadd.f32 %v11763_v9, %v11759_v58 }
 0x2fa   : > { %v1550_v59 = vadd.f32 %v1549_v57, %v11740_v6  ;;  %v1558_v54 = vadd.f32 %v1557_v42, %v11748_v61  ;;  %v11784_v42 = vadd.f32 %v11526_v11, %v11613_v56  ;;  %v11794_v4 = vadd.f32 %v11538_v17, %v11595_v48 }
 0x2fb   : > { %16344 = vst [vmem:[#allocation87_spill] sm:$0xff] %v11777_v14  ;;  %v11803_v9 = vadd.f32 %v11540_v18, %v11598_v49  ;;  %v11811_v17 = vadd.f32 %v11548_v22, %v11598_v49  ;;  %v11817_v5 = vadd.f32 %v1471_v53, %v11722_v51 }
 0x2fc   : > { %v1559_v46 = vadd.f32 %v1558_v54, %v11766_v3  ;;  %v1551_v35 = vadd.f32 %v1550_v59, %v11751_v0  ;;  %v11790_v54 = vadd.f32 %v11534_v15, %v11613_v56  ;;  %16346 = vst [vmem:[#allocation89_spill] sm:$0xff] %v11794_v4  ;;  %v11807_v15 = vadd.f32 %v11544_v20, %v11595_v48 }
 0x2fd   : > { %v1362_v33 = vpop.f32.mrb[36].mxu0  ;;  %v1475_v11 = vpop.f32.mrb[36].mxu1  ;;  %16347 = vst [vmem:[#allocation90_spill] sm:$0xff] %v11803_v9  ;;  %16349 = vst [vmem:[#allocation92_spill] sm:$0xff] %v11811_v17  ;;  %v1583_v63 = vadd.f32 %v1582_v60, %v11784_v42 }
 0x2fe   : > { %16345 = vst [vmem:[#allocation88_spill] sm:$0xff] %v11790_v54  ;;  %v1560_v57 = vadd.f32 %v1559_v46, %v11777_v14  ;;  %v11798_v8 = vadd.f32 %v1362_v33, %v11689_v52  ;;  %v1364_v59 = vpop.f32.mrb[37].mxu0  ;;  %v1552_v1 = vadd.f32 %v1551_v35, %v11774_v12  ;;  %16348 = vst [vmem:[#allocation91_spill] sm:$0xff] %v11807_v15  ;;  %v1477_v58 = vpop.f32.mrb[37].mxu1 }
 0x2ff   : > { %v11814_v46 = vadd.f32 %v1364_v59, %v11700_v44  ;;  %v1366_v33 = vpop.f32.mrb[38].mxu0  ;;  %v11824_v20 = vadd.f32 %v1475_v11, %v11719_v62  ;;  %v1479_v22 = vpop.f32.mrb[38].mxu1  ;;  %v11829_v59 = vadd.f32 %v11530_v13, %v11636_v55  ;;  %v1592_v53 = vadd.f32 %v1591_v43, %v11790_v54 }
 0x300   : > { %v1567_v35 = vadd.f32 %v1566_v7, %v11798_v8  ;;  %v11821_v18 = vadd.f32 %v1366_v33, %v11689_v52  ;;  %v1368_v45 = vpop.f32.mrb[39].mxu0  ;;  %1553 = vadd.xlane.f32.xlu0 %v1552_v1  ;;  %v1481_v7 = vpop.f32.mrb[39].mxu1  ;;  %v11837_v33 = vadd.f32 %v11536_v16, %v11636_v55  ;;  %v1561_v60 = vadd.f32 %v1560_v57, %v11817_v5 }
 0x301   : > { %v11833_v14 = vadd.f32 %v1368_v45, %v11700_v44  ;;  %v1600_v13 = vadd.f32 %v11803_v9, %v11794_v4  ;;  %v11846_v43 = vadd.f32 %v11542_v19, %v11613_v56  ;;  %v1609_v45 = vadd.f32 %v11811_v17, %v11807_v15 }
 0x302   : > { %16350 = vst [vmem:[#allocation93_spill] sm:$0xff] %v11837_v33  ;;  %v1568_v11 = vadd.f32 %v1567_v35, %v11814_v46  ;;  %v1576_v1 = vadd.f32 %v1575_v10, %v11821_v18  ;;  %v11852_v16 = vadd.f32 %v11550_v23, %v11613_v56  ;;  %v11856_v10 = vadd.f32 %v1477_v58, %v11722_v51 }
 0x303   : > { %16351 = vst [vmem:[#allocation94_spill] sm:$0xff] %v11846_v43  ;;  %v11859_v57 = vadd.f32 %v1479_v22, %v11719_v62  ;;  %v1584_v19 = vadd.f32 %v1583_v63, %v11829_v59  ;;  %v1593_v4 = vadd.f32 %v1592_v53, %v11837_v33  ;;  %v11866_v23 = vadd.f32 %v11546_v21, %v11636_v55 }
 0x304   : > { %16352 = vst [vmem:[#allocation95_spill] sm:$0xff] %v11852_v16  ;;  %v1577_v35 = vadd.f32 %v1576_v1, %v11833_v14  ;;  %1562 = vadd.xlane.f32.xlu0 %v1561_v60  ;;  %v1569_v9 = vadd.f32 %v1568_v11, %v11824_v20  ;;  %v1601_v11 = vadd.f32 %v1600_v13, %v11846_v43 }
 0x305   : > { %v1372_v17 = vpop.f32.mrb[40].mxu0  ;;  %16353 = vst [vmem:[#allocation96_spill] sm:$0xff] %v11866_v23  ;;  %v1485_v60 = vpop.f32.mrb[40].mxu1  ;;  %v1610_v63 = vadd.f32 %v1609_v45, %v11852_v16  ;;  %v11877_v53 = vadd.f32 %v11552_v24, %v11636_v55  ;;  %v11898_v16 = vadd.f32 %v11556_v26, %v11598_v49  ;;  %v11914_v26 = vadd.f32 %v11560_v28, %v11595_v48 }
 0x306   : > { %v1578_v1 = vadd.f32 %v1577_v35, %v11859_v57  ;;  %v11870_v58 = vadd.f32 %v1372_v17, %v11689_v52  ;;  %v1374_v15 = vpop.f32.mrb[41].mxu0  ;;  %v1570_v22 = vadd.f32 %v1569_v9, %v11856_v10  ;;  %v1487_v35 = vpop.f32.mrb[41].mxu1  ;;  %v11883_v17 = vadd.f32 %v1481_v7, %v11722_v51 }
 0x307   : > { %16355 = vst [vmem:[#allocation98_spill] sm:$0xff] %v11877_v53  ;;  %v11880_v21 = vadd.f32 %v1374_v15, %v11700_v44  ;;  %v1376_v33 = vpop.f32.mrb[42].mxu0  ;;  %v11890_v45 = vadd.f32 %v1485_v60, %v11719_v62  ;;  %v1489_v24 = vpop.f32.mrb[42].mxu1  ;;  %v11894_v15 = vadd.f32 %v11554_v25, %v11595_v48  ;;  %16357 = vst [vmem:[#allocation100_spill] sm:$0xff] %v11898_v16 }
 0x308   : > { %16354 = vst [vmem:[#allocation97_spill] sm:$0xff] %v11870_v58  ;;  %v1585_v54 = vadd.f32 %v1584_v19, %v11870_v58  ;;  %v11887_v9 = vadd.f32 %v1376_v33, %v11689_v52  ;;  %v1378_v13 = vpop.f32.mrb[43].mxu0  ;;  %1571 = vadd.xlane.f32.xlu1 %v1570_v22  ;;  %v11904_v33 = vadd.f32 %v1487_v35, %v11722_v51  ;;  %v1491_v19 = vpop.f32.mrb[43].mxu1  ;;  %16358 = vst [vmem:[#allocation101_spill] sm:$0xff] %v11914_v26 }
 0x309   : > { %16356 = vst [vmem:[#allocation99_spill] sm:$0xff] %v11894_v15  ;;  %v11901_v7 = vadd.f32 %v1378_v13, %v11700_v44  ;;  %v11909_v43 = vadd.f32 %v1489_v24, %v11719_v62  ;;  %v1579_v25 = vadd.f32 %v1578_v1, %v11883_v17  ;;  %v11918_v13 = vadd.f32 %v11564_v30, %v11598_v49 }
 0x30a   : > { %v1586_v22 = vadd.f32 %v1585_v54, %v11880_v21  ;;  %v1594_v60 = vadd.f32 %v1593_v4, %v11887_v9  ;;  %v1602_v35 = vadd.f32 %v1601_v11, %v11866_v23  ;;  %v1611_v58 = vadd.f32 %v1610_v63, %v11877_v53 }
 0x30b   : > { %16359 = vst [vmem:[#allocation102_spill] sm:$0xff] %v11918_v13  ;;  %v1618_v1 = vadd.f32 %v11898_v16, %v11894_v15  ;;  %v11928_v28 = vadd.f32 %v11558_v27, %v11613_v56  ;;  %v11932_v30 = vadd.f32 %v11562_v29, %v11636_v55  ;;  %v11936_v11 = vadd.f32 %v11566_v31, %v11613_v56 }
 0x30c   : > { %v1595_v54 = vadd.f32 %v1594_v60, %v11901_v7  ;;  %v1587_v4 = vadd.f32 %v1586_v22, %v11890_v45  ;;  %1580 = vadd.xlane.f32.xlu1 %v1579_v25  ;;  %v11940_v22 = vadd.f32 %v1491_v19, %v11722_v51  ;;  %v1627_v29 = vadd.f32 %v11918_v13, %v11914_v26 }
 0x30d   : > { %16360 = vst [vmem:[#allocation103_spill] sm:$0xff] %v11932_v30  ;;  %16361 = vst [vmem:[#allocation104_spill] sm:$0xff] %v11936_v11  ;;  %v1382_v63 = vpop.f32.mrb[44].mxu0  ;;  %v1495_v16 = vpop.f32.mrb[44].mxu1  ;;  %v11950_v31 = vadd.f32 %v11570_v34, %v11595_v48 }
 0x30e   : > { %v1596_v24 = vadd.f32 %v1595_v54, %v11909_v43  ;;  %v11943_v60 = vadd.f32 %v1382_v63, %v11689_v52  ;;  %v1384_v25 = vpop.f32.mrb[45].mxu0  ;;  %v1588_v27 = vadd.f32 %v1587_v4, %v11904_v33  ;;  %v11954_v54 = vadd.f32 %v11572_v36, %v11598_v49  ;;  %v1497_v15 = vpop.f32.mrb[45].mxu1 }
 0x30f   : > { %16363 = vst [vmem:[#allocation106_spill] sm:$0xff] %v11950_v31  ;;  %v11957_v19 = vadd.f32 %v1384_v25, %v11700_v44  ;;  %v1386_v63 = vpop.f32.mrb[46].mxu0  ;;  %v11964_v13 = vadd.f32 %v1495_v16, %v11719_v62  ;;  %v1499_v26 = vpop.f32.mrb[46].mxu1  ;;  %v1619_v36 = vadd.f32 %v1618_v1, %v11928_v28  ;;  %v11970_v25 = vadd.f32 %v11576_v38, %v11595_v48 }
 0x310   : > { %16362 = vst [vmem:[#allocation105_spill] sm:$0xff] %v11943_v60  ;;  %16364 = vst [vmem:[#allocation107_spill] sm:$0xff] %v11954_v54  ;;  %v1603_v53 = vadd.f32 %v1602_v35, %v11943_v60  ;;  %v11961_v4 = vadd.f32 %v1386_v63, %v11689_v52  ;;  %v1388_v23 = vpop.f32.mrb[47].mxu0  ;;  %1589 = vadd.xlane.f32.xlu0 %v1588_v27  ;;  %v1597_v34 = vadd.f32 %v1596_v24, %v11940_v22  ;;  %v1501_v27 = vpop.f32.mrb[47].mxu1 }
 0x311   : > { %16365 = vst [vmem:[#allocation108_spill] sm:$0xff] %v11970_v25  ;;  %v11974_v35 = vadd.f32 %v11580_v40, %v11598_v49  ;;  %v11977_v63 = vadd.f32 %v1388_v23, %v11700_v44  ;;  %v11982_v24 = vadd.f32 %v1497_v15, %v11722_v51  ;;  %v11985_v1 = vadd.f32 %v1499_v26, %v11719_v62 }
 0x312   : > { %v1604_v16 = vadd.f32 %v1603_v53, %v11957_v19  ;;  %v1612_v60 = vadd.f32 %v1611_v58, %v11961_v4  ;;  %1598 = vadd.xlane.f32.xlu1 %v1597_v34  ;;  %v1628_v38 = vadd.f32 %v1627_v29, %v11936_v11  ;;  %v1636_v40 = vadd.f32 %v11954_v54, %v11950_v31 }
 0x313   : > { %16366 = vst [vmem:[#allocation109_spill] sm:$0xff] %v11974_v35  ;;  %v11992_v23 = vadd.f32 %v11574_v37, %v11613_v56  ;;  %v1620_v15 = vadd.f32 %v1619_v36, %v11932_v30  ;;  %v11999_v34 = vadd.f32 %v11568_v32, %v11636_v55  ;;  %v1645_v26 = vadd.f32 %v11974_v35, %v11970_v25 }
 0x314   : > { %v1613_v53 = vadd.f32 %v1612_v60, %v11977_v63  ;;  %v1605_v58 = vadd.f32 %v1604_v16, %v11964_v13  ;;  %v12005_v29 = vadd.f32 %v11582_v41, %v11613_v56  ;;  %v12009_v60 = vadd.f32 %v1501_v27, %v11722_v51 }
 0x315   : > { %16367 = vst [vmem:[#allocation110_spill] sm:$0xff] %v11992_v23  ;;  %16368 = vst [vmem:[#allocation111_spill] sm:$0xff] %v11999_v34  ;;  %v1392_v54 = vpop.f32.mrb[48].mxu0  ;;  %v1505_v31 = vpop.f32.mrb[48].mxu1  ;;  %v1629_v11 = vadd.f32 %v1628_v38, %v11999_v34  ;;  %v1637_v35 = vadd.f32 %v1636_v40, %v11992_v23  ;;  %v12019_v41 = vadd.f32 %v11578_v39, %v11636_v55 }
 0x316   : > { %16369 = vst [vmem:[#allocation112_spill] sm:$0xff] %v12005_v29  ;;  %v1614_v37 = vadd.f32 %v1613_v53, %v11985_v1  ;;  %16370 = vst [vmem:[#allocation113_spill] sm:$0xff] %v12009_v60  ;;  %v12012_v16 = vadd.f32 %v1392_v54, %v11689_v52  ;;  %v1394_v36 = vpop.f32.mrb[49].mxu0  ;;  %v1606_v32 = vadd.f32 %v1605_v58, %v11982_v24  ;;  %v1507_v25 = vpop.f32.mrb[49].mxu1 }
 0x317   : > { %16372 = vst [vmem:[#allocation115_spill] sm:$0xff] %v12019_v41  ;;  %v12022_v53 = vadd.f32 %v1394_v36, %v11700_v44  ;;  %v1396_v27 = vpop.f32.mrb[50].mxu0  ;;  %v12029_v38 = vadd.f32 %v1505_v31, %v11719_v62  ;;  %v1509_v23 = vpop.f32.mrb[50].mxu1  ;;  %v1646_v39 = vadd.f32 %v1645_v26, %v12005_v29  ;;  %v12035_v36 = vadd.f32 %v11592_v47, %v11595_v48  ;;  %v16381_v47 = vld [vmem:[#allocation44_spill] sm:$0xff] }
 0x318   : > { %16371 = vst [vmem:[#allocation114_spill] sm:$0xff] %v12012_v16  ;;  %v1621_v54 = vadd.f32 %v1620_v15, %v12012_v16  ;;  %v12026_v30 = vadd.f32 %v1396_v27, %v11689_v52  ;;  %v1398_v58 = vpop.f32.mrb[51].mxu0  ;;  %1607 = vadd.xlane.f32.xlu0 %v1606_v32  ;;  %v1615_v40 = vadd.f32 %v1614_v37, %v12009_v60  ;;  %v1511_v32 = vpop.f32.mrb[51].mxu1  ;;  %v16385_v16 = vld [vmem:[#allocation51_spill] sm:$0xff] }
 0x319   : > { %16373 = vst [vmem:[#allocation116_spill] sm:$0xff] %v12022_v53  ;;  %16375 = vst [vmem:[#allocation118_spill] sm:$0xff] %v12029_v38  ;;  %v12039_v15 = vadd.f32 %v11600_v50, %v11598_v49  ;;  %v12042_v27 = vadd.f32 %v1398_v58, %v11700_v44  ;;  %v12047_v37 = vadd.f32 %v1507_v25, %v11722_v51  ;;  %v16383_v50 = vld [vmem:[#allocation49_spill] sm:$0xff] }
 0x31a   : > { %16374 = vst [vmem:[#allocation117_spill] sm:$0xff] %v12026_v30  ;;  %16376 = vst [vmem:[#allocation119_spill] sm:$0xff] %v12035_v36  ;;  %v1622_v31 = vadd.f32 %v1621_v54, %v12022_v53  ;;  %v1630_v34 = vadd.f32 %v1629_v11, %v12026_v30  ;;  %1616 = vadd.xlane.f32.xlu1 %v1615_v40  ;;  %v12050_v26 = vadd.f32 %v1509_v23, %v11719_v62  ;;  %v16387_v30 = vld [vmem:[#allocation48_spill] sm:$0xff] }
 0x31b   : > { %16377 = vst [vmem:[#allocation120_spill] sm:$0xff] %v12039_v15  ;;  %16378 = vst [vmem:[#allocation121_spill] sm:$0xff] %v12042_v27  ;;  %v12054_v29 = vadd.f32 %v16381_v47, %v11636_v55  ;;  %v12058_v58 = vadd.f32 %v16383_v50, %v11595_v48  ;;  %v12062_v54 = vadd.f32 %v16385_v16, %v11598_v49 }
 0x31c   : > { %16379 = vst [vmem:[#allocation122_spill] sm:$0xff] %v12047_v37  ;;  %16380 = vst [vmem:[#allocation123_spill] sm:$0xff] %v12050_v26  ;;  %v1631_v11 = vadd.f32 %v1630_v34, %v12042_v27  ;;  %v1623_v25 = vadd.f32 %v1622_v31, %v12029_v38  ;;  %v1638_v40 = vadd.f32 %v1637_v35, %v12019_v41  ;;  %v16397_v38 = vld [vmem:[#allocation64_spill] sm:$0xff] }
 0x31d   : > { %16382 = vst [vmem:[#allocation44_spill] sm:$0xff] %v12054_v29  ;;  %16384 = vst [vmem:[#allocation49_spill] sm:$0xff] %v12058_v58  ;;  %v1647_v23 = vadd.f32 %v1646_v39, %v12054_v29  ;;  %v1654_v47 = vadd.f32 %v12039_v15, %v12035_v36  ;;  %v12072_v53 = vadd.f32 %v16387_v30, %v11613_v56  ;;  %v1402_v50 = vpop.f32.mrb[52].mxu0  ;;  %v1515_v39 = vpop.f32.mrb[52].mxu1  ;;  %v16391_v36 = vld [vmem:[#allocation50_spill] sm:$0xff]  ;;  %v16393_v29 = vld [vmem:[#allocation52_spill] sm:$0xff] }
 0x31e   : > { %16386 = vst [vmem:[#allocation51_spill] sm:$0xff] %v12062_v54  ;;  %v1632_v60 = vadd.f32 %v1631_v11, %v12050_v26  ;;  %v12076_v16 = vadd.f32 %v1511_v32, %v11722_v51  ;;  %v12079_v34 = vadd.f32 %v1402_v50, %v11689_v52  ;;  %v1404_v31 = vpop.f32.mrb[53].mxu0  ;;  %v1624_v35 = vadd.f32 %v1623_v25, %v12047_v37  ;;  %v1517_v41 = vpop.f32.mrb[53].mxu1 }
 0x31f   : > { %16388 = vst [vmem:[#allocation48_spill] sm:$0xff] %v12072_v53  ;;  %v1663_v15 = vadd.f32 %v12062_v54, %v12058_v58  ;;  %v12086_v30 = vadd.f32 %v16391_v36, %v11636_v55  ;;  %v12090_v11 = vadd.f32 %v16393_v29, %v11613_v56  ;;  %v12093_v32 = vadd.f32 %v1404_v31, %v11700_v44  ;;  %v1406_v50 = vpop.f32.mrb[54].mxu0  ;;  %v1519_v58 = vpop.f32.mrb[54].mxu1  ;;  %v16395_v31 = vld [vmem:[#allocation59_spill] sm:$0xff] }
 0x320   : > { %16389 = vst [vmem:[#allocation124_spill] sm:$0xff] %v12076_v16  ;;  %16390 = vst [vmem:[#allocation125_spill] sm:$0xff] %v12079_v34  ;;  %v1639_v26 = vadd.f32 %v1638_v40, %v12079_v34  ;;  %v12097_v25 = vadd.f32 %v1406_v50, %v11689_v52  ;;  %v1408_v27 = vpop.f32.mrb[55].mxu0  ;;  %1625 = vadd.xlane.f32.xlu0 %v1624_v35  ;;  %v12100_v54 = vadd.f32 %v1515_v39, %v11719_v62  ;;  %v1521_v35 = vpop.f32.mrb[55].mxu1 }
 0x321   : > { %16392 = vst [vmem:[#allocation50_spill] sm:$0xff] %v12086_v30  ;;  %16394 = vst [vmem:[#allocation52_spill] sm:$0xff] %v12090_v11  ;;  %v1633_v36 = vadd.f32 %v1632_v60, %v12076_v16  ;;  %v1655_v29 = vadd.f32 %v1654_v47, %v12072_v53  ;;  %v12106_v37 = vadd.f32 %v16395_v31, %v11595_v48 }
 0x322   : > { %v12110_v40 = vadd.f32 %v16397_v38, %v11598_v49  ;;  %v12113_v50 = vadd.f32 %v1408_v27, %v11700_v44  ;;  %v1640_v39 = vadd.f32 %v1639_v26, %v12093_v32  ;;  %v1648_v34 = vadd.f32 %v1647_v23, %v12097_v25  ;;  %v16401_v38 = vld [vmem:[#allocation70_spill] sm:$0xff]  ;;  %v16403_v27 = vld [vmem:[#allocation72_spill] sm:$0xff] }
 0x323   : > { %16396 = vst [vmem:[#allocation59_spill] sm:$0xff] %v12106_v37  ;;  %v12118_v60 = vadd.f32 %v1517_v41, %v11722_v51  ;;  %1634 = vadd.xlane.f32.xlu1 %v1633_v36  ;;  %v12121_v47 = vadd.f32 %v1519_v58, %v11719_v62  ;;  %v1664_v31 = vadd.f32 %v1663_v15, %v12090_v11  ;;  %v16405_v36 = vld [vmem:[#allocation54_spill] sm:$0xff] }
 0x324   : > { %16398 = vst [vmem:[#allocation64_spill] sm:$0xff] %v12110_v40  ;;  %16399 = vst [vmem:[#allocation126_spill] sm:$0xff] %v12113_v50  ;;  %v12126_v53 = vadd.f32 %v16401_v38, %v11595_v48  ;;  %v12130_v16 = vadd.f32 %v16403_v27, %v11598_v49  ;;  %v1649_v26 = vadd.f32 %v1648_v34, %v12113_v50  ;;  %v16407_v48 = vld [vmem:[#allocation65_spill] sm:$0xff] }
 0x325   : > { %16400 = vst [vmem:[#allocation127_spill] sm:$0xff] %v12121_v47  ;;  %v1641_v23 = vadd.f32 %v1640_v39, %v12100_v54  ;;  %v1656_v41 = vadd.f32 %v1655_v29, %v12086_v30  ;;  %v12137_v58 = vadd.f32 %v16405_v36, %v11636_v55  ;;  %v1672_v15 = vadd.f32 %v12110_v40, %v12106_v37  ;;  %v1412_v11 = vpop.f32.mrb[56].mxu0  ;;  %v1525_v36 = vpop.f32.mrb[56].mxu1 }
 0x326   : > { %16402 = vst [vmem:[#allocation70_spill] sm:$0xff] %v12126_v53  ;;  %16404 = vst [vmem:[#allocation72_spill] sm:$0xff] %v12130_v16  ;;  %v12143_v38 = vadd.f32 %v16407_v48, %v11613_v56  ;;  %v1650_v49 = vadd.f32 %v1649_v26, %v12121_v47  ;;  %v12147_v34 = vadd.f32 %v1521_v35, %v11722_v51  ;;  %v1414_v29 = vpop.f32.mrb[57].mxu0  ;;  %v16409_v48 = vld [vmem:[#allocation73_spill] sm:$0xff]  ;;  %v1527_v47 = vpop.f32.mrb[57].mxu1 }
 0x327   : > { %16406 = vst [vmem:[#allocation54_spill] sm:$0xff] %v12137_v58  ;;  %v12150_v39 = vadd.f32 %v1412_v11, %v11689_v52  ;;  %v1642_v27 = vadd.f32 %v1641_v23, %v12118_v60  ;;  %v1665_v30 = vadd.f32 %v1664_v31, %v12137_v58  ;;  %v1681_v40 = vadd.f32 %v12130_v16, %v12126_v53  ;;  %v1416_v35 = vpop.f32.mrb[58].mxu0  ;;  %v1529_v53 = vpop.f32.mrb[58].mxu1 }
 0x328   : > { %16408 = vst [vmem:[#allocation65_spill] sm:$0xff] %v12143_v38  ;;  %v12158_v37 = vadd.f32 %v16409_v48, %v11613_v56  ;;  %v12161_v26 = vadd.f32 %v1414_v29, %v11700_v44  ;;  %v12165_v50 = vadd.f32 %v1416_v35, %v11689_v52  ;;  %v1418_v23 = vpop.f32.mrb[59].mxu0  ;;  %v12168_v31 = vadd.f32 %v1525_v36, %v11719_v62  ;;  %v16411_v29 = vld [vmem:[#allocation71_spill] sm:$0xff] }
 0x329   : > { %v1657_v11 = vadd.f32 %v1656_v41, %v12150_v39  ;;  %1643 = vadd.xlane.f32.xlu0 %v1642_v27  ;;  %v1651_v16 = vadd.f32 %v1650_v49, %v12147_v34  ;;  %v1673_v56 = vadd.f32 %v1672_v15, %v12143_v38  ;;  %v12174_v48 = vadd.f32 %v16411_v29, %v11636_v55  ;;  %v1531_v41 = vpop.f32.mrb[59].mxu1 }
 0x32a   : > { %16410 = vst [vmem:[#allocation73_spill] sm:$0xff] %v12158_v37  ;;  %v12177_v58 = vadd.f32 %v1418_v23, %v11700_v44  ;;  %v1666_v27 = vadd.f32 %v1665_v30, %v12165_v50  ;;  %v12182_v36 = vadd.f32 %v1527_v47, %v11722_v51  ;;  %v12185_v49 = vadd.f32 %v1529_v53, %v11719_v62 }
 0x32b   : > { %16412 = vst [vmem:[#allocation71_spill] sm:$0xff] %v12174_v48  ;;  %v1658_v35 = vadd.f32 %v1657_v11, %v12161_v26  ;;  %1652 = vadd.xlane.f32.xlu1 %v1651_v16  ;;  %v1682_v15 = vadd.f32 %v1681_v40, %v12158_v37  ;;  %v1674_v23 = vadd.f32 %v1673_v56, %v12174_v48 }
 0x32c   : > { %16413 = vst [vmem:[#allocation128_spill] sm:$0xff] %v12177_v58  ;;  %16414 = vst [vmem:[#allocation129_spill] sm:$0xff] %v12185_v49  ;;  %v1667_v29 = vadd.f32 %v1666_v27, %v12177_v58  ;;  %v12193_v11 = vadd.f32 %v11686_v2, %v11636_v55  ;;  %v12197_v16 = vadd.f32 %v1531_v41, %v11722_v51 }
 0x32d   : > { %v1659_v38 = vadd.f32 %v1658_v35, %v12168_v31  ;;  %v1422_v30 = vpop.f32.mrb[60].mxu0  ;;  %v1535_v37 = vpop.f32.mrb[60].mxu1 }
 0x32e   : > { %16415 = vst [vmem:[#allocation130_spill] sm:$0xff] %v12193_v11  ;;  %v1668_v47 = vadd.f32 %v1667_v29, %v12185_v49  ;;  %v12200_v53 = vadd.f32 %v1422_v30, %v11689_v52  ;;  %v1424_v40 = vpop.f32.mrb[61].mxu0  ;;  %v1683_v35 = vadd.f32 %v1682_v15, %v12193_v11  ;;  %v1537_v2 = vpop.f32.mrb[61].mxu1  ;;  %v12212_v30 = vadd.f32 %v1535_v37, %v11719_v62 }
 0x32f   : > { %v1660_v27 = vadd.f32 %v1659_v38, %v12182_v36  ;;  %v12205_v56 = vadd.f32 %v1424_v40, %v11700_v44  ;;  %v1426_v55 = vpop.f32.mrb[62].mxu0  ;;  %v1539_v49 = vpop.f32.mrb[62].mxu1 }
 0x330   : > { %v1675_v48 = vadd.f32 %v1674_v23, %v12200_v53  ;;  %v12209_v29 = vadd.f32 %v1426_v55, %v11689_v52  ;;  %v1428_v41 = vpop.f32.mrb[63].mxu0  ;;  %16418 = vst [vmem:[#allocation133_spill] sm:$0xff] %v12212_v30  ;;  %v1669_v38 = vadd.f32 %v1668_v47, %v12197_v16  ;;  %v1541_v40 = vpop.f32.mrb[63].mxu1  ;;  %v12221_v23 = vadd.f32 %v1537_v2, %v11722_v51  ;;  %v9636_v55 = vld [vmem:[#allocation8] ss:$16 sps:$4 sm:$0xff]  }
 0x331   : > { %16416 = vst [vmem:[#allocation131_spill] sm:$0xff] %v12205_v56  ;;  %1661 = vadd.xlane.f32.xlu0 %v1660_v27  ;;  %v12216_v15 = vadd.f32 %v1428_v41, %v11700_v44  ;;  %v12224_v52 = vadd.f32 %v1539_v49, %v11719_v62  ;;  %v12230_v44 = vadd.f32 %v1541_v40, %v11722_v51  ;;  %v9638_v2 = vld [vmem:[#allocation8 + $0x4] ss:$16 sps:$4 sm:$0xff]   ;;  %v9639_v41 = vld [vmem:[#allocation8 + $0x8] ss:$16 sps:$4 sm:$0xff]  }
 0x332   : > { %16417 = vst [vmem:[#allocation132_spill] sm:$0xff] %v12209_v29  ;;  %v1676_v11 = vadd.f32 %v1675_v48, %v12205_v56  ;;  %v1684_v58 = vadd.f32 %v1683_v35, %v12209_v29  ;;  %16420 = vst [vmem:[#allocation135_spill] sm:$0xff] %v12221_v23  ;;  %1670 = vadd.xlane.f32.xlu1 %v1669_v38  ;;  %v9641_v62 = vld [vmem:[#allocation8 + $0xc] ss:$16 sps:$4 sm:$0xff]   ;;  %v9644_v49 = vld [vmem:[#allocation8 + $0x24] ss:$16 sps:$4 sm:$0xff]   ;;  %4418 = vmatprep.subr.bf16.mxu0 %v9638_v2 }
 0x333   : > { %16419 = vst [vmem:[#allocation134_spill] sm:$0xff] %v12216_v15  ;;  %16421 = vst [vmem:[#allocation136_spill] sm:$0xff] %v12224_v52  ;;  %4870 = vmatprep.subr.bf16.mxu1 %v9641_v62  ;;  %4419 = vmatpush1.bf16.msra.mxu0 %v9636_v55  ;;  %v9645_v51 = vld [vmem:[#allocation8 + $0x28] ss:$16 sps:$4 sm:$0xff]   ;;  %v9650_v38 = vld [vmem:[#allocation8 + $0x44] ss:$16 sps:$4 sm:$0xff]  }
 0x334   : > { %v1685_v37 = vadd.f32 %v1684_v58, %v12216_v15  ;;  %v1677_v47 = vadd.f32 %v1676_v11, %v12212_v30  ;;  %16422 = vst [vmem:[#allocation137_spill] sm:$0xff] %v12230_v44  ;;  %v9647_v58 = vld [vmem:[#allocation8 + $0x2c] ss:$16 sps:$4 sm:$0xff]   ;;  %v9642_v11 = vld [vmem:[#allocation8 + $0x20] ss:$16 sps:$4 sm:$0xff]   ;;  %4871 = vmatpush1.bf16.msra.mxu1 %v9639_v41  ;;  %4420 = vmatprep.subr.bf16.mxu0 %v9644_v49 }
 0x335   : > { %4872 = vmatprep.subr.bf16.mxu1 %v9647_v58  ;;  %v9653_v40 = vld [vmem:[#allocation8 + $0x4c] ss:$16 sps:$4 sm:$0xff]   ;;  %v9657_v55 = vld [vmem:[#allocation8 + $0x68] ss:$16 sps:$4 sm:$0xff]   ;;  %v9662_v2 = vld [vmem:[#allocation8 + $0x84] ss:$16 sps:$4 sm:$0xff]  }
 0x336   : > { %v1686_v27 = vadd.f32 %v1685_v37, %v12224_v52  ;;  %v1678_v48 = vadd.f32 %v1677_v47, %v12221_v23  ;;  %v9648_v37 = vld [vmem:[#allocation8 + $0x40] ss:$16 sps:$4 sm:$0xff]   ;;  %v9651_v47 = vld [vmem:[#allocation8 + $0x48] ss:$16 sps:$4 sm:$0xff]   ;;  %v9665_v41 = vld [vmem:[#allocation8 + $0x8c] ss:$16 sps:$4 sm:$0xff]  }
 0x337   : > { %4421 = vmatpush1.bf16.msra.mxu0 %v9642_v11  ;;  %v9660_v62 = vld [vmem:[#allocation8 + $0x80] ss:$16 sps:$4 sm:$0xff]   ;;  %v9663_v49 = vld [vmem:[#allocation8 + $0x88] ss:$16 sps:$4 sm:$0xff]   ;;  %v9668_v58 = vld [vmem:[#allocation8 + $0xa4] ss:$16 sps:$4 sm:$0xff]  }
 0x338   : > { %1679 = vadd.xlane.f32.xlu0 %v1678_v48  ;;  %v1687_v35 = vadd.f32 %v1686_v27, %v12230_v44  ;;  %4873 = vmatpush1.bf16.msra.mxu1 %v9645_v51  ;;  %v9656_v27 = vld [vmem:[#allocation8 + $0x64] ss:$16 sps:$4 sm:$0xff]   ;;  %v9659_v48 = vld [vmem:[#allocation8 + $0x6c] ss:$16 sps:$4 sm:$0xff]   ;;  %v9675_v52 = vld [vmem:[#allocation8 + $0xc8] ss:$16 sps:$4 sm:$0xff]  }
 0x339   : > { %4422 = vmatprep.subr.bf16.mxu0 %v9650_v38  ;;  %4874 = vmatprep.subr.bf16.mxu1 %v9653_v40  ;;  %v9671_v11 = vld [vmem:[#allocation8 + $0xac] ss:$16 sps:$4 sm:$0xff]   ;;  %v9666_v38 = vld [vmem:[#allocation8 + $0xa0] ss:$16 sps:$4 sm:$0xff]  }
 0x33a   : > { %1688 = vadd.xlane.f32.xlu1 %v1687_v35  ;;  %v9654_v35 = vld [vmem:[#allocation8 + $0x60] ss:$16 sps:$4 sm:$0xff]  }
 0x33b   : > { %4423 = vmatpush1.bf16.msra.mxu0 %v9648_v37  ;;  %v9669_v37 = vld [vmem:[#allocation8 + $0xa8] ss:$16 sps:$4 sm:$0xff]   ;;  %v16431_v15 = vld [vmem:[#allocation81_spill] sm:$0xff] }
 0x33c   : > { %4875 = vmatpush1.bf16.msra.mxu1 %v9651_v47  ;;  %4424 = vmatprep.subr.bf16.mxu0 %v9656_v27  ;;  %v9674_v47 = vld [vmem:[#allocation8 + $0xc4] ss:$16 sps:$4 sm:$0xff]   ;;  %v9677_v27 = vld [vmem:[#allocation8 + $0xcc] ss:$16 sps:$4 sm:$0xff]  }
 0x33d   : > { %4876 = vmatprep.subr.bf16.mxu1 %v9659_v48  ;;  %v16423_v48 = vld [vmem:[#allocation55_spill] sm:$0xff] }
 0x33f   : > { %4425 = vmatpush1.bf16.msra.mxu0 %v9654_v35 }
 0x340   : > { %4877 = vmatpush1.bf16.msra.mxu1 %v9657_v55  ;;  %4426 = vmatprep.subr.bf16.mxu0 %v9662_v2  ;;  %v16425_v55 = vld [vmem:[#allocation56_spill] sm:$0xff] }
 0x341   : > { %4878 = vmatprep.subr.bf16.mxu1 %v9665_v41  ;;  %v16427_v41 = vld [vmem:[#allocation62_spill] sm:$0xff] }
 0x343   : > { %4427 = vmatpush1.bf16.msra.mxu0 %v9660_v62 }
 0x344   : > { %4879 = vmatpush1.bf16.msra.mxu1 %v9663_v49  ;;  %4428 = vmatprep.subr.bf16.mxu0 %v9668_v58  ;;  %v9672_v49 = vld [vmem:[#allocation8 + $0xc0] ss:$16 sps:$4 sm:$0xff]  }
 0x345   : > { %4880 = vmatprep.subr.bf16.mxu1 %v9671_v11  ;;  %v16429_v11 = vld [vmem:[#allocation76_spill] sm:$0xff] }
 0x347   : > { %4429 = vmatpush1.bf16.msra.mxu0 %v9666_v38 }
 0x348   : > { %4881 = vmatpush1.bf16.msra.mxu1 %v9669_v37  ;;  %4430 = vmatprep.subr.bf16.mxu0 %v9674_v47  ;;  %v16436_v47 = vld [vmem:[#allocation58_spill] sm:$0xff] }
 0x349   : > { %4882 = vmatprep.subr.bf16.mxu1 %v9677_v27 }
 0x34b   : > { %4431 = vmatpush1.bf16.msra.mxu0 %v9672_v49 }
 0x34c   : > { %4883 = vmatpush1.bf16.msra.mxu1 %v9675_v52 }
 0x38d   : > { %v1554_v51 = vpop.xlane.xlu0 %1553 }
 0x38e   : > { %v12234_v40 = vmul.f32 0.001, %v1554_v51 }
 0x390   : > { %v12238_v35 = vsub.f32 %v16423_v48, %v12234_v40  ;;  %v12242_v2 = vsub.f32 %v16425_v55, %v12234_v40  ;;  %v12246_v62 = vsub.f32 %v16427_v41, %v12234_v40  ;;  %v12252_v44 = vsub.f32 %v16429_v11, %v12234_v40  ;;  %v9680_v41 = vld [vmem:[#allocation8 + $0xe4] ss:$16 sps:$4 sm:$0xff]   ;;  %v9683_v11 = vld [vmem:[#allocation8 + $0xec] ss:$16 sps:$4 sm:$0xff]  }
 0x391   : > { %v1563_v51 = vpop.xlane.xlu0 %1562  ;;  %v12260_v38 = vsub.f32 %v16431_v15, %v12234_v40  ;;  %v12278_v30 = vsub.f32 %v11751_v0, %v12234_v40  ;;  %4432 = vmatprep.subr.bf16.mxu0 %v9680_v41  ;;  %v9681_v0 = vld [vmem:[#allocation8 + $0xe8] ss:$16 sps:$4 sm:$0xff]   ;;  %4884 = vmatprep.subr.bf16.mxu1 %v9683_v11 }
 0x392   : > { %16424 = vst [vmem:[#allocation55_spill] sm:$0xff] %v12238_v35  ;;  %16426 = vst [vmem:[#allocation56_spill] sm:$0xff] %v12242_v2  ;;  %v12248_v58 = vmul.f32 0.001, %v1563_v51  ;;  %v1834_v48 = vmul.f32 %v12238_v35, %v12238_v35  ;;  %v1835_v55 = vmul.f32 %v12242_v2, %v12242_v2  ;;  %v12264_v51 = vsub.f32 %v11740_v6, %v12234_v40  ;;  %v16434_v2 = vld [vmem:[#allocation57_spill] sm:$0xff]  ;;  %v16439_v6 = vld [vmem:[#allocation63_spill] sm:$0xff] }
 0x393   : > { %16428 = vst [vmem:[#allocation62_spill] sm:$0xff] %v12246_v62  ;;  %16430 = vst [vmem:[#allocation76_spill] sm:$0xff] %v12252_v44  ;;  %v1836_v35 = vmul.f32 %v12246_v62, %v12246_v62  ;;  %v9678_v62 = vld [vmem:[#allocation8 + $0xe0] ss:$16 sps:$4 sm:$0xff]   ;;  %v1838_v56 = vmul.f32 %v12260_v38, %v12260_v38  ;;  %4885 = vmatpush1.bf16.msra.mxu1 %v9681_v0 }
 0x394   : > { %16432 = vst [vmem:[#allocation81_spill] sm:$0xff] %v12260_v38  ;;  %16433 = vst [vmem:[#allocation138_spill] sm:$0xff] %v12264_v51  ;;  %v1962_v23 = vadd.f32 %v1835_v55, %v1834_v48  ;;  %v12270_v37 = vsub.f32 %v16434_v2, %v12248_v58  ;;  %v12274_v29 = vsub.f32 %v16436_v47, %v12248_v58  ;;  %4433 = vmatpush1.bf16.msra.mxu0 %v9678_v62  ;;  %v16451_v62 = vld [vmem:[#allocation77_spill] sm:$0xff] }
 0x395   : > { %v1572_v15 = vpop.xlane.xlu1 %1571  ;;  %16438 = vst [vmem:[#allocation139_spill] sm:$0xff] %v12278_v30  ;;  %v12282_v27 = vsub.f32 %v16439_v6, %v12248_v58  ;;  %v12288_v2 = vsub.f32 %v11774_v12, %v12234_v40  ;;  %v1837_v55 = vmul.f32 %v12252_v44, %v12252_v44  ;;  %v16442_v6 = vld [vmem:[#allocation79_spill] sm:$0xff]  ;;  %v12310_v41 = vsub.f32 %v11766_v3, %v12248_v58 }
 0x396   : > { %16435 = vst [vmem:[#allocation57_spill] sm:$0xff] %v12270_v37  ;;  %16437 = vst [vmem:[#allocation58_spill] sm:$0xff] %v12274_v29  ;;  %v12284_v48 = vmul.f32 0.001, %v1572_v15  ;;  %v1963_v47 = vadd.f32 %v1962_v23, %v1836_v35  ;;  %v12296_v49 = vsub.f32 %v16442_v6, %v12248_v58  ;;  %v1842_v15 = vmul.f32 %v12270_v37, %v12270_v37  ;;  %v16446_v37 = vld [vmem:[#allocation66_spill] sm:$0xff]  ;;  %v16448_v3 = vld [vmem:[#allocation87_spill] sm:$0xff] }
 0x397   : > { %16440 = vst [vmem:[#allocation63_spill] sm:$0xff] %v12282_v27  ;;  %16441 = vst [vmem:[#allocation140_spill] sm:$0xff] %v12288_v2  ;;  %v1843_v12 = vmul.f32 %v12274_v29, %v12274_v29  ;;  %v1839_v23 = vmul.f32 %v12264_v51, %v12264_v51  ;;  %v12306_v35 = vsub.f32 %v11748_v61, %v12248_v58  ;;  %v16447_v51 = vld [vmem:[#allocation67_spill] sm:$0xff] }
 0x398   : > { %16443 = vst [vmem:[#allocation79_spill] sm:$0xff] %v12296_v49  ;;  %v1964_v52 = vadd.f32 %v1963_v47, %v1837_v55  ;;  %16445 = vst [vmem:[#allocation142_spill] sm:$0xff] %v12310_v41  ;;  %v1844_v38 = vmul.f32 %v12282_v27, %v12282_v27  ;;  %v12316_v11 = vsub.f32 %v16446_v37, %v12284_v48 }
 0x399   : > { %16444 = vst [vmem:[#allocation141_spill] sm:$0xff] %v12306_v35  ;;  %v1581_v6 = vpop.xlane.xlu1 %1580  ;;  %v1971_v44 = vadd.f32 %v1843_v12, %v1842_v15  ;;  %v12320_v55 = vsub.f32 %v16447_v51, %v12284_v48  ;;  %v1840_v61 = vmul.f32 %v12278_v30, %v12278_v30  ;;  %v12326_v29 = vsub.f32 %v16448_v3, %v12248_v58 }
 0x39a   : > { %v1965_v47 = vadd.f32 %v1964_v52, %v1838_v56  ;;  %v12330_v15 = vsub.f32 %v11817_v5, %v12248_v58  ;;  %v12332_v37 = vmul.f32 0.001, %v1581_v6  ;;  %v1845_v51 = vmul.f32 %v12296_v49, %v12296_v49  ;;  %v16453_v6 = vld [vmem:[#allocation80_spill] sm:$0xff] }
 0x39b   : > { %16449 = vst [vmem:[#allocation66_spill] sm:$0xff] %v12326_v29  ;;  %v1972_v12 = vadd.f32 %v1971_v44, %v1844_v38  ;;  %v12338_v27 = vsub.f32 %v16451_v62, %v12284_v48  ;;  %v1841_v56 = vmul.f32 %v12288_v2, %v12288_v2  ;;  %v1850_v3 = vmul.f32 %v12316_v11, %v12316_v11 }
 0x39c   : > { %16450 = vst [vmem:[#allocation67_spill] sm:$0xff] %v12330_v15  ;;  %v1966_v52 = vadd.f32 %v1965_v47, %v1839_v23  ;;  %v1851_v5 = vmul.f32 %v12320_v55, %v12320_v55  ;;  %v1846_v0 = vmul.f32 %v12306_v35, %v12306_v35  ;;  %v1847_v44 = vmul.f32 %v12310_v41, %v12310_v41 }
 0x39d   : > { %16452 = vst [vmem:[#allocation87_spill] sm:$0xff] %v12338_v27  ;;  %v1973_v38 = vadd.f32 %v1972_v12, %v1845_v51  ;;  %v12352_v62 = vsub.f32 %v16453_v6, %v12284_v48  ;;  %v1848_v23 = vmul.f32 %v12326_v29, %v12326_v29  ;;  %v1849_v47 = vmul.f32 %v12330_v15, %v12330_v15  ;;  %v1590_v35 = vpop.xlane.xlu0 %1589  ;;  %v16456_v6 = vld [vmem:[#allocation68_spill] sm:$0xff] }
 0x39e   : > { %v1967_v30 = vadd.f32 %v1966_v52, %v1840_v61  ;;  %v12360_v2 = vsub.f32 %v11798_v8, %v12284_v48  ;;  %v1852_v51 = vmul.f32 %v12338_v27, %v12338_v27  ;;  %v1980_v12 = vadd.f32 %v1851_v5, %v1850_v3  ;;  %v16459_v8 = vld [vmem:[#allocation69_spill] sm:$0xff] }
 0x39f   : > { %16454 = vst [vmem:[#allocation77_spill] sm:$0xff] %v12352_v62  ;;  %v1974_v49 = vadd.f32 %v1973_v38, %v1846_v0  ;;  %v12366_v41 = vsub.f32 %v16456_v6, %v12332_v37  ;;  %v12370_v52 = vsub.f32 %v11814_v46, %v12284_v48  ;;  %v12374_v29 = vsub.f32 %v11824_v20, %v12284_v48  ;;  %v16460_v6 = vld [vmem:[#allocation78_spill] sm:$0xff]  ;;  %v1599_v15 = vpop.xlane.xlu1 %1598 }
 0x3a0   : > { %16455 = vst [vmem:[#allocation80_spill] sm:$0xff] %v12360_v2  ;;  %v1968_v61 = vadd.f32 %v1967_v30, %v1841_v56  ;;  %v12378_v0 = vsub.f32 %v16459_v8, %v12332_v37  ;;  %v1853_v3 = vmul.f32 %v12352_v62, %v12352_v62  ;;  %v1981_v5 = vadd.f32 %v1980_v12, %v1852_v51  ;;  %v16463_v51 = vld [vmem:[#allocation82_spill] sm:$0xff] }
 0x3a1   : > { %16457 = vst [vmem:[#allocation68_spill] sm:$0xff] %v12370_v52  ;;  %16458 = vst [vmem:[#allocation143_spill] sm:$0xff] %v12374_v29  ;;  %v1975_v38 = vadd.f32 %v1974_v49, %v1847_v44  ;;  %v12384_v30 = vsub.f32 %v16460_v6, %v12332_v37  ;;  %v12386_v56 = vmul.f32 0.001, %v1590_v35  ;;  %v12390_v46 = vsub.f32 %v11856_v10, %v12284_v48 }
 0x3a2   : > { %1969 = vadd.xlane.f32.xlu0 %v1968_v61  ;;  %v1854_v20 = vmul.f32 %v12360_v2, %v12360_v2  ;;  %v1858_v49 = vmul.f32 %v12366_v41, %v12366_v41  ;;  %v1982_v8 = vadd.f32 %v1981_v5, %v1853_v3  ;;  %v12398_v12 = vsub.f32 %v16463_v51, %v12332_v37 }
 0x3a3   : > { %16461 = vst [vmem:[#allocation69_spill] sm:$0xff] %v12384_v30  ;;  %16462 = vst [vmem:[#allocation78_spill] sm:$0xff] %v12390_v46  ;;  %v1976_v44 = vadd.f32 %v1975_v38, %v1848_v23  ;;  %v1859_v35 = vmul.f32 %v12378_v0, %v12378_v0  ;;  %v1855_v61 = vmul.f32 %v12370_v52, %v12370_v52 }
 0x3a4   : > { %16464 = vst [vmem:[#allocation82_spill] sm:$0xff] %v12398_v12  ;;  %v1856_v10 = vmul.f32 %v12374_v29, %v12374_v29  ;;  %v12408_v6 = vsub.f32 %v11821_v18, %v12332_v37  ;;  %v1983_v38 = vadd.f32 %v1982_v8, %v1854_v20  ;;  %v1860_v3 = vmul.f32 %v12384_v30, %v12384_v30  ;;  %v16468_v29 = vld [vmem:[#allocation83_spill] sm:$0xff]  ;;  %v16469_v18 = vld [vmem:[#allocation84_spill] sm:$0xff] }
 0x3a5   : > { %v1977_v23 = vadd.f32 %v1976_v44, %v1849_v47  ;;  %v1989_v5 = vadd.f32 %v1859_v35, %v1858_v49  ;;  %v12414_v51 = vsub.f32 %v11833_v14, %v12332_v37  ;;  %v12418_v2 = vsub.f32 %v11859_v57, %v12332_v37 }
 0x3a6   : > { %16465 = vst [vmem:[#allocation144_spill] sm:$0xff] %v12408_v6  ;;  %v12422_v52 = vsub.f32 %v16468_v29, %v12386_v56  ;;  %v12426_v47 = vsub.f32 %v16469_v18, %v12386_v56  ;;  %v1857_v20 = vmul.f32 %v12390_v46, %v12390_v46  ;;  %v1984_v49 = vadd.f32 %v1983_v38, %v1855_v61  ;;  %v1608_v38 = vpop.xlane.xlu0 %1607 }
 0x3a7   : > { %16466 = vst [vmem:[#allocation145_spill] sm:$0xff] %v12414_v51  ;;  %16467 = vst [vmem:[#allocation146_spill] sm:$0xff] %v12418_v2  ;;  %1978 = vadd.xlane.f32.xlu1 %v1977_v23  ;;  %v1861_v14 = vmul.f32 %v12398_v12, %v12398_v12  ;;  %v1990_v44 = vadd.f32 %v1989_v5, %v1860_v3  ;;  %v12432_v8 = vmul.f32 0.001, %v1599_v15 }
 0x3a8   : > { %v12436_v57 = vsub.f32 %v11883_v17, %v12332_v37  ;;  %v1862_v29 = vmul.f32 %v12408_v6, %v12408_v6  ;;  %v12442_v35 = vsub.f32 %v11784_v42, %v12386_v56  ;;  %v1985_v23 = vadd.f32 %v1984_v49, %v1856_v10  ;;  %v16473_v42 = vld [vmem:[#allocation97_spill] sm:$0xff]  ;;  %v1617_v49 = vpop.xlane.xlu1 %1616 }
 0x3a9   : > { %v1991_v18 = vadd.f32 %v1990_v44, %v1861_v14  ;;  %v1866_v61 = vmul.f32 %v12422_v52, %v12422_v52  ;;  %v1867_v15 = vmul.f32 %v12426_v47, %v12426_v47  ;;  %v1863_v17 = vmul.f32 %v12414_v51, %v12414_v51  ;;  %v16477_v51 = vld [vmem:[#allocation85_spill] sm:$0xff] }
 0x3aa   : > { %16470 = vst [vmem:[#allocation83_spill] sm:$0xff] %v12436_v57  ;;  %16471 = vst [vmem:[#allocation84_spill] sm:$0xff] %v12442_v35  ;;  %v1864_v3 = vmul.f32 %v12418_v2, %v12418_v2  ;;  %v12454_v5 = vsub.f32 %v11829_v59, %v12386_v56  ;;  %v12458_v10 = vsub.f32 %v16473_v42, %v12386_v56  ;;  %v16478_v42 = vld [vmem:[#allocation86_spill] sm:$0xff] }
 0x3ab   : > { %v1986_v14 = vadd.f32 %v1985_v23, %v1857_v20  ;;  %v1992_v44 = vadd.f32 %v1991_v18, %v1862_v29  ;;  %v12462_v46 = vsub.f32 %v11880_v21, %v12386_v56  ;;  %v12466_v6 = vsub.f32 %v11890_v45, %v12386_v56  ;;  %v16479_v23 = vld [vmem:[#allocation88_spill] sm:$0xff] }
 0x3ac   : > { %16472 = vst [vmem:[#allocation147_spill] sm:$0xff] %v12454_v5  ;;  %16474 = vst [vmem:[#allocation97_spill] sm:$0xff] %v12458_v10  ;;  %v1868_v2 = vmul.f32 %v12442_v35, %v12442_v35  ;;  %v1998_v59 = vadd.f32 %v1867_v15, %v1866_v61  ;;  %v12472_v27 = vsub.f32 %v16477_v51, %v12432_v8  ;;  %v12478_v29 = vmul.f32 0.001, %v1608_v38 }
 0x3ad   : > { %16475 = vst [vmem:[#allocation148_spill] sm:$0xff] %v12462_v46  ;;  %16476 = vst [vmem:[#allocation149_spill] sm:$0xff] %v12466_v6  ;;  %v12476_v20 = vsub.f32 %v16478_v42, %v12432_v8  ;;  %1987 = vadd.xlane.f32.xlu0 %v1986_v14  ;;  %v1865_v21 = vmul.f32 %v12436_v57, %v12436_v57  ;;  %v1993_v45 = vadd.f32 %v1992_v44, %v1863_v17 }
 0x3ae   : > { %v12484_v18 = vsub.f32 %v16479_v23, %v12432_v8  ;;  %v12486_v61 = vmul.f32 0.001, %v1617_v49  ;;  %v12490_v51 = vsub.f32 %v11904_v33, %v12386_v56  ;;  %v1869_v15 = vmul.f32 %v12454_v5, %v12454_v5  ;;  %v1626_v49 = vpop.xlane.xlu0 %1625 }
 0x3af   : > { %v1999_v38 = vadd.f32 %v1998_v59, %v1868_v2  ;;  %v1994_v42 = vadd.f32 %v1993_v45, %v1864_v3  ;;  %v1870_v14 = vmul.f32 %v12458_v10, %v12458_v10  ;;  %v1874_v17 = vmul.f32 %v12472_v27, %v12472_v27  ;;  %v16482_v2 = vld [vmem:[#allocation93_spill] sm:$0xff] }
 0x3b0   : > { %16480 = vst [vmem:[#allocation85_spill] sm:$0xff] %v12484_v18  ;;  %16481 = vst [vmem:[#allocation86_spill] sm:$0xff] %v12490_v51  ;;  %v1875_v44 = vmul.f32 %v12476_v20, %v12476_v20  ;;  %v1871_v23 = vmul.f32 %v12462_v46, %v12462_v46  ;;  %v1872_v33 = vmul.f32 %v12466_v6, %v12466_v6  ;;  %v1635_v35 = vpop.xlane.xlu1 %1634 }
 0x3b1   : > { %v2000_v57 = vadd.f32 %v1999_v38, %v1869_v15  ;;  %v12506_v3 = vsub.f32 %v16482_v2, %v12432_v8  ;;  %v1995_v59 = vadd.f32 %v1994_v42, %v1865_v21  ;;  %v12510_v45 = vsub.f32 %v11887_v9, %v12432_v8  ;;  %v16486_v15 = vld [vmem:[#allocation89_spill] sm:$0xff]  ;;  %v16487_v21 = vld [vmem:[#allocation90_spill] sm:$0xff] }
 0x3b2   : > { %v12514_v10 = vsub.f32 %v11901_v7, %v12432_v8  ;;  %v1876_v46 = vmul.f32 %v12484_v18, %v12484_v18  ;;  %v2007_v6 = vadd.f32 %v1875_v44, %v1874_v17  ;;  %v12520_v38 = vsub.f32 %v16486_v15, %v12478_v29 }
 0x3b3   : > { %16483 = vst [vmem:[#allocation88_spill] sm:$0xff] %v12506_v3  ;;  %16484 = vst [vmem:[#allocation93_spill] sm:$0xff] %v12510_v45  ;;  %v2001_v5 = vadd.f32 %v2000_v57, %v1870_v14  ;;  %v12524_v42 = vsub.f32 %v16487_v21, %v12478_v29  ;;  %v12526_v9 = vmul.f32 0.001, %v1626_v49  ;;  %1996 = vadd.xlane.f32.xlu1 %v1995_v59  ;;  %v16489_v57 = vld [vmem:[#allocation94_spill] sm:$0xff]  ;;  %v16492_v21 = vld [vmem:[#allocation96_spill] sm:$0xff] }
 0x3b4   : > { %16485 = vst [vmem:[#allocation150_spill] sm:$0xff] %v12514_v10  ;;  %v1873_v7 = vmul.f32 %v12490_v51, %v12490_v51  ;;  %v12532_v2 = vsub.f32 %v11909_v43, %v12432_v8  ;;  %v12536_v14 = vsub.f32 %v16489_v57, %v12478_v29  ;;  %v12540_v44 = vsub.f32 %v11940_v22, %v12432_v8 }
 0x3b5   : > { %v2002_v17 = vadd.f32 %v2001_v5, %v1871_v23  ;;  %v1877_v49 = vmul.f32 %v12506_v3, %v12506_v3  ;;  %v2008_v59 = vadd.f32 %v2007_v6, %v1876_v46  ;;  %v12544_v15 = vmul.f32 0.001, %v1635_v35  ;;  %v9686_v6 = vld [vmem:[#allocation8 + $0x104] ss:$16 sps:$4 sm:$0xff]  }
 0x3b6   : > { %16488 = vst [vmem:[#allocation89_spill] sm:$0xff] %v12532_v2  ;;  %16490 = vst [vmem:[#allocation90_spill] sm:$0xff] %v12536_v14  ;;  %v12548_v51 = vsub.f32 %v16492_v21, %v12478_v29  ;;  %v1882_v43 = vmul.f32 %v12520_v38, %v12520_v38  ;;  %v1883_v5 = vmul.f32 %v12524_v42, %v12524_v42  ;;  %v16494_v21 = vld [vmem:[#allocation105_spill] sm:$0xff]  ;;  %4434 = vmatprep.subr.bf16.mxu0 %v9686_v6 }
 0x3b7   : > { %16491 = vst [vmem:[#allocation94_spill] sm:$0xff] %v12540_v44  ;;  %v2003_v23 = vadd.f32 %v2002_v17, %v1872_v33  ;;  %v1878_v22 = vmul.f32 %v12510_v45, %v12510_v45  ;;  %v1879_v57 = vmul.f32 %v12514_v10, %v12514_v10  ;;  %v2009_v46 = vadd.f32 %v2008_v59, %v1877_v49  ;;  %v9684_v33 = vld [vmem:[#allocation8 + $0x100] ss:$16 sps:$4 sm:$0xff]   ;;  %v9689_v17 = vld [vmem:[#allocation8 + $0x10c] ss:$16 sps:$4 sm:$0xff]  }
 0x3b8   : > { %16493 = vst [vmem:[#allocation96_spill] sm:$0xff] %v12548_v51  ;;  %v1880_v35 = vmul.f32 %v12532_v2, %v12532_v2  ;;  %v12562_v18 = vsub.f32 %v16494_v21, %v12478_v29  ;;  %v1884_v3 = vmul.f32 %v12536_v14, %v12536_v14  ;;  %v2016_v30 = vadd.f32 %v1883_v5, %v1882_v43  ;;  %v16497_v49 = vld [vmem:[#allocation91_spill] sm:$0xff]  ;;  %v9687_v2 = vld [vmem:[#allocation8 + $0x108] ss:$16 sps:$4 sm:$0xff]   ;;  %v1644_v21 = vpop.xlane.xlu0 %1643 }
 0x3b9   : > { %v2004_v62 = vadd.f32 %v2003_v23, %v1873_v7  ;;  %v2010_v45 = vadd.f32 %v2009_v46, %v1878_v22  ;;  %v12568_v10 = vsub.f32 %v11957_v19, %v12478_v29  ;;  %v12572_v59 = vsub.f32 %v16497_v49, %v12486_v61  ;;  %v16500_v5 = vld [vmem:[#allocation92_spill] sm:$0xff]  ;;  %4886 = vmatprep.subr.bf16.mxu1 %v9689_v17 }
 0x3ba   : > { %16495 = vst [vmem:[#allocation105_spill] sm:$0xff] %v12562_v18  ;;  %v12576_v12 = vsub.f32 %v11964_v13, %v12478_v29  ;;  %v1885_v43 = vmul.f32 %v12548_v51, %v12548_v51  ;;  %v2017_v7 = vadd.f32 %v2016_v30, %v1884_v3  ;;  %v12582_v23 = vsub.f32 %v16500_v5, %v12486_v61  ;;  %v16503_v13 = vld [vmem:[#allocation95_spill] sm:$0xff] }
 0x3bb   : > { %16496 = vst [vmem:[#allocation151_spill] sm:$0xff] %v12568_v10  ;;  %16498 = vst [vmem:[#allocation91_spill] sm:$0xff] %v12572_v59  ;;  %2005 = vadd.xlane.f32.xlu0 %v2004_v62  ;;  %v1881_v19 = vmul.f32 %v12540_v44, %v12540_v44  ;;  %v2011_v22 = vadd.f32 %v2010_v45, %v1879_v57  ;;  %v12588_v46 = vsub.f32 %v11982_v24, %v12478_v29  ;;  %v9690_v45 = vld [vmem:[#allocation8 + $0x120] ss:$16 sps:$4 sm:$0xff]   ;;  %v9692_v57 = vld [vmem:[#allocation8 + $0x124] ss:$16 sps:$4 sm:$0xff]  }
 0x3bc   : > { %16499 = vst [vmem:[#allocation152_spill] sm:$0xff] %v12576_v12  ;;  %16501 = vst [vmem:[#allocation92_spill] sm:$0xff] %v12582_v23  ;;  %v12592_v6 = vsub.f32 %v16503_v13, %v12486_v61  ;;  %v1886_v30 = vmul.f32 %v12562_v18, %v12562_v18  ;;  %v2018_v3 = vadd.f32 %v2017_v7, %v1885_v43  ;;  %4435 = vmatpush1.bf16.msra.mxu0 %v9684_v33  ;;  %v16505_v13 = vld [vmem:[#allocation98_spill] sm:$0xff]  ;;  %v1653_v18 = vpop.xlane.xlu1 %1652 }
 0x3bd   : > { %16502 = vst [vmem:[#allocation153_spill] sm:$0xff] %v12588_v46  ;;  %v1890_v17 = vmul.f32 %v12572_v59, %v12572_v59  ;;  %v1891_v62 = vmul.f32 %v12582_v23, %v12582_v23  ;;  %v2012_v49 = vadd.f32 %v2011_v22, %v1880_v35  ;;  %v12600_v24 = vmul.f32 0.001, %v1644_v21  ;;  %4887 = vmatpush1.bf16.msra.mxu1 %v9687_v2  ;;  %v9693_v43 = vld [vmem:[#allocation8 + $0x128] ss:$16 sps:$4 sm:$0xff]  }
 0x3be   : > { %16504 = vst [vmem:[#allocation95_spill] sm:$0xff] %v12592_v6  ;;  %v1887_v5 = vmul.f32 %v12568_v10, %v12568_v10  ;;  %v12606_v44 = vsub.f32 %v16505_v13, %v12486_v61  ;;  %v9695_v7 = vld [vmem:[#allocation8 + $0x12c] ss:$16 sps:$4 sm:$0xff]   ;;  %v1888_v14 = vmul.f32 %v12576_v12, %v12576_v12  ;;  %v2019_v33 = vadd.f32 %v2018_v3, %v1886_v30  ;;  %v16509_v10 = vld [vmem:[#allocation99_spill] sm:$0xff] }
 0x3bf   : > { %v12612_v35 = vsub.f32 %v11961_v4, %v12486_v61  ;;  %v12616_v21 = vsub.f32 %v11977_v63, %v12486_v61  ;;  %4436 = vmatprep.subr.bf16.mxu0 %v9692_v57  ;;  %v2013_v22 = vadd.f32 %v2012_v49, %v1881_v19  ;;  %v1892_v2 = vmul.f32 %v12592_v6, %v12592_v6  ;;  %v16512_v63 = vld [vmem:[#allocation100_spill] sm:$0xff]  ;;  %v16519_v12 = vld [vmem:[#allocation114_spill] sm:$0xff] }
 0x3c0   : > { %16506 = vst [vmem:[#allocation98_spill] sm:$0xff] %v12606_v44  ;;  %v2025_v13 = vadd.f32 %v1891_v62, %v1890_v17  ;;  %v12622_v51 = vsub.f32 %v16509_v10, %v12526_v9  ;;  %4888 = vmatprep.subr.bf16.mxu1 %v9695_v7  ;;  %v1889_v30 = vmul.f32 %v12588_v46, %v12588_v46  ;;  %v12634_v17 = vmul.f32 0.001, %v1653_v18  ;;  %v9698_v7 = vld [vmem:[#allocation8 + $0x144] ss:$16 sps:$4 sm:$0xff]  }
 0x3c1   : > { %16507 = vst [vmem:[#allocation154_spill] sm:$0xff] %v12612_v35  ;;  %16508 = vst [vmem:[#allocation155_spill] sm:$0xff] %v12616_v21  ;;  %v2020_v4 = vadd.f32 %v2019_v33, %v1887_v5  ;;  %v12628_v3 = vsub.f32 %v11985_v1, %v12486_v61  ;;  %v12632_v19 = vsub.f32 %v16512_v63, %v12526_v9  ;;  %4437 = vmatpush1.bf16.msra.mxu0 %v9690_v45  ;;  %v16515_v1 = vld [vmem:[#allocation113_spill] sm:$0xff] }
 0x3c2   : > { %16510 = vst [vmem:[#allocation99_spill] sm:$0xff] %v12622_v51  ;;  %2014 = vadd.xlane.f32.xlu1 %v2013_v22  ;;  %v1893_v10 = vmul.f32 %v12606_v44, %v12606_v44  ;;  %v2026_v62 = vadd.f32 %v2025_v13, %v1892_v2  ;;  %v12640_v57 = vsub.f32 %v11928_v28, %v12526_v9  ;;  %v1662_v2 = vpop.xlane.xlu0 %1661  ;;  %v16517_v28 = vld [vmem:[#allocation103_spill] sm:$0xff] }
 0x3c3   : > { %16511 = vst [vmem:[#allocation156_spill] sm:$0xff] %v12628_v3  ;;  %16513 = vst [vmem:[#allocation100_spill] sm:$0xff] %v12632_v19  ;;  %4889 = vmatpush1.bf16.msra.mxu1 %v9693_v43  ;;  %v2021_v49 = vadd.f32 %v2020_v4, %v1888_v14  ;;  %v12644_v5 = vsub.f32 %v16515_v1, %v12486_v61  ;;  %v1894_v45 = vmul.f32 %v12612_v35, %v12612_v35  ;;  %v9696_v13 = vld [vmem:[#allocation8 + $0x140] ss:$16 sps:$4 sm:$0xff]   ;;  %v9701_v4 = vld [vmem:[#allocation8 + $0x14c] ss:$16 sps:$4 sm:$0xff]  }
 0x3c4   : > { %16514 = vst [vmem:[#allocation157_spill] sm:$0xff] %v12640_v57  ;;  %v1898_v18 = vmul.f32 %v12622_v51, %v12622_v51  ;;  %v1895_v33 = vmul.f32 %v12616_v21, %v12616_v21  ;;  %v2027_v22 = vadd.f32 %v2026_v62, %v1893_v10  ;;  %v12654_v43 = vsub.f32 %v16517_v28, %v12526_v9  ;;  %v16521_v10 = vld [vmem:[#allocation116_spill] sm:$0xff]  ;;  %v16535_v51 = vld [vmem:[#allocation117_spill] sm:$0xff] }
 0x3c5   : > { %16516 = vst [vmem:[#allocation113_spill] sm:$0xff] %v12644_v5  ;;  %v1899_v14 = vmul.f32 %v12632_v19, %v12632_v19  ;;  %v2022_v63 = vadd.f32 %v2021_v49, %v1889_v30  ;;  %v1896_v1 = vmul.f32 %v12628_v3, %v12628_v3  ;;  %v12662_v46 = vsub.f32 %v16519_v12, %v12526_v9  ;;  %v9699_v28 = vld [vmem:[#allocation8 + $0x148] ss:$16 sps:$4 sm:$0xff]   ;;  %v16523_v30 = vld [vmem:[#allocation101_spill] sm:$0xff] }
 0x3c6   : > { %16518 = vst [vmem:[#allocation103_spill] sm:$0xff] %v12654_v43  ;;  %v12666_v62 = vsub.f32 %v16521_v10, %v12526_v9  ;;  %4438 = vmatprep.subr.bf16.mxu0 %v9698_v7  ;;  %v2028_v35 = vadd.f32 %v2027_v22, %v1894_v45  ;;  %v1900_v21 = vmul.f32 %v12640_v57, %v12640_v57  ;;  %v12676_v3 = vmul.f32 0.001, %v1662_v2  ;;  %v16525_v10 = vld [vmem:[#allocation102_spill] sm:$0xff]  ;;  %v16527_v45 = vld [vmem:[#allocation104_spill] sm:$0xff]  ;;  %v1671_v2 = vpop.xlane.xlu1 %1670 }
 0x3c7   : > { %16520 = vst [vmem:[#allocation114_spill] sm:$0xff] %v12662_v46  ;;  %v2034_v6 = vadd.f32 %v1899_v14, %v1898_v18  ;;  %v12672_v49 = vsub.f32 %v16523_v30, %v12544_v15  ;;  %4890 = vmatprep.subr.bf16.mxu1 %v9701_v4  ;;  %2023 = vadd.xlane.f32.xlu0 %v2022_v63  ;;  %v16529_v14 = vld [vmem:[#allocation118_spill] sm:$0xff] }
 0x3c8   : > { %16522 = vst [vmem:[#allocation116_spill] sm:$0xff] %v12666_v62  ;;  %v1897_v12 = vmul.f32 %v12644_v5, %v12644_v5  ;;  %v12680_v7 = vsub.f32 %v16525_v10, %v12544_v15  ;;  %v12684_v22 = vsub.f32 %v16527_v45, %v12544_v15  ;;  %v2029_v18 = vadd.f32 %v2028_v35, %v1895_v33  ;;  %v16531_v5 = vld [vmem:[#allocation122_spill] sm:$0xff]  ;;  %v16533_v10 = vld [vmem:[#allocation111_spill] sm:$0xff] }
 0x3c9   : > { %16524 = vst [vmem:[#allocation101_spill] sm:$0xff] %v12672_v49  ;;  %v12688_v30 = vsub.f32 %v16529_v14, %v12526_v9  ;;  %v1901_v4 = vmul.f32 %v12654_v43, %v12654_v43  ;;  %v2035_v63 = vadd.f32 %v2034_v6, %v1900_v21  ;;  %4439 = vmatpush1.bf16.msra.mxu0 %v9696_v13  ;;  %v9702_v45 = vld [vmem:[#allocation8 + $0x160] ss:$16 sps:$4 sm:$0xff]   ;;  %v9704_v14 = vld [vmem:[#allocation8 + $0x164] ss:$16 sps:$4 sm:$0xff]  }
 0x3ca   : > { %16526 = vst [vmem:[#allocation102_spill] sm:$0xff] %v12680_v7  ;;  %16528 = vst [vmem:[#allocation104_spill] sm:$0xff] %v12684_v22  ;;  %v12694_v57 = vsub.f32 %v16531_v5, %v12526_v9  ;;  %v12698_v44 = vsub.f32 %v16533_v10, %v12544_v15  ;;  %v1906_v35 = vmul.f32 %v12672_v49, %v12672_v49  ;;  %4891 = vmatpush1.bf16.msra.mxu1 %v9699_v28  ;;  %v9705_v6 = vld [vmem:[#allocation8 + $0x168] ss:$16 sps:$4 sm:$0xff]   ;;  %v9707_v10 = vld [vmem:[#allocation8 + $0x16c] ss:$16 sps:$4 sm:$0xff]  }
 0x3cb   : > { %16530 = vst [vmem:[#allocation118_spill] sm:$0xff] %v12688_v30  ;;  %v1907_v33 = vmul.f32 %v12680_v7, %v12680_v7  ;;  %v2030_v21 = vadd.f32 %v2029_v18, %v1896_v1  ;;  %v1902_v13 = vmul.f32 %v12662_v46, %v12662_v46  ;;  %v1903_v5 = vmul.f32 %v12666_v62, %v12666_v62  ;;  %v16537_v49 = vld [vmem:[#allocation121_spill] sm:$0xff]  ;;  %v16541_v62 = vld [vmem:[#allocation106_spill] sm:$0xff] }
 0x3cc   : > { %16532 = vst [vmem:[#allocation122_spill] sm:$0xff] %v12694_v57  ;;  %16534 = vst [vmem:[#allocation111_spill] sm:$0xff] %v12698_v44  ;;  %v2036_v43 = vadd.f32 %v2035_v63, %v1901_v4  ;;  %v12710_v19 = vsub.f32 %v16535_v51, %v12544_v15  ;;  %v12714_v7 = vsub.f32 %v16537_v49, %v12544_v15  ;;  %4440 = vmatprep.subr.bf16.mxu0 %v9704_v14  ;;  %v16539_v4 = vld [vmem:[#allocation123_spill] sm:$0xff] }
 0x3cd   : > { %v1908_v28 = vmul.f32 %v12684_v22, %v12684_v22  ;;  %v2043_v1 = vadd.f32 %v1907_v33, %v1906_v35  ;;  %v2031_v18 = vadd.f32 %v2030_v21, %v1897_v12  ;;  %v12718_v46 = vmul.f32 0.001, %v1671_v2  ;;  %4892 = vmatprep.subr.bf16.mxu1 %v9707_v10  ;;  %4441 = vmatpush1.bf16.msra.mxu0 %v9702_v45  ;;  %v16542_v35 = vld [vmem:[#allocation107_spill] sm:$0xff]  ;;  %v16543_v45 = vld [vmem:[#allocation110_spill] sm:$0xff] }
 0x3ce   : > { %16536 = vst [vmem:[#allocation117_spill] sm:$0xff] %v12710_v19  ;;  %16538 = vst [vmem:[#allocation121_spill] sm:$0xff] %v12714_v7  ;;  %v2037_v59 = vadd.f32 %v2036_v43, %v1902_v13  ;;  %v12722_v63 = vsub.f32 %v16539_v4, %v12544_v15  ;;  %v1909_v51 = vmul.f32 %v12698_v44, %v12698_v44  ;;  %4893 = vmatpush1.bf16.msra.mxu1 %v9705_v6  ;;  %v9710_v4 = vld [vmem:[#allocation8 + $0x184] ss:$16 sps:$4 sm:$0xff]  }
 0x3cf   : > { %v2044_v49 = vadd.f32 %v2043_v1, %v1908_v28  ;;  %v12728_v23 = vsub.f32 %v16541_v62, %v12600_v24  ;;  %v12732_v12 = vsub.f32 %v16542_v35, %v12600_v24  ;;  %2032 = vadd.xlane.f32.xlu1 %v2031_v18  ;;  %v1904_v43 = vmul.f32 %v12688_v30, %v12688_v30  ;;  %v16545_v62 = vld [vmem:[#allocation124_spill] sm:$0xff]  ;;  %v16573_v44 = vld [vmem:[#allocation49_spill] sm:$0xff] }
 0x3d0   : > { %16540 = vst [vmem:[#allocation123_spill] sm:$0xff] %v12722_v63  ;;  %v1905_v2 = vmul.f32 %v12694_v57, %v12694_v57  ;;  %v2038_v33 = vadd.f32 %v2037_v59, %v1903_v5  ;;  %v12740_v14 = vsub.f32 %v16543_v45, %v12600_v24  ;;  %v12744_v21 = vsub.f32 %v16545_v62, %v12544_v15  ;;  %v16547_v59 = vld [vmem:[#allocation115_spill] sm:$0xff] }
 0x3d1   : > { %v1910_v13 = vmul.f32 %v12710_v19, %v12710_v19  ;;  %v2045_v6 = vadd.f32 %v2044_v49, %v1909_v51  ;;  %v1914_v10 = vmul.f32 %v12728_v23, %v12728_v23  ;;  %v1911_v1 = vmul.f32 %v12714_v7, %v12714_v7  ;;  %v1680_v51 = vpop.xlane.xlu0 %1679  ;;  %v16549_v49 = vld [vmem:[#allocation125_spill] sm:$0xff]  ;;  %v16552_v7 = vld [vmem:[#allocation108_spill] sm:$0xff]  ;;  %4442 = vmatprep.subr.bf16.mxu0 %v9710_v4 }
 0x3d2   : > { %16544 = vst [vmem:[#allocation106_spill] sm:$0xff] %v12740_v14  ;;  %16546 = vst [vmem:[#allocation107_spill] sm:$0xff] %v12744_v21  ;;  %v2039_v28 = vadd.f32 %v2038_v33, %v1904_v43  ;;  %v12754_v5 = vsub.f32 %v16547_v59, %v12600_v24  ;;  %v1915_v18 = vmul.f32 %v12732_v12, %v12732_v12  ;;  %v9708_v33 = vld [vmem:[#allocation8 + $0x180] ss:$16 sps:$4 sm:$0xff]   ;;  %v9713_v59 = vld [vmem:[#allocation8 + $0x18c] ss:$16 sps:$4 sm:$0xff]  }
 0x3d3   : > { %v1912_v35 = vmul.f32 %v12722_v63, %v12722_v63  ;;  %v2046_v45 = vadd.f32 %v2045_v6, %v1910_v13  ;;  %v12762_v62 = vsub.f32 %v16549_v49, %v12600_v24  ;;  %v12766_v43 = vsub.f32 %v12093_v32, %v12600_v24  ;;  %v9711_v13 = vld [vmem:[#allocation8 + $0x188] ss:$16 sps:$4 sm:$0xff]   ;;  %v16553_v32 = vld [vmem:[#allocation109_spill] sm:$0xff]  ;;  %4894 = vmatprep.subr.bf16.mxu1 %v9713_v59 }
 0x3d4   : > { %16548 = vst [vmem:[#allocation110_spill] sm:$0xff] %v12754_v5  ;;  %v2040_v30 = vadd.f32 %v2039_v28, %v1905_v2  ;;  %v1916_v57 = vmul.f32 %v12740_v14, %v12740_v14  ;;  %v2052_v19 = vadd.f32 %v1915_v18, %v1914_v10  ;;  %v12772_v63 = vsub.f32 %v16552_v7, %v12634_v17  ;;  %v16554_v2 = vld [vmem:[#allocation112_spill] sm:$0xff] }
 0x3d5   : > { %16550 = vst [vmem:[#allocation124_spill] sm:$0xff] %v12762_v62  ;;  %16551 = vst [vmem:[#allocation115_spill] sm:$0xff] %v12766_v43  ;;  %v1913_v6 = vmul.f32 %v12744_v21, %v12744_v21  ;;  %v2047_v49 = vadd.f32 %v2046_v45, %v1911_v1  ;;  %v12778_v22 = vsub.f32 %v16553_v32, %v12634_v17  ;;  %v12784_v10 = vmul.f32 0.001, %v1680_v51  ;;  %v1689_v51 = vpop.xlane.xlu1 %1688 }
 0x3d6   : > { %v12782_v28 = vsub.f32 %v16554_v2, %v12634_v17  ;;  %2041 = vadd.xlane.f32.xlu0 %v2040_v30  ;;  %v12788_v7 = vsub.f32 %v12100_v54, %v12600_v24  ;;  %v1917_v18 = vmul.f32 %v12754_v5, %v12754_v5  ;;  %v2053_v1 = vadd.f32 %v2052_v19, %v1916_v57  ;;  %v16558_v57 = vld [vmem:[#allocation44_spill] sm:$0xff] }
 0x3d7   : > { %v2048_v4 = vadd.f32 %v2047_v49, %v1912_v35  ;;  %v12794_v45 = vsub.f32 %v12118_v60, %v12600_v24  ;;  %v1922_v32 = vmul.f32 %v12772_v63, %v12772_v63  ;;  %v1923_v30 = vmul.f32 %v12778_v22, %v12778_v22  ;;  %4443 = vmatpush1.bf16.msra.mxu0 %v9708_v33  ;;  %v9716_v60 = vld [vmem:[#allocation8 + $0x1a4] ss:$16 sps:$4 sm:$0xff]   ;;  %v16561_v33 = vld [vmem:[#allocation126_spill] sm:$0xff] }
 0x3d8   : > { %16555 = vst [vmem:[#allocation125_spill] sm:$0xff] %v12782_v28  ;;  %16556 = vst [vmem:[#allocation108_spill] sm:$0xff] %v12788_v7  ;;  %v1918_v54 = vmul.f32 %v12762_v62, %v12762_v62  ;;  %v1919_v59 = vmul.f32 %v12766_v43, %v12766_v43  ;;  %v2054_v19 = vadd.f32 %v2053_v1, %v1917_v18  ;;  %4895 = vmatpush1.bf16.msra.mxu1 %v9711_v13  ;;  %v9714_v43 = vld [vmem:[#allocation8 + $0x1a0] ss:$16 sps:$4 sm:$0xff]   ;;  %v9719_v18 = vld [vmem:[#allocation8 + $0x1ac] ss:$16 sps:$4 sm:$0xff]  }
 0x3d9   : > { %16557 = vst [vmem:[#allocation109_spill] sm:$0xff] %v12794_v45  ;;  %v12806_v35 = vsub.f32 %v16558_v57, %v12634_v17  ;;  %v2049_v49 = vadd.f32 %v2048_v4, %v1913_v6  ;;  %v12810_v2 = vsub.f32 %v12097_v25, %v12634_v17  ;;  %v12814_v21 = vsub.f32 %v16561_v33, %v12634_v17  ;;  %v16563_v57 = vld [vmem:[#allocation119_spill] sm:$0xff]  ;;  %v16565_v6 = vld [vmem:[#allocation120_spill] sm:$0xff] }
 0x3da   : > { %v1924_v62 = vmul.f32 %v12782_v28, %v12782_v28  ;;  %v2055_v1 = vadd.f32 %v2054_v19, %v1918_v54  ;;  %v2061_v14 = vadd.f32 %v1923_v30, %v1922_v32  ;;  %v12820_v13 = vsub.f32 %v16563_v57, %v12676_v3  ;;  %4444 = vmatprep.subr.bf16.mxu0 %v9716_v60  ;;  %v9717_v25 = vld [vmem:[#allocation8 + $0x1a8] ss:$16 sps:$4 sm:$0xff]   ;;  %v16568_v57 = vld [vmem:[#allocation127_spill] sm:$0xff] }
 0x3db   : > { %16559 = vst [vmem:[#allocation112_spill] sm:$0xff] %v12806_v35  ;;  %16560 = vst [vmem:[#allocation44_spill] sm:$0xff] %v12810_v2  ;;  %v12824_v4 = vsub.f32 %v16565_v6, %v12676_v3  ;;  %2050 = vadd.xlane.f32.xlu1 %v2049_v49  ;;  %v12826_v33 = vmul.f32 0.001, %v1689_v51  ;;  %v1920_v28 = vmul.f32 %v12788_v7, %v12788_v7  ;;  %v16566_v32 = vld [vmem:[#allocation48_spill] sm:$0xff]  ;;  %4896 = vmatprep.subr.bf16.mxu1 %v9719_v18  ;;  %v16571_v7 = vld [vmem:[#allocation50_spill] sm:$0xff] }
 0x3dc   : > { %16562 = vst [vmem:[#allocation126_spill] sm:$0xff] %v12814_v21  ;;  %16564 = vst [vmem:[#allocation119_spill] sm:$0xff] %v12820_v13  ;;  %v1921_v54 = vmul.f32 %v12794_v45, %v12794_v45  ;;  %v12834_v30 = vsub.f32 %v16566_v32, %v12676_v3  ;;  %v2056_v19 = vadd.f32 %v2055_v1, %v1919_v59  ;;  %4445 = vmatpush1.bf16.msra.mxu0 %v9714_v43  ;;  %v9720_v32 = vld [vmem:[#allocation8 + $0x1c0] ss:$16 sps:$4 sm:$0xff]  }
 0x3dd   : > { %v12838_v6 = vsub.f32 %v16568_v57, %v12634_v17  ;;  %v1925_v60 = vmul.f32 %v12806_v35, %v12806_v35  ;;  %v2062_v51 = vadd.f32 %v2061_v14, %v1924_v62  ;;  %v12844_v49 = vsub.f32 %v12147_v34, %v12634_v17  ;;  %v9722_v57 = vld [vmem:[#allocation8 + $0x1c4] ss:$16 sps:$4 sm:$0xff]   ;;  %4897 = vmatpush1.bf16.msra.mxu1 %v9717_v25 }
 0x3de   : > { %16567 = vst [vmem:[#allocation120_spill] sm:$0xff] %v12834_v30  ;;  %v12848_v45 = vsub.f32 %v16571_v7, %v12676_v3  ;;  %v1930_v59 = vmul.f32 %v12820_v13, %v12820_v13  ;;  %v1931_v1 = vmul.f32 %v12824_v4, %v12824_v4  ;;  %v2057_v5 = vadd.f32 %v2056_v19, %v1920_v28  ;;  %v9725_v7 = vld [vmem:[#allocation8 + $0x1cc] ss:$16 sps:$4 sm:$0xff]   ;;  %v9723_v19 = vld [vmem:[#allocation8 + $0x1c8] ss:$16 sps:$4 sm:$0xff]  }
 0x3df   : > { %16569 = vst [vmem:[#allocation48_spill] sm:$0xff] %v12838_v6  ;;  %16570 = vst [vmem:[#allocation127_spill] sm:$0xff] %v12844_v49  ;;  %v1926_v14 = vmul.f32 %v12810_v2, %v12810_v2  ;;  %v1927_v34 = vmul.f32 %v12814_v21, %v12814_v21  ;;  %v2063_v62 = vadd.f32 %v2062_v51, %v1925_v60  ;;  %4446 = vmatprep.subr.bf16.mxu0 %v9722_v57  ;;  %v16575_v60 = vld [vmem:[#allocation51_spill] sm:$0xff]  ;;  %v16595_v21 = vld [vmem:[#allocation73_spill] sm:$0xff] }
 0x3e0   : > { %v12860_v18 = vsub.f32 %v12150_v39, %v12676_v3  ;;  %v1932_v35 = vmul.f32 %v12834_v30, %v12834_v30  ;;  %v2070_v43 = vadd.f32 %v1931_v1, %v1930_v59  ;;  %v12866_v28 = vsub.f32 %v16573_v44, %v12718_v46  ;;  %4898 = vmatprep.subr.bf16.mxu1 %v9725_v7  ;;  %v16576_v1 = vld [vmem:[#allocation52_spill] sm:$0xff]  ;;  %v16578_v7 = vld [vmem:[#allocation54_spill] sm:$0xff] }
 0x3e1   : > { %v2058_v2 = vadd.f32 %v2057_v5, %v1921_v54  ;;  %v2064_v13 = vadd.f32 %v2063_v62, %v1926_v14  ;;  %v12870_v25 = vsub.f32 %v12161_v26, %v12676_v3  ;;  %v12874_v39 = vsub.f32 %v16575_v60, %v12718_v46  ;;  %4447 = vmatpush1.bf16.msra.mxu0 %v9720_v32  ;;  %v9728_v60 = vld [vmem:[#allocation8 + $0x1e4] ss:$16 sps:$4 sm:$0xff]  }
 0x3e2   : > { %16572 = vst [vmem:[#allocation50_spill] sm:$0xff] %v12860_v18  ;;  %v1928_v51 = vmul.f32 %v12838_v6, %v12838_v6  ;;  %v1933_v44 = vmul.f32 %v12848_v45, %v12848_v45  ;;  %v2071_v59 = vadd.f32 %v2070_v43, %v1932_v35  ;;  %v12882_v5 = vsub.f32 %v16576_v1, %v12718_v46  ;;  %v16582_v6 = vld [vmem:[#allocation128_spill] sm:$0xff] }
 0x3e3   : > { %16574 = vst [vmem:[#allocation49_spill] sm:$0xff] %v12870_v25  ;;  %2059 = vadd.xlane.f32.xlu0 %v2058_v2  ;;  %v1929_v26 = vmul.f32 %v12844_v49, %v12844_v49  ;;  %v2065_v54 = vadd.f32 %v2064_v13, %v1927_v34  ;;  %v12888_v57 = vsub.f32 %v12168_v31, %v12676_v3 }
 0x3e4   : > { %v1938_v14 = vmul.f32 %v12866_v28, %v12866_v28  ;;  %v1934_v35 = vmul.f32 %v12860_v18, %v12860_v18  ;;  %v2072_v62 = vadd.f32 %v2071_v59, %v1933_v44  ;;  %v12896_v43 = vsub.f32 %v16578_v7, %v12718_v46  ;;  %4899 = vmatpush1.bf16.msra.mxu1 %v9723_v19  ;;  %v16581_v19 = vld [vmem:[#allocation59_spill] sm:$0xff] }
 0x3e5   : > { %16577 = vst [vmem:[#allocation51_spill] sm:$0xff] %v12888_v57  ;;  %v1939_v2 = vmul.f32 %v12874_v39, %v12874_v39  ;;  %v2066_v13 = vadd.f32 %v2065_v54, %v1928_v51  ;;  %v12902_v31 = vsub.f32 %v12182_v36, %v12676_v3  ;;  %v1935_v32 = vmul.f32 %v12870_v25, %v12870_v25  ;;  %v9726_v54 = vld [vmem:[#allocation8 + $0x1e0] ss:$16 sps:$4 sm:$0xff]   ;;  %v9731_v36 = vld [vmem:[#allocation8 + $0x1ec] ss:$16 sps:$4 sm:$0xff]  }
 0x3e6   : > { %v12908_v34 = vsub.f32 %v12165_v50, %v12718_v46  ;;  %v2073_v44 = vadd.f32 %v2072_v62, %v1934_v35  ;;  %v1940_v59 = vmul.f32 %v12882_v5, %v12882_v5  ;;  %v12914_v51 = vsub.f32 %v16581_v19, %v12784_v10  ;;  %v16584_v50 = vld [vmem:[#allocation64_spill] sm:$0xff]  ;;  %v16585_v35 = vld [vmem:[#allocation65_spill] sm:$0xff]  ;;  %4448 = vmatprep.subr.bf16.mxu0 %v9728_v60 }
 0x3e7   : > { %16579 = vst [vmem:[#allocation52_spill] sm:$0xff] %v12902_v31  ;;  %v2079_v1 = vadd.f32 %v1939_v2, %v1938_v14  ;;  %v2067_v7 = vadd.f32 %v2066_v13, %v1929_v26  ;;  %v12918_v49 = vsub.f32 %v16582_v6, %v12718_v46  ;;  %v12922_v18 = vsub.f32 %v16584_v50, %v12784_v10  ;;  %v9729_v14 = vld [vmem:[#allocation8 + $0x1e8] ss:$16 sps:$4 sm:$0xff]   ;;  %v16587_v50 = vld [vmem:[#allocation129_spill] sm:$0xff] }
 0x3e8   : > { %16580 = vst [vmem:[#allocation54_spill] sm:$0xff] %v12908_v34  ;;  %v12926_v62 = vsub.f32 %v16585_v35, %v12784_v10  ;;  %v1936_v2 = vmul.f32 %v12888_v57, %v12888_v57  ;;  %v2074_v19 = vadd.f32 %v2073_v44, %v1935_v32  ;;  %v1941_v26 = vmul.f32 %v12896_v43, %v12896_v43 }
 0x3e9   : > { %16583 = vst [vmem:[#allocation59_spill] sm:$0xff] %v12918_v49  ;;  %v2080_v13 = vadd.f32 %v2079_v1, %v1940_v59  ;;  %4900 = vmatprep.subr.bf16.mxu1 %v9731_v36  ;;  %2068 = vadd.xlane.f32.xlu1 %v2067_v7  ;;  %v1937_v6 = vmul.f32 %v12902_v31, %v12902_v31  ;;  %v16589_v1 = vld [vmem:[#allocation71_spill] sm:$0xff] }
 0x3ea   : > { %16586 = vst [vmem:[#allocation128_spill] sm:$0xff] %v12926_v62  ;;  %v12936_v25 = vsub.f32 %v16587_v50, %v12718_v46  ;;  %v1946_v60 = vmul.f32 %v12914_v51, %v12914_v51  ;;  %v1947_v35 = vmul.f32 %v12922_v18, %v12922_v18  ;;  %v2075_v32 = vadd.f32 %v2074_v19, %v1936_v2  ;;  %v9734_v19 = vld [vmem:[#allocation8 + $0x204] ss:$16 sps:$4 sm:$0xff]  }
 0x3eb   : > { %v1942_v44 = vmul.f32 %v12908_v34, %v12908_v34  ;;  %v2081_v59 = vadd.f32 %v2080_v13, %v1941_v26  ;;  %v12946_v36 = vsub.f32 %v16589_v1, %v12784_v10  ;;  %4449 = vmatpush1.bf16.msra.mxu0 %v9726_v54  ;;  %v12950_v7 = vsub.f32 %v12197_v16, %v12718_v46  ;;  %v16593_v54 = vld [vmem:[#allocation70_spill] sm:$0xff] }
 0x3ec   : > { %16588 = vst [vmem:[#allocation64_spill] sm:$0xff] %v12936_v25  ;;  %v1943_v50 = vmul.f32 %v12918_v49, %v12918_v49  ;;  %v12956_v57 = vsub.f32 %v12200_v53, %v12784_v10  ;;  %v1948_v2 = vmul.f32 %v12926_v62, %v12926_v62  ;;  %4901 = vmatpush1.bf16.msra.mxu1 %v9729_v14  ;;  %v9737_v16 = vld [vmem:[#allocation8 + $0x20c] ss:$16 sps:$4 sm:$0xff]  }
 0x3ed   : > { %16590 = vst [vmem:[#allocation65_spill] sm:$0xff] %v12946_v36  ;;  %16591 = vst [vmem:[#allocation129_spill] sm:$0xff] %v12950_v7  ;;  %v2076_v26 = vadd.f32 %v2075_v32, %v1937_v6  ;;  %v2082_v13 = vadd.f32 %v2081_v59, %v1942_v44  ;;  %v2088_v1 = vadd.f32 %v1947_v35, %v1946_v60  ;;  %v16594_v49 = vld [vmem:[#allocation72_spill] sm:$0xff]  ;;  %4531 = vmatprep.subr.bf16.mxu0 %v9734_v19  ;;  %v16597_v6 = vld [vmem:[#allocation131_spill] sm:$0xff] }
 0x3ee   : > { %16592 = vst [vmem:[#allocation71_spill] sm:$0xff] %v12956_v57  ;;  %v12962_v31 = vsub.f32 %v16593_v54, %v12826_v33  ;;  %v1944_v34 = vmul.f32 %v12936_v25, %v12936_v25  ;;  %v12968_v53 = vsub.f32 %v16594_v49, %v12826_v33  ;;  %v12972_v62 = vsub.f32 %v16595_v21, %v12826_v33  ;;  %v16599_v49 = vld [vmem:[#allocation130_spill] sm:$0xff]  ;;  %v16602_v54 = vld [vmem:[#allocation132_spill] sm:$0xff] }
 0x3ef   : > { %2077 = vadd.xlane.f32.xlu0 %v2076_v26  ;;  %v2083_v14 = vadd.f32 %v2082_v13, %v1943_v50  ;;  %v12976_v60 = vsub.f32 %v16597_v6, %v12784_v10  ;;  %v1949_v35 = vmul.f32 %v12946_v36, %v12946_v36  ;;  %v2089_v32 = vadd.f32 %v2088_v1, %v1948_v2  ;;  %v16600_v26 = vld [vmem:[#allocation133_spill] sm:$0xff] }
 0x3f0   : > { %16596 = vst [vmem:[#allocation70_spill] sm:$0xff] %v12972_v62  ;;  %v1945_v44 = vmul.f32 %v12950_v7, %v12950_v7  ;;  %v12984_v59 = vsub.f32 %v16599_v49, %v12826_v33  ;;  %v1954_v21 = vmul.f32 %v12962_v31, %v12962_v31  ;;  %v1955_v50 = vmul.f32 %v12968_v53, %v12968_v53 }
 0x3f1   : > { %16598 = vst [vmem:[#allocation72_spill] sm:$0xff] %v12976_v60  ;;  %4983 = vmatprep.subr.bf16.mxu1 %v9737_v16  ;;  %v2084_v19 = vadd.f32 %v2083_v14, %v1944_v34  ;;  %v12992_v13 = vsub.f32 %v16600_v26, %v12784_v10  ;;  %v1950_v2 = vmul.f32 %v12956_v57, %v12956_v57  ;;  %v16604_v16 = vld [vmem:[#allocation135_spill] sm:$0xff]  ;;  %v16606_v57 = vld [vmem:[#allocation134_spill] sm:$0xff] }
 0x3f2   : > { %v2090_v1 = vadd.f32 %v2089_v32, %v1949_v35  ;;  %v12998_v6 = vsub.f32 %v16602_v54, %v12826_v33  ;;  %v1956_v49 = vmul.f32 %v12972_v62, %v12972_v62  ;;  %v2097_v25 = vadd.f32 %v1955_v50, %v1954_v21  ;;  %v16608_v50 = vld [vmem:[#allocation136_spill] sm:$0xff] }
 0x3f3   : > { %16601 = vst [vmem:[#allocation73_spill] sm:$0xff] %v12992_v13  ;;  %v2085_v7 = vadd.f32 %v2084_v19, %v1945_v44  ;;  %v13004_v34 = vsub.f32 %v16604_v16, %v12784_v10  ;;  %v1951_v14 = vmul.f32 %v12976_v60, %v12976_v60  ;;  %v13010_v35 = vsub.f32 %v16606_v57, %v12826_v33  ;;  %v16610_v60 = vld [vmem:[#allocation137_spill] sm:$0xff] }
 0x3f4   : > { %16603 = vst [vmem:[#allocation131_spill] sm:$0xff] %v12998_v6  ;;  %v2091_v26 = vadd.f32 %v2090_v1, %v1950_v2  ;;  %v1957_v32 = vmul.f32 %v12984_v59, %v12984_v59  ;;  %v2098_v54 = vadd.f32 %v2097_v25, %v1956_v49  ;;  %v1952_v44 = vmul.f32 %v12992_v13, %v12992_v13 }
 0x3f5   : > { %16605 = vst [vmem:[#allocation130_spill] sm:$0xff] %v13004_v34  ;;  %16607 = vst [vmem:[#allocation133_spill] sm:$0xff] %v13010_v35  ;;  %2086 = vadd.xlane.f32.xlu1 %v2085_v7  ;;  %v13018_v19 = vsub.f32 %v16608_v50, %v12826_v33  ;;  %v1958_v2 = vmul.f32 %v12998_v6, %v12998_v6  ;;  %v1953_v57 = vmul.f32 %v13004_v34, %v13004_v34  ;;  %v16617_v34 = vld [vmem:[#allocation57_spill] sm:$0xff] }
 0x3f6   : > { %v2092_v21 = vadd.f32 %v2091_v26, %v1951_v14  ;;  %v2099_v1 = vadd.f32 %v2098_v54, %v1957_v32  ;;  %v13026_v25 = vsub.f32 %v16610_v60, %v12826_v33  ;;  %v1959_v7 = vmul.f32 %v13010_v35, %v13010_v35 }
 0x3f7   : > { %16609 = vst [vmem:[#allocation132_spill] sm:$0xff] %v13018_v19  ;;  %v1960_v26 = vmul.f32 %v13018_v19, %v13018_v19  ;;  %v2106_v60 = vmul.f32 %v12234_v40, %v12234_v40 }
 0x3f8   : > { %v2093_v16 = vadd.f32 %v2092_v21, %v1952_v44  ;;  %16611 = vst [vmem:[#allocation135_spill] sm:$0xff] %v13026_v25  ;;  %v2100_v49 = vadd.f32 %v2099_v1, %v1958_v2  ;;  %v1961_v32 = vmul.f32 %v13026_v25, %v13026_v25  ;;  %v2107_v2 = vmul.f32 %v12248_v58, %v12248_v58  ;;  %v13042_v58 = vld [vmem:[#allocation5] sm:$0xff] }
 0x3f9   : > { %v2122_v44 = vmul.f32 24.0, %v2106_v60 }
 0x3fa   : > { %v2094_v14 = vadd.f32 %v2093_v16, %v1953_v57  ;;  %v2101_v50 = vadd.f32 %v2100_v49, %v1959_v7  ;;  %v2123_v16 = vmul.f32 24.0, %v2107_v2 }
 0x3fc   : > { %2095 = vadd.xlane.f32.xlu0 %v2094_v14  ;;  %v2102_v54 = vadd.f32 %v2101_v50, %v1960_v26  ;;  %v2108_v14 = vmul.f32 %v12284_v48, %v12284_v48 }
 0x3fe   : > { %v2103_v13 = vadd.f32 %v2102_v54, %v1961_v32  ;;  %v2124_v50 = vmul.f32 24.0, %v2108_v14  ;;  %v2109_v54 = vmul.f32 %v12332_v37, %v12332_v37 }
 0x400   : > { %2104 = vadd.xlane.f32.xlu1 %v2103_v13  ;;  %v2125_v2 = vmul.f32 24.0, %v2109_v54 }
 0x42f   : > { %v1970_v21 = vpop.xlane.xlu0 %1969 }
 0x430   : > { %v2138_v1 = vsub.f32 %v1970_v21, %v2122_v44  ;;  %v13044_v44 = vld [vmem:[#allocation7] sm:$0xff] }
 0x432   : > { %v2154_v57 = vmul.f32 0.001, %v2138_v1  ;;  %v16612_v1 = vld [vmem:[#allocation46_spill] sm:$0xff] }
 0x433   : > { %v13048_v48 = vrot.slane %v13042_v58, %v16612_v1 }
 0x434   : > { %v2170_v19 = vadd.f32 1e-05, %v2154_v57  ;;  %v1979_v7 = vpop.xlane.xlu1 %1978 }
 0x435   : > { %v2139_v49 = vsub.f32 %v1979_v7, %v2123_v16 }
 0x436   : > { %10148 = vrsqrt.f32 %v2170_v19  ;;  %v16613_v19 = vld [vmem:[#allocation45_spill] sm:$0xff] }
 0x437   : > { %v2155_v26 = vmul.f32 0.001, %v2139_v49  ;;  %v13052_v57 = vrot.slane %v13042_v58, %v16613_v19  ;;  %v16614_v49 = vld [vmem:[#allocation56_spill] sm:$0xff] }
 0x439   : > { %v2171_v13 = vadd.f32 1e-05, %v2155_v26  ;;  %v16615_v26 = vld [vmem:[#allocation55_spill] sm:$0xff] }
 0x43a   : > { %v1988_v32 = vpop.xlane.xlu0 %1987 }
 0x43b   : > { %10150 = vrsqrt.f32 %v2171_v13  ;;  %v2140_v40 = vsub.f32 %v1988_v32, %v2124_v50  ;;  %v2110_v50 = vmul.f32 %v12386_v56, %v12386_v56  ;;  %v13064_v32 = vrot.slane %v13044_v44, %v16612_v1 }
 0x43d   : > { %v2156_v60 = vmul.f32 0.001, %v2140_v40 }
 0x43f   : > { %v2172_v21 = vadd.f32 1e-05, %v2156_v60 }
 0x440   : > { %v13054_v16 = vpop.eup %10148  ;;  %v1997_v7 = vpop.xlane.xlu1 %1996 }
 0x441   : > { %10152 = vrsqrt.f32 %v2172_v21  ;;  %v2141_v37 = vsub.f32 %v1997_v7, %v2125_v2  ;;  %v2203_v14 = vmul.f32 %v13054_v16, %v16614_v49  ;;  %v2202_v13 = vmul.f32 %v13054_v16, %v16615_v26  ;;  %v16616_v26 = vld [vmem:[#allocation58_spill] sm:$0xff] }
 0x442   : > { %v13070_v21 = vrot.slane %v13044_v44, %v16613_v19  ;;  %v2126_v49 = vmul.f32 24.0, %v2110_v50 }
 0x443   : > { %v2157_v40 = vmul.f32 0.001, %v2141_v37  ;;  %v2372_v54 = vmul.f32 %v13048_v48, %v2203_v14  ;;  %v2371_v60 = vmul.f32 %v13052_v57, %v2202_v13  ;;  %v2111_v14 = vmul.f32 %v12432_v8, %v12432_v8 }
 0x445   : > { %v13072_v2 = vpop.eup %10150  ;;  %v2173_v7 = vadd.f32 1e-05, %v2157_v40  ;;  %v2541_v13 = vadd.f32 %v13064_v32, %v2372_v54  ;;  %v2540_v19 = vadd.f32 %v13070_v21, %v2371_v60 }
 0x446   : > { %v2211_v56 = vmul.f32 %v13072_v2, %v16616_v26  ;;  %v2210_v1 = vmul.f32 %v13072_v2, %v16617_v34 }
 0x447   : > { %10154 = vrsqrt.f32 %v2173_v7  ;;  %v2127_v7 = vmul.f32 24.0, %v2111_v14  ;;  %v2669_v62 = vmax.f32 %v2541_v13, 0.0  ;;  %v2668_v36 = vmax.f32 %v2540_v19, 0.0  ;;  %v9732_v14 = vld [vmem:[#allocation8 + $0x200] ss:$16 sps:$4 sm:$0xff]  }
 0x448   : > { %v2006_v37 = vpop.xlane.xlu0 %2005  ;;  %v2380_v6 = vmul.f32 %v13048_v48, %v2211_v56  ;;  %v2379_v50 = vmul.f32 %v13052_v57, %v2210_v1  ;;  %v2112_v1 = vmul.f32 %v12478_v29, %v12478_v29  ;;  %v9735_v13 = vld [vmem:[#allocation8 + $0x208] ss:$16 sps:$4 sm:$0xff]   ;;  %v9740_v19 = vld [vmem:[#allocation8 + $0x224] ss:$16 sps:$4 sm:$0xff]  }
 0x449   : > { %v2142_v25 = vsub.f32 %v2006_v37, %v2126_v49 }
 0x44a   : > { %v2549_v26 = vadd.f32 %v13064_v32, %v2380_v6  ;;  %v2548_v35 = vadd.f32 %v13070_v21, %v2379_v50  ;;  %v9743_v50 = vld [vmem:[#allocation8 + $0x22c] ss:$16 sps:$4 sm:$0xff]   ;;  %v2128_v29 = vmul.f32 24.0, %v2112_v1  ;;  %v9746_v1 = vld [vmem:[#allocation8 + $0x244] ss:$16 sps:$4 sm:$0xff]  }
 0x44b   : > { %v2158_v40 = vmul.f32 0.001, %v2142_v25  ;;  %v13086_v34 = vpop.eup %10152 }
 0x44c   : > { %v2677_v30 = vmax.f32 %v2549_v26, 0.0  ;;  %v2676_v54 = vmax.f32 %v2548_v35, 0.0  ;;  %v2219_v60 = vmul.f32 %v13086_v34, %v12320_v55  ;;  %v2218_v6 = vmul.f32 %v13086_v34, %v12316_v11 }
 0x44d   : > { %v2174_v8 = vadd.f32 1e-05, %v2158_v40 }
 0x44e   : > { %v2797_v56 = vpack.c.bf16 %v2677_v30, %v2669_v62  ;;  %v2796_v37 = vpack.c.bf16 %v2676_v54, %v2668_v36  ;;  %v2388_v35 = vmul.f32 %v13048_v48, %v2219_v60  ;;  %v2387_v55 = vmul.f32 %v13052_v57, %v2218_v6  ;;  %v9738_v62 = vld [vmem:[#allocation8 + $0x220] ss:$16 sps:$4 sm:$0xff]   ;;  %v9741_v36 = vld [vmem:[#allocation8 + $0x228] ss:$16 sps:$4 sm:$0xff]   ;;  %v9749_v6 = vld [vmem:[#allocation8 + $0x24c] ss:$16 sps:$4 sm:$0xff]  }
 0x44f   : > { %v2015_v49 = vpop.xlane.xlu1 %2014  ;;  %10156 = vrsqrt.f32 %v2174_v8  ;;  %v2113_v30 = vmul.f32 %v12486_v61, %v12486_v61 }
 0x450   : > { %v2143_v25 = vsub.f32 %v2015_v49, %v2127_v7  ;;  %4450 = vmatprep.mubr.bf16.mxu0 %v2797_v56  ;;  %4902 = vmatprep.mubr.bf16.mxu1 %v2797_v56  ;;  %v2557_v49 = vadd.f32 %v13064_v32, %v2388_v35  ;;  %v2556_v56 = vadd.f32 %v13070_v21, %v2387_v55  ;;  %v9752_v35 = vld [vmem:[#allocation8 + $0x264] ss:$16 sps:$4 sm:$0xff]  }
 0x451   : > { %v13096_v26 = vpop.eup %10154  ;;  %4451 = vmatmul.mubr.bf16.vlgmr.msra.gmra.mrb[64].mxu0 %v2796_v37  ;;  %4903 = vmatmul.mubr.bf16.vlgmr.msra.gmra.mrb[64].mxu1 %v2796_v37 }
 0x452   : > { %v2159_v40 = vmul.f32 0.001, %v2143_v25  ;;  %4532 = vmatpush1.bf16.msra.mxu0 %v9732_v14  ;;  %4984 = vmatpush1.bf16.msra.mxu1 %v9735_v13  ;;  %v2227_v8 = vmul.f32 %v13096_v26, %v12378_v0  ;;  %v2226_v54 = vmul.f32 %v13096_v26, %v12366_v41  ;;  %v2129_v14 = vmul.f32 24.0, %v2113_v30  ;;  %v9744_v13 = vld [vmem:[#allocation8 + $0x240] ss:$16 sps:$4 sm:$0xff]  }
 0x453   : > { %4533 = vmatprep.subr.bf16.mxu0 %v9740_v19  ;;  %4985 = vmatprep.subr.bf16.mxu1 %v9743_v50  ;;  %v9747_v19 = vld [vmem:[#allocation8 + $0x248] ss:$16 sps:$4 sm:$0xff]   ;;  %v2684_v55 = vmax.f32 %v2556_v56, 0.0  ;;  %v9761_v56 = vld [vmem:[#allocation8 + $0x28c] ss:$16 sps:$4 sm:$0xff]  }
 0x454   : > { %v2175_v11 = vadd.f32 1e-05, %v2159_v40  ;;  %v2024_v7 = vpop.xlane.xlu0 %2023  ;;  %v2396_v61 = vmul.f32 %v13048_v48, %v2227_v8  ;;  %v2395_v25 = vmul.f32 %v13052_v57, %v2226_v54  ;;  %v9755_v40 = vld [vmem:[#allocation8 + $0x26c] ss:$16 sps:$4 sm:$0xff]  }
 0x455   : > { %v2144_v60 = vsub.f32 %v2024_v7, %v2128_v29 }
 0x456   : > { %10158 = vrsqrt.f32 %v2175_v11  ;;  %4534 = vmatpush1.bf16.msra.mxu0 %v9738_v62  ;;  %4986 = vmatpush1.bf16.msra.mxu1 %v9741_v36  ;;  %v2565_v41 = vadd.f32 %v13064_v32, %v2396_v61  ;;  %v2564_v0 = vadd.f32 %v13070_v21, %v2395_v25  ;;  %v2685_v11 = vmax.f32 %v2557_v49, 0.0  ;;  %v9750_v49 = vld [vmem:[#allocation8 + $0x260] ss:$16 sps:$4 sm:$0xff]   ;;  %v9753_v61 = vld [vmem:[#allocation8 + $0x268] ss:$16 sps:$4 sm:$0xff]  }
 0x457   : > { %v2160_v37 = vmul.f32 0.001, %v2144_v60  ;;  %4535 = vmatprep.subr.bf16.mxu0 %v9746_v1  ;;  %4987 = vmatprep.subr.bf16.mxu1 %v9749_v6  ;;  %v2114_v62 = vmul.f32 %v12526_v9, %v12526_v9  ;;  %v9758_v25 = vld [vmem:[#allocation8 + $0x284] ss:$16 sps:$4 sm:$0xff]  }
 0x458   : > { %v2693_v7 = vmax.f32 %v2565_v41, 0.0  ;;  %v2692_v8 = vmax.f32 %v2564_v0, 0.0  ;;  %v9756_v0 = vld [vmem:[#allocation8 + $0x280] ss:$16 sps:$4 sm:$0xff]  }
 0x459   : > { %v2176_v50 = vadd.f32 1e-05, %v2160_v37  ;;  %v13110_v29 = vpop.eup %10156  ;;  %v2130_v9 = vmul.f32 24.0, %v2114_v62 }
 0x45a   : > { %v2235_v36 = vmul.f32 %v13110_v29, %v12426_v47  ;;  %v2234_v54 = vmul.f32 %v13110_v29, %v12422_v52  ;;  %v2805_v1 = vpack.c.bf16 %v2693_v7, %v2685_v11  ;;  %v2804_v6 = vpack.c.bf16 %v2692_v8, %v2684_v55  ;;  %4536 = vmatpush1.bf16.msra.mxu0 %v9744_v13  ;;  %v9759_v13 = vld [vmem:[#allocation8 + $0x288] ss:$16 sps:$4 sm:$0xff]   ;;  %v9764_v11 = vld [vmem:[#allocation8 + $0x2a4] ss:$16 sps:$4 sm:$0xff]   ;;  %v9767_v7 = vld [vmem:[#allocation8 + $0x2ac] ss:$16 sps:$4 sm:$0xff]  }
 0x45b   : > { %10160 = vrsqrt.f32 %v2176_v50  ;;  %4988 = vmatpush1.bf16.msra.mxu1 %v9747_v19  ;;  %4537 = vmatprep.subr.bf16.mxu0 %v9752_v35  ;;  %v2115_v50 = vmul.f32 %v12544_v15, %v12544_v15 }
 0x45c   : > { %v2033_v30 = vpop.xlane.xlu1 %2032  ;;  %4989 = vmatprep.subr.bf16.mxu1 %v9755_v40  ;;  %4460 = vmatprep.mubr.bf16.mxu0 %v2805_v1  ;;  %v2404_v47 = vmul.f32 %v13048_v48, %v2235_v36  ;;  %v2403_v41 = vmul.f32 %v13052_v57, %v2234_v54  ;;  %v9765_v54 = vld [vmem:[#allocation8 + $0x2a8] ss:$16 sps:$4 sm:$0xff]  }
 0x45d   : > { %v2145_v60 = vsub.f32 %v2033_v30, %v2129_v14  ;;  %4912 = vmatprep.mubr.bf16.mxu1 %v2805_v1  ;;  %4461 = vmatmul.mubr.bf16.gmra.mrb[68].mxu0 %v2804_v6 }
 0x45e   : > { %4913 = vmatmul.mubr.bf16.gmra.mrb[68].mxu1 %v2804_v6  ;;  %4538 = vmatpush1.bf16.msra.mxu0 %v9750_v49  ;;  %v2573_v30 = vadd.f32 %v13064_v32, %v2404_v47  ;;  %v2572_v15 = vadd.f32 %v13070_v21, %v2403_v41  ;;  %v9770_v49 = vld [vmem:[#allocation8 + $0x2c4] ss:$16 sps:$4 sm:$0xff]  }
 0x45f   : > { %v2161_v37 = vmul.f32 0.001, %v2145_v60  ;;  %4990 = vmatpush1.bf16.msra.mxu1 %v9753_v61  ;;  %4539 = vmatprep.subr.bf16.mxu0 %v9758_v25  ;;  %v2131_v60 = vmul.f32 24.0, %v2115_v50  ;;  %v9773_v61 = vld [vmem:[#allocation8 + $0x2cc] ss:$16 sps:$4 sm:$0xff]  }
 0x460   : > { %v13119_v52 = vpop.eup %10158  ;;  %4991 = vmatprep.subr.bf16.mxu1 %v9761_v56  ;;  %v2701_v47 = vmax.f32 %v2573_v30, 0.0 }
 0x461   : > { %v2177_v14 = vadd.f32 1e-05, %v2161_v37  ;;  %v2243_v35 = vmul.f32 %v13119_v52, %v12476_v20  ;;  %v2242_v40 = vmul.f32 %v13119_v52, %v12472_v27  ;;  %v9762_v20 = vld [vmem:[#allocation8 + $0x2a0] ss:$16 sps:$4 sm:$0xff]  }
 0x462   : > { %4540 = vmatpush1.bf16.msra.mxu0 %v9756_v0  ;;  %v2116_v0 = vmul.f32 %v12600_v24, %v12600_v24 }
 0x463   : > { %v2042_v19 = vpop.xlane.xlu0 %2041  ;;  %10162 = vrsqrt.f32 %v2177_v14  ;;  %v2412_v8 = vmul.f32 %v13048_v48, %v2243_v35  ;;  %v2411_v62 = vmul.f32 %v13052_v57, %v2242_v40  ;;  %4992 = vmatpush1.bf16.msra.mxu1 %v9759_v13  ;;  %4541 = vmatprep.subr.bf16.mxu0 %v9764_v11  ;;  %v2700_v13 = vmax.f32 %v2572_v15, 0.0  ;;  %v9768_v40 = vld [vmem:[#allocation8 + $0x2c0] ss:$16 sps:$4 sm:$0xff]   ;;  %v9771_v11 = vld [vmem:[#allocation8 + $0x2c8] ss:$16 sps:$4 sm:$0xff]  }
 0x464   : > { %v2146_v55 = vsub.f32 %v2042_v19, %v2130_v9  ;;  %4993 = vmatprep.subr.bf16.mxu1 %v9767_v7  ;;  %v16618_v15 = vld [vmem:[#allocation92_spill] sm:$0xff] }
 0x465   : > { %v13132_v27 = vpop.eup %10160  ;;  %v2581_v1 = vadd.f32 %v13064_v32, %v2412_v8  ;;  %v2580_v6 = vadd.f32 %v13070_v21, %v2411_v62  ;;  %v9779_v8 = vld [vmem:[#allocation8 + $0x2ec] ss:$16 sps:$4 sm:$0xff]   ;;  %v2132_v62 = vmul.f32 24.0, %v2116_v0 }
 0x466   : > { %v2162_v36 = vmul.f32 0.001, %v2146_v55  ;;  %v2251_v37 = vmul.f32 %v13132_v27, %v12524_v42  ;;  %4542 = vmatpush1.bf16.msra.mxu0 %v9762_v20  ;;  %v2250_v19 = vmul.f32 %v13132_v27, %v12520_v38  ;;  %v9776_v55 = vld [vmem:[#allocation8 + $0x2e4] ss:$16 sps:$4 sm:$0xff]  }
 0x467   : > { %v2709_v14 = vmax.f32 %v2581_v1, 0.0  ;;  %v2708_v41 = vmax.f32 %v2580_v6, 0.0  ;;  %4994 = vmatpush1.bf16.msra.mxu1 %v9765_v54  ;;  %4543 = vmatprep.subr.bf16.mxu0 %v9770_v49  ;;  %v16619_v54 = vld [vmem:[#allocation91_spill] sm:$0xff]  ;;  %v9777_v6 = vld [vmem:[#allocation8 + $0x2e8] ss:$16 sps:$4 sm:$0xff]  }
 0x468   : > { %v2178_v25 = vadd.f32 1e-05, %v2162_v36  ;;  %v2051_v56 = vpop.xlane.xlu1 %2050  ;;  %4995 = vmatprep.subr.bf16.mxu1 %v9773_v61  ;;  %v2420_v7 = vmul.f32 %v13048_v48, %v2251_v37  ;;  %v2419_v38 = vmul.f32 %v13052_v57, %v2250_v19  ;;  %v9774_v1 = vld [vmem:[#allocation8 + $0x2e0] ss:$16 sps:$4 sm:$0xff]   ;;  %v2117_v61 = vmul.f32 %v12634_v17, %v12634_v17  ;;  %v9785_v37 = vld [vmem:[#allocation8 + $0x30c] ss:$16 sps:$4 sm:$0xff]  }
 0x469   : > { %v2147_v9 = vsub.f32 %v2051_v56, %v2131_v60  ;;  %v2813_v35 = vpack.c.bf16 %v2709_v14, %v2701_v47  ;;  %v2812_v42 = vpack.c.bf16 %v2708_v41, %v2700_v13  ;;  %v9782_v56 = vld [vmem:[#allocation8 + $0x304] ss:$16 sps:$4 sm:$0xff]   ;;  %v9780_v17 = vld [vmem:[#allocation8 + $0x300] ss:$16 sps:$4 sm:$0xff]   ;;  %v9783_v19 = vld [vmem:[#allocation8 + $0x308] ss:$16 sps:$4 sm:$0xff]  }
 0x46a   : > { %10164 = vrsqrt.f32 %v2178_v25  ;;  %4544 = vmatpush1.bf16.msra.mxu0 %v9768_v40  ;;  %v2589_v25 = vadd.f32 %v13064_v32, %v2420_v7  ;;  %v2588_v41 = vadd.f32 %v13070_v21, %v2419_v38  ;;  %v2133_v40 = vmul.f32 24.0, %v2117_v61  ;;  %v9788_v7 = vld [vmem:[#allocation8 + $0x324] ss:$16 sps:$4 sm:$0xff]  }
 0x46b   : > { %v2163_v50 = vmul.f32 0.001, %v2147_v9  ;;  %4470 = vmatprep.mubr.bf16.mxu0 %v2813_v35  ;;  %4922 = vmatprep.mubr.bf16.mxu1 %v2813_v35 }
 0x46c   : > { %4471 = vmatmul.mubr.bf16.gmra.mrb[72].mxu0 %v2812_v42  ;;  %4923 = vmatmul.mubr.bf16.gmra.mrb[72].mxu1 %v2812_v42  ;;  %v2717_v42 = vmax.f32 %v2589_v25, 0.0  ;;  %v9789_v25 = vld [vmem:[#allocation8 + $0x328] ss:$16 sps:$4 sm:$0xff]  }
 0x46d   : > { %v2179_v30 = vadd.f32 1e-05, %v2163_v50  ;;  %v13143_v24 = vpop.eup %10162  ;;  %4996 = vmatpush1.bf16.msra.mxu1 %v9771_v11  ;;  %4545 = vmatprep.subr.bf16.mxu0 %v9776_v55  ;;  %v2118_v11 = vmul.f32 %v12676_v3, %v12676_v3  ;;  %v9791_v3 = vld [vmem:[#allocation8 + $0x32c] ss:$16 sps:$4 sm:$0xff]  }
 0x46e   : > { %v2259_v20 = vmul.f32 %v13143_v24, %v16618_v15  ;;  %v2258_v60 = vmul.f32 %v13143_v24, %v16619_v54  ;;  %4997 = vmatprep.subr.bf16.mxu1 %v9779_v8  ;;  %4546 = vmatpush1.bf16.msra.mxu0 %v9774_v1  ;;  %v2716_v54 = vmax.f32 %v2588_v41, 0.0  ;;  %v9786_v1 = vld [vmem:[#allocation8 + $0x320] ss:$16 sps:$4 sm:$0xff]  }
 0x46f   : > { %10166 = vrsqrt.f32 %v2179_v30  ;;  %4547 = vmatprep.subr.bf16.mxu0 %v9782_v56  ;;  %v9794_v56 = vld [vmem:[#allocation8 + $0x344] ss:$16 sps:$4 sm:$0xff]  }
 0x470   : > { %v2060_v36 = vpop.xlane.xlu0 %2059  ;;  %v2428_v9 = vmul.f32 %v13048_v48, %v2259_v20  ;;  %v2427_v47 = vmul.f32 %v13052_v57, %v2258_v60 }
 0x471   : > { %v2148_v49 = vsub.f32 %v2060_v36, %v2132_v62  ;;  %4998 = vmatpush1.bf16.msra.mxu1 %v9777_v6  ;;  %v16620_v62 = vld [vmem:[#allocation100_spill] sm:$0xff]  ;;  %v16621_v36 = vld [vmem:[#allocation99_spill] sm:$0xff] }
 0x472   : > { %v2597_v0 = vadd.f32 %v13064_v32, %v2428_v9  ;;  %v2596_v13 = vadd.f32 %v13070_v21, %v2427_v47  ;;  %4999 = vmatprep.subr.bf16.mxu1 %v9785_v37  ;;  %4548 = vmatpush1.bf16.msra.mxu0 %v9780_v17  ;;  %v2134_v9 = vmul.f32 24.0, %v2118_v11  ;;  %v9792_v11 = vld [vmem:[#allocation8 + $0x340] ss:$16 sps:$4 sm:$0xff]  }
 0x473   : > { %v2164_v14 = vmul.f32 0.001, %v2148_v49  ;;  %4549 = vmatprep.subr.bf16.mxu0 %v9788_v7 }
 0x474   : > { %v13158_v50 = vpop.eup %10164  ;;  %v2725_v8 = vmax.f32 %v2597_v0, 0.0  ;;  %v2724_v30 = vmax.f32 %v2596_v13, 0.0  ;;  %v16622_v13 = vld [vmem:[#allocation102_spill] sm:$0xff] }
 0x475   : > { %v2180_v35 = vadd.f32 1e-05, %v2164_v14  ;;  %v2267_v38 = vmul.f32 %v13158_v50, %v16620_v62  ;;  %v2266_v15 = vmul.f32 %v13158_v50, %v16621_v36  ;;  %5000 = vmatpush1.bf16.msra.mxu1 %v9783_v19  ;;  %v9797_v14 = vld [vmem:[#allocation8 + $0x34c] ss:$16 sps:$4 sm:$0xff]   ;;  %v9800_v62 = vld [vmem:[#allocation8 + $0x364] ss:$16 sps:$4 sm:$0xff]  }
 0x476   : > { %v2069_v55 = vpop.xlane.xlu1 %2068  ;;  %v2821_v60 = vpack.c.bf16 %v2725_v8, %v2717_v42  ;;  %v2820_v49 = vpack.c.bf16 %v2724_v30, %v2716_v54  ;;  %v2119_v42 = vmul.f32 %v12718_v46, %v12718_v46  ;;  %5001 = vmatprep.subr.bf16.mxu1 %v9791_v3  ;;  %4550 = vmatpush1.bf16.msra.mxu0 %v9786_v1  ;;  %v9795_v30 = vld [vmem:[#allocation8 + $0x348] ss:$16 sps:$4 sm:$0xff]   ;;  %v9798_v1 = vld [vmem:[#allocation8 + $0x360] ss:$16 sps:$4 sm:$0xff]  }
 0x477   : > { %10168 = vrsqrt.f32 %v2180_v35  ;;  %v2149_v20 = vsub.f32 %v2069_v55, %v2133_v40  ;;  %v2436_v61 = vmul.f32 %v13048_v48, %v2267_v38  ;;  %v2435_v47 = vmul.f32 %v13052_v57, %v2266_v15  ;;  %v16623_v35 = vld [vmem:[#allocation101_spill] sm:$0xff]  ;;  %4551 = vmatprep.subr.bf16.mxu0 %v9794_v56  ;;  %v9803_v15 = vld [vmem:[#allocation8 + $0x36c] ss:$16 sps:$4 sm:$0xff]  }
 0x478   : > { %4480 = vmatprep.mubr.bf16.mxu0 %v2821_v60  ;;  %4932 = vmatprep.mubr.bf16.mxu1 %v2821_v60  ;;  %v2135_v60 = vmul.f32 24.0, %v2119_v42  ;;  %v9812_v42 = vld [vmem:[#allocation8 + $0x3a4] ss:$16 sps:$4 sm:$0xff]  }
 0x479   : > { %v2165_v6 = vmul.f32 0.001, %v2149_v20  ;;  %v13167_v37 = vpop.eup %10166  ;;  %4481 = vmatmul.mubr.bf16.gmra.mrb[76].mxu0 %v2820_v49  ;;  %4933 = vmatmul.mubr.bf16.gmra.mrb[76].mxu1 %v2820_v49  ;;  %v2605_v55 = vadd.f32 %v13064_v32, %v2436_v61  ;;  %v2604_v36 = vadd.f32 %v13070_v21, %v2435_v47  ;;  %v2120_v49 = vmul.f32 %v12784_v10, %v12784_v10 }
 0x47a   : > { %v2275_v17 = vmul.f32 %v13167_v37, %v16622_v13  ;;  %v2274_v19 = vmul.f32 %v13167_v37, %v16623_v35  ;;  %5002 = vmatpush1.bf16.msra.mxu1 %v9789_v25  ;;  %4552 = vmatpush1.bf16.msra.mxu0 %v9792_v11  ;;  %v9801_v13 = vld [vmem:[#allocation8 + $0x368] ss:$16 sps:$4 sm:$0xff]  }
 0x47b   : > { %v2181_v41 = vadd.f32 1e-05, %v2165_v6  ;;  %5003 = vmatprep.subr.bf16.mxu1 %v9797_v14  ;;  %v2733_v61 = vmax.f32 %v2605_v55, 0.0  ;;  %4553 = vmatprep.subr.bf16.mxu0 %v9800_v62  ;;  %v2732_v47 = vmax.f32 %v2604_v36, 0.0  ;;  %v9807_v62 = vld [vmem:[#allocation8 + $0x388] ss:$16 sps:$4 sm:$0xff]  }
 0x47c   : > { %v2078_v0 = vpop.xlane.xlu0 %2077  ;;  %v2444_v7 = vmul.f32 %v13048_v48, %v2275_v17  ;;  %v2443_v8 = vmul.f32 %v13052_v57, %v2274_v19  ;;  %v9806_v17 = vld [vmem:[#allocation8 + $0x384] ss:$16 sps:$4 sm:$0xff]   ;;  %v9804_v19 = vld [vmem:[#allocation8 + $0x380] ss:$16 sps:$4 sm:$0xff]  }
 0x47d   : > { %v2150_v40 = vsub.f32 %v2078_v0, %v2134_v9  ;;  %10170 = vrsqrt.f32 %v2181_v41 }
 0x47e   : > { %v2613_v46 = vadd.f32 %v13064_v32, %v2444_v7  ;;  %v2612_v20 = vadd.f32 %v13070_v21, %v2443_v8  ;;  %5004 = vmatpush1.bf16.msra.mxu1 %v9795_v30  ;;  %4554 = vmatpush1.bf16.msra.mxu0 %v9798_v1  ;;  %v2136_v7 = vmul.f32 24.0, %v2120_v49 }
 0x47f   : > { %v2166_v38 = vmul.f32 0.001, %v2150_v40  ;;  %5005 = vmatprep.subr.bf16.mxu1 %v9803_v15  ;;  %v9809_v40 = vld [vmem:[#allocation8 + $0x38c] ss:$16 sps:$4 sm:$0xff]   ;;  %4555 = vmatprep.subr.bf16.mxu0 %v9806_v17  ;;  %v9810_v15 = vld [vmem:[#allocation8 + $0x3a0] ss:$16 sps:$4 sm:$0xff]  }
 0x480   : > { %v2741_v25 = vmax.f32 %v2613_v46, 0.0  ;;  %v2740_v56 = vmax.f32 %v2612_v20, 0.0  ;;  %v9815_v46 = vld [vmem:[#allocation8 + $0x3ac] ss:$16 sps:$4 sm:$0xff]   ;;  %v9824_v17 = vld [vmem:[#allocation8 + $0x3e4] ss:$16 sps:$4 sm:$0xff]  }
 0x481   : > { %v2182_v54 = vadd.f32 1e-05, %v2166_v38  ;;  %v13182_v3 = vpop.eup %10168 }
 0x482   : > { %v2087_v6 = vpop.xlane.xlu1 %2086  ;;  %v2283_v14 = vmul.f32 %v13182_v3, %v12732_v12  ;;  %v2829_v41 = vpack.c.bf16 %v2741_v25, %v2733_v61  ;;  %v2282_v0 = vmul.f32 %v13182_v3, %v12728_v23  ;;  %v2828_v10 = vpack.c.bf16 %v2740_v56, %v2732_v47  ;;  %5006 = vmatpush1.bf16.msra.mxu1 %v9801_v13  ;;  %v9816_v47 = vld [vmem:[#allocation8 + $0x3c0] ss:$16 sps:$4 sm:$0xff]  }
 0x483   : > { %10172 = vrsqrt.f32 %v2182_v54  ;;  %v2151_v9 = vsub.f32 %v2087_v6, %v2135_v60  ;;  %v2121_v23 = vmul.f32 %v12826_v33, %v12826_v33  ;;  %5007 = vmatprep.subr.bf16.mxu1 %v9809_v40  ;;  %4556 = vmatpush1.bf16.msra.mxu0 %v9804_v19  ;;  %v9818_v54 = vld [vmem:[#allocation8 + $0x3c4] ss:$16 sps:$4 sm:$0xff]  }
 0x484   : > { %4490 = vmatprep.mubr.bf16.mxu0 %v2829_v41  ;;  %4942 = vmatprep.mubr.bf16.mxu1 %v2829_v41  ;;  %v2452_v12 = vmul.f32 %v13048_v48, %v2283_v14  ;;  %v2451_v30 = vmul.f32 %v13052_v57, %v2282_v0  ;;  %v9821_v14 = vld [vmem:[#allocation8 + $0x3cc] ss:$16 sps:$4 sm:$0xff]   ;;  %v16624_v19 = vld [vmem:[#allocation119_spill] sm:$0xff] }
 0x485   : > { %v2167_v35 = vmul.f32 0.001, %v2151_v9  ;;  %4491 = vmatmul.mubr.bf16.gmra.mrb[80].mxu0 %v2828_v10  ;;  %4943 = vmatmul.mubr.bf16.gmra.mrb[80].mxu1 %v2828_v10  ;;  %v2137_v6 = vmul.f32 24.0, %v2121_v23  ;;  %v9819_v23 = vld [vmem:[#allocation8 + $0x3c8] ss:$16 sps:$4 sm:$0xff]  }
 0x486   : > { %4557 = vmatprep.subr.bf16.mxu0 %v9812_v42  ;;  %v2621_v1 = vadd.f32 %v13064_v32, %v2452_v12  ;;  %v2620_v61 = vadd.f32 %v13070_v21, %v2451_v30  ;;  %5008 = vmatpush1.bf16.msra.mxu1 %v9807_v62  ;;  %v9822_v30 = vld [vmem:[#allocation8 + $0x3e0] ss:$16 sps:$4 sm:$0xff]  }
 0x487   : > { %v2183_v11 = vadd.f32 1e-05, %v2167_v35  ;;  %v13191_v55 = vpop.eup %10170  ;;  %5009 = vmatprep.subr.bf16.mxu1 %v9815_v46  ;;  %4558 = vmatpush1.bf16.msra.mxu0 %v9810_v15 }
 0x488   : > { %v2291_v36 = vmul.f32 %v13191_v55, %v12778_v22  ;;  %v2290_v20 = vmul.f32 %v13191_v55, %v12772_v63  ;;  %v9813_v22 = vld [vmem:[#allocation8 + $0x3a8] ss:$16 sps:$4 sm:$0xff]   ;;  %4559 = vmatprep.subr.bf16.mxu0 %v9818_v54  ;;  %v2749_v35 = vmax.f32 %v2621_v1, 0.0 }
 0x489   : > { %v2096_v8 = vpop.xlane.xlu0 %2095  ;;  %10174 = vrsqrt.f32 %v2183_v11  ;;  %v2748_v11 = vmax.f32 %v2620_v61, 0.0 }
 0x48a   : > { %v2152_v38 = vsub.f32 %v2096_v8, %v2136_v7  ;;  %v2460_v60 = vmul.f32 %v13048_v48, %v2291_v36  ;;  %v2459_v49 = vmul.f32 %v13052_v57, %v2290_v20  ;;  %5010 = vmatpush1.bf16.msra.mxu1 %v9813_v22  ;;  %v9830_v36 = vld [vmem:[#allocation8 + $0x404] ss:$16 sps:$4 sm:$0xff]  }
 0x48b   : > { %5011 = vmatprep.subr.bf16.mxu1 %v9821_v14  ;;  %4560 = vmatpush1.bf16.msra.mxu0 %v9816_v47  ;;  %v16626_v47 = vld [vmem:[#allocation53_spill] sm:$0xff] }
 0x48c   : > { %v2168_v33 = vmul.f32 0.001, %v2152_v38  ;;  %v2629_v63 = vadd.f32 %v13064_v32, %v2460_v60  ;;  %v2628_v0 = vadd.f32 %v13070_v21, %v2459_v49  ;;  %4561 = vmatprep.subr.bf16.mxu0 %v9824_v17  ;;  %v9827_v38 = vld [vmem:[#allocation8 + $0x3ec] ss:$16 sps:$4 sm:$0xff]   ;;  %v9825_v60 = vld [vmem:[#allocation8 + $0x3e8] ss:$16 sps:$4 sm:$0xff]   ;;  %v13232_v14 = vrot.slane %v13042_v58, %v16626_v47 }
 0x48d   : > { %v13204_v25 = vpop.eup %10172  ;;  %v2105_v9 = vpop.xlane.xlu1 %2104  ;;  %v9833_v49 = vld [vmem:[#allocation8 + $0x40c] ss:$16 sps:$4 sm:$0xff]  }
 0x48e   : > { %v2184_v56 = vadd.f32 1e-05, %v2168_v33  ;;  %v2153_v41 = vsub.f32 %v2105_v9, %v2137_v6  ;;  %v2299_v13 = vmul.f32 %v13204_v25, %v12824_v4  ;;  %v2757_v10 = vmax.f32 %v2629_v63, 0.0  ;;  %5012 = vmatpush1.bf16.msra.mxu1 %v9819_v23 }
 0x48f   : > { %v2298_v40 = vmul.f32 %v13204_v25, %v16624_v19  ;;  %v2756_v7 = vmax.f32 %v2628_v0, 0.0  ;;  %4562 = vmatpush1.bf16.msra.mxu0 %v9822_v30  ;;  %5013 = vmatprep.subr.bf16.mxu1 %v9827_v38 }
 0x490   : > { %10176 = vrsqrt.f32 %v2184_v56  ;;  %v2169_v42 = vmul.f32 0.001, %v2153_v41  ;;  %v2837_v12 = vpack.c.bf16 %v2757_v10, %v2749_v35  ;;  %v2468_v8 = vmul.f32 %v13048_v48, %v2299_v13  ;;  %4644 = vmatprep.subr.bf16.mxu0 %v9830_v36  ;;  %v16625_v56 = vld [vmem:[#allocation79_spill] sm:$0xff]  ;;  %v16627_v10 = vld [vmem:[#allocation76_spill] sm:$0xff] }
 0x491   : > { %v2836_v62 = vpack.c.bf16 %v2756_v7, %v2748_v11  ;;  %v2467_v46 = vmul.f32 %v13052_v57, %v2298_v40  ;;  %v2205_v19 = vmul.f32 %v13054_v16, %v16627_v10 }
 0x492   : > { %v2185_v4 = vadd.f32 1e-05, %v2169_v42  ;;  %4500 = vmatprep.mubr.bf16.mxu0 %v2837_v12  ;;  %4952 = vmatprep.mubr.bf16.mxu1 %v2837_v12  ;;  %v2637_v33 = vadd.f32 %v13064_v32, %v2468_v8 }
 0x493   : > { %v13213_v15 = vpop.eup %10174  ;;  %4501 = vmatmul.mubr.bf16.gmra.mrb[84].mxu0 %v2836_v62  ;;  %4953 = vmatmul.mubr.bf16.gmra.mrb[84].mxu1 %v2836_v62  ;;  %v2636_v61 = vadd.f32 %v13070_v21, %v2467_v46  ;;  %v2374_v30 = vmul.f32 %v13232_v14, %v2205_v19  ;;  %v16628_v62 = vld [vmem:[#allocation63_spill] sm:$0xff] }
 0x494   : > { %10178 = vrsqrt.f32 %v2185_v4  ;;  %v2307_v20 = vmul.f32 %v13213_v15, %v12874_v39  ;;  %v2306_v54 = vmul.f32 %v13213_v15, %v12866_v28  ;;  %v2213_v28 = vmul.f32 %v13072_v2, %v16625_v56  ;;  %5014 = vmatpush1.bf16.msra.mxu1 %v9825_v60  ;;  %v16630_v60 = vld [vmem:[#allocation62_spill] sm:$0xff] }
 0x495   : > { %v2765_v63 = vmax.f32 %v2637_v33, 0.0  ;;  %5096 = vmatprep.subr.bf16.mxu1 %v9833_v49  ;;  %v2764_v35 = vmax.f32 %v2636_v61, 0.0  ;;  %v2212_v38 = vmul.f32 %v13072_v2, %v16628_v62  ;;  %v16636_v62 = vld [vmem:[#allocation147_spill] sm:$0xff] }
 0x496   : > { %v2476_v1 = vmul.f32 %v13048_v48, %v2307_v20  ;;  %v2475_v6 = vmul.f32 %v13052_v57, %v2306_v54  ;;  %v2382_v42 = vmul.f32 %v13232_v14, %v2213_v28  ;;  %v16629_v54 = vld [vmem:[#allocation82_spill] sm:$0xff] }
 0x497   : > { %v2229_v33 = vmul.f32 %v13096_v26, %v16629_v54 }
 0x498   : > { %v2645_v22 = vadd.f32 %v13064_v32, %v2476_v1  ;;  %v2644_v39 = vadd.f32 %v13070_v21, %v2475_v6  ;;  %v16631_v1 = vld [vmem:[#allocation47_spill] sm:$0xff] }
 0x499   : > { %v13267_v6 = vrot.slane %v13042_v58, %v16631_v1 }
 0x49a   : > { %v13228_v9 = vpop.eup %10176  ;;  %v2773_v41 = vmax.f32 %v2645_v22, 0.0  ;;  %v2772_v0 = vmax.f32 %v2644_v39, 0.0  ;;  %v16632_v22 = vld [vmem:[#allocation77_spill] sm:$0xff] }
 0x49b   : > { %v2315_v13 = vmul.f32 %v13228_v9, %v12922_v18  ;;  %v2314_v17 = vmul.f32 %v13228_v9, %v12914_v51  ;;  %v13247_v51 = vrot.slane %v13044_v44, %v16626_v47  ;;  %v2381_v56 = vmul.f32 %v13267_v6, %v2212_v38 }
 0x49c   : > { %v2845_v40 = vpack.c.bf16 %v2773_v41, %v2765_v63  ;;  %v2844_v11 = vpack.c.bf16 %v2772_v0, %v2764_v35  ;;  %v2398_v0 = vmul.f32 %v13232_v14, %v2229_v33  ;;  %v2237_v38 = vmul.f32 %v13110_v29, %v16636_v62  ;;  %v9840_v62 = vld [vmem:[#allocation8 + $0x440] ss:$16 sps:$4 sm:$0xff]  }
 0x49d   : > { %v2484_v7 = vmul.f32 %v13048_v48, %v2315_v13  ;;  %v2483_v18 = vmul.f32 %v13052_v57, %v2314_v17  ;;  %v2551_v4 = vadd.f32 %v13247_v51, %v2382_v42  ;;  %v2543_v61 = vadd.f32 %v13247_v51, %v2374_v30 }
 0x49e   : > { %v13242_v12 = vpop.eup %10178  ;;  %4510 = vmatprep.mubr.bf16.mxu0 %v2845_v40  ;;  %4962 = vmatprep.mubr.bf16.mxu1 %v2845_v40  ;;  %v16633_v40 = vld [vmem:[#allocation69_spill] sm:$0xff] }
 0x49f   : > { %4511 = vmatmul.mubr.bf16.gmra.mrb[88].mxu0 %v2844_v11  ;;  %4963 = vmatmul.mubr.bf16.gmra.mrb[88].mxu1 %v2844_v11  ;;  %v2323_v8 = vmul.f32 %v13242_v12, %v12968_v53  ;;  %v2322_v23 = vmul.f32 %v13242_v12, %v12962_v31  ;;  %v2653_v46 = vadd.f32 %v13064_v32, %v2484_v7  ;;  %v2679_v39 = vmax.f32 %v2551_v4, 0.0 }
 0x4a0   : > { %v2652_v53 = vadd.f32 %v13070_v21, %v2483_v18  ;;  %v2204_v31 = vmul.f32 %v13054_v16, %v16630_v60  ;;  %v2671_v17 = vmax.f32 %v2543_v61, 0.0  ;;  %v2228_v42 = vmul.f32 %v13096_v26, %v16633_v40  ;;  %v16634_v18 = vld [vmem:[#allocation88_spill] sm:$0xff]  ;;  %v9828_v60 = vld [vmem:[#allocation8 + $0x400] ss:$16 sps:$4 sm:$0xff]  }
 0x4a1   : > { %v2492_v36 = vmul.f32 %v13048_v48, %v2323_v8  ;;  %v2491_v20 = vmul.f32 %v13052_v57, %v2322_v23  ;;  %v2221_v57 = vmul.f32 %v13086_v34, %v16632_v22  ;;  %v2781_v28 = vmax.f32 %v2653_v46, 0.0  ;;  %v16635_v23 = vld [vmem:[#allocation87_spill] sm:$0xff]  ;;  %v9831_v61 = vld [vmem:[#allocation8 + $0x408] ss:$16 sps:$4 sm:$0xff]  }
 0x4a2   : > { %v2780_v13 = vmax.f32 %v2652_v53, 0.0  ;;  %v2373_v58 = vmul.f32 %v13267_v6, %v2204_v31  ;;  %v2799_v11 = vpack.c.bf16 %v2679_v39, %v2671_v17  ;;  %v2567_v7 = vadd.f32 %v13247_v51, %v2398_v0  ;;  %v16638_v0 = vld [vmem:[#allocation98_spill] sm:$0xff] }
 0x4a3   : > { %v2661_v49 = vadd.f32 %v13064_v32, %v2492_v36  ;;  %v2660_v48 = vadd.f32 %v13070_v21, %v2491_v20  ;;  %v13279_v32 = vrot.slane %v13044_v44, %v16631_v1  ;;  %v2390_v35 = vmul.f32 %v13232_v14, %v2221_v57  ;;  %v16637_v57 = vld [vmem:[#allocation85_spill] sm:$0xff] }
 0x4a4   : > { %v2245_v8 = vmul.f32 %v13119_v52, %v16634_v18  ;;  %v2220_v30 = vmul.f32 %v13086_v34, %v16635_v23  ;;  %v2397_v46 = vmul.f32 %v13267_v6, %v2228_v42  ;;  %v2695_v20 = vmax.f32 %v2567_v7, 0.0  ;;  %v9837_v42 = vld [vmem:[#allocation8 + $0x428] ss:$16 sps:$4 sm:$0xff]   ;;  %v9842_v7 = vld [vmem:[#allocation8 + $0x444] ss:$16 sps:$4 sm:$0xff]  }
 0x4a5   : > { %v2789_v63 = vmax.f32 %v2661_v49, 0.0  ;;  %v2788_v41 = vmax.f32 %v2660_v48, 0.0  ;;  %v2550_v19 = vadd.f32 %v13279_v32, %v2381_v56  ;;  %v2542_v44 = vadd.f32 %v13279_v32, %v2373_v58 }
 0x4a6   : > { %v2559_v4 = vadd.f32 %v13247_v51, %v2390_v35  ;;  %v2414_v54 = vmul.f32 %v13232_v14, %v2245_v8  ;;  %v2389_v53 = vmul.f32 %v13267_v6, %v2220_v30  ;;  %v2406_v49 = vmul.f32 %v13232_v14, %v2237_v38  ;;  %v9834_v35 = vld [vmem:[#allocation8 + $0x420] ss:$16 sps:$4 sm:$0xff]   ;;  %v9845_v8 = vld [vmem:[#allocation8 + $0x44c] ss:$16 sps:$4 sm:$0xff]  }
 0x4a7   : > { %v2853_v21 = vpack.c.bf16 %v2789_v63, %v2781_v28  ;;  %v2852_v10 = vpack.c.bf16 %v2788_v41, %v2780_v13  ;;  %v2678_v36 = vmax.f32 %v2550_v19, 0.0  ;;  %v2670_v33 = vmax.f32 %v2542_v44, 0.0  ;;  %v9836_v28 = vld [vmem:[#allocation8 + $0x424] ss:$16 sps:$4 sm:$0xff]   ;;  %v9839_v63 = vld [vmem:[#allocation8 + $0x42c] ss:$16 sps:$4 sm:$0xff]  }
 0x4a8   : > { %v2687_v31 = vmax.f32 %v2559_v4, 0.0  ;;  %v2566_v22 = vadd.f32 %v13279_v32, %v2397_v46  ;;  %v2244_v39 = vmul.f32 %v13119_v52, %v16637_v57  ;;  %v2583_v41 = vadd.f32 %v13247_v51, %v2414_v54  ;;  %v16640_v19 = vld [vmem:[#allocation96_spill] sm:$0xff] }
 0x4a9   : > { %4520 = vmatprep.mubr.bf16.mxu0 %v2853_v21  ;;  %4972 = vmatprep.mubr.bf16.mxu1 %v2853_v21  ;;  %v2798_v48 = vpack.c.bf16 %v2678_v36, %v2670_v33  ;;  %v2261_v13 = vmul.f32 %v13143_v24, %v16638_v0  ;;  %v2558_v58 = vadd.f32 %v13279_v32, %v2389_v53  ;;  %v16639_v21 = vld [vmem:[#allocation84_spill] sm:$0xff]  ;;  %v16641_v33 = vld [vmem:[#allocation95_spill] sm:$0xff] }
 0x4aa   : > { %4521 = vmatmul.mubr.bf16.gmra.mrb[92].mxu0 %v2852_v10  ;;  %4973 = vmatmul.mubr.bf16.gmra.mrb[92].mxu1 %v2852_v10  ;;  %v2807_v56 = vpack.c.bf16 %v2695_v20, %v2687_v31  ;;  %v2236_v17 = vmul.f32 %v13110_v29, %v16639_v21  ;;  %v2575_v10 = vadd.f32 %v13247_v51, %v2406_v49  ;;  %v2711_v44 = vmax.f32 %v2583_v41, 0.0  ;;  %v9843_v20 = vld [vmem:[#allocation8 + $0x448] ss:$16 sps:$4 sm:$0xff]   ;;  %v9848_v31 = vld [vmem:[#allocation8 + $0x464] ss:$16 sps:$4 sm:$0xff]  }
 0x4ab   : > { %4563 = vmatprep.mubr.bf16.mxu0 %v2799_v11  ;;  %5015 = vmatprep.mubr.bf16.mxu1 %v2799_v11  ;;  %v2253_v40 = vmul.f32 %v13132_v27, %v16640_v19  ;;  %v2694_v11 = vmax.f32 %v2566_v22, 0.0  ;;  %v2413_v18 = vmul.f32 %v13267_v6, %v2244_v39  ;;  %v2430_v23 = vmul.f32 %v13232_v14, %v2261_v13  ;;  %v9851_v49 = vld [vmem:[#allocation8 + $0x46c] ss:$16 sps:$4 sm:$0xff]   ;;  %v16644_v41 = vld [vmem:[#allocation103_spill] sm:$0xff]  ;;  %v9849_v13 = vld [vmem:[#allocation8 + $0x468] ss:$16 sps:$4 sm:$0xff]  }
 0x4ac   : > { %v2686_v30 = vmax.f32 %v2558_v58, 0.0  ;;  %v2405_v4 = vmul.f32 %v13267_v6, %v2236_v17  ;;  %v2703_v38 = vmax.f32 %v2575_v10, 0.0  ;;  %v2260_v53 = vmul.f32 %v13143_v24, %v16641_v33  ;;  %v16643_v39 = vld [vmem:[#allocation90_spill] sm:$0xff]  ;;  %v9854_v21 = vld [vmem:[#allocation8 + $0x484] ss:$16 sps:$4 sm:$0xff]  }
 0x4ad   : > { %v2422_v36 = vmul.f32 %v13232_v14, %v2253_v40  ;;  %v2582_v54 = vadd.f32 %v13279_v32, %v2413_v18  ;;  %v2269_v0 = vmul.f32 %v13158_v50, %v16644_v41 }
 0x4ae   : > { %v2806_v46 = vpack.c.bf16 %v2694_v11, %v2686_v30  ;;  %v2574_v57 = vadd.f32 %v13279_v32, %v2405_v4  ;;  %v2429_v17 = vmul.f32 %v13267_v6, %v2260_v53  ;;  %v9852_v11 = vld [vmem:[#allocation8 + $0x480] ss:$16 sps:$4 sm:$0xff]   ;;  %v16645_v30 = vld [vmem:[#allocation104_spill] sm:$0xff] }
 0x4af   : > { %v2710_v58 = vmax.f32 %v2582_v54, 0.0  ;;  %v2438_v18 = vmul.f32 %v13232_v14, %v2269_v0  ;;  %v2276_v4 = vmul.f32 %v13167_v37, %v16645_v30  ;;  %v16647_v53 = vld [vmem:[#allocation157_spill] sm:$0xff]  ;;  %v16650_v30 = vld [vmem:[#allocation106_spill] sm:$0xff] }
 0x4b0   : > { %v2702_v40 = vmax.f32 %v2574_v57, 0.0 }
 0x4b2   : > { %4564 = vmatmul.mubr.bf16.vlgmr.msra.gmra.mrb[64].mxu0 %v2798_v48  ;;  %5016 = vmatmul.mubr.bf16.vlgmr.msra.gmra.mrb[64].mxu1 %v2798_v48  ;;  %v2599_v48 = vadd.f32 %v13247_v51, %v2430_v23  ;;  %v2598_v23 = vadd.f32 %v13279_v32, %v2429_v17 }
 0x4b3   : > { %4573 = vmatprep.mubr.bf16.mxu0 %v2807_v56  ;;  %4645 = vmatpush1.bf16.msra.mxu0 %v9828_v60  ;;  %v2815_v60 = vpack.c.bf16 %v2711_v44, %v2703_v38  ;;  %v9855_v44 = vld [vmem:[#allocation8 + $0x488] ss:$16 sps:$4 sm:$0xff]   ;;  %v9860_v38 = vld [vmem:[#allocation8 + $0x4a4] ss:$16 sps:$4 sm:$0xff]  }
 0x4b4   : > { %5025 = vmatprep.mubr.bf16.mxu1 %v2807_v56  ;;  %5097 = vmatpush1.bf16.msra.mxu1 %v9831_v61  ;;  %v16642_v61 = vld [vmem:[#allocation111_spill] sm:$0xff]  ;;  %v2252_v56 = vmul.f32 %v13132_v27, %v16643_v39  ;;  %v2727_v10 = vmax.f32 %v2599_v48, 0.0  ;;  %v16648_v48 = vld [vmem:[#allocation110_spill] sm:$0xff]  ;;  %v2726_v57 = vmax.f32 %v2598_v23, 0.0 }
 0x4b5   : > { %4646 = vmatprep.subr.bf16.mxu0 %v9836_v28  ;;  %5098 = vmatprep.subr.bf16.mxu1 %v9839_v63  ;;  %v2277_v22 = vmul.f32 %v13167_v37, %v16642_v61  ;;  %v9846_v28 = vld [vmem:[#allocation8 + $0x460] ss:$16 sps:$4 sm:$0xff]   ;;  %v2591_v63 = vadd.f32 %v13247_v51, %v2422_v36  ;;  %v9863_v36 = vld [vmem:[#allocation8 + $0x4ac] ss:$16 sps:$4 sm:$0xff]   ;;  %v2285_v61 = vmul.f32 %v13182_v3, %v16648_v48  ;;  %v9866_v39 = vld [vmem:[#allocation8 + $0x4c4] ss:$16 sps:$4 sm:$0xff]  }
 0x4b6   : > { %v9876_v48 = vld [vmem:[#allocation8 + $0x500] ss:$16 sps:$4 sm:$0xff]  }
 0x4b7   : > { %4647 = vmatpush1.bf16.msra.mxu0 %v9834_v35  ;;  %v9857_v35 = vld [vmem:[#allocation8 + $0x48c] ss:$16 sps:$4 sm:$0xff]   ;;  %v2446_v19 = vmul.f32 %v13232_v14, %v2277_v22  ;;  %v9861_v22 = vld [vmem:[#allocation8 + $0x4a8] ss:$16 sps:$4 sm:$0xff]   ;;  %v2454_v17 = vmul.f32 %v13232_v14, %v2285_v61 }
 0x4b8   : > { %5099 = vmatpush1.bf16.msra.mxu1 %v9837_v42  ;;  %4648 = vmatprep.subr.bf16.mxu0 %v9842_v7  ;;  %v2421_v42 = vmul.f32 %v13267_v6, %v2252_v56  ;;  %v2719_v7 = vmax.f32 %v2591_v63, 0.0  ;;  %v2445_v56 = vmul.f32 %v13267_v6, %v2276_v4  ;;  %v2284_v4 = vmul.f32 %v13182_v3, %v16650_v30  ;;  %v9888_v30 = vld [vmem:[#allocation8 + $0x540] ss:$16 sps:$4 sm:$0xff]  }
 0x4b9   : > { %5100 = vmatprep.subr.bf16.mxu1 %v9845_v8  ;;  %v2814_v8 = vpack.c.bf16 %v2710_v58, %v2702_v40  ;;  %v9864_v58 = vld [vmem:[#allocation8 + $0x4c0] ss:$16 sps:$4 sm:$0xff]  }
 0x4ba   : > { %4574 = vmatmul.mubr.bf16.gmra.mrb[68].mxu0 %v2806_v46  ;;  %5026 = vmatmul.mubr.bf16.gmra.mrb[68].mxu1 %v2806_v46  ;;  %v2615_v46 = vadd.f32 %v13247_v51, %v2446_v19  ;;  %v2590_v33 = vadd.f32 %v13279_v32, %v2421_v42  ;;  %v2614_v19 = vadd.f32 %v13279_v32, %v2445_v56  ;;  %v16649_v40 = vld [vmem:[#allocation125_spill] sm:$0xff] }
 0x4bb   : > { %4583 = vmatprep.mubr.bf16.mxu0 %v2815_v60  ;;  %4649 = vmatpush1.bf16.msra.mxu0 %v9840_v62  ;;  %v2823_v62 = vpack.c.bf16 %v2727_v10, %v2719_v7  ;;  %v9867_v10 = vld [vmem:[#allocation8 + $0x4c8] ss:$16 sps:$4 sm:$0xff]   ;;  %v2292_v42 = vmul.f32 %v13191_v55, %v16649_v40  ;;  %v9872_v7 = vld [vmem:[#allocation8 + $0x4e4] ss:$16 sps:$4 sm:$0xff]   ;;  %v2308_v56 = vmul.f32 %v13213_v15, %v12882_v5 }
 0x4bc   : > { %5035 = vmatprep.mubr.bf16.mxu1 %v2815_v60  ;;  %5101 = vmatpush1.bf16.msra.mxu1 %v9843_v20  ;;  %v16646_v20 = vld [vmem:[#allocation112_spill] sm:$0xff]  ;;  %v2268_v60 = vmul.f32 %v13158_v50, %v16647_v53  ;;  %v2743_v63 = vmax.f32 %v2615_v46, 0.0  ;;  %v2718_v0 = vmax.f32 %v2590_v33, 0.0 }
 0x4bd   : > { %4650 = vmatprep.subr.bf16.mxu0 %v9848_v31  ;;  %5102 = vmatprep.subr.bf16.mxu1 %v9851_v49  ;;  %v2293_v54 = vmul.f32 %v13191_v55, %v16646_v20  ;;  %v9858_v31 = vld [vmem:[#allocation8 + $0x4a0] ss:$16 sps:$4 sm:$0xff]   ;;  %v2607_v49 = vadd.f32 %v13247_v51, %v2438_v18  ;;  %v9875_v18 = vld [vmem:[#allocation8 + $0x4ec] ss:$16 sps:$4 sm:$0xff]   ;;  %v9873_v46 = vld [vmem:[#allocation8 + $0x4e8] ss:$16 sps:$4 sm:$0xff]  }
 0x4be   : > { %v2742_v20 = vmax.f32 %v2614_v19, 0.0  ;;  %v9881_v33 = vld [vmem:[#allocation8 + $0x50c] ss:$16 sps:$4 sm:$0xff]   ;;  %v9885_v40 = vld [vmem:[#allocation8 + $0x528] ss:$16 sps:$4 sm:$0xff]  }
 0x4bf   : > { %4651 = vmatpush1.bf16.msra.mxu0 %v9846_v28  ;;  %v9869_v28 = vld [vmem:[#allocation8 + $0x4cc] ss:$16 sps:$4 sm:$0xff]   ;;  %v2462_v41 = vmul.f32 %v13232_v14, %v2293_v54  ;;  %v2461_v54 = vmul.f32 %v13267_v6, %v2292_v42 }
 0x4c0   : > { %5103 = vmatpush1.bf16.msra.mxu1 %v9849_v13  ;;  %4652 = vmatprep.subr.bf16.mxu0 %v9854_v21  ;;  %v2437_v13 = vmul.f32 %v13267_v6, %v2268_v60  ;;  %v2735_v21 = vmax.f32 %v2607_v49, 0.0  ;;  %v2453_v49 = vmul.f32 %v13267_v6, %v2284_v4 }
 0x4c1   : > { %5104 = vmatprep.subr.bf16.mxu1 %v9857_v35  ;;  %v2822_v35 = vpack.c.bf16 %v2726_v57, %v2718_v0  ;;  %v9879_v57 = vld [vmem:[#allocation8 + $0x508] ss:$16 sps:$4 sm:$0xff]  }
 0x4c2   : > { %4584 = vmatmul.mubr.bf16.gmra.mrb[72].mxu0 %v2814_v8  ;;  %5036 = vmatmul.mubr.bf16.gmra.mrb[72].mxu1 %v2814_v8  ;;  %v2631_v8 = vadd.f32 %v13247_v51, %v2462_v41  ;;  %v2606_v23 = vadd.f32 %v13279_v32, %v2437_v13  ;;  %v9887_v41 = vld [vmem:[#allocation8 + $0x52c] ss:$16 sps:$4 sm:$0xff]   ;;  %v2325_v13 = vmul.f32 %v13242_v12, %v12984_v59  ;;  %v9890_v59 = vld [vmem:[#allocation8 + $0x544] ss:$16 sps:$4 sm:$0xff]  }
 0x4c3   : > { %4593 = vmatprep.mubr.bf16.mxu0 %v2823_v62  ;;  %4653 = vmatpush1.bf16.msra.mxu0 %v9852_v11  ;;  %v2831_v11 = vpack.c.bf16 %v2743_v63, %v2735_v21  ;;  %v9884_v63 = vld [vmem:[#allocation8 + $0x524] ss:$16 sps:$4 sm:$0xff]   ;;  %v16651_v21 = vld [vmem:[#allocation120_spill] sm:$0xff] }
 0x4c4   : > { %5045 = vmatprep.mubr.bf16.mxu1 %v2823_v62  ;;  %5105 = vmatpush1.bf16.msra.mxu1 %v9855_v44  ;;  %v2309_v44 = vmul.f32 %v13213_v15, %v12896_v43  ;;  %v9870_v62 = vld [vmem:[#allocation8 + $0x4e0] ss:$16 sps:$4 sm:$0xff]   ;;  %v9878_v43 = vld [vmem:[#allocation8 + $0x504] ss:$16 sps:$4 sm:$0xff]   ;;  %v2759_v53 = vmax.f32 %v2631_v8, 0.0  ;;  %v2494_v8 = vmul.f32 %v13232_v14, %v2325_v13 }
 0x4c5   : > { %4654 = vmatprep.subr.bf16.mxu0 %v9860_v38  ;;  %5106 = vmatprep.subr.bf16.mxu1 %v9863_v36  ;;  %v2623_v38 = vadd.f32 %v13247_v51, %v2454_v17  ;;  %v2301_v36 = vmul.f32 %v13204_v25, %v12848_v45  ;;  %v2300_v17 = vmul.f32 %v13204_v25, %v16651_v21  ;;  %v9902_v13 = vld [vmem:[#allocation8 + $0x584] ss:$16 sps:$4 sm:$0xff]   ;;  %v9905_v21 = vld [vmem:[#allocation8 + $0x58c] ss:$16 sps:$4 sm:$0xff]  }
 0x4c6   : > { %v2478_v60 = vmul.f32 %v13232_v14, %v2309_v44 }
 0x4c7   : > { %4655 = vmatpush1.bf16.msra.mxu0 %v9858_v31  ;;  %v2734_v31 = vmax.f32 %v2606_v23, 0.0  ;;  %v2751_v61 = vmax.f32 %v2623_v38, 0.0  ;;  %v2470_v45 = vmul.f32 %v13232_v14, %v2301_v36  ;;  %v2469_v23 = vmul.f32 %v13267_v6, %v2300_v17  ;;  %v9891_v36 = vld [vmem:[#allocation8 + $0x548] ss:$16 sps:$4 sm:$0xff]  }
 0x4c8   : > { %5107 = vmatpush1.bf16.msra.mxu1 %v9861_v22  ;;  %4656 = vmatprep.subr.bf16.mxu0 %v9866_v39  ;;  %v2630_v39 = vadd.f32 %v13279_v32, %v2461_v54  ;;  %v2647_v0 = vadd.f32 %v13247_v51, %v2478_v60  ;;  %v2663_v60 = vadd.f32 %v13247_v51, %v2494_v8  ;;  %v16658_v8 = vld [vmem:[#allocation141_spill] sm:$0xff] }
 0x4c9   : > { %5108 = vmatprep.subr.bf16.mxu1 %v9869_v28  ;;  %v2830_v22 = vpack.c.bf16 %v2742_v20, %v2734_v31  ;;  %v2839_v28 = vpack.c.bf16 %v2759_v53, %v2751_v61  ;;  %v2639_v5 = vadd.f32 %v13247_v51, %v2470_v45  ;;  %v16653_v20 = vld [vmem:[#allocation70_spill] sm:$0xff]  ;;  %v9894_v45 = vld [vmem:[#allocation8 + $0x560] ss:$16 sps:$4 sm:$0xff]  }
 0x4ca   : > { %4594 = vmatmul.mubr.bf16.gmra.mrb[76].mxu0 %v2822_v35  ;;  %5046 = vmatmul.mubr.bf16.gmra.mrb[76].mxu1 %v2822_v35  ;;  %v9882_v35 = vld [vmem:[#allocation8 + $0x520] ss:$16 sps:$4 sm:$0xff]   ;;  %v2758_v42 = vmax.f32 %v2630_v39, 0.0  ;;  %v9899_v53 = vld [vmem:[#allocation8 + $0x56c] ss:$16 sps:$4 sm:$0xff]  }
 0x4cb   : > { %4603 = vmatprep.mubr.bf16.mxu0 %v2831_v11  ;;  %4657 = vmatpush1.bf16.msra.mxu0 %v9864_v58  ;;  %v2622_v58 = vadd.f32 %v13279_v32, %v2453_v49  ;;  %v2767_v4 = vmax.f32 %v2639_v5, 0.0  ;;  %v16654_v31 = vld [vmem:[#allocation142_spill] sm:$0xff] }
 0x4cc   : > { %5055 = vmatprep.mubr.bf16.mxu1 %v2831_v11  ;;  %5109 = vmatpush1.bf16.msra.mxu1 %v9867_v10  ;;  %v16652_v10 = vld [vmem:[#allocation65_spill] sm:$0xff]  ;;  %v2477_v11 = vmul.f32 %v13267_v6, %v2308_v56  ;;  %v2215_v49 = vmul.f32 %v13072_v2, %v16654_v31  ;;  %v13390_v56 = vld [vmem:[#allocation5] sm:$0xff] }
 0x4cd   : > { %4658 = vmatprep.subr.bf16.mxu0 %v9872_v7  ;;  %5110 = vmatprep.subr.bf16.mxu1 %v9875_v18  ;;  %v2317_v19 = vmul.f32 %v13228_v9, %v16652_v10  ;;  %v9893_v7 = vld [vmem:[#allocation8 + $0x54c] ss:$16 sps:$4 sm:$0xff]   ;;  %v2775_v18 = vmax.f32 %v2647_v0, 0.0  ;;  %v2750_v44 = vmax.f32 %v2622_v58, 0.0  ;;  %v9900_v10 = vld [vmem:[#allocation8 + $0x580] ss:$16 sps:$4 sm:$0xff]  }
 0x4cf   : > { %4659 = vmatpush1.bf16.msra.mxu0 %v9870_v62  ;;  %v2486_v62 = vmul.f32 %v13232_v14, %v2317_v19  ;;  %v2838_v38 = vpack.c.bf16 %v2758_v42, %v2750_v44  ;;  %v2847_v54 = vpack.c.bf16 %v2775_v18, %v2767_v4  ;;  %v2638_v14 = vadd.f32 %v13279_v32, %v2469_v23  ;;  %v13400_v42 = vld [vmem:[#allocation7] sm:$0xff]  ;;  %v9908_v23 = vld [vmem:[#allocation8 + $0x5a4] ss:$16 sps:$4 sm:$0xff]  }
 0x4d0   : > { %5111 = vmatpush1.bf16.msra.mxu1 %v9873_v46  ;;  %4660 = vmatprep.subr.bf16.mxu0 %v9878_v43  ;;  %v2646_v46 = vadd.f32 %v13279_v32, %v2477_v11  ;;  %v2324_v43 = vmul.f32 %v13242_v12, %v16653_v20 }
 0x4d1   : > { %5112 = vmatprep.subr.bf16.mxu1 %v9881_v33  ;;  %v9896_v33 = vld [vmem:[#allocation8 + $0x564] ss:$16 sps:$4 sm:$0xff]  }
 0x4d2   : > { %4604 = vmatmul.mubr.bf16.gmra.mrb[80].mxu0 %v2830_v22  ;;  %5056 = vmatmul.mubr.bf16.gmra.mrb[80].mxu1 %v2830_v22  ;;  %v2655_v22 = vadd.f32 %v13247_v51, %v2486_v62  ;;  %v2774_v0 = vmax.f32 %v2646_v46, 0.0  ;;  %v2493_v58 = vmul.f32 %v13267_v6, %v2324_v43  ;;  %v2791_v51 = vmax.f32 %v2663_v60, 0.0  ;;  %v16659_v62 = vld [vmem:[#allocation145_spill] sm:$0xff]  ;;  %v16662_v60 = vld [vmem:[#allocation68_spill] sm:$0xff] }
 0x4d3   : > { %4613 = vmatprep.mubr.bf16.mxu0 %v2839_v28  ;;  %4661 = vmatpush1.bf16.msra.mxu0 %v9876_v48  ;;  %v16655_v48 = vld [vmem:[#allocation128_spill] sm:$0xff]  ;;  %v16661_v43 = vld [vmem:[#allocation81_spill] sm:$0xff]  ;;  %v2223_v31 = vmul.f32 %v13086_v34, %v16662_v60 }
 0x4d4   : > { %5065 = vmatprep.mubr.bf16.mxu1 %v2839_v28  ;;  %5113 = vmatpush1.bf16.msra.mxu1 %v9879_v57  ;;  %v2316_v61 = vmul.f32 %v13228_v9, %v16655_v48  ;;  %v16656_v57 = vld [vmem:[#allocation138_spill] sm:$0xff]  ;;  %v16657_v28 = vld [vmem:[#allocation61_spill] sm:$0xff]  ;;  %v2783_v19 = vmax.f32 %v2655_v22, 0.0  ;;  %v2662_v18 = vadd.f32 %v13279_v32, %v2493_v58 }
 0x4d5   : > { %4662 = vmatprep.subr.bf16.mxu0 %v9884_v63  ;;  %5114 = vmatprep.subr.bf16.mxu1 %v9887_v41  ;;  %v2207_v39 = vmul.f32 %v13054_v16, %v16656_v57  ;;  %v13394_v63 = vrot.slane %v13390_v56, %v16657_v28  ;;  %v9897_v41 = vld [vmem:[#allocation8 + $0x568] ss:$16 sps:$4 sm:$0xff]   ;;  %v9914_v48 = vld [vmem:[#allocation8 + $0x5c4] ss:$16 sps:$4 sm:$0xff]  }
 0x4d6   : > { %v2485_v5 = vmul.f32 %v13267_v6, %v2316_v61  ;;  %v2214_v6 = vmul.f32 %v13072_v2, %v16658_v8  ;;  %v2855_v44 = vpack.c.bf16 %v2791_v51, %v2783_v19  ;;  %v9923_v19 = vld [vmem:[#allocation8 + $0x5ec] ss:$16 sps:$4 sm:$0xff]  }
 0x4d7   : > { %4663 = vmatpush1.bf16.msra.mxu0 %v9882_v35  ;;  %v2384_v17 = vmul.f32 %v13394_v63, %v2215_v49  ;;  %v2766_v35 = vmax.f32 %v2638_v14, 0.0  ;;  %v9909_v49 = vld [vmem:[#allocation8 + $0x5a8] ss:$16 sps:$4 sm:$0xff]   ;;  %v2790_v14 = vmax.f32 %v2662_v18, 0.0 }
 0x4d8   : > { %5115 = vmatpush1.bf16.msra.mxu1 %v9885_v40  ;;  %4664 = vmatprep.subr.bf16.mxu0 %v9890_v59  ;;  %v2376_v40 = vmul.f32 %v13394_v63, %v2207_v39  ;;  %v13404_v59 = vrot.slane %v13400_v42, %v16657_v28  ;;  %v2654_v20 = vadd.f32 %v13279_v32, %v2485_v5  ;;  %v9917_v32 = vld [vmem:[#allocation8 + $0x5cc] ss:$16 sps:$4 sm:$0xff]  }
 0x4d9   : > { %5116 = vmatprep.subr.bf16.mxu1 %v9893_v7  ;;  %v2846_v11 = vpack.c.bf16 %v2774_v0, %v2766_v35  ;;  %v9903_v7 = vld [vmem:[#allocation8 + $0x588] ss:$16 sps:$4 sm:$0xff]  }
 0x4da   : > { %4614 = vmatmul.mubr.bf16.gmra.mrb[84].mxu0 %v2838_v38  ;;  %5066 = vmatmul.mubr.bf16.gmra.mrb[84].mxu1 %v2838_v38  ;;  %v2553_v4 = vadd.f32 %v13404_v59, %v2384_v17  ;;  %v2231_v38 = vmul.f32 %v13096_v26, %v16659_v62  ;;  %v2782_v39 = vmax.f32 %v2654_v20, 0.0  ;;  %v16663_v17 = vld [vmem:[#allocation144_spill] sm:$0xff] }
 0x4db   : > { %4623 = vmatprep.mubr.bf16.mxu0 %v2847_v54  ;;  %4665 = vmatpush1.bf16.msra.mxu0 %v9888_v30  ;;  %v9911_v30 = vld [vmem:[#allocation8 + $0x5ac] ss:$16 sps:$4 sm:$0xff]   ;;  %v2230_v35 = vmul.f32 %v13096_v26, %v16663_v17  ;;  %v9921_v62 = vld [vmem:[#allocation8 + $0x5e8] ss:$16 sps:$4 sm:$0xff]  }
 0x4dc   : > { %5075 = vmatprep.mubr.bf16.mxu1 %v2847_v54  ;;  %5117 = vmatpush1.bf16.msra.mxu1 %v9891_v36  ;;  %v16660_v36 = vld [vmem:[#allocation60_spill] sm:$0xff]  ;;  %v2206_v54 = vmul.f32 %v13054_v16, %v16661_v43  ;;  %v2400_v22 = vmul.f32 %v13394_v63, %v2231_v38  ;;  %v2854_v58 = vpack.c.bf16 %v2790_v14, %v2782_v39 }
 0x4dd   : > { %4666 = vmatprep.subr.bf16.mxu0 %v9896_v33  ;;  %5118 = vmatprep.subr.bf16.mxu1 %v9899_v53  ;;  %v13414_v46 = vrot.slane %v13390_v56, %v16660_v36  ;;  %v9906_v33 = vld [vmem:[#allocation8 + $0x5a0] ss:$16 sps:$4 sm:$0xff]   ;;  %v2545_v53 = vadd.f32 %v13404_v59, %v2376_v40  ;;  %v13426_v57 = vrot.slane %v13400_v42, %v16660_v36  ;;  %v16665_v8 = vld [vmem:[#allocation80_spill] sm:$0xff]  ;;  %v9926_v36 = vld [vmem:[#allocation8 + $0x604] ss:$16 sps:$4 sm:$0xff]  }
 0x4de   : > { %v2569_v40 = vadd.f32 %v13404_v59, %v2400_v22  ;;  %v9929_v43 = vld [vmem:[#allocation8 + $0x60c] ss:$16 sps:$4 sm:$0xff]   ;;  %v9927_v22 = vld [vmem:[#allocation8 + $0x608] ss:$16 sps:$4 sm:$0xff]  }
 0x4df   : > { %4667 = vmatpush1.bf16.msra.mxu0 %v9894_v45  ;;  %v2383_v61 = vmul.f32 %v13414_v46, %v2214_v6  ;;  %v2681_v45 = vmax.f32 %v2553_v4, 0.0  ;;  %v2375_v28 = vmul.f32 %v13414_v46, %v2206_v54  ;;  %v2673_v0 = vmax.f32 %v2545_v53, 0.0 }
 0x4e0   : > { %5119 = vmatpush1.bf16.msra.mxu1 %v9897_v41  ;;  %4668 = vmatprep.subr.bf16.mxu0 %v9902_v13  ;;  %v9912_v41 = vld [vmem:[#allocation8 + $0x5c0] ss:$16 sps:$4 sm:$0xff]   ;;  %v2392_v13 = vmul.f32 %v13394_v63, %v2223_v31  ;;  %v2222_v6 = vmul.f32 %v13086_v34, %v16665_v8  ;;  %v2399_v20 = vmul.f32 %v13414_v46, %v2230_v35  ;;  %v2697_v54 = vmax.f32 %v2569_v40, 0.0 }
 0x4e1   : > { %5120 = vmatprep.subr.bf16.mxu1 %v9905_v21  ;;  %v9915_v21 = vld [vmem:[#allocation8 + $0x5c8] ss:$16 sps:$4 sm:$0xff]   ;;  %v2552_v51 = vadd.f32 %v13426_v57, %v2383_v61  ;;  %v2801_v5 = vpack.c.bf16 %v2681_v45, %v2673_v0  ;;  %v2544_v18 = vadd.f32 %v13426_v57, %v2375_v28  ;;  %v9932_v28 = vld [vmem:[#allocation8 + $0x624] ss:$16 sps:$4 sm:$0xff]  }
 0x4e2   : > { %4624 = vmatmul.mubr.bf16.gmra.mrb[88].mxu0 %v2846_v11  ;;  %5076 = vmatmul.mubr.bf16.gmra.mrb[88].mxu1 %v2846_v11  ;;  %v16664_v11 = vld [vmem:[#allocation150_spill] sm:$0xff]  ;;  %v2391_v60 = vmul.f32 %v13414_v46, %v2222_v6  ;;  %v2568_v61 = vadd.f32 %v13426_v57, %v2399_v20  ;;  %v16668_v0 = vld [vmem:[#allocation155_spill] sm:$0xff] }
 0x4e3   : > { %4633 = vmatprep.mubr.bf16.mxu0 %v2855_v44  ;;  %4669 = vmatpush1.bf16.msra.mxu0 %v9900_v10  ;;  %v9920_v10 = vld [vmem:[#allocation8 + $0x5e4] ss:$16 sps:$4 sm:$0xff]   ;;  %v2680_v38 = vmax.f32 %v2552_v51, 0.0  ;;  %v2672_v53 = vmax.f32 %v2544_v18, 0.0 }
 0x4e4   : > { %5085 = vmatprep.mubr.bf16.mxu1 %v2855_v44  ;;  %5121 = vmatpush1.bf16.msra.mxu1 %v9903_v7  ;;  %v2247_v7 = vmul.f32 %v13119_v52, %v16664_v11  ;;  %v9918_v44 = vld [vmem:[#allocation8 + $0x5e0] ss:$16 sps:$4 sm:$0xff]   ;;  %v2696_v40 = vmax.f32 %v2568_v61, 0.0  ;;  %v9938_v18 = vld [vmem:[#allocation8 + $0x644] ss:$16 sps:$4 sm:$0xff]  }
 0x4e5   : > { %4670 = vmatprep.subr.bf16.mxu0 %v9908_v23  ;;  %5122 = vmatprep.subr.bf16.mxu1 %v9911_v30  ;;  %v2561_v23 = vadd.f32 %v13404_v59, %v2392_v13  ;;  %v16666_v30 = vld [vmem:[#allocation148_spill] sm:$0xff]  ;;  %v2800_v14 = vpack.c.bf16 %v2680_v38, %v2672_v53  ;;  %v2263_v13 = vmul.f32 %v13143_v24, %v16668_v0  ;;  %v16669_v51 = vld [vmem:[#allocation97_spill] sm:$0xff] }
 0x4e6   : > { %v2239_v4 = vmul.f32 %v13110_v29, %v16666_v30  ;;  %v2238_v17 = vmul.f32 %v13110_v29, %v16669_v51 }
 0x4e7   : > { %4671 = vmatpush1.bf16.msra.mxu0 %v9906_v33  ;;  %v2416_v33 = vmul.f32 %v13394_v63, %v2247_v7  ;;  %v2689_v31 = vmax.f32 %v2561_v23, 0.0  ;;  %v9933_v7 = vld [vmem:[#allocation8 + $0x628] ss:$16 sps:$4 sm:$0xff]   ;;  %v2432_v6 = vmul.f32 %v13394_v63, %v2263_v13  ;;  %v9941_v23 = vld [vmem:[#allocation8 + $0x64c] ss:$16 sps:$4 sm:$0xff]  }
 0x4e8   : > { %5123 = vmatpush1.bf16.msra.mxu1 %v9909_v49  ;;  %4672 = vmatprep.subr.bf16.mxu0 %v9914_v48  ;;  %v2408_v49 = vmul.f32 %v13394_v63, %v2239_v4  ;;  %v9924_v48 = vld [vmem:[#allocation8 + $0x600] ss:$16 sps:$4 sm:$0xff]   ;;  %v2407_v30 = vmul.f32 %v13414_v46, %v2238_v17 }
 0x4e9   : > { %5124 = vmatprep.subr.bf16.mxu1 %v9917_v32  ;;  %v16667_v32 = vld [vmem:[#allocation93_spill] sm:$0xff]  ;;  %v2809_v39 = vpack.c.bf16 %v2697_v54, %v2689_v31  ;;  %v2601_v31 = vadd.f32 %v13404_v59, %v2432_v6 }
 0x4ea   : > { %4634 = vmatmul.mubr.bf16.gmra.mrb[92].mxu0 %v2854_v58  ;;  %5086 = vmatmul.mubr.bf16.gmra.mrb[92].mxu1 %v2854_v58  ;;  %v2246_v45 = vmul.f32 %v13119_v52, %v16667_v32  ;;  %v9935_v58 = vld [vmem:[#allocation8 + $0x62c] ss:$16 sps:$4 sm:$0xff]   ;;  %v2577_v35 = vadd.f32 %v13404_v59, %v2408_v49  ;;  %v16672_v49 = vld [vmem:[#allocation121_spill] sm:$0xff]  ;;  %v2576_v61 = vadd.f32 %v13426_v57, %v2407_v30 }
 0x4eb   : > { %4673 = vmatpush1.bf16.msra.mxu0 %v9912_v41  ;;  %4676 = vmatprep.mubr.bf16.mxu0 %v2801_v5  ;;  %v2585_v41 = vadd.f32 %v13404_v59, %v2416_v33  ;;  %v9939_v33 = vld [vmem:[#allocation8 + $0x648] ss:$16 sps:$4 sm:$0xff]   ;;  %v16673_v32 = vld [vmem:[#allocation105_spill] sm:$0xff]  ;;  %v2729_v51 = vmax.f32 %v2601_v31, 0.0 }
 0x4ec   : > { %5125 = vmatpush1.bf16.msra.mxu1 %v9915_v21  ;;  %5128 = vmatprep.mubr.bf16.mxu1 %v2801_v5  ;;  %v2560_v21 = vadd.f32 %v13426_v57, %v2391_v60  ;;  %v16670_v5 = vld [vmem:[#allocation151_spill] sm:$0xff]  ;;  %v2415_v11 = vmul.f32 %v13414_v46, %v2246_v45  ;;  %v2705_v4 = vmax.f32 %v2577_v35, 0.0  ;;  %v2254_v45 = vmul.f32 %v13132_v27, %v16673_v32 }
 0x4ed   : > { %4674 = vmatprep.subr.bf16.mxu0 %v9920_v10  ;;  %5126 = vmatprep.subr.bf16.mxu1 %v9923_v19  ;;  %v2255_v10 = vmul.f32 %v13132_v27, %v16670_v5  ;;  %v9930_v19 = vld [vmem:[#allocation8 + $0x620] ss:$16 sps:$4 sm:$0xff]   ;;  %v2713_v8 = vmax.f32 %v2585_v41, 0.0  ;;  %v9944_v60 = vld [vmem:[#allocation8 + $0x664] ss:$16 sps:$4 sm:$0xff]   ;;  %v2704_v35 = vmax.f32 %v2576_v61, 0.0 }
 0x4ee   : > { %v2584_v20 = vadd.f32 %v13426_v57, %v2415_v11  ;;  %v9942_v41 = vld [vmem:[#allocation8 + $0x660] ss:$16 sps:$4 sm:$0xff]   ;;  %v9953_v5 = vld [vmem:[#allocation8 + $0x68c] ss:$16 sps:$4 sm:$0xff]   ;;  %v9956_v30 = vld [vmem:[#allocation8 + $0x6a4] ss:$16 sps:$4 sm:$0xff]  }
 0x4ef   : > { %4675 = vmatpush1.bf16.msra.mxu0 %v9918_v44  ;;  %v2688_v44 = vmax.f32 %v2560_v21, 0.0  ;;  %v2817_v53 = vpack.c.bf16 %v2713_v8, %v2705_v4  ;;  %v9950_v21 = vld [vmem:[#allocation8 + $0x684] ss:$16 sps:$4 sm:$0xff]   ;;  %v9954_v31 = vld [vmem:[#allocation8 + $0x6a0] ss:$16 sps:$4 sm:$0xff]  }
 0x4f0   : > { %5127 = vmatpush1.bf16.msra.mxu1 %v9921_v62  ;;  %4757 = vmatprep.subr.bf16.mxu0 %v9926_v36  ;;  %v2424_v62 = vmul.f32 %v13394_v63, %v2255_v10  ;;  %v9936_v36 = vld [vmem:[#allocation8 + $0x640] ss:$16 sps:$4 sm:$0xff]   ;;  %v2712_v0 = vmax.f32 %v2584_v20, 0.0  ;;  %v2423_v10 = vmul.f32 %v13414_v46, %v2254_v45  ;;  %v9962_v61 = vld [vmem:[#allocation8 + $0x6c4] ss:$16 sps:$4 sm:$0xff]  }
 0x4f1   : > { %5209 = vmatprep.subr.bf16.mxu1 %v9929_v43  ;;  %v2808_v38 = vpack.c.bf16 %v2696_v40, %v2688_v44  ;;  %v16671_v43 = vld [vmem:[#allocation154_spill] sm:$0xff]  ;;  %v16675_v8 = vld [vmem:[#allocation117_spill] sm:$0xff] }
 0x4f2   : > { %4677 = vmatmul.mubr.bf16.vlgmr.msra.gmra.mrb[64].mxu0 %v2800_v14  ;;  %v2262_v54 = vmul.f32 %v13143_v24, %v16671_v43  ;;  %v2816_v11 = vpack.c.bf16 %v2712_v0, %v2704_v35  ;;  %v2278_v6 = vmul.f32 %v13167_v37, %v16675_v8  ;;  %v9951_v44 = vld [vmem:[#allocation8 + $0x688] ss:$16 sps:$4 sm:$0xff]   ;;  %v2592_v20 = vadd.f32 %v13426_v57, %v2423_v10  ;;  %v9968_v10 = vld [vmem:[#allocation8 + $0x6e4] ss:$16 sps:$4 sm:$0xff]  }
 0x4f3   : > { %5129 = vmatmul.mubr.bf16.vlgmr.msra.gmra.mrb[64].mxu1 %v2800_v14  ;;  %4686 = vmatprep.mubr.bf16.mxu0 %v2809_v39  ;;  %v2279_v14 = vmul.f32 %v13167_v37, %v16672_v49  ;;  %v16677_v43 = vld [vmem:[#allocation114_spill] sm:$0xff]  ;;  %v16681_v8 = vld [vmem:[#allocation124_spill] sm:$0xff] }
 0x4f4   : > { %4758 = vmatpush1.bf16.msra.mxu0 %v9924_v48  ;;  %5138 = vmatprep.mubr.bf16.mxu1 %v2809_v39  ;;  %v9947_v48 = vld [vmem:[#allocation8 + $0x66c] ss:$16 sps:$4 sm:$0xff]   ;;  %v2431_v13 = vmul.f32 %v13414_v46, %v2262_v54  ;;  %v2270_v54 = vmul.f32 %v13158_v50, %v16677_v43  ;;  %v9963_v35 = vld [vmem:[#allocation8 + $0x6c8] ss:$16 sps:$4 sm:$0xff]  }
 0x4f5   : > { %5210 = vmatpush1.bf16.msra.mxu1 %v9927_v22  ;;  %4759 = vmatprep.subr.bf16.mxu0 %v9932_v28  ;;  %v2593_v22 = vadd.f32 %v13404_v59, %v2424_v62  ;;  %v16674_v39 = vld [vmem:[#allocation116_spill] sm:$0xff]  ;;  %v2448_v17 = vmul.f32 %v13394_v63, %v2279_v14  ;;  %v16676_v62 = vld [vmem:[#allocation126_spill] sm:$0xff]  ;;  %v2447_v14 = vmul.f32 %v13414_v46, %v2278_v6 }
 0x4f6   : > { %5211 = vmatprep.subr.bf16.mxu1 %v9935_v58  ;;  %v2271_v28 = vmul.f32 %v13158_v50, %v16674_v39  ;;  %v9945_v58 = vld [vmem:[#allocation8 + $0x668] ss:$16 sps:$4 sm:$0xff]   ;;  %v9965_v39 = vld [vmem:[#allocation8 + $0x6cc] ss:$16 sps:$4 sm:$0xff]   ;;  %v2286_v6 = vmul.f32 %v13182_v3, %v16681_v8 }
 0x4f7   : > { %v2617_v4 = vadd.f32 %v13404_v59, %v2448_v17 }
 0x4f8   : > { %4760 = vmatpush1.bf16.msra.mxu0 %v9930_v19  ;;  %v2721_v19 = vmax.f32 %v2593_v22, 0.0  ;;  %v2440_v40 = vmul.f32 %v13394_v63, %v2271_v28  ;;  %v2720_v22 = vmax.f32 %v2592_v20, 0.0  ;;  %v2439_v28 = vmul.f32 %v13414_v46, %v2270_v54  ;;  %v9974_v20 = vld [vmem:[#allocation8 + $0x704] ss:$16 sps:$4 sm:$0xff]  }
 0x4f9   : > { %5212 = vmatpush1.bf16.msra.mxu1 %v9933_v7  ;;  %4761 = vmatprep.subr.bf16.mxu0 %v9938_v18  ;;  %v9948_v7 = vld [vmem:[#allocation8 + $0x680] ss:$16 sps:$4 sm:$0xff]   ;;  %v2600_v18 = vadd.f32 %v13426_v57, %v2431_v13  ;;  %v2745_v32 = vmax.f32 %v2617_v4, 0.0 }
 0x4fa   : > { %4687 = vmatmul.mubr.bf16.gmra.mrb[68].mxu0 %v2808_v38  ;;  %5213 = vmatprep.subr.bf16.mxu1 %v9941_v23  ;;  %v2825_v23 = vpack.c.bf16 %v2729_v51, %v2721_v19  ;;  %v16679_v51 = vld [vmem:[#allocation44_spill] sm:$0xff]  ;;  %v9966_v4 = vld [vmem:[#allocation8 + $0x6e0] ss:$16 sps:$4 sm:$0xff]  }
 0x4fb   : > { %5139 = vmatmul.mubr.bf16.gmra.mrb[68].mxu1 %v2808_v38  ;;  %4696 = vmatprep.mubr.bf16.mxu0 %v2817_v53  ;;  %v2295_v38 = vmul.f32 %v13191_v55, %v16676_v62  ;;  %v2728_v49 = vmax.f32 %v2600_v18, 0.0  ;;  %v2294_v17 = vmul.f32 %v13191_v55, %v16679_v51  ;;  %v2608_v18 = vadd.f32 %v13426_v57, %v2439_v28  ;;  %v9980_v28 = vld [vmem:[#allocation8 + $0x724] ss:$16 sps:$4 sm:$0xff]   ;;  %v16685_v51 = vld [vmem:[#allocation50_spill] sm:$0xff] }
 0x4fc   : > { %4762 = vmatpush1.bf16.msra.mxu0 %v9936_v36  ;;  %5148 = vmatprep.mubr.bf16.mxu1 %v2817_v53  ;;  %v9959_v36 = vld [vmem:[#allocation8 + $0x6ac] ss:$16 sps:$4 sm:$0xff]   ;;  %v16678_v53 = vld [vmem:[#allocation115_spill] sm:$0xff] }
 0x4fd   : > { %5214 = vmatpush1.bf16.msra.mxu1 %v9939_v33  ;;  %4763 = vmatprep.subr.bf16.mxu0 %v9944_v60  ;;  %v2609_v33 = vadd.f32 %v13404_v59, %v2440_v40  ;;  %v2287_v60 = vmul.f32 %v13182_v3, %v16678_v53  ;;  %v2464_v45 = vmul.f32 %v13394_v63, %v2295_v38  ;;  %v16680_v40 = vld [vmem:[#allocation59_spill] sm:$0xff]  ;;  %v9977_v53 = vld [vmem:[#allocation8 + $0x70c] ss:$16 sps:$4 sm:$0xff]  }
 0x4fe   : > { %5215 = vmatprep.subr.bf16.mxu1 %v9947_v48  ;;  %v9957_v48 = vld [vmem:[#allocation8 + $0x6a8] ss:$16 sps:$4 sm:$0xff]   ;;  %v2824_v13 = vpack.c.bf16 %v2728_v49, %v2720_v22  ;;  %v2463_v38 = vmul.f32 %v13414_v46, %v2294_v17  ;;  %v2302_v17 = vmul.f32 %v13204_v25, %v16685_v51  ;;  %v9998_v51 = vld [vmem:[#allocation8 + $0x784] ss:$16 sps:$4 sm:$0xff]  }
 0x4ff   : > { %v2456_v0 = vmul.f32 %v13394_v63, %v2287_v60  ;;  %v2633_v19 = vadd.f32 %v13404_v59, %v2464_v45  ;;  %v2455_v60 = vmul.f32 %v13414_v46, %v2286_v6  ;;  %v9975_v22 = vld [vmem:[#allocation8 + $0x708] ss:$16 sps:$4 sm:$0xff]  }
 0x500   : > { %4764 = vmatpush1.bf16.msra.mxu0 %v9942_v41  ;;  %v2737_v41 = vmax.f32 %v2609_v33, 0.0  ;;  %v2736_v33 = vmax.f32 %v2608_v18, 0.0  ;;  %v9986_v18 = vld [vmem:[#allocation8 + $0x744] ss:$16 sps:$4 sm:$0xff]  }
 0x501   : > { %5216 = vmatpush1.bf16.msra.mxu1 %v9945_v58  ;;  %4765 = vmatprep.subr.bf16.mxu0 %v9950_v21  ;;  %v9960_v58 = vld [vmem:[#allocation8 + $0x6c0] ss:$16 sps:$4 sm:$0xff]   ;;  %v2616_v21 = vadd.f32 %v13426_v57, %v2447_v14  ;;  %v2761_v43 = vmax.f32 %v2633_v19, 0.0 }
 0x502   : > { %4697 = vmatmul.mubr.bf16.gmra.mrb[72].mxu0 %v2816_v11  ;;  %5217 = vmatprep.subr.bf16.mxu1 %v9953_v5  ;;  %v2833_v5 = vpack.c.bf16 %v2745_v32, %v2737_v41  ;;  %v16683_v32 = vld [vmem:[#allocation54_spill] sm:$0xff]  ;;  %v9978_v19 = vld [vmem:[#allocation8 + $0x720] ss:$16 sps:$4 sm:$0xff]  }
 0x503   : > { %5149 = vmatmul.mubr.bf16.gmra.mrb[72].mxu1 %v2816_v11  ;;  %4706 = vmatprep.mubr.bf16.mxu0 %v2825_v23  ;;  %v2311_v11 = vmul.f32 %v13213_v15, %v16680_v40  ;;  %v2744_v62 = vmax.f32 %v2616_v21, 0.0  ;;  %v2310_v45 = vmul.f32 %v13213_v15, %v16683_v32  ;;  %v2624_v21 = vadd.f32 %v13426_v57, %v2455_v60  ;;  %v9992_v60 = vld [vmem:[#allocation8 + $0x764] ss:$16 sps:$4 sm:$0xff]  }
 0x504   : > { %4766 = vmatpush1.bf16.msra.mxu0 %v9948_v7  ;;  %5158 = vmatprep.mubr.bf16.mxu1 %v2825_v23  ;;  %v9971_v7 = vld [vmem:[#allocation8 + $0x6ec] ss:$16 sps:$4 sm:$0xff]   ;;  %v16682_v23 = vld [vmem:[#allocation49_spill] sm:$0xff] }
 0x505   : > { %5218 = vmatpush1.bf16.msra.mxu1 %v9951_v44  ;;  %4767 = vmatprep.subr.bf16.mxu0 %v9956_v30  ;;  %v2625_v44 = vadd.f32 %v13404_v59, %v2456_v0  ;;  %v2303_v30 = vmul.f32 %v13204_v25, %v16682_v23  ;;  %v2480_v54 = vmul.f32 %v13394_v63, %v2311_v11  ;;  %v16684_v0 = vld [vmem:[#allocation133_spill] sm:$0xff]  ;;  %v9989_v23 = vld [vmem:[#allocation8 + $0x74c] ss:$16 sps:$4 sm:$0xff]  }
 0x506   : > { %5219 = vmatprep.subr.bf16.mxu1 %v9959_v36  ;;  %v9969_v36 = vld [vmem:[#allocation8 + $0x6e8] ss:$16 sps:$4 sm:$0xff]   ;;  %v2832_v14 = vpack.c.bf16 %v2744_v62, %v2736_v33  ;;  %v2479_v11 = vmul.f32 %v13414_v46, %v2310_v45 }
 0x507   : > { %v2472_v49 = vmul.f32 %v13394_v63, %v2303_v30  ;;  %v2649_v41 = vadd.f32 %v13404_v59, %v2480_v54  ;;  %v2471_v30 = vmul.f32 %v13414_v46, %v2302_v17  ;;  %v9987_v33 = vld [vmem:[#allocation8 + $0x748] ss:$16 sps:$4 sm:$0xff]  }
 0x508   : > { %4768 = vmatpush1.bf16.msra.mxu0 %v9954_v31  ;;  %v2753_v31 = vmax.f32 %v2625_v44, 0.0  ;;  %v2752_v44 = vmax.f32 %v2624_v21, 0.0  ;;  %v9993_v21 = vld [vmem:[#allocation8 + $0x768] ss:$16 sps:$4 sm:$0xff]  }
 0x509   : > { %5220 = vmatpush1.bf16.msra.mxu1 %v9957_v48  ;;  %4769 = vmatprep.subr.bf16.mxu0 %v9962_v61  ;;  %v9972_v48 = vld [vmem:[#allocation8 + $0x700] ss:$16 sps:$4 sm:$0xff]   ;;  %v2632_v61 = vadd.f32 %v13426_v57, %v2463_v38  ;;  %v2777_v8 = vmax.f32 %v2649_v41, 0.0 }
 0x50a   : > { %4707 = vmatmul.mubr.bf16.gmra.mrb[76].mxu0 %v2824_v13  ;;  %5221 = vmatprep.subr.bf16.mxu1 %v9965_v39  ;;  %v2841_v39 = vpack.c.bf16 %v2761_v43, %v2753_v31  ;;  %v16687_v43 = vld [vmem:[#allocation131_spill] sm:$0xff] }
 0x50b   : > { %5159 = vmatmul.mubr.bf16.gmra.mrb[76].mxu1 %v2824_v13  ;;  %4716 = vmatprep.mubr.bf16.mxu0 %v2833_v5  ;;  %v2327_v13 = vmul.f32 %v13242_v12, %v16684_v0  ;;  %v2760_v40 = vmax.f32 %v2632_v61, 0.0  ;;  %v2326_v54 = vmul.f32 %v13242_v12, %v16687_v43  ;;  %v16689_v61 = vld [vmem:[#allocation71_spill] sm:$0xff]  ;;  %v16694_v43 = vld [vmem:[#allocation74_spill] sm:$0xff] }
 0x50c   : > { %4770 = vmatpush1.bf16.msra.mxu0 %v9960_v58  ;;  %5168 = vmatprep.mubr.bf16.mxu1 %v2833_v5  ;;  %v9983_v58 = vld [vmem:[#allocation8 + $0x72c] ss:$16 sps:$4 sm:$0xff]   ;;  %v2318_v32 = vmul.f32 %v13228_v9, %v16689_v61  ;;  %v9990_v0 = vld [vmem:[#allocation8 + $0x760] ss:$16 sps:$4 sm:$0xff]  }
 0x50d   : > { %5222 = vmatpush1.bf16.msra.mxu1 %v9963_v35  ;;  %4771 = vmatprep.subr.bf16.mxu0 %v9968_v10  ;;  %v2641_v35 = vadd.f32 %v13404_v59, %v2472_v49  ;;  %v16686_v5 = vld [vmem:[#allocation72_spill] sm:$0xff]  ;;  %v2496_v6 = vmul.f32 %v13394_v63, %v2327_v13  ;;  %v2840_v38 = vpack.c.bf16 %v2760_v40, %v2752_v44  ;;  %v16688_v49 = vld [vmem:[#allocation67_spill] sm:$0xff] }
 0x50e   : > { %5223 = vmatprep.subr.bf16.mxu1 %v9971_v7  ;;  %v2319_v10 = vmul.f32 %v13228_v9, %v16686_v5  ;;  %v9981_v7 = vld [vmem:[#allocation8 + $0x728] ss:$16 sps:$4 sm:$0xff]   ;;  %v10001_v5 = vld [vmem:[#allocation8 + $0x78c] ss:$16 sps:$4 sm:$0xff]  }
 0x50f   : > { %v2665_v31 = vadd.f32 %v13404_v59, %v2496_v6  ;;  %v9999_v6 = vld [vmem:[#allocation8 + $0x788] ss:$16 sps:$4 sm:$0xff]  }
 0x510   : > { %4772 = vmatpush1.bf16.msra.mxu0 %v9966_v4  ;;  %v2769_v4 = vmax.f32 %v2641_v35, 0.0  ;;  %v2488_v62 = vmul.f32 %v13394_v63, %v2319_v10  ;;  %v9995_v63 = vld [vmem:[#allocation8 + $0x76c] ss:$16 sps:$4 sm:$0xff]   ;;  %v2487_v10 = vmul.f32 %v13414_v46, %v2318_v32 }
 0x511   : > { %5224 = vmatpush1.bf16.msra.mxu1 %v9969_v36  ;;  %4773 = vmatprep.subr.bf16.mxu0 %v9974_v20  ;;  %v9984_v36 = vld [vmem:[#allocation8 + $0x740] ss:$16 sps:$4 sm:$0xff]   ;;  %v2648_v20 = vadd.f32 %v13426_v57, %v2479_v11  ;;  %v2793_v17 = vmax.f32 %v2665_v31, 0.0  ;;  %v10013_v32 = vld [vmem:[#allocation8 + $0x7cc] ss:$16 sps:$4 sm:$0xff]  }
 0x512   : > { %4717 = vmatmul.mubr.bf16.gmra.mrb[80].mxu0 %v2832_v14  ;;  %5225 = vmatprep.subr.bf16.mxu1 %v9977_v53  ;;  %v2849_v53 = vpack.c.bf16 %v2777_v8, %v2769_v4  ;;  %v2657_v45 = vadd.f32 %v13404_v59, %v2488_v62  ;;  %v10007_v62 = vld [vmem:[#allocation8 + $0x7ac] ss:$16 sps:$4 sm:$0xff]  }
 0x513   : > { %5169 = vmatmul.mubr.bf16.gmra.mrb[80].mxu1 %v2832_v14  ;;  %4726 = vmatprep.mubr.bf16.mxu0 %v2841_v39  ;;  %v2217_v14 = vmul.f32 %v13072_v2, %v16688_v49  ;;  %v2776_v13 = vmax.f32 %v2648_v20, 0.0  ;;  %v16696_v49 = vld [vmem:[#allocation78_spill] sm:$0xff] }
 0x514   : > { %4774 = vmatpush1.bf16.msra.mxu0 %v9972_v48  ;;  %5178 = vmatprep.mubr.bf16.mxu1 %v2841_v39  ;;  %v2640_v48 = vadd.f32 %v13426_v57, %v2471_v30 }
 0x515   : > { %5226 = vmatpush1.bf16.msra.mxu1 %v9975_v22  ;;  %4775 = vmatprep.subr.bf16.mxu0 %v9980_v28  ;;  %v16690_v22 = vld [vmem:[#allocation140_spill] sm:$0xff]  ;;  %v16691_v28 = vld [vmem:[#allocation75_spill] sm:$0xff] }
 0x516   : > { %5227 = vmatprep.subr.bf16.mxu1 %v9983_v58  ;;  %v2209_v39 = vmul.f32 %v13054_v16, %v16690_v22  ;;  %v13540_v41 = vrot.slane %v13390_v56, %v16691_v28  ;;  %v2495_v58 = vmul.f32 %v13414_v46, %v2326_v54  ;;  %v2768_v35 = vmax.f32 %v2640_v48, 0.0  ;;  %v16692_v46 = vld [vmem:[#allocation66_spill] sm:$0xff] }
 0x517   : > { %v13548_v11 = vrot.slane %v13400_v42, %v16691_v28  ;;  %v2216_v4 = vmul.f32 %v13072_v2, %v16692_v46  ;;  %v13559_v54 = vrot.slane %v13390_v56, %v16694_v43  ;;  %v10002_v2 = vld [vmem:[#allocation8 + $0x7a0] ss:$16 sps:$4 sm:$0xff]  }
 0x518   : > { %4776 = vmatpush1.bf16.msra.mxu0 %v9978_v19  ;;  %v2386_v59 = vmul.f32 %v13540_v41, %v2217_v14  ;;  %v2785_v19 = vmax.f32 %v2657_v45, 0.0  ;;  %v2378_v40 = vmul.f32 %v13540_v41, %v2209_v39  ;;  %v2664_v8 = vadd.f32 %v13426_v57, %v2495_v58  ;;  %v10005_v14 = vld [vmem:[#allocation8 + $0x7a8] ss:$16 sps:$4 sm:$0xff]  }
 0x519   : > { %5228 = vmatpush1.bf16.msra.mxu1 %v9981_v7  ;;  %4777 = vmatprep.subr.bf16.mxu0 %v9986_v18  ;;  %v2848_v7 = vpack.c.bf16 %v2776_v13, %v2768_v35  ;;  %v9996_v18 = vld [vmem:[#allocation8 + $0x780] ss:$16 sps:$4 sm:$0xff]   ;;  %v2385_v48 = vmul.f32 %v13559_v54, %v2216_v4  ;;  %v10011_v58 = vld [vmem:[#allocation8 + $0x7c8] ss:$16 sps:$4 sm:$0xff]  }
 0x51a   : > { %4727 = vmatmul.mubr.bf16.gmra.mrb[84].mxu0 %v2840_v38  ;;  %5229 = vmatprep.subr.bf16.mxu1 %v9989_v23  ;;  %v2857_v44 = vpack.c.bf16 %v2793_v17, %v2785_v19  ;;  %v10004_v23 = vld [vmem:[#allocation8 + $0x7a4] ss:$16 sps:$4 sm:$0xff]   ;;  %v2555_v30 = vadd.f32 %v13548_v11, %v2386_v59  ;;  %v2792_v31 = vmax.f32 %v2664_v8, 0.0  ;;  %v16697_v59 = vld [vmem:[#allocation146_spill] sm:$0xff]  ;;  %v10014_v8 = vld [vmem:[#allocation8 + $0x7e0] ss:$16 sps:$4 sm:$0xff]  }
 0x51b   : > { %5179 = vmatmul.mubr.bf16.gmra.mrb[84].mxu1 %v2840_v38  ;;  %4736 = vmatprep.mubr.bf16.mxu0 %v2849_v53  ;;  %v2656_v38 = vadd.f32 %v13426_v57, %v2487_v10  ;;  %v2225_v57 = vmul.f32 %v13086_v34, %v16696_v49  ;;  %v2232_v35 = vmul.f32 %v13096_v26, %v16697_v59  ;;  %v16698_v10 = vld [vmem:[#allocation94_spill] sm:$0xff]  ;;  %v16702_v49 = vld [vmem:[#allocation113_spill] sm:$0xff] }
 0x51c   : > { %4778 = vmatpush1.bf16.msra.mxu0 %v9984_v36  ;;  %5188 = vmatprep.mubr.bf16.mxu1 %v2849_v53  ;;  %v16693_v36 = vld [vmem:[#allocation83_spill] sm:$0xff]  ;;  %v2683_v56 = vmax.f32 %v2555_v30, 0.0  ;;  %v2249_v19 = vmul.f32 %v13119_v52, %v16698_v10 }
 0x51d   : > { %5230 = vmatpush1.bf16.msra.mxu1 %v9987_v33  ;;  %4779 = vmatprep.subr.bf16.mxu0 %v9992_v60  ;;  %v2233_v20 = vmul.f32 %v13096_v26, %v16693_v36  ;;  %v2547_v33 = vadd.f32 %v13548_v11, %v2378_v40  ;;  %v16695_v53 = vld [vmem:[#allocation139_spill] sm:$0xff]  ;;  %v2784_v61 = vmax.f32 %v2656_v38, 0.0  ;;  %v2394_v13 = vmul.f32 %v13540_v41, %v2225_v57 }
 0x51e   : > { %5231 = vmatprep.subr.bf16.mxu1 %v9995_v63  ;;  %v2208_v60 = vmul.f32 %v13054_v16, %v16695_v53  ;;  %v10010_v63 = vld [vmem:[#allocation8 + $0x7c4] ss:$16 sps:$4 sm:$0xff]   ;;  %v13570_v16 = vrot.slane %v13400_v42, %v16694_v43  ;;  %v10019_v42 = vld [vmem:[#allocation8 + $0x7ec] ss:$16 sps:$4 sm:$0xff]   ;;  %v2401_v46 = vmul.f32 %v13559_v54, %v2232_v35  ;;  %v2265_v57 = vmul.f32 %v13143_v24, %v16702_v49 }
 0x51f   : > { %v2402_v45 = vmul.f32 %v13540_v41, %v2233_v20  ;;  %v2675_v22 = vmax.f32 %v2547_v33, 0.0  ;;  %v2856_v28 = vpack.c.bf16 %v2792_v31, %v2784_v61  ;;  %v2563_v26 = vadd.f32 %v13548_v11, %v2394_v13  ;;  %v16701_v53 = vld [vmem:[#allocation89_spill] sm:$0xff] }
 0x520   : > { %4780 = vmatpush1.bf16.msra.mxu0 %v9990_v0  ;;  %v2377_v39 = vmul.f32 %v13559_v54, %v2208_v60  ;;  %v10008_v0 = vld [vmem:[#allocation8 + $0x7c0] ss:$16 sps:$4 sm:$0xff]   ;;  %v2554_v17 = vadd.f32 %v13570_v16, %v2385_v48  ;;  %v2570_v33 = vadd.f32 %v13570_v16, %v2401_v46  ;;  %v2248_v60 = vmul.f32 %v13119_v52, %v16701_v53 }
 0x521   : > { %5232 = vmatpush1.bf16.msra.mxu1 %v9993_v21  ;;  %4781 = vmatprep.subr.bf16.mxu0 %v9998_v51  ;;  %v2803_v21 = vpack.c.bf16 %v2683_v56, %v2675_v22  ;;  %v10016_v51 = vld [vmem:[#allocation8 + $0x7e4] ss:$16 sps:$4 sm:$0xff]   ;;  %v2691_v36 = vmax.f32 %v2563_v26, 0.0 }
 0x522   : > { %4737 = vmatmul.mubr.bf16.gmra.mrb[88].mxu0 %v2848_v7  ;;  %5233 = vmatprep.subr.bf16.mxu1 %v10001_v5  ;;  %v2571_v5 = vadd.f32 %v13548_v11, %v2402_v45  ;;  %v2546_v40 = vadd.f32 %v13570_v16, %v2377_v39  ;;  %v2682_v30 = vmax.f32 %v2554_v17, 0.0  ;;  %v16704_v61 = vld [vmem:[#allocation153_spill] sm:$0xff]  ;;  %v2698_v52 = vmax.f32 %v2570_v33, 0.0 }
 0x523   : > { %5189 = vmatmul.mubr.bf16.gmra.mrb[88].mxu1 %v2848_v7  ;;  %4746 = vmatprep.mubr.bf16.mxu0 %v2857_v44  ;;  %v16699_v7 = vld [vmem:[#allocation143_spill] sm:$0xff]  ;;  %v2417_v45 = vmul.f32 %v13559_v54, %v2248_v60  ;;  %v2434_v39 = vmul.f32 %v13540_v41, %v2265_v57  ;;  %v16711_v60 = vld [vmem:[#allocation118_spill] sm:$0xff]  ;;  %v16712_v49 = vld [vmem:[#allocation109_spill] sm:$0xff] }
 0x524   : > { %4782 = vmatpush1.bf16.msra.mxu0 %v9996_v18  ;;  %5198 = vmatprep.mubr.bf16.mxu1 %v2857_v44  ;;  %v2224_v18 = vmul.f32 %v13086_v34, %v16699_v7  ;;  %v2699_v4 = vmax.f32 %v2571_v5, 0.0  ;;  %v2674_v38 = vmax.f32 %v2546_v40, 0.0  ;;  %v2289_v57 = vmul.f32 %v13182_v3, %v16712_v49  ;;  %v16721_v49 = vld [vmem:[#allocation132_spill] sm:$0xff] }
 0x525   : > { %5234 = vmatpush1.bf16.msra.mxu1 %v9999_v6  ;;  %4783 = vmatprep.subr.bf16.mxu0 %v10004_v23  ;;  %v16700_v6 = vld [vmem:[#allocation86_spill] sm:$0xff]  ;;  %v2603_v35 = vadd.f32 %v13548_v11, %v2434_v39 }
 0x526   : > { %5235 = vmatprep.subr.bf16.mxu1 %v10007_v62  ;;  %v2241_v44 = vmul.f32 %v13110_v29, %v16700_v6  ;;  %v10017_v23 = vld [vmem:[#allocation8 + $0x7e8] ss:$16 sps:$4 sm:$0xff]   ;;  %v2418_v62 = vmul.f32 %v13540_v41, %v2249_v19  ;;  %v2393_v34 = vmul.f32 %v13559_v54, %v2224_v18  ;;  %v2802_v43 = vpack.c.bf16 %v2682_v30, %v2674_v38  ;;  %v16709_v38 = vld [vmem:[#allocation123_spill] sm:$0xff] }
 0x527   : > { %v16707_v19 = vld [vmem:[#allocation152_spill] sm:$0xff]  ;;  %v16708_v18 = vld [vmem:[#allocation122_spill] sm:$0xff]  ;;  %v2731_v6 = vmax.f32 %v2603_v35, 0.0 }
 0x528   : > { %4784 = vmatpush1.bf16.msra.mxu0 %v10002_v2  ;;  %v2410_v20 = vmul.f32 %v13540_v41, %v2241_v44  ;;  %v2811_v2 = vpack.c.bf16 %v2699_v4, %v2691_v36  ;;  %v2587_v31 = vadd.f32 %v13548_v11, %v2418_v62  ;;  %v2256_v40 = vmul.f32 %v13132_v27, %v16707_v19 }
 0x529   : > { %5236 = vmatpush1.bf16.msra.mxu1 %v10005_v14  ;;  %4785 = vmatprep.subr.bf16.mxu0 %v10010_v63  ;;  %v2562_v14 = vadd.f32 %v13570_v16, %v2393_v34  ;;  %v16703_v63 = vld [vmem:[#allocation149_spill] sm:$0xff]  ;;  %v2280_v34 = vmul.f32 %v13167_v37, %v16709_v38  ;;  %v16720_v38 = vld [vmem:[#allocation130_spill] sm:$0xff] }
 0x52a   : > { %4747 = vmatmul.mubr.bf16.gmra.mrb[92].mxu0 %v2856_v28  ;;  %5237 = vmatprep.subr.bf16.mxu1 %v10013_v32  ;;  %v2240_v56 = vmul.f32 %v13110_v29, %v16703_v63  ;;  %v2579_v48 = vadd.f32 %v13548_v11, %v2410_v20  ;;  %v2257_v32 = vmul.f32 %v13132_v27, %v16704_v61  ;;  %v2715_v22 = vmax.f32 %v2587_v31, 0.0 }
 0x52b   : > { %5199 = vmatmul.mubr.bf16.gmra.mrb[92].mxu1 %v2856_v28  ;;  %4789 = vmatprep.mubr.bf16.mxu0 %v2803_v21  ;;  %v2690_v28 = vmax.f32 %v2562_v14, 0.0  ;;  %v2425_v30 = vmul.f32 %v13559_v54, %v2256_v40  ;;  %v2449_v14 = vmul.f32 %v13559_v54, %v2280_v34  ;;  %v2321_v34 = vmul.f32 %v13228_v9, %v16720_v38 }
 0x52c   : > { %4786 = vmatpush1.bf16.msra.mxu0 %v10008_v0  ;;  %5241 = vmatprep.mubr.bf16.mxu1 %v2803_v21  ;;  %v2409_v0 = vmul.f32 %v13559_v54, %v2240_v56  ;;  %v2707_v13 = vmax.f32 %v2579_v48, 0.0  ;;  %v2426_v29 = vmul.f32 %v13540_v41, %v2257_v32  ;;  %v2586_v21 = vadd.f32 %v13570_v16, %v2417_v45 }
 0x52d   : > { %5238 = vmatpush1.bf16.msra.mxu1 %v10011_v58  ;;  %4787 = vmatprep.subr.bf16.mxu0 %v10016_v51  ;;  %v2810_v58 = vpack.c.bf16 %v2698_v52, %v2690_v28  ;;  %v16705_v51 = vld [vmem:[#allocation156_spill] sm:$0xff]  ;;  %v2594_v53 = vadd.f32 %v13570_v16, %v2425_v30  ;;  %v2618_v45 = vadd.f32 %v13570_v16, %v2449_v14 }
 0x52e   : > { %5239 = vmatprep.subr.bf16.mxu1 %v10019_v42  ;;  %v2264_v17 = vmul.f32 %v13143_v24, %v16705_v51  ;;  %v2819_v59 = vpack.c.bf16 %v2715_v22, %v2707_v13  ;;  %v16706_v42 = vld [vmem:[#allocation107_spill] sm:$0xff]  ;;  %v2578_v10 = vadd.f32 %v13570_v16, %v2409_v0  ;;  %v2595_v7 = vadd.f32 %v13548_v11, %v2426_v29  ;;  %v16713_v22 = vld [vmem:[#allocation48_spill] sm:$0xff]  ;;  %v16714_v13 = vld [vmem:[#allocation129_spill] sm:$0xff] }
 0x52f   : > { %v2281_v5 = vmul.f32 %v13167_v37, %v16706_v42  ;;  %v2714_v24 = vmax.f32 %v2586_v21, 0.0  ;;  %v2722_v48 = vmax.f32 %v2594_v53, 0.0  ;;  %v2296_v39 = vmul.f32 %v13191_v55, %v16713_v22  ;;  %v16715_v21 = vld [vmem:[#allocation108_spill] sm:$0xff] }
 0x530   : > { %4788 = vmatpush1.bf16.msra.mxu0 %v10014_v8  ;;  %v2273_v8 = vmul.f32 %v13158_v50, %v16708_v18  ;;  %v2433_v26 = vmul.f32 %v13559_v54, %v2264_v17  ;;  %v2723_v46 = vmax.f32 %v2595_v7, 0.0  ;;  %v2313_v29 = vmul.f32 %v13213_v15, %v16714_v13 }
 0x531   : > { %5240 = vmatpush1.bf16.msra.mxu1 %v10017_v23  ;;  %v2450_v44 = vmul.f32 %v13540_v41, %v2281_v5  ;;  %v2706_v23 = vmax.f32 %v2578_v10, 0.0  ;;  %v2288_v51 = vmul.f32 %v13182_v3, %v16715_v21  ;;  %v2465_v42 = vmul.f32 %v13559_v54, %v2296_v39  ;;  %v16725_v21 = vld [vmem:[#allocation46_spill] sm:$0xff] }
 0x532   : > { %v2442_v27 = vmul.f32 %v13540_v41, %v2273_v8  ;;  %v2602_v62 = vadd.f32 %v13570_v16, %v2433_v26  ;;  %v2827_v36 = vpack.c.bf16 %v2731_v6, %v2723_v46  ;;  %v2482_v10 = vmul.f32 %v13540_v41, %v2313_v29  ;;  %v16724_v29 = vld [vmem:[#allocation45_spill] sm:$0xff] }
 0x533   : > { %4790 = vmatmul.mubr.bf16.vlgmr.msra.gmra.mrb[64].mxu0 %v2802_v43  ;;  %v2818_v4 = vpack.c.bf16 %v2714_v24, %v2706_v23  ;;  %v2619_v20 = vadd.f32 %v13548_v11, %v2450_v44  ;;  %v2457_v40 = vmul.f32 %v13559_v54, %v2288_v51  ;;  %v2634_v8 = vadd.f32 %v13570_v16, %v2465_v42  ;;  %v16717_v24 = vld [vmem:[#allocation64_spill] sm:$0xff]  ;;  %v16718_v23 = vld [vmem:[#allocation135_spill] sm:$0xff] }
 0x534   : > { %5242 = vmatmul.mubr.bf16.vlgmr.msra.gmra.mrb[64].mxu1 %v2802_v43  ;;  %4799 = vmatprep.mubr.bf16.mxu0 %v2811_v2  ;;  %v16710_v43 = vld [vmem:[#allocation127_spill] sm:$0xff]  ;;  %v2611_v31 = vadd.f32 %v13548_v11, %v2442_v27  ;;  %v2730_v37 = vmax.f32 %v2602_v62, 0.0  ;;  %v2312_v26 = vmul.f32 %v13213_v15, %v16717_v24  ;;  %v2651_v44 = vadd.f32 %v13548_v11, %v2482_v10 }
 0x535   : > { %5251 = vmatprep.mubr.bf16.mxu1 %v2811_v2  ;;  %v2297_v33 = vmul.f32 %v13191_v55, %v16710_v43  ;;  %v2272_v2 = vmul.f32 %v13158_v50, %v16711_v60  ;;  %v2747_v63 = vmax.f32 %v2619_v20, 0.0  ;;  %v2458_v50 = vmul.f32 %v13540_v41, %v2289_v57  ;;  %v16719_v27 = vld [vmem:[#allocation51_spill] sm:$0xff] }
 0x536   : > { %v2739_v32 = vmax.f32 %v2611_v31, 0.0  ;;  %v2826_v52 = vpack.c.bf16 %v2730_v37, %v2722_v48  ;;  %v2746_v55 = vmax.f32 %v2618_v45, 0.0  ;;  %v2329_v30 = vmul.f32 %v13242_v12, %v16718_v23 }
 0x537   : > { %v2466_v56 = vmul.f32 %v13540_v41, %v2297_v33  ;;  %v2441_v61 = vmul.f32 %v13559_v54, %v2272_v2  ;;  %v2627_v17 = vadd.f32 %v13548_v11, %v2458_v50  ;;  %v2626_v46 = vadd.f32 %v13570_v16, %v2457_v40 }
 0x538   : > { %v2835_v28 = vpack.c.bf16 %v2747_v63, %v2739_v32  ;;  %v2762_v15 = vmax.f32 %v2634_v8, 0.0  ;;  %v2779_v20 = vmax.f32 %v2651_v44, 0.0  ;;  %v2498_v43 = vmul.f32 %v13540_v41, %v2329_v30 }
 0x539   : > { %v2635_v0 = vadd.f32 %v13548_v11, %v2466_v56  ;;  %v2755_v7 = vmax.f32 %v2627_v17, 0.0  ;;  %v2754_v33 = vmax.f32 %v2626_v46, 0.0  ;;  %v2328_v57 = vmul.f32 %v13242_v12, %v16721_v49  ;;  %v16722_v56 = vld [vmem:[#allocation73_spill] sm:$0xff] }
 0x53a   : > { %v2667_v14 = vadd.f32 %v13548_v11, %v2498_v43  ;;  %v2320_v48 = vmul.f32 %v13228_v9, %v16722_v56 }
 0x53b   : > { %4800 = vmatmul.mubr.bf16.gmra.mrb[68].mxu0 %v2810_v58  ;;  %v2763_v5 = vmax.f32 %v2635_v0, 0.0  ;;  %v2842_v2 = vpack.c.bf16 %v2762_v15, %v2754_v33  ;;  %v2497_v32 = vmul.f32 %v13559_v54, %v2328_v57 }
 0x53c   : > { %5252 = vmatmul.mubr.bf16.gmra.mrb[68].mxu1 %v2810_v58  ;;  %4809 = vmatprep.mubr.bf16.mxu0 %v2819_v59  ;;  %v2610_v58 = vadd.f32 %v13570_v16, %v2441_v61  ;;  %v2795_v50 = vmax.f32 %v2667_v14, 0.0  ;;  %v2489_v12 = vmul.f32 %v13559_v54, %v2320_v48 }
 0x53d   : > { %5261 = vmatprep.mubr.bf16.mxu1 %v2819_v59  ;;  %v16716_v59 = vld [vmem:[#allocation52_spill] sm:$0xff]  ;;  %v2843_v6 = vpack.c.bf16 %v2763_v5, %v2755_v7  ;;  %v2666_v39 = vadd.f32 %v13570_v16, %v2497_v32 }
 0x53e   : > { %v2305_v35 = vmul.f32 %v13204_v25, %v16716_v59  ;;  %v2738_v19 = vmax.f32 %v2610_v58, 0.0  ;;  %v2658_v9 = vadd.f32 %v13570_v16, %v2489_v12 }
 0x540   : > { %v2474_v3 = vmul.f32 %v13540_v41, %v2305_v35  ;;  %v2834_v18 = vpack.c.bf16 %v2746_v55, %v2738_v19  ;;  %v2786_v0 = vmax.f32 %v2658_v9, 0.0 }
 0x542   : > { %v2643_v62 = vadd.f32 %v13548_v11, %v2474_v3 }
 0x543   : > { %4810 = vmatmul.mubr.bf16.gmra.mrb[72].mxu0 %v2818_v4 }
 0x544   : > { %5262 = vmatmul.mubr.bf16.gmra.mrb[72].mxu1 %v2818_v4  ;;  %4819 = vmatprep.mubr.bf16.mxu0 %v2827_v36  ;;  %v2304_v4 = vmul.f32 %v13204_v25, %v16719_v27  ;;  %v2771_v60 = vmax.f32 %v2643_v62, 0.0  ;;  %v2490_v25 = vmul.f32 %v13540_v41, %v2321_v34 }
 0x545   : > { %5271 = vmatprep.mubr.bf16.mxu1 %v2827_v36  ;;  %v2481_v36 = vmul.f32 %v13559_v54, %v2312_v26 }
 0x546   : > { %v2473_v53 = vmul.f32 %v13559_v54, %v2304_v4  ;;  %v2851_v37 = vpack.c.bf16 %v2779_v20, %v2771_v60  ;;  %v2659_v61 = vadd.f32 %v13548_v11, %v2490_v25  ;;  %v2794_v11 = vmax.f32 %v2666_v39, 0.0  ;;  %v3116_v54 = vld [vmem:[%s16723_s22] sm:$0xf] }
 0x547   : > { %v2650_v31 = vadd.f32 %v13570_v16, %v2481_v36  ;;  %v13686_v58 = vrot.slane %v3116_v54, %v16724_v29  ;;  %v13689_v51 = vrot.slane %v3116_v54, %v16725_v21  ;;  %v13701_v5 = vrot.slane %v3116_v54, %v16626_v47 }
 0x548   : > { %v2642_v63 = vadd.f32 %v13570_v16, %v2473_v53  ;;  %v2787_v45 = vmax.f32 %v2659_v61, 0.0  ;;  %v2858_v13 = vpack.c.bf16 %v2794_v11, %v2786_v0  ;;  %v13692_v16 = vrot.slane %v3116_v54, %v16631_v1 }
 0x549   : > { %v2778_v41 = vmax.f32 %v2650_v31, 0.0 }
 0x54b   : > { %4820 = vmatmul.mubr.bf16.gmra.mrb[76].mxu0 %v2826_v52 }
 0x54c   : > { %5272 = vmatmul.mubr.bf16.gmra.mrb[76].mxu1 %v2826_v52  ;;  %4829 = vmatprep.mubr.bf16.mxu0 %v2835_v28  ;;  %v2770_v52 = vmax.f32 %v2642_v63, 0.0 }
 0x54d   : > { %5281 = vmatprep.mubr.bf16.mxu1 %v2835_v28  ;;  %v2859_v28 = vpack.c.bf16 %v2795_v50, %v2787_v45 }
 0x54e   : > { %v2850_v22 = vpack.c.bf16 %v2778_v41, %v2770_v52 }
 0x553   : > { %4830 = vmatmul.mubr.bf16.gmra.mrb[80].mxu0 %v2834_v18 }
 0x554   : > { %5282 = vmatmul.mubr.bf16.gmra.mrb[80].mxu1 %v2834_v18  ;;  %4839 = vmatprep.mubr.bf16.mxu0 %v2843_v6 }
 0x555   : > { %5291 = vmatprep.mubr.bf16.mxu1 %v2843_v6 }
 0x55b   : > { %4840 = vmatmul.mubr.bf16.gmra.mrb[84].mxu0 %v2842_v2 }
 0x55c   : > { %5292 = vmatmul.mubr.bf16.gmra.mrb[84].mxu1 %v2842_v2  ;;  %4849 = vmatprep.mubr.bf16.mxu0 %v2851_v37 }
 0x55d   : > { %5301 = vmatprep.mubr.bf16.mxu1 %v2851_v37 }
 0x563   : > { %4850 = vmatmul.mubr.bf16.gmra.mrb[88].mxu0 %v2850_v22 }
 0x564   : > { %5302 = vmatmul.mubr.bf16.gmra.mrb[88].mxu1 %v2850_v22  ;;  %4859 = vmatprep.mubr.bf16.mxu0 %v2859_v28 }
 0x565   : > { %5311 = vmatprep.mubr.bf16.mxu1 %v2859_v28 }
 0x56b   : > { %4860 = vmatmul.mubr.bf16.gmra.mrb[92].mxu0 %v2858_v13 }
 0x56c   : > { %5312 = vmatmul.mubr.bf16.gmra.mrb[92].mxu1 %v2858_v13 }
 0x606   : > { %v4791_v17 = vpop.f32.mrb[64].mxu0 }
 0x607   : > { %v13695_v59 = vadd.f32 %v4791_v17, %v13686_v58  ;;  %v5243_v35 = vpop.f32.mrb[64].mxu1  ;;  %v4793_v55 = vpop.f32.mrb[65].mxu0 }
 0x608   : > { %v13698_v42 = vadd.f32 %v4793_v55, %v13689_v51  ;;  %v5245_v10 = vpop.f32.mrb[65].mxu1  ;;  %v4795_v19 = vpop.f32.mrb[66].mxu0  ;;  %v13707_v18 = vadd.f32 %v5243_v35, %v13692_v16 }
 0x609   : > { %v13704_v40 = vadd.f32 %v4795_v19, %v13686_v58  ;;  %v5247_v7 = vpop.f32.mrb[66].mxu1  ;;  %v4797_v3 = vpop.f32.mrb[67].mxu0  ;;  %v13715_v6 = vadd.f32 %v5245_v10, %v13701_v5 }
 0x60a   : > { %v5324_v8 = vadd.f32 %v13698_v42, %v13695_v59  ;;  %v13712_v24 = vadd.f32 %v4797_v3, %v13689_v51  ;;  %v5249_v26 = vpop.f32.mrb[67].mxu1  ;;  %v13718_v44 = vadd.f32 %v5247_v7, %v13692_v16 }
 0x60b   : > { %v13724_v46 = vadd.f32 %v5249_v26, %v13701_v5 }
 0x60c   : > { %v5329_v23 = vadd.f32 %v13712_v24, %v13704_v40  ;;  %v5325_v30 = vadd.f32 %v13707_v18, %v5324_v8 }
 0x60e   : > { %v4801_v27 = vpop.f32.mrb[68].mxu0  ;;  %v5326_v4 = vadd.f32 %v13715_v6, %v5325_v30  ;;  %v5330_v62 = vadd.f32 %v13718_v44, %v5329_v23 }
 0x60f   : > { %v13729_v38 = vadd.f32 %v4801_v27, %v13686_v58  ;;  %v5253_v34 = vpop.f32.mrb[68].mxu1  ;;  %v4803_v15 = vpop.f32.mrb[69].mxu0 }
 0x610   : > { %v13732_v36 = vadd.f32 %v4803_v15, %v13689_v51  ;;  %v5255_v20 = vpop.f32.mrb[69].mxu1  ;;  %v4805_v43 = vpop.f32.mrb[70].mxu0  ;;  %5327 = vadd.xlane.f32.xlu0 %v5326_v4  ;;  %v5331_v33 = vadd.f32 %v13724_v46, %v5330_v62  ;;  %v13739_v2 = vadd.f32 %v5253_v34, %v13692_v16 }
 0x611   : > { %v13736_v53 = vadd.f32 %v4805_v43, %v13686_v58  ;;  %v5257_v60 = vpop.f32.mrb[70].mxu1  ;;  %v4807_v25 = vpop.f32.mrb[71].mxu0  ;;  %v13747_v37 = vadd.f32 %v5255_v20, %v13701_v5 }
 0x612   : > { %v5334_v31 = vadd.f32 %v13732_v36, %v13729_v38  ;;  %v13744_v49 = vadd.f32 %v4807_v25, %v13689_v51  ;;  %v5259_v57 = vpop.f32.mrb[71].mxu1  ;;  %5332 = vadd.xlane.f32.xlu1 %v5331_v33  ;;  %v13750_v14 = vadd.f32 %v5257_v60, %v13692_v16 }
 0x613   : > { %v13756_v48 = vadd.f32 %v5259_v57, %v13701_v5 }
 0x614   : > { %v5339_v63 = vadd.f32 %v13744_v49, %v13736_v53  ;;  %v5335_v56 = vadd.f32 %v13739_v2, %v5334_v31 }
 0x616   : > { %v4811_v61 = vpop.f32.mrb[72].mxu0  ;;  %v5336_v41 = vadd.f32 %v13747_v37, %v5335_v56  ;;  %v5340_v32 = vadd.f32 %v13750_v14, %v5339_v63 }
 0x617   : > { %v13761_v50 = vadd.f32 %v4811_v61, %v13686_v58  ;;  %v5263_v52 = vpop.f32.mrb[72].mxu1  ;;  %v4813_v12 = vpop.f32.mrb[73].mxu0 }
 0x618   : > { %v13764_v45 = vadd.f32 %v4813_v12, %v13689_v51  ;;  %v5265_v22 = vpop.f32.mrb[73].mxu1  ;;  %v4815_v39 = vpop.f32.mrb[74].mxu0  ;;  %5337 = vadd.xlane.f32.xlu0 %v5336_v41  ;;  %v5341_v28 = vadd.f32 %v13756_v48, %v5340_v32  ;;  %v13771_v13 = vadd.f32 %v5263_v52, %v13692_v16 }
 0x619   : > { %v13768_v9 = vadd.f32 %v4815_v39, %v13686_v58  ;;  %v5267_v11 = vpop.f32.mrb[74].mxu1  ;;  %v4817_v0 = vpop.f32.mrb[75].mxu0  ;;  %v13779_v55 = vadd.f32 %v5265_v22, %v13701_v5 }
 0x61a   : > { %v5344_v54 = vadd.f32 %v13764_v45, %v13761_v50  ;;  %v13776_v17 = vadd.f32 %v4817_v0, %v13689_v51  ;;  %v5269_v35 = vpop.f32.mrb[75].mxu1  ;;  %5342 = vadd.xlane.f32.xlu1 %v5341_v28  ;;  %v13782_v10 = vadd.f32 %v5267_v11, %v13692_v16 }
 0x61b   : > { %v13788_v3 = vadd.f32 %v5269_v35, %v13701_v5 }
 0x61c   : > { %v5349_v19 = vadd.f32 %v13776_v17, %v13768_v9  ;;  %v5345_v7 = vadd.f32 %v13771_v13, %v5344_v54 }
 0x61e   : > { %v4821_v8 = vpop.f32.mrb[76].mxu0  ;;  %v5346_v26 = vadd.f32 %v13779_v55, %v5345_v7  ;;  %v5350_v23 = vadd.f32 %v13782_v10, %v5349_v19 }
 0x61f   : > { %v13793_v30 = vadd.f32 %v4821_v8, %v13686_v58  ;;  %v5273_v27 = vpop.f32.mrb[76].mxu1  ;;  %v4823_v4 = vpop.f32.mrb[77].mxu0 }
 0x620   : > { %v13796_v62 = vadd.f32 %v4823_v4, %v13689_v51  ;;  %v5275_v34 = vpop.f32.mrb[77].mxu1  ;;  %v4825_v15 = vpop.f32.mrb[78].mxu0  ;;  %5347 = vadd.xlane.f32.xlu0 %v5346_v26  ;;  %v5351_v20 = vadd.f32 %v13788_v3, %v5350_v23  ;;  %v13803_v25 = vadd.f32 %v5273_v27, %v13692_v16 }
 0x621   : > { %v13800_v43 = vadd.f32 %v4825_v15, %v13686_v58  ;;  %v5277_v33 = vpop.f32.mrb[78].mxu1  ;;  %v4827_v60 = vpop.f32.mrb[79].mxu0  ;;  %v13811_v56 = vadd.f32 %v5275_v34, %v13701_v5 }
 0x622   : > { %v5354_v31 = vadd.f32 %v13796_v62, %v13793_v30  ;;  %v13808_v57 = vadd.f32 %v4827_v60, %v13689_v51  ;;  %v5279_v63 = vpop.f32.mrb[79].mxu1  ;;  %5352 = vadd.xlane.f32.xlu1 %v5351_v20  ;;  %v13814_v61 = vadd.f32 %v5277_v33, %v13692_v16 }
 0x623   : > { %v13820_v52 = vadd.f32 %v5279_v63, %v13701_v5 }
 0x624   : > { %v5359_v41 = vadd.f32 %v13808_v57, %v13800_v43  ;;  %v5355_v32 = vadd.f32 %v13803_v25, %v5354_v31 }
 0x626   : > { %v4831_v12 = vpop.f32.mrb[80].mxu0  ;;  %v5356_v22 = vadd.f32 %v13811_v56, %v5355_v32  ;;  %v5360_v39 = vadd.f32 %v13814_v61, %v5359_v41 }
 0x627   : > { %v13825_v28 = vadd.f32 %v4831_v12, %v13686_v58  ;;  %v5283_v11 = vpop.f32.mrb[80].mxu1  ;;  %v4833_v0 = vpop.f32.mrb[81].mxu0 }
 0x628   : > { %v13828_v54 = vadd.f32 %v4833_v0, %v13689_v51  ;;  %v5285_v35 = vpop.f32.mrb[81].mxu1  ;;  %v4835_v19 = vpop.f32.mrb[82].mxu0  ;;  %5357 = vadd.xlane.f32.xlu0 %v5356_v22  ;;  %v5361_v7 = vadd.f32 %v13820_v52, %v5360_v39  ;;  %v13835_v27 = vadd.f32 %v5283_v11, %v13692_v16 }
 0x629   : > { %v13832_v8 = vadd.f32 %v4835_v19, %v13686_v58  ;;  %v5287_v26 = vpop.f32.mrb[82].mxu1  ;;  %v4837_v23 = vpop.f32.mrb[83].mxu0  ;;  %v13843_v20 = vadd.f32 %v5285_v35, %v13701_v5 }
 0x62a   : > { %v5364_v4 = vadd.f32 %v13828_v54, %v13825_v28  ;;  %v13840_v34 = vadd.f32 %v4837_v23, %v13689_v51  ;;  %v5289_v15 = vpop.f32.mrb[83].mxu1  ;;  %5362 = vadd.xlane.f32.xlu1 %v5361_v7  ;;  %v13846_v33 = vadd.f32 %v5287_v26, %v13692_v16 }
 0x62b   : > { %v13852_v63 = vadd.f32 %v5289_v15, %v13701_v5 }
 0x62c   : > { %v5369_v60 = vadd.f32 %v13840_v34, %v13832_v8  ;;  %v5365_v31 = vadd.f32 %v13835_v27, %v5364_v4 }
 0x62e   : > { %v4841_v41 = vpop.f32.mrb[84].mxu0  ;;  %v5366_v32 = vadd.f32 %v13843_v20, %v5365_v31  ;;  %v5370_v12 = vadd.f32 %v13846_v33, %v5369_v60 }
 0x62f   : > { %v13857_v22 = vadd.f32 %v4841_v41, %v13686_v58  ;;  %v5293_v39 = vpop.f32.mrb[84].mxu1  ;;  %v4843_v11 = vpop.f32.mrb[85].mxu0 }
 0x630   : > { %v13860_v0 = vadd.f32 %v4843_v11, %v13689_v51  ;;  %v5295_v35 = vpop.f32.mrb[85].mxu1  ;;  %v4845_v19 = vpop.f32.mrb[86].mxu0  ;;  %5367 = vadd.xlane.f32.xlu0 %v5366_v32  ;;  %v5371_v7 = vadd.f32 %v13852_v63, %v5370_v12  ;;  %v13867_v15 = vadd.f32 %v5293_v39, %v13692_v16 }
 0x631   : > { %v13864_v26 = vadd.f32 %v4845_v19, %v13686_v58  ;;  %v5297_v23 = vpop.f32.mrb[86].mxu1  ;;  %v4847_v4 = vpop.f32.mrb[87].mxu0  ;;  %v13875_v32 = vadd.f32 %v5295_v35, %v13701_v5 }
 0x632   : > { %16727 = vst [vmem:[#allocation136_spill] sm:$0xff] %v13867_v15  ;;  %v5374_v60 = vadd.f32 %v13860_v0, %v13857_v22  ;;  %v13872_v31 = vadd.f32 %v4847_v4, %v13689_v51  ;;  %v5299_v41 = vpop.f32.mrb[87].mxu1  ;;  %5372 = vadd.xlane.f32.xlu1 %v5371_v7  ;;  %v13878_v12 = vadd.f32 %v5297_v23, %v13692_v16 }
 0x633   : > { %16726 = vst [vmem:[#allocation134_spill] sm:$0xff] %v13864_v26  ;;  %16729 = vst [vmem:[#allocation56_spill] sm:$0xff] %v13875_v32  ;;  %v13884_v19 = vadd.f32 %v5299_v41, %v13701_v5 }
 0x634   : > { %16728 = vst [vmem:[#allocation137_spill] sm:$0xff] %v13872_v31  ;;  %16730 = vst [vmem:[#allocation55_spill] sm:$0xff] %v13878_v12  ;;  %v5379_v11 = vadd.f32 %v13872_v31, %v13864_v26  ;;  %v5375_v39 = vadd.f32 %v13867_v15, %v5374_v60 }
 0x635   : > { %16731 = vst [vmem:[#allocation58_spill] sm:$0xff] %v13884_v19 }
 0x636   : > { %v4851_v1 = vpop.f32.mrb[88].mxu0  ;;  %v5376_v4 = vadd.f32 %v13875_v32, %v5375_v39  ;;  %v5380_v47 = vadd.f32 %v13878_v12, %v5379_v11 }
 0x637   : > { %v13889_v7 = vadd.f32 %v4851_v1, %v13686_v58  ;;  %v5303_v35 = vpop.f32.mrb[88].mxu1  ;;  %v4853_v29 = vpop.f32.mrb[89].mxu0 }
 0x638   : > { %v13892_v23 = vadd.f32 %v4853_v29, %v13689_v51  ;;  %v5305_v21 = vpop.f32.mrb[89].mxu1  ;;  %v4855_v31 = vpop.f32.mrb[90].mxu0  ;;  %5377 = vadd.xlane.f32.xlu0 %v5376_v4  ;;  %v5381_v60 = vadd.f32 %v13884_v19, %v5380_v47  ;;  %v13899_v11 = vadd.f32 %v5303_v35, %v13692_v16 }
 0x639   : > { %16732 = vst [vmem:[#allocation57_spill] sm:$0xff] %v13889_v7  ;;  %v13896_v41 = vadd.f32 %v4855_v31, %v13686_v58  ;;  %v5307_v26 = vpop.f32.mrb[90].mxu1  ;;  %v4857_v39 = vpop.f32.mrb[91].mxu0  ;;  %v13907_v4 = vadd.f32 %v5305_v21, %v13701_v5 }
 0x63a   : > { %16733 = vst [vmem:[#allocation92_spill] sm:$0xff] %v13892_v23  ;;  %v5384_v1 = vadd.f32 %v13892_v23, %v13889_v7  ;;  %v13904_v12 = vadd.f32 %v4857_v39, %v13689_v51  ;;  %v5309_v29 = vpop.f32.mrb[91].mxu1  ;;  %5382 = vadd.xlane.f32.xlu1 %v5381_v60  ;;  %v13910_v47 = vadd.f32 %v5307_v26, %v13692_v16 }
 0x63b   : > { %16734 = vst [vmem:[#allocation91_spill] sm:$0xff] %v13896_v41  ;;  %v13916_v19 = vadd.f32 %v5309_v29, %v13701_v5 }
 0x63c   : > { %16735 = vst [vmem:[#allocation100_spill] sm:$0xff] %v13904_v12  ;;  %16736 = vst [vmem:[#allocation99_spill] sm:$0xff] %v13910_v47  ;;  %v5389_v31 = vadd.f32 %v13904_v12, %v13896_v41  ;;  %v5385_v35 = vadd.f32 %v13899_v11, %v5384_v1 }
 0x63e   : > { %v4861_v23 = vpop.f32.mrb[92].mxu0  ;;  %v5386_v39 = vadd.f32 %v13907_v4, %v5385_v35  ;;  %v5390_v7 = vadd.f32 %v13910_v47, %v5389_v31 }
 0x63f   : > { %v13921_v60 = vadd.f32 %v4861_v23, %v13686_v58  ;;  %v5313_v21 = vpop.f32.mrb[92].mxu1  ;;  %v4863_v32 = vpop.f32.mrb[93].mxu0 }
 0x640   : > { %v13924_v26 = vadd.f32 %v4863_v32, %v13689_v51  ;;  %v5315_v15 = vpop.f32.mrb[93].mxu1  ;;  %v4865_v12 = vpop.f32.mrb[94].mxu0  ;;  %5387 = vadd.xlane.f32.xlu0 %v5386_v39  ;;  %v5391_v1 = vadd.f32 %v13916_v19, %v5390_v7  ;;  %v13931_v31 = vadd.f32 %v5313_v21, %v13692_v16 }
 0x641   : > { %v13928_v29 = vadd.f32 %v4865_v12, %v13686_v58  ;;  %v5317_v41 = vpop.f32.mrb[94].mxu1  ;;  %v4867_v35 = vpop.f32.mrb[95].mxu0  ;;  %v13939_v39 = vadd.f32 %v5315_v15, %v13701_v5  ;;  %v10020_v15 = vld [vmem:[#allocation13] ss:$8 sps:$4 sm:$0xff]  }
 0x642   : > { %16737 = vst [vmem:[#allocation102_spill] sm:$0xff] %v13924_v26  ;;  %v5394_v23 = vadd.f32 %v13924_v26, %v13921_v60  ;;  %v13936_v47 = vadd.f32 %v4867_v35, %v13689_v51  ;;  %v5319_v32 = vpop.f32.mrb[95].mxu1  ;;  %5392 = vadd.xlane.f32.xlu1 %v5391_v1  ;;  %v13942_v7 = vadd.f32 %v5317_v41, %v13692_v16  ;;  %v10022_v35 = vld [vmem:[#allocation13 + $0x4] ss:$8 sps:$4 sm:$0xff]   ;;  %v10025_v16 = vld [vmem:[#allocation13 + $0x14] ss:$8 sps:$4 sm:$0xff]  }
 0x643   : > { %v13948_v21 = vadd.f32 %v5319_v32, %v13701_v5  ;;  %6450 = vmatprep.subr.bf16.mxu0 %v10022_v35  ;;  %v10023_v41 = vld [vmem:[#allocation13 + $0x10] ss:$8 sps:$4 sm:$0xff]   ;;  %v10031_v5 = vld [vmem:[#allocation13 + $0x34] ss:$8 sps:$4 sm:$0xff]  }
 0x644   : > { %16738 = vst [vmem:[#allocation101_spill] sm:$0xff] %v13936_v47  ;;  %v5399_v58 = vadd.f32 %v13936_v47, %v13928_v29  ;;  %v5395_v12 = vadd.f32 %v13931_v31, %v5394_v23  ;;  %6451 = vmatpush1.bf16.msra.mxu0 %v10020_v15  ;;  %v10028_v47 = vld [vmem:[#allocation13 + $0x24] ss:$8 sps:$4 sm:$0xff]   ;;  %v10026_v23 = vld [vmem:[#allocation13 + $0x20] ss:$8 sps:$4 sm:$0xff]  }
 0x645   : > { %6452 = vmatprep.subr.bf16.mxu0 %v10025_v16  ;;  %v10029_v32 = vld [vmem:[#allocation13 + $0x30] ss:$8 sps:$4 sm:$0xff]   ;;  %v10038_v15 = vld [vmem:[#allocation13 + $0x60] ss:$8 sps:$4 sm:$0xff]   ;;  %v10043_v35 = vld [vmem:[#allocation13 + $0x74] ss:$8 sps:$4 sm:$0xff]  }
 0x646   : > { %v5396_v26 = vadd.f32 %v13939_v39, %v5395_v12  ;;  %v5400_v51 = vadd.f32 %v13942_v7, %v5399_v58  ;;  %v10034_v58 = vld [vmem:[#allocation13 + $0x44] ss:$8 sps:$4 sm:$0xff]   ;;  %v10037_v12 = vld [vmem:[#allocation13 + $0x54] ss:$8 sps:$4 sm:$0xff]   ;;  %v10041_v16 = vld [vmem:[#allocation13 + $0x70] ss:$8 sps:$4 sm:$0xff]  }
 0x648   : > { %5397 = vadd.xlane.f32.xlu0 %v5396_v26  ;;  %v5401_v1 = vadd.f32 %v13948_v21, %v5400_v51  ;;  %6453 = vmatpush1.bf16.msra.mxu0 %v10023_v41  ;;  %v10032_v26 = vld [vmem:[#allocation13 + $0x40] ss:$8 sps:$4 sm:$0xff]   ;;  %v10035_v51 = vld [vmem:[#allocation13 + $0x50] ss:$8 sps:$4 sm:$0xff]  }
 0x649   : > { %6454 = vmatprep.subr.bf16.mxu0 %v10028_v47  ;;  %v10046_v47 = vld [vmem:[#allocation13 + $0x84] ss:$8 sps:$4 sm:$0xff]   ;;  %v10044_v41 = vld [vmem:[#allocation13 + $0x80] ss:$8 sps:$4 sm:$0xff]  }
 0x64a   : > { %5402 = vadd.xlane.f32.xlu1 %v5401_v1  ;;  %v10040_v1 = vld [vmem:[#allocation13 + $0x64] ss:$8 sps:$4 sm:$0xff]  }
 0x64c   : > { %6455 = vmatpush1.bf16.msra.mxu0 %v10026_v23 }
 0x64d   : > { %6456 = vmatprep.subr.bf16.mxu0 %v10031_v5 }
 0x650   : > { %6457 = vmatpush1.bf16.msra.mxu0 %v10029_v32 }
 0x651   : > { %6458 = vmatprep.subr.bf16.mxu0 %v10034_v58 }
 0x654   : > { %6459 = vmatpush1.bf16.msra.mxu0 %v10032_v26 }
 0x655   : > { %6460 = vmatprep.subr.bf16.mxu0 %v10037_v12 }
 0x658   : > { %6461 = vmatpush1.bf16.msra.mxu0 %v10035_v51 }
 0x659   : > { %6462 = vmatprep.subr.bf16.mxu0 %v10040_v1 }
 0x65c   : > { %6463 = vmatpush1.bf16.msra.mxu0 %v10038_v15 }
 0x65d   : > { %6464 = vmatprep.subr.bf16.mxu0 %v10043_v35 }
 0x660   : > { %6465 = vmatpush1.bf16.msra.mxu0 %v10041_v16 }
 0x661   : > { %6466 = vmatprep.subr.bf16.mxu0 %v10046_v47 }
 0x664   : > { %6467 = vmatpush1.bf16.msra.mxu0 %v10044_v41 }
 0x69d   : > { %v5328_v23 = vpop.xlane.xlu0 %5327 }
 0x69e   : > { %v13953_v5 = vmul.f32 0.002, %v5328_v23 }
 0x69f   : > { %v5333_v32 = vpop.xlane.xlu1 %5332 }
 0x6a0   : > { %v13955_v58 = vmul.f32 0.002, %v5333_v32  ;;  %v13959_v26 = vsub.f32 %v13695_v59, %v13953_v5  ;;  %v13963_v12 = vsub.f32 %v13698_v42, %v13953_v5  ;;  %v13967_v51 = vsub.f32 %v13707_v18, %v13953_v5 }
 0x6a1   : > { %v13971_v1 = vsub.f32 %v13715_v6, %v13953_v5 }
 0x6a2   : > { %16739 = vst [vmem:[#allocation119_spill] sm:$0xff] %v13959_v26  ;;  %16740 = vst [vmem:[#allocation79_spill] sm:$0xff] %v13967_v51  ;;  %v5484_v15 = vmul.f32 %v13959_v26, %v13959_v26  ;;  %v5485_v35 = vmul.f32 %v13963_v12, %v13963_v12  ;;  %v13979_v59 = vsub.f32 %v13704_v40, %v13955_v58 }
 0x6a3   : > { %v13983_v42 = vsub.f32 %v13712_v24, %v13955_v58  ;;  %v13987_v18 = vsub.f32 %v13718_v44, %v13955_v58  ;;  %v5486_v6 = vmul.f32 %v13967_v51, %v13967_v51  ;;  %v13995_v40 = vsub.f32 %v13724_v46, %v13955_v58 }
 0x6a4   : > { %16741 = vst [vmem:[#allocation76_spill] sm:$0xff] %v13979_v59  ;;  %v5548_v16 = vadd.f32 %v5485_v35, %v5484_v15  ;;  %v5488_v47 = vmul.f32 %v13979_v59, %v13979_v59  ;;  %v5487_v44 = vmul.f32 %v13971_v1, %v13971_v1 }
 0x6a5   : > { %16742 = vst [vmem:[#allocation63_spill] sm:$0xff] %v13983_v42  ;;  %v5338_v41 = vpop.xlane.xlu0 %5337  ;;  %v5489_v24 = vmul.f32 %v13983_v42, %v13983_v42  ;;  %v5490_v15 = vmul.f32 %v13987_v18, %v13987_v18  ;;  %v5491_v42 = vmul.f32 %v13995_v40, %v13995_v40 }
 0x6a6   : > { %v13999_v23 = vmul.f32 0.002, %v5338_v41  ;;  %v5549_v32 = vadd.f32 %v5548_v16, %v5486_v6 }
 0x6a7   : > { %v5343_v26 = vpop.xlane.xlu1 %5342  ;;  %v5553_v35 = vadd.f32 %v5489_v24, %v5488_v47 }
 0x6a8   : > { %v14005_v59 = vmul.f32 0.002, %v5343_v26  ;;  %v5550_v51 = vadd.f32 %v5549_v32, %v5487_v44  ;;  %v14009_v46 = vsub.f32 %v13729_v38, %v13999_v23  ;;  %v14013_v41 = vsub.f32 %v13732_v36, %v13999_v23 }
 0x6a9   : > { %v5554_v6 = vadd.f32 %v5553_v35, %v5490_v15  ;;  %v14019_v16 = vsub.f32 %v13739_v2, %v13999_v23  ;;  %v14023_v26 = vsub.f32 %v13747_v37, %v13999_v23 }
 0x6aa   : > { %5551 = vadd.xlane.f32.xlu0 %v5550_v51  ;;  %v5492_v38 = vmul.f32 %v14009_v46, %v14009_v46  ;;  %v5493_v36 = vmul.f32 %v14013_v41, %v14013_v41  ;;  %v14031_v47 = vsub.f32 %v13736_v53, %v14005_v59  ;;  %v14035_v24 = vsub.f32 %v13744_v49, %v14005_v59 }
 0x6ab   : > { %16743 = vst [vmem:[#allocation82_spill] sm:$0xff] %v14019_v16  ;;  %v5555_v2 = vadd.f32 %v5554_v6, %v5491_v42  ;;  %v5494_v37 = vmul.f32 %v14019_v16, %v14019_v16  ;;  %v14041_v51 = vsub.f32 %v13750_v14, %v14005_v59  ;;  %v14045_v32 = vsub.f32 %v13756_v48, %v14005_v59 }
 0x6ac   : > { %16744 = vst [vmem:[#allocation62_spill] sm:$0xff] %v14031_v47  ;;  %16745 = vst [vmem:[#allocation77_spill] sm:$0xff] %v14035_v24  ;;  %v5558_v44 = vadd.f32 %v5493_v36, %v5492_v38  ;;  %v5496_v53 = vmul.f32 %v14031_v47, %v14031_v47  ;;  %v5497_v49 = vmul.f32 %v14035_v24, %v14035_v24 }
 0x6ad   : > { %16746 = vst [vmem:[#allocation69_spill] sm:$0xff] %v14041_v51  ;;  %16747 = vst [vmem:[#allocation88_spill] sm:$0xff] %v14045_v32  ;;  %5556 = vadd.xlane.f32.xlu1 %v5555_v2  ;;  %v5348_v42 = vpop.xlane.xlu0 %5347  ;;  %v5495_v15 = vmul.f32 %v14023_v26, %v14023_v26  ;;  %v5498_v6 = vmul.f32 %v14041_v51, %v14041_v51  ;;  %v5499_v36 = vmul.f32 %v14045_v32, %v14045_v32 }
 0x6ae   : > { %v14053_v35 = vmul.f32 0.002, %v5348_v42  ;;  %v5559_v14 = vadd.f32 %v5558_v44, %v5494_v37  ;;  %v5563_v38 = vadd.f32 %v5497_v49, %v5496_v53 }
 0x6af   : > { %v5353_v48 = vpop.xlane.xlu1 %5352 }
 0x6b0   : > { %v14059_v16 = vmul.f32 0.002, %v5353_v48  ;;  %v5560_v47 = vadd.f32 %v5559_v14, %v5495_v15  ;;  %v5564_v24 = vadd.f32 %v5563_v38, %v5498_v6  ;;  %v14063_v2 = vsub.f32 %v13761_v50, %v14053_v35 }
 0x6b1   : > { %v14067_v42 = vsub.f32 %v13764_v45, %v14053_v35  ;;  %v14071_v37 = vsub.f32 %v13771_v13, %v14053_v35  ;;  %v14085_v45 = vsub.f32 %v13779_v55, %v14053_v35 }
 0x6b2   : > { %5561 = vadd.xlane.f32.xlu0 %v5560_v47  ;;  %v5565_v44 = vadd.f32 %v5564_v24, %v5499_v36  ;;  %v5500_v53 = vmul.f32 %v14063_v2, %v14063_v2  ;;  %v14077_v49 = vsub.f32 %v13768_v9, %v14059_v16  ;;  %v14081_v50 = vsub.f32 %v13776_v17, %v14059_v16 }
 0x6b3   : > { %16748 = vst [vmem:[#allocation87_spill] sm:$0xff] %v14071_v37  ;;  %v5501_v13 = vmul.f32 %v14067_v42, %v14067_v42  ;;  %v14091_v47 = vsub.f32 %v13782_v10, %v14059_v16  ;;  %v14095_v9 = vsub.f32 %v13788_v3, %v14059_v16  ;;  %v5502_v15 = vmul.f32 %v14071_v37, %v14071_v37 }
 0x6b4   : > { %5566 = vadd.xlane.f32.xlu1 %v5565_v44  ;;  %v5504_v17 = vmul.f32 %v14077_v49, %v14077_v49  ;;  %v5505_v24 = vmul.f32 %v14081_v50, %v14081_v50  ;;  %v5503_v3 = vmul.f32 %v14085_v45, %v14085_v45 }
 0x6b5   : > { %16749 = vst [vmem:[#allocation147_spill] sm:$0xff] %v14091_v47  ;;  %16750 = vst [vmem:[#allocation85_spill] sm:$0xff] %v14095_v9  ;;  %v5358_v55 = vpop.xlane.xlu0 %5357  ;;  %v5568_v14 = vadd.f32 %v5501_v13, %v5500_v53  ;;  %v5506_v10 = vmul.f32 %v14091_v47, %v14091_v47  ;;  %v5507_v44 = vmul.f32 %v14095_v9, %v14095_v9 }
 0x6b6   : > { %v14103_v6 = vmul.f32 0.002, %v5358_v55  ;;  %v5573_v38 = vadd.f32 %v5505_v24, %v5504_v17 }
 0x6b7   : > { %v5363_v48 = vpop.xlane.xlu1 %5362  ;;  %v5569_v36 = vadd.f32 %v5568_v14, %v5502_v15 }
 0x6b8   : > { %v14111_v51 = vmul.f32 0.002, %v5363_v48  ;;  %v5574_v32 = vadd.f32 %v5573_v38, %v5506_v10  ;;  %v14115_v53 = vsub.f32 %v13793_v30, %v14103_v6  ;;  %v14119_v13 = vsub.f32 %v13796_v62, %v14103_v6 }
 0x6b9   : > { %v5570_v17 = vadd.f32 %v5569_v36, %v5503_v3  ;;  %v14123_v24 = vsub.f32 %v13803_v25, %v14103_v6  ;;  %v14127_v55 = vsub.f32 %v13811_v56, %v14103_v6 }
 0x6ba   : > { %v5575_v15 = vadd.f32 %v5574_v32, %v5507_v44  ;;  %v5508_v14 = vmul.f32 %v14115_v53, %v14115_v53  ;;  %v5509_v30 = vmul.f32 %v14119_v13, %v14119_v13  ;;  %v14135_v62 = vsub.f32 %v13800_v43, %v14111_v51 }
 0x6bb   : > { %16751 = vst [vmem:[#allocation98_spill] sm:$0xff] %v14123_v24  ;;  %16752 = vst [vmem:[#allocation84_spill] sm:$0xff] %v14127_v55  ;;  %5571 = vadd.xlane.f32.xlu0 %v5570_v17  ;;  %v14139_v25 = vsub.f32 %v13808_v57, %v14111_v51  ;;  %v14143_v56 = vsub.f32 %v13814_v61, %v14111_v51  ;;  %v5510_v32 = vmul.f32 %v14123_v24, %v14123_v24 }
 0x6bc   : > { %5576 = vadd.xlane.f32.xlu1 %v5575_v15  ;;  %v5578_v10 = vadd.f32 %v5509_v30, %v5508_v14  ;;  %v5512_v38 = vmul.f32 %v14135_v62, %v14135_v62  ;;  %v14151_v43 = vsub.f32 %v13820_v52, %v14111_v51  ;;  %v5511_v61 = vmul.f32 %v14127_v55, %v14127_v55 }
 0x6bd   : > { %16753 = vst [vmem:[#allocation96_spill] sm:$0xff] %v14143_v56  ;;  %v5368_v48 = vpop.xlane.xlu0 %5367  ;;  %v5513_v57 = vmul.f32 %v14139_v25, %v14139_v25  ;;  %v5514_v17 = vmul.f32 %v14143_v56, %v14143_v56 }
 0x6be   : > { %16754 = vst [vmem:[#allocation95_spill] sm:$0xff] %v14151_v43  ;;  %v14155_v3 = vmul.f32 0.002, %v5368_v48  ;;  %v5579_v36 = vadd.f32 %v5578_v10, %v5510_v32  ;;  %v5515_v24 = vmul.f32 %v14151_v43, %v14151_v43 }
 0x6bf   : > { %v5373_v44 = vpop.xlane.xlu1 %5372  ;;  %v5583_v15 = vadd.f32 %v5513_v57, %v5512_v38  ;;  %v10047_v57 = vld [vmem:[#allocation13 + $0x90] ss:$8 sps:$4 sm:$0xff]  }
 0x6c0   : > { %v14161_v14 = vmul.f32 0.002, %v5373_v44  ;;  %v5580_v30 = vadd.f32 %v5579_v36, %v5511_v61  ;;  %v14165_v52 = vsub.f32 %v13825_v28, %v14155_v3  ;;  %v14169_v48 = vsub.f32 %v13828_v54, %v14155_v3  ;;  %v10049_v61 = vld [vmem:[#allocation13 + $0x94] ss:$8 sps:$4 sm:$0xff]   ;;  %v10052_v44 = vld [vmem:[#allocation13 + $0xa4] ss:$8 sps:$4 sm:$0xff]  }
 0x6c1   : > { %v5584_v32 = vadd.f32 %v5583_v15, %v5514_v17  ;;  %v14175_v10 = vsub.f32 %v13835_v27, %v14155_v3  ;;  %v14179_v38 = vsub.f32 %v13843_v20, %v14155_v3  ;;  %6468 = vmatprep.subr.bf16.mxu0 %v10049_v61 }
 0x6c2   : > { %5581 = vadd.xlane.f32.xlu0 %v5580_v30  ;;  %v5516_v28 = vmul.f32 %v14165_v52, %v14165_v52  ;;  %v5517_v54 = vmul.f32 %v14169_v48, %v14169_v48  ;;  %v14187_v36 = vsub.f32 %v13832_v8, %v14161_v14  ;;  %v14191_v27 = vsub.f32 %v13840_v34, %v14161_v14 }
 0x6c3   : > { %16755 = vst [vmem:[#allocation111_spill] sm:$0xff] %v14175_v10  ;;  %16756 = vst [vmem:[#allocation90_spill] sm:$0xff] %v14179_v38  ;;  %v5585_v20 = vadd.f32 %v5584_v32, %v5515_v24  ;;  %v5518_v17 = vmul.f32 %v14175_v10, %v14175_v10  ;;  %v14197_v15 = vsub.f32 %v13846_v33, %v14161_v14  ;;  %6469 = vmatpush1.bf16.msra.mxu0 %v10047_v57  ;;  %v10050_v24 = vld [vmem:[#allocation13 + $0xa0] ss:$8 sps:$4 sm:$0xff]  }
 0x6c4   : > { %v5588_v30 = vadd.f32 %v5517_v54, %v5516_v28  ;;  %v14201_v56 = vsub.f32 %v13852_v63, %v14161_v14  ;;  %v5520_v8 = vmul.f32 %v14187_v36, %v14187_v36  ;;  %v5521_v34 = vmul.f32 %v14191_v27, %v14191_v27  ;;  %6470 = vmatprep.subr.bf16.mxu0 %v10052_v44  ;;  %v10053_v44 = vld [vmem:[#allocation13 + $0xb0] ss:$8 sps:$4 sm:$0xff]  }
 0x6c5   : > { %16757 = vst [vmem:[#allocation103_spill] sm:$0xff] %v14197_v15  ;;  %5586 = vadd.xlane.f32.xlu1 %v5585_v20  ;;  %v5378_v32 = vpop.xlane.xlu0 %5377  ;;  %v5519_v33 = vmul.f32 %v14179_v38, %v14179_v38  ;;  %v5522_v63 = vmul.f32 %v14197_v15, %v14197_v15  ;;  %v10056_v15 = vld [vmem:[#allocation13 + $0xc0] ss:$8 sps:$4 sm:$0xff]  }
 0x6c6   : > { %16758 = vst [vmem:[#allocation104_spill] sm:$0xff] %v14201_v56  ;;  %v14209_v61 = vmul.f32 0.002, %v5378_v32  ;;  %v5589_v28 = vadd.f32 %v5588_v30, %v5518_v17  ;;  %v5593_v54 = vadd.f32 %v5521_v34, %v5520_v8  ;;  %v5523_v43 = vmul.f32 %v14201_v56, %v14201_v56  ;;  %v10055_v32 = vld [vmem:[#allocation13 + $0xb4] ss:$8 sps:$4 sm:$0xff]  }
 0x6c7   : > { %v5383_v10 = vpop.xlane.xlu1 %5382  ;;  %6471 = vmatpush1.bf16.msra.mxu0 %v10050_v24  ;;  %v16760_v30 = vld [vmem:[#allocation136_spill] sm:$0xff]  ;;  %v10058_v34 = vld [vmem:[#allocation13 + $0xc4] ss:$8 sps:$4 sm:$0xff]   ;;  %v16764_v24 = vld [vmem:[#allocation137_spill] sm:$0xff] }
 0x6c8   : > { %v14215_v55 = vmul.f32 0.002, %v5383_v10  ;;  %v5590_v57 = vadd.f32 %v5589_v28, %v5519_v33  ;;  %v5594_v20 = vadd.f32 %v5593_v54, %v5522_v63  ;;  %v14219_v47 = vsub.f32 %v13857_v22, %v14209_v61  ;;  %v16762_v22 = vld [vmem:[#allocation134_spill] sm:$0xff]  ;;  %6472 = vmatprep.subr.bf16.mxu0 %v10055_v32 }
 0x6c9   : > { %v14223_v17 = vsub.f32 %v13860_v0, %v14209_v61  ;;  %v14227_v8 = vsub.f32 %v16760_v30, %v14209_v61  ;;  %v16766_v0 = vld [vmem:[#allocation56_spill] sm:$0xff] }
 0x6ca   : > { %16759 = vst [vmem:[#allocation112_spill] sm:$0xff] %v14219_v47  ;;  %5591 = vadd.xlane.f32.xlu0 %v5590_v57  ;;  %v5595_v10 = vadd.f32 %v5594_v20, %v5523_v43  ;;  %v5524_v33 = vmul.f32 %v14219_v47, %v14219_v47  ;;  %v14233_v28 = vsub.f32 %v16762_v22, %v14215_v55  ;;  %v16768_v43 = vld [vmem:[#allocation55_spill] sm:$0xff]  ;;  %v16770_v20 = vld [vmem:[#allocation58_spill] sm:$0xff] }
 0x6cb   : > { %16761 = vst [vmem:[#allocation157_spill] sm:$0xff] %v14227_v8  ;;  %v14237_v63 = vsub.f32 %v16764_v24, %v14215_v55  ;;  %v14241_v54 = vsub.f32 %v16766_v0, %v14209_v61  ;;  %v5525_v30 = vmul.f32 %v14223_v17, %v14223_v17  ;;  %v14247_v57 = vsub.f32 %v16768_v43, %v14215_v55 }
 0x6cc   : > { %16763 = vst [vmem:[#allocation110_spill] sm:$0xff] %v14233_v28  ;;  %5596 = vadd.xlane.f32.xlu1 %v5595_v10  ;;  %v14251_v22 = vsub.f32 %v16770_v20, %v14215_v55  ;;  %v5528_v24 = vmul.f32 %v14233_v28, %v14233_v28  ;;  %6473 = vmatpush1.bf16.msra.mxu0 %v10053_v44 }
 0x6cd   : > { %16765 = vst [vmem:[#allocation125_spill] sm:$0xff] %v14237_v63  ;;  %16767 = vst [vmem:[#allocation106_spill] sm:$0xff] %v14241_v54  ;;  %v5529_v0 = vmul.f32 %v14237_v63, %v14237_v63  ;;  %v5388_v56 = vpop.xlane.xlu0 %5387  ;;  %v5526_v38 = vmul.f32 %v14227_v8, %v14227_v8  ;;  %v5598_v43 = vadd.f32 %v5525_v30, %v5524_v33  ;;  %6474 = vmatprep.subr.bf16.mxu0 %v10058_v34  ;;  %v16772_v33 = vld [vmem:[#allocation57_spill] sm:$0xff] }
 0x6ce   : > { %16769 = vst [vmem:[#allocation120_spill] sm:$0xff] %v14247_v57  ;;  %16771 = vst [vmem:[#allocation65_spill] sm:$0xff] %v14251_v22  ;;  %v14259_v32 = vmul.f32 0.002, %v5388_v56  ;;  %v5530_v10 = vmul.f32 %v14247_v57, %v14247_v57  ;;  %v5527_v9 = vmul.f32 %v14241_v54, %v14241_v54  ;;  %v5531_v44 = vmul.f32 %v14251_v22, %v14251_v22  ;;  %v16773_v56 = vld [vmem:[#allocation92_spill] sm:$0xff] }
 0x6cf   : > { %v5603_v20 = vadd.f32 %v5529_v0, %v5528_v24  ;;  %v5393_v37 = vpop.xlane.xlu1 %5392  ;;  %v5599_v28 = vadd.f32 %v5598_v43, %v5526_v38  ;;  %v10059_v24 = vld [vmem:[#allocation13 + $0xd0] ss:$8 sps:$4 sm:$0xff]   ;;  %v10061_v0 = vld [vmem:[#allocation13 + $0xd4] ss:$8 sps:$4 sm:$0xff]   ;;  %v10064_v43 = vld [vmem:[#allocation13 + $0xe4] ss:$8 sps:$4 sm:$0xff]  }
 0x6d0   : > { %v14267_v63 = vmul.f32 0.002, %v5393_v37  ;;  %v14271_v34 = vsub.f32 %v16772_v33, %v14259_v32  ;;  %v14275_v30 = vsub.f32 %v16773_v56, %v14259_v32  ;;  %6475 = vmatpush1.bf16.msra.mxu0 %v10056_v15  ;;  %v14279_v38 = vsub.f32 %v13899_v11, %v14259_v32  ;;  %v16776_v15 = vld [vmem:[#allocation91_spill] sm:$0xff]  ;;  %v16777_v11 = vld [vmem:[#allocation100_spill] sm:$0xff] }
 0x6d1   : > { %v5604_v47 = vadd.f32 %v5603_v20, %v5530_v10  ;;  %v5600_v57 = vadd.f32 %v5599_v28, %v5527_v9  ;;  %v14283_v37 = vsub.f32 %v13907_v4, %v14259_v32  ;;  %6476 = vmatprep.subr.bf16.mxu0 %v10061_v0  ;;  %v16778_v4 = vld [vmem:[#allocation99_spill] sm:$0xff] }
 0x6d2   : > { %16774 = vst [vmem:[#allocation70_spill] sm:$0xff] %v14279_v38  ;;  %v5532_v20 = vmul.f32 %v14271_v34, %v14271_v34  ;;  %v5533_v33 = vmul.f32 %v14275_v30, %v14275_v30  ;;  %v14291_v56 = vsub.f32 %v16776_v15, %v14267_v63  ;;  %v14295_v9 = vsub.f32 %v16777_v11, %v14267_v63  ;;  %v10062_v15 = vld [vmem:[#allocation13 + $0xe0] ss:$8 sps:$4 sm:$0xff]  }
 0x6d3   : > { %16775 = vst [vmem:[#allocation142_spill] sm:$0xff] %v14283_v37  ;;  %v5605_v10 = vadd.f32 %v5604_v47, %v5531_v44  ;;  %5601 = vadd.xlane.f32.xlu0 %v5600_v57  ;;  %v14299_v28 = vsub.f32 %v16778_v4, %v14267_v63  ;;  %v5534_v47 = vmul.f32 %v14279_v38, %v14279_v38 }
 0x6d4   : > { %v5608_v44 = vadd.f32 %v5533_v33, %v5532_v20  ;;  %v5536_v8 = vmul.f32 %v14291_v56, %v14291_v56  ;;  %6477 = vmatpush1.bf16.msra.mxu0 %v10059_v24  ;;  %v14307_v57 = vsub.f32 %v13916_v19, %v14267_v63  ;;  %v5537_v11 = vmul.f32 %v14295_v9, %v14295_v9 }
 0x6d5   : > { %16779 = vst [vmem:[#allocation128_spill] sm:$0xff] %v14299_v28  ;;  %5606 = vadd.xlane.f32.xlu1 %v5605_v10  ;;  %v5398_v0 = vpop.xlane.xlu0 %5397  ;;  %6478 = vmatprep.subr.bf16.mxu0 %v10064_v43  ;;  %v5535_v10 = vmul.f32 %v14283_v37, %v14283_v37  ;;  %v5538_v24 = vmul.f32 %v14299_v28, %v14299_v28  ;;  %v16782_v43 = vld [vmem:[#allocation102_spill] sm:$0xff] }
 0x6d6   : > { %16780 = vst [vmem:[#allocation138_spill] sm:$0xff] %v14307_v57  ;;  %v14311_v4 = vmul.f32 0.002, %v5398_v0  ;;  %v5609_v20 = vadd.f32 %v5608_v44, %v5534_v47  ;;  %v5613_v38 = vadd.f32 %v5537_v11, %v5536_v8  ;;  %v5539_v47 = vmul.f32 %v14307_v57, %v14307_v57  ;;  %v10065_v11 = vld [vmem:[#allocation13 + $0xf0] ss:$8 sps:$4 sm:$0xff]  }
 0x6d7   : > { %v5403_v33 = vpop.xlane.xlu1 %5402 }
 0x6d8   : > { %v14317_v22 = vmul.f32 0.002, %v5403_v33  ;;  %v5610_v54 = vadd.f32 %v5609_v20, %v5535_v10  ;;  %v14321_v19 = vsub.f32 %v13921_v60, %v14311_v4  ;;  %v14325_v0 = vsub.f32 %v16782_v43, %v14311_v4  ;;  %6479 = vmatpush1.bf16.msra.mxu0 %v10062_v15  ;;  %v10067_v60 = vld [vmem:[#allocation13 + $0xf4] ss:$8 sps:$4 sm:$0xff]   ;;  %v10070_v33 = vld [vmem:[#allocation13 + $0x104] ss:$8 sps:$4 sm:$0xff]  }
 0x6d9   : > { %v5614_v44 = vadd.f32 %v5613_v38, %v5538_v24  ;;  %v14331_v28 = vsub.f32 %v13931_v31, %v14311_v4  ;;  %v14335_v8 = vsub.f32 %v13939_v39, %v14311_v4  ;;  %v16787_v31 = vld [vmem:[#allocation101_spill] sm:$0xff]  ;;  %6480 = vmatprep.subr.bf16.mxu0 %v10067_v60 }
 0x6da   : > { %16781 = vst [vmem:[#allocation61_spill] sm:$0xff] %v14321_v19  ;;  %16783 = vst [vmem:[#allocation141_spill] sm:$0xff] %v14325_v0  ;;  %5611 = vadd.xlane.f32.xlu0 %v5610_v54  ;;  %v5540_v10 = vmul.f32 %v14321_v19, %v14321_v19  ;;  %v5541_v15 = vmul.f32 %v14325_v0, %v14325_v0  ;;  %v14343_v38 = vsub.f32 %v13928_v29, %v14317_v22  ;;  %v10068_v0 = vld [vmem:[#allocation13 + $0x100] ss:$8 sps:$4 sm:$0xff]  }
 0x6db   : > { %16784 = vst [vmem:[#allocation145_spill] sm:$0xff] %v14331_v28  ;;  %16785 = vst [vmem:[#allocation60_spill] sm:$0xff] %v14335_v8  ;;  %v14347_v20 = vsub.f32 %v16787_v31, %v14317_v22  ;;  %v5615_v39 = vadd.f32 %v5614_v44, %v5539_v47  ;;  %v5542_v24 = vmul.f32 %v14331_v28, %v14331_v28 }
 0x6dc   : > { %16786 = vst [vmem:[#allocation81_spill] sm:$0xff] %v14343_v38  ;;  %v14353_v54 = vsub.f32 %v13942_v7, %v14317_v22  ;;  %v5618_v43 = vadd.f32 %v5541_v15, %v5540_v10  ;;  %v14357_v57 = vsub.f32 %v13948_v21, %v14317_v22  ;;  %v5544_v29 = vmul.f32 %v14343_v38, %v14343_v38 }
 0x6dd   : > { %16788 = vst [vmem:[#allocation68_spill] sm:$0xff] %v14347_v20  ;;  %v5545_v31 = vmul.f32 %v14347_v20, %v14347_v20  ;;  %6481 = vmatpush1.bf16.msra.mxu0 %v10065_v11  ;;  %5616 = vadd.xlane.f32.xlu1 %v5615_v39  ;;  %v5543_v47 = vmul.f32 %v14335_v8, %v14335_v8  ;;  %v16797_v20 = vld [vmem:[#allocation63_spill] sm:$0xff] }
 0x6de   : > { %16789 = vst [vmem:[#allocation144_spill] sm:$0xff] %v14353_v54  ;;  %16790 = vst [vmem:[#allocation150_spill] sm:$0xff] %v14357_v57  ;;  %v5619_v44 = vadd.f32 %v5618_v43, %v5542_v24  ;;  %v5546_v7 = vmul.f32 %v14353_v54, %v14353_v54  ;;  %6563 = vmatprep.subr.bf16.mxu0 %v10070_v33  ;;  %v5547_v21 = vmul.f32 %v14357_v57, %v14357_v57  ;;  %v16795_v57 = vld [vmem:[#allocation79_spill] sm:$0xff] }
 0x6df   : > { %v5623_v60 = vadd.f32 %v5545_v31, %v5544_v29  ;;  %v5628_v11 = vmul.f32 %v13953_v5, %v13953_v5  ;;  %v5629_v39 = vmul.f32 %v13955_v58, %v13955_v58  ;;  %v5630_v31 = vmul.f32 %v13999_v23, %v13999_v23 }
 0x6e0   : > { %v5620_v10 = vadd.f32 %v5619_v44, %v5543_v47  ;;  %v5632_v58 = vmul.f32 %v14053_v35, %v14053_v35  ;;  %v5635_v23 = vmul.f32 %v14111_v51, %v14111_v51 }
 0x6e1   : > { %v5624_v15 = vadd.f32 %v5623_v60, %v5546_v7  ;;  %v5644_v24 = vmul.f32 12.0, %v5628_v11  ;;  %v5645_v54 = vmul.f32 12.0, %v5629_v39  ;;  %v5646_v5 = vmul.f32 12.0, %v5630_v31  ;;  %v5322_v31 = vld [vmem:[#allocation10] sm:$0xf] }
 0x6e2   : > { %5621 = vadd.xlane.f32.xlu0 %v5620_v10  ;;  %v5633_v60 = vmul.f32 %v14059_v16, %v14059_v16  ;;  %v5637_v11 = vmul.f32 %v14161_v14, %v14161_v14  ;;  %v5638_v16 = vmul.f32 %v14209_v61, %v14209_v61  ;;  %v5639_v39 = vmul.f32 %v14215_v55, %v14215_v55  ;;  %v5323_v55 = vld [vmem:[#allocation11] sm:$0xf] }
 0x6e3   : > { %v5625_v28 = vadd.f32 %v5624_v15, %v5547_v21  ;;  %v5634_v21 = vmul.f32 %v14103_v6, %v14103_v6  ;;  %v5640_v6 = vmul.f32 %v14259_v32, %v14259_v32  ;;  %v14399_v14 = vmul.f32 12.0, %v5635_v23  ;;  %v16792_v23 = vld [vmem:[#allocation45_spill] sm:$0xff] }
 0x6e4   : > { %v5642_v32 = vmul.f32 %v14311_v4, %v14311_v4 }
 0x6e5   : > { %5626 = vadd.xlane.f32.xlu1 %v5625_v28  ;;  %v5631_v28 = vmul.f32 %v14005_v59, %v14005_v59  ;;  %v5636_v59 = vmul.f32 %v14155_v3, %v14155_v3  ;;  %v5641_v3 = vmul.f32 %v14267_v63, %v14267_v63  ;;  %v14409_v63 = vmul.f32 12.0, %v5638_v16 }
 0x6e6   : > { %v14432_v16 = vmul.f32 12.0, %v5642_v32 }
 0x6e7   : > { %v5647_v15 = vmul.f32 12.0, %v5631_v28  ;;  %v5643_v28 = vmul.f32 %v14317_v22, %v14317_v22  ;;  %v14424_v22 = vrot.slane %v5322_v31, %v16792_v23 }
 0x737   : > { %v5552_v43 = vpop.xlane.xlu0 %5551 }
 0x738   : > { %v5660_v8 = vsub.f32 %v5552_v43, %v5644_v24  ;;  %v5648_v43 = vmul.f32 12.0, %v5632_v58  ;;  %v14413_v58 = vmul.f32 12.0, %v5640_v6 }
 0x73a   : > { %v5676_v29 = vmul.f32 0.002, %v5660_v8  ;;  %v5557_v33 = vpop.xlane.xlu1 %5556 }
 0x73b   : > { %v5661_v47 = vsub.f32 %v5557_v33, %v5645_v54  ;;  %v14397_v33 = vmul.f32 12.0, %v5634_v21  ;;  %v14418_v21 = vmul.f32 12.0, %v5641_v3 }
 0x73c   : > { %v5692_v44 = vadd.f32 1e-05, %v5676_v29  ;;  %v5649_v29 = vmul.f32 12.0, %v5633_v60 }
 0x73d   : > { %v5677_v7 = vmul.f32 0.002, %v5661_v47  ;;  %v14401_v47 = vmul.f32 12.0, %v5636_v59  ;;  %v14427_v59 = vrot.slane %v5323_v55, %v16792_v23 }
 0x73e   : > { %10180 = vrsqrt.f32 %v5692_v44 }
 0x73f   : > { %v5693_v10 = vadd.f32 1e-05, %v5677_v7  ;;  %v5562_v8 = vpop.xlane.xlu0 %5561  ;;  %v14407_v7 = vmul.f32 12.0, %v5637_v11 }
 0x740   : > { %v5662_v54 = vsub.f32 %v5562_v8, %v5646_v5  ;;  %v14411_v5 = vmul.f32 12.0, %v5639_v39  ;;  %v14434_v39 = vmul.f32 12.0, %v5643_v28 }
 0x741   : > { %10182 = vrsqrt.f32 %v5693_v10  ;;  %v5567_v35 = vpop.xlane.xlu1 %5566  ;;  %v16791_v10 = vld [vmem:[#allocation46_spill] sm:$0xff] }
 0x742   : > { %v5678_v51 = vmul.f32 0.002, %v5662_v54  ;;  %v5663_v24 = vsub.f32 %v5567_v35, %v5647_v15  ;;  %v14416_v8 = vrot.slane %v5322_v31, %v16791_v10  ;;  %v14421_v4 = vrot.slane %v5323_v55, %v16791_v10  ;;  %v16793_v54 = vld [vmem:[#allocation53_spill] sm:$0xff] }
 0x743   : > { %v14430_v15 = vrot.slane %v5322_v31, %v16793_v54  ;;  %v14437_v6 = vrot.slane %v5323_v55, %v16793_v54 }
 0x744   : > { %v5694_v61 = vadd.f32 1e-05, %v5678_v51  ;;  %v5679_v44 = vmul.f32 0.002, %v5663_v24 }
 0x746   : > { %10184 = vrsqrt.f32 %v5694_v61  ;;  %v5695_v60 = vadd.f32 1e-05, %v5679_v44  ;;  %v16794_v61 = vld [vmem:[#allocation119_spill] sm:$0xff] }
 0x748   : > { %v10181_v11 = vpop.eup %10180  ;;  %10186 = vrsqrt.f32 %v5695_v60  ;;  %v5572_v35 = vpop.xlane.xlu0 %5571  ;;  %v16796_v60 = vld [vmem:[#allocation47_spill] sm:$0xff] }
 0x749   : > { %v5664_v51 = vsub.f32 %v5572_v35, %v5648_v43  ;;  %v5577_v24 = vpop.xlane.xlu1 %5576  ;;  %v5725_v3 = vmul.f32 %v10181_v11, %v13963_v12  ;;  %v5724_v44 = vmul.f32 %v10181_v11, %v16794_v61  ;;  %v5727_v10 = vmul.f32 %v10181_v11, %v13971_v1 }
 0x74a   : > { %v5665_v23 = vsub.f32 %v5577_v24, %v5649_v29  ;;  %v5726_v37 = vmul.f32 %v10181_v11, %v16795_v57  ;;  %v14444_v38 = vrot.slane %v5322_v31, %v16796_v60  ;;  %v14447_v32 = vrot.slane %v5323_v55, %v16796_v60  ;;  %v16798_v29 = vld [vmem:[#allocation76_spill] sm:$0xff] }
 0x74b   : > { %v10183_v28 = vpop.eup %10182  ;;  %v5680_v54 = vmul.f32 0.002, %v5664_v51  ;;  %v5810_v43 = vmul.f32 %v14416_v8, %v5725_v3  ;;  %v5809_v35 = vmul.f32 %v14424_v22, %v5724_v44  ;;  %v5812_v12 = vmul.f32 %v14430_v15, %v5727_v10 }
 0x74c   : > { %v5681_v61 = vmul.f32 0.002, %v5665_v23  ;;  %v5729_v1 = vmul.f32 %v10183_v28, %v16797_v20  ;;  %v5728_v24 = vmul.f32 %v10183_v28, %v16798_v29  ;;  %v5731_v57 = vmul.f32 %v10183_v28, %v13995_v40 }
 0x74d   : > { %v5696_v31 = vadd.f32 1e-05, %v5680_v54  ;;  %v5895_v11 = vadd.f32 %v14421_v4, %v5810_v43  ;;  %v5894_v55 = vadd.f32 %v14427_v59, %v5809_v35  ;;  %v5897_v51 = vadd.f32 %v14437_v6, %v5812_v12 }
 0x74e   : > { %v5697_v60 = vadd.f32 1e-05, %v5681_v61  ;;  %v5814_v3 = vmul.f32 %v14416_v8, %v5729_v1  ;;  %v5813_v44 = vmul.f32 %v14424_v22, %v5728_v24  ;;  %v5816_v10 = vmul.f32 %v14430_v15, %v5731_v57 }
 0x74f   : > { %10188 = vrsqrt.f32 %v5696_v31  ;;  %v5582_v20 = vpop.xlane.xlu0 %5581  ;;  %v5959_v23 = vmax.f32 %v5895_v11, 0.0  ;;  %v5958_v29 = vmax.f32 %v5894_v55, 0.0  ;;  %v5961_v19 = vmax.f32 %v5897_v51, 0.0 }
 0x750   : > { %v14461_v40 = vpop.eup %10184  ;;  %10190 = vrsqrt.f32 %v5697_v60  ;;  %v5666_v54 = vsub.f32 %v5582_v20, %v14397_v33  ;;  %v5899_v43 = vadd.f32 %v14421_v4, %v5814_v3  ;;  %v5898_v35 = vadd.f32 %v14427_v59, %v5813_v44  ;;  %v16799_v3 = vld [vmem:[#allocation77_spill] sm:$0xff] }
 0x751   : > { %v5733_v12 = vmul.f32 %v14461_v40, %v14013_v41  ;;  %v5732_v61 = vmul.f32 %v14461_v40, %v14009_v46  ;;  %v5901_v1 = vadd.f32 %v14437_v6, %v5816_v10  ;;  %v5730_v24 = vmul.f32 %v10183_v28, %v13987_v18  ;;  %v16800_v46 = vld [vmem:[#allocation62_spill] sm:$0xff] }
 0x752   : > { %v14472_v57 = vpop.eup %10186  ;;  %v5682_v31 = vmul.f32 0.002, %v5666_v54  ;;  %v5587_v11 = vpop.xlane.xlu1 %5586  ;;  %v5963_v55 = vmax.f32 %v5899_v43, 0.0  ;;  %v5962_v33 = vmax.f32 %v5898_v35, 0.0  ;;  %v5811_v51 = vmul.f32 %v14444_v38, %v5726_v37  ;;  %v10073_v35 = vld [vmem:[#allocation13 + $0x114] ss:$8 sps:$4 sm:$0xff]  }
 0x753   : > { %v5667_v60 = vsub.f32 %v5587_v11, %v14399_v14  ;;  %v5737_v41 = vmul.f32 %v14472_v57, %v16799_v3  ;;  %v5818_v44 = vmul.f32 %v14416_v8, %v5733_v12  ;;  %v5736_v10 = vmul.f32 %v14472_v57, %v16800_v46 }
 0x754   : > { %v5698_v20 = vadd.f32 1e-05, %v5682_v31  ;;  %v6023_v18 = vpack.c.bf16 %v5963_v55, %v5959_v23  ;;  %v6022_v28 = vpack.c.bf16 %v5962_v33, %v5958_v29  ;;  %v5817_v54 = vmul.f32 %v14424_v22, %v5732_v61 }
 0x755   : > { %v5683_v43 = vmul.f32 0.002, %v5667_v60  ;;  %v5822_v37 = vmul.f32 %v14416_v8, %v5737_v41  ;;  %v5903_v14 = vadd.f32 %v14421_v4, %v5818_v44  ;;  %v5821_v11 = vmul.f32 %v14424_v22, %v5736_v10  ;;  %v10071_v41 = vld [vmem:[#allocation13 + $0x110] ss:$8 sps:$4 sm:$0xff]  }
 0x756   : > { %10192 = vrsqrt.f32 %v5698_v20  ;;  %6482 = vmatprep.mubr.bf16.mxu0 %v6023_v18  ;;  %v5902_v12 = vadd.f32 %v14427_v59, %v5817_v54  ;;  %v5965_v3 = vmax.f32 %v5901_v1, 0.0  ;;  %v5815_v31 = vmul.f32 %v14444_v38, %v5730_v24 }
 0x757   : > { %v5699_v23 = vadd.f32 1e-05, %v5683_v43  ;;  %6483 = vmatmul.mubr.bf16.vlgmr.msra.gmra.mrb[96].mxu0 %v6022_v28  ;;  %v5592_v29 = vpop.xlane.xlu0 %5591  ;;  %v5907_v61 = vadd.f32 %v14421_v4, %v5822_v37  ;;  %v5967_v55 = vmax.f32 %v5903_v14, 0.0  ;;  %v5906_v33 = vadd.f32 %v14427_v59, %v5821_v11  ;;  %v10076_v28 = vld [vmem:[#allocation13 + $0x124] ss:$8 sps:$4 sm:$0xff]  }
 0x758   : > { %6564 = vmatpush1.bf16.msra.mxu0 %v10068_v0  ;;  %v5668_v60 = vsub.f32 %v5592_v29, %v14401_v47  ;;  %v5966_v44 = vmax.f32 %v5902_v12, 0.0  ;;  %v14490_v46 = vpack.c.bf16 %v5965_v3, %v5961_v19  ;;  %v5896_v10 = vadd.f32 %v14447_v32, %v5811_v51 }
 0x759   : > { %v14493_v1 = vpop.eup %10188  ;;  %10194 = vrsqrt.f32 %v5699_v23  ;;  %v5597_v24 = vpop.xlane.xlu1 %5596  ;;  %6565 = vmatprep.subr.bf16.mxu0 %v10073_v35  ;;  %v5971_v20 = vmax.f32 %v5907_v61, 0.0  ;;  %v5970_v18 = vmax.f32 %v5906_v33, 0.0  ;;  %v5900_v54 = vadd.f32 %v14447_v32, %v5815_v31  ;;  %v10074_v31 = vld [vmem:[#allocation13 + $0x120] ss:$8 sps:$4 sm:$0xff]  }
 0x75a   : > { %v14496_v43 = vpop.eup %10190  ;;  %v5684_v0 = vmul.f32 0.002, %v5668_v60  ;;  %v5669_v47 = vsub.f32 %v5597_v24, %v14407_v7  ;;  %v5741_v19 = vmul.f32 %v14493_v1, %v14067_v42  ;;  %v5740_v51 = vmul.f32 %v14493_v1, %v14063_v2  ;;  %v10079_v42 = vld [vmem:[#allocation13 + $0x134] ss:$8 sps:$4 sm:$0xff]  }
 0x75b   : > { %v6027_v37 = vpack.c.bf16 %v5971_v20, %v5967_v55  ;;  %v6026_v14 = vpack.c.bf16 %v5970_v18, %v5966_v44  ;;  %v5745_v35 = vmul.f32 %v14496_v43, %v14081_v50  ;;  %v5744_v11 = vmul.f32 %v14496_v43, %v14077_v49  ;;  %v10077_v18 = vld [vmem:[#allocation13 + $0x130] ss:$8 sps:$4 sm:$0xff]  }
 0x75c   : > { %v5700_v12 = vadd.f32 1e-05, %v5684_v0  ;;  %v5685_v3 = vmul.f32 0.002, %v5669_v47  ;;  %6566 = vmatpush1.bf16.msra.mxu0 %v10071_v41  ;;  %v5826_v7 = vmul.f32 %v14416_v8, %v5741_v19  ;;  %v5825_v23 = vmul.f32 %v14424_v22, %v5740_v51  ;;  %v16801_v0 = vld [vmem:[#allocation88_spill] sm:$0xff] }
 0x75d   : > { %6492 = vmatprep.mubr.bf16.mxu0 %v6027_v37  ;;  %6567 = vmatprep.subr.bf16.mxu0 %v10076_v28  ;;  %v5830_v2 = vmul.f32 %v14416_v8, %v5745_v35  ;;  %v5829_v29 = vmul.f32 %v14424_v22, %v5744_v11  ;;  %v5960_v61 = vmax.f32 %v5896_v10, 0.0  ;;  %v5964_v50 = vmax.f32 %v5900_v54, 0.0  ;;  %v10082_v35 = vld [vmem:[#allocation13 + $0x144] ss:$8 sps:$4 sm:$0xff]  }
 0x75e   : > { %10196 = vrsqrt.f32 %v5700_v12  ;;  %v5701_v55 = vadd.f32 1e-05, %v5685_v3  ;;  %v5911_v49 = vadd.f32 %v14421_v4, %v5826_v7  ;;  %v5910_v33 = vadd.f32 %v14427_v59, %v5825_v23 }
 0x75f   : > { %6493 = vmatmul.mubr.bf16.gmra.mrb[100].mxu0 %v6026_v14  ;;  %v5915_v60 = vadd.f32 %v14421_v4, %v5830_v2  ;;  %v5914_v41 = vadd.f32 %v14427_v59, %v5829_v29  ;;  %v14515_v44 = vpack.c.bf16 %v5964_v50, %v5960_v61  ;;  %v5735_v24 = vmul.f32 %v14461_v40, %v14023_v26  ;;  %v10080_v61 = vld [vmem:[#allocation13 + $0x140] ss:$8 sps:$4 sm:$0xff]  }
 0x760   : > { %v14519_v20 = vpop.eup %10192  ;;  %10198 = vrsqrt.f32 %v5701_v55  ;;  %6568 = vmatpush1.bf16.msra.mxu0 %v10074_v31  ;;  %v5602_v10 = vpop.xlane.xlu0 %5601  ;;  %v5975_v28 = vmax.f32 %v5911_v49, 0.0  ;;  %v5974_v54 = vmax.f32 %v5910_v33, 0.0  ;;  %v5739_v47 = vmul.f32 %v14472_v57, %v16801_v0  ;;  %v10085_v55 = vld [vmem:[#allocation13 + $0x154] ss:$8 sps:$4 sm:$0xff]  }
 0x761   : > { %v5670_v19 = vsub.f32 %v5602_v10, %v14409_v63  ;;  %6569 = vmatprep.subr.bf16.mxu0 %v10079_v42  ;;  %v5979_v37 = vmax.f32 %v5915_v60, 0.0  ;;  %v5978_v14 = vmax.f32 %v5914_v41, 0.0  ;;  %v5749_v26 = vmul.f32 %v14519_v20, %v14119_v13 }
 0x762   : > { %v5607_v51 = vpop.xlane.xlu1 %5606  ;;  %v5748_v12 = vmul.f32 %v14519_v20, %v14115_v53  ;;  %v5820_v3 = vmul.f32 %v14430_v15, %v5735_v24  ;;  %v5824_v31 = vmul.f32 %v14430_v15, %v5739_v47 }
 0x763   : > { %v5671_v11 = vsub.f32 %v5607_v51, %v14411_v5  ;;  %v14531_v7 = vpop.eup %10194  ;;  %v5686_v63 = vmul.f32 0.002, %v5670_v19  ;;  %v6031_v23 = vpack.c.bf16 %v5979_v37, %v5975_v28  ;;  %v6030_v42 = vpack.c.bf16 %v5978_v14, %v5974_v54  ;;  %v10083_v19 = vld [vmem:[#allocation13 + $0x150] ss:$8 sps:$4 sm:$0xff]  }
 0x764   : > { %v5834_v2 = vmul.f32 %v14416_v8, %v5749_v26  ;;  %6570 = vmatpush1.bf16.msra.mxu0 %v10077_v18  ;;  %v5753_v13 = vmul.f32 %v14531_v7, %v14139_v25  ;;  %v5752_v53 = vmul.f32 %v14531_v7, %v14135_v62  ;;  %v5833_v5 = vmul.f32 %v14424_v22, %v5748_v12 }
 0x765   : > { %v5687_v29 = vmul.f32 0.002, %v5671_v11  ;;  %v5702_v50 = vadd.f32 1e-05, %v5686_v63  ;;  %6502 = vmatprep.mubr.bf16.mxu0 %v6031_v23  ;;  %6571 = vmatprep.subr.bf16.mxu0 %v10082_v35  ;;  %v5905_v33 = vadd.f32 %v14437_v6, %v5820_v3  ;;  %v5909_v60 = vadd.f32 %v14437_v6, %v5824_v31  ;;  %v10088_v35 = vld [vmem:[#allocation13 + $0x164] ss:$8 sps:$4 sm:$0xff]  }
 0x766   : > { %v5919_v49 = vadd.f32 %v14421_v4, %v5834_v2  ;;  %v5838_v24 = vmul.f32 %v14416_v8, %v5753_v13  ;;  %v5837_v25 = vmul.f32 %v14424_v22, %v5752_v53  ;;  %v5918_v10 = vadd.f32 %v14427_v59, %v5833_v5 }
 0x767   : > { %v5703_v41 = vadd.f32 1e-05, %v5687_v29  ;;  %10200 = vrsqrt.f32 %v5702_v50  ;;  %6503 = vmatmul.mubr.bf16.gmra.mrb[104].mxu0 %v6030_v42  ;;  %v5612_v62 = vpop.xlane.xlu0 %5611  ;;  %v5969_v28 = vmax.f32 %v5905_v33, 0.0  ;;  %v5973_v54 = vmax.f32 %v5909_v60, 0.0  ;;  %v16802_v42 = vld [vmem:[#allocation82_spill] sm:$0xff]  ;;  %v16803_v60 = vld [vmem:[#allocation69_spill] sm:$0xff] }
 0x768   : > { %v5983_v18 = vmax.f32 %v5919_v49, 0.0  ;;  %v14545_v0 = vpop.eup %10196  ;;  %6572 = vmatpush1.bf16.msra.mxu0 %v10080_v61  ;;  %v5672_v47 = vsub.f32 %v5612_v62, %v14413_v58  ;;  %v5923_v51 = vadd.f32 %v14421_v4, %v5838_v24  ;;  %v5922_v37 = vadd.f32 %v14427_v59, %v5837_v25  ;;  %v10086_v50 = vld [vmem:[#allocation13 + $0x160] ss:$8 sps:$4 sm:$0xff]  }
 0x769   : > { %10202 = vrsqrt.f32 %v5703_v41  ;;  %6573 = vmatprep.subr.bf16.mxu0 %v10085_v55  ;;  %v5982_v14 = vmax.f32 %v5918_v10, 0.0  ;;  %v5757_v26 = vmul.f32 %v14545_v0, %v14169_v48  ;;  %v5756_v11 = vmul.f32 %v14545_v0, %v14165_v52 }
 0x76a   : > { %v14554_v12 = vpack.c.bf16 %v5973_v54, %v5969_v28  ;;  %v14556_v3 = vpop.eup %10198  ;;  %v5688_v31 = vmul.f32 0.002, %v5672_v47  ;;  %v5617_v58 = vpop.xlane.xlu1 %5616  ;;  %v5987_v63 = vmax.f32 %v5923_v51, 0.0  ;;  %v5986_v23 = vmax.f32 %v5922_v37, 0.0  ;;  %v10089_v47 = vld [vmem:[#allocation13 + $0x170] ss:$8 sps:$4 sm:$0xff]  }
 0x76b   : > { %v5734_v2 = vmul.f32 %v14461_v40, %v16802_v42  ;;  %v5673_v29 = vsub.f32 %v5617_v58, %v14418_v21  ;;  %v5761_v61 = vmul.f32 %v14556_v3, %v14191_v27  ;;  %v5842_v48 = vmul.f32 %v14416_v8, %v5757_v26  ;;  %v10091_v40 = vld [vmem:[#allocation13 + $0x174] ss:$8 sps:$4 sm:$0xff]  }
 0x76c   : > { %v5760_v52 = vmul.f32 %v14556_v3, %v14187_v36  ;;  %v5704_v13 = vadd.f32 1e-05, %v5688_v31  ;;  %6574 = vmatpush1.bf16.msra.mxu0 %v10083_v19  ;;  %v6035_v53 = vpack.c.bf16 %v5987_v63, %v5983_v18  ;;  %v6034_v5 = vpack.c.bf16 %v5986_v23, %v5982_v14  ;;  %v16804_v42 = vld [vmem:[#allocation112_spill] sm:$0xff] }
 0x76d   : > { %v5841_v55 = vmul.f32 %v14424_v22, %v5756_v11  ;;  %v5689_v49 = vmul.f32 0.002, %v5673_v29  ;;  %6575 = vmatprep.subr.bf16.mxu0 %v10088_v35  ;;  %v5846_v21 = vmul.f32 %v14416_v8, %v5761_v61  ;;  %v5927_v33 = vadd.f32 %v14421_v4, %v5842_v48  ;;  %v10094_v11 = vld [vmem:[#allocation13 + $0x184] ss:$8 sps:$4 sm:$0xff]   ;;  %v16805_v48 = vld [vmem:[#allocation125_spill] sm:$0xff] }
 0x76e   : > { %v5845_v27 = vmul.f32 %v14424_v22, %v5760_v52  ;;  %10204 = vrsqrt.f32 %v5704_v13  ;;  %6512 = vmatprep.mubr.bf16.mxu0 %v6035_v53  ;;  %v5738_v41 = vmul.f32 %v14472_v57, %v16803_v60  ;;  %v5819_v24 = vmul.f32 %v14444_v38, %v5734_v2  ;;  %v16806_v13 = vld [vmem:[#allocation110_spill] sm:$0xff] }
 0x76f   : > { %v5926_v36 = vadd.f32 %v14427_v59, %v5841_v55  ;;  %v5705_v25 = vadd.f32 1e-05, %v5689_v49  ;;  %6513 = vmatmul.mubr.bf16.gmra.mrb[108].mxu0 %v6034_v5  ;;  %v5622_v10 = vpop.xlane.xlu0 %5621  ;;  %v5931_v62 = vadd.f32 %v14421_v4, %v5846_v21  ;;  %v5991_v18 = vmax.f32 %v5927_v33, 0.0 }
 0x770   : > { %v5930_v28 = vadd.f32 %v14427_v59, %v5845_v27  ;;  %6576 = vmatpush1.bf16.msra.mxu0 %v10086_v50  ;;  %v5674_v54 = vsub.f32 %v5622_v10, %v14432_v16  ;;  %v5823_v51 = vmul.f32 %v14444_v38, %v5738_v41  ;;  %v5904_v37 = vadd.f32 %v14447_v32, %v5819_v24  ;;  %v10092_v50 = vld [vmem:[#allocation13 + $0x180] ss:$8 sps:$4 sm:$0xff]   ;;  %v16807_v10 = vld [vmem:[#allocation85_spill] sm:$0xff] }
 0x771   : > { %v5990_v19 = vmax.f32 %v5926_v36, 0.0  ;;  %v14579_v57 = vpop.eup %10200  ;;  %10206 = vrsqrt.f32 %v5705_v25  ;;  %6577 = vmatprep.subr.bf16.mxu0 %v10091_v40  ;;  %v5995_v35 = vmax.f32 %v5931_v62, 0.0  ;;  %v5743_v31 = vmul.f32 %v14493_v1, %v14085_v45 }
 0x772   : > { %v5627_v14 = vpop.xlane.xlu1 %5626  ;;  %v5994_v26 = vmax.f32 %v5930_v28, 0.0  ;;  %v5690_v16 = vmul.f32 0.002, %v5674_v54  ;;  %v5765_v23 = vmul.f32 %v14579_v57, %v14223_v17  ;;  %v5764_v2 = vmul.f32 %v14579_v57, %v16804_v42  ;;  %v10097_v17 = vld [vmem:[#allocation13 + $0x194] ss:$8 sps:$4 sm:$0xff]  }
 0x773   : > { %v14583_v58 = vpop.eup %10202  ;;  %v5675_v63 = vsub.f32 %v5627_v14, %v14434_v39  ;;  %v6039_v29 = vpack.c.bf16 %v5995_v35, %v5991_v18  ;;  %v5908_v21 = vadd.f32 %v14447_v32, %v5823_v51  ;;  %v5968_v33 = vmax.f32 %v5904_v37, 0.0  ;;  %v10095_v28 = vld [vmem:[#allocation13 + $0x190] ss:$8 sps:$4 sm:$0xff]   ;;  %v10100_v14 = vld [vmem:[#allocation13 + $0x1a4] ss:$8 sps:$4 sm:$0xff]  }
 0x774   : > { %v6038_v61 = vpack.c.bf16 %v5994_v26, %v5990_v19  ;;  %v5769_v52 = vmul.f32 %v14583_v58, %v16805_v48  ;;  %v5768_v53 = vmul.f32 %v14583_v58, %v16806_v13  ;;  %v5706_v45 = vadd.f32 1e-05, %v5690_v16  ;;  %6578 = vmatpush1.bf16.msra.mxu0 %v10089_v47  ;;  %v10098_v48 = vld [vmem:[#allocation13 + $0x1a0] ss:$8 sps:$4 sm:$0xff]  }
 0x775   : > { %v5691_v5 = vmul.f32 0.002, %v5675_v63  ;;  %v5850_v39 = vmul.f32 %v14416_v8, %v5765_v23  ;;  %v5849_v55 = vmul.f32 %v14424_v22, %v5764_v2  ;;  %6522 = vmatprep.mubr.bf16.mxu0 %v6039_v29  ;;  %6579 = vmatprep.subr.bf16.mxu0 %v10094_v11  ;;  %v5972_v25 = vmax.f32 %v5908_v21, 0.0  ;;  %v16808_v23 = vld [vmem:[#allocation87_spill] sm:$0xff] }
 0x776   : > { %v5854_v49 = vmul.f32 %v14416_v8, %v5769_v52  ;;  %v5853_v40 = vmul.f32 %v14424_v22, %v5768_v53  ;;  %10208 = vrsqrt.f32 %v5706_v45  ;;  %v5747_v62 = vmul.f32 %v14496_v43, %v16807_v10  ;;  %v10106_v10 = vld [vmem:[#allocation13 + $0x1c4] ss:$8 sps:$4 sm:$0xff]  }
 0x777   : > { %v5707_v27 = vadd.f32 1e-05, %v5691_v5  ;;  %v5935_v36 = vadd.f32 %v14421_v4, %v5850_v39  ;;  %v5934_v60 = vadd.f32 %v14427_v59, %v5849_v55  ;;  %6523 = vmatmul.mubr.bf16.gmra.mrb[112].mxu0 %v6038_v61  ;;  %v5828_v19 = vmul.f32 %v14430_v15, %v5743_v31 }
 0x778   : > { %v5939_v41 = vadd.f32 %v14421_v4, %v5854_v49  ;;  %v5938_v24 = vadd.f32 %v14427_v59, %v5853_v40  ;;  %v14605_v18 = vpop.eup %10204  ;;  %6580 = vmatpush1.bf16.msra.mxu0 %v10092_v50  ;;  %v14612_v11 = vpack.c.bf16 %v5972_v25, %v5968_v33  ;;  %v5832_v16 = vmul.f32 %v14430_v15, %v5747_v62  ;;  %v16809_v50 = vld [vmem:[#allocation147_spill] sm:$0xff]  ;;  %v16810_v33 = vld [vmem:[#allocation84_spill] sm:$0xff]  ;;  %v16811_v62 = vld [vmem:[#allocation141_spill] sm:$0xff] }
 0x779   : > { %10210 = vrsqrt.f32 %v5707_v27  ;;  %v5999_v54 = vmax.f32 %v5935_v36, 0.0  ;;  %v5998_v47 = vmax.f32 %v5934_v60, 0.0  ;;  %6581 = vmatprep.subr.bf16.mxu0 %v10097_v17  ;;  %v5773_v35 = vmul.f32 %v14605_v18, %v14275_v30  ;;  %v10101_v60 = vld [vmem:[#allocation13 + $0x1b0] ss:$8 sps:$4 sm:$0xff]  }
 0x77a   : > { %v6003_v51 = vmax.f32 %v5939_v41, 0.0  ;;  %v6002_v37 = vmax.f32 %v5938_v24, 0.0  ;;  %v5772_v26 = vmul.f32 %v14605_v18, %v14271_v34  ;;  %v5913_v63 = vadd.f32 %v14437_v6, %v5828_v19 }
 0x77b   : > { %v5742_v42 = vmul.f32 %v14493_v1, %v16808_v23  ;;  %v14618_v31 = vpop.eup %10206  ;;  %v5858_v61 = vmul.f32 %v14416_v8, %v5773_v35  ;;  %v5917_v13 = vadd.f32 %v14437_v6, %v5832_v16  ;;  %v10103_v1 = vld [vmem:[#allocation13 + $0x1b4] ss:$8 sps:$4 sm:$0xff]   ;;  %v5746_v39 = vmul.f32 %v14496_v43, %v16809_v50 }
 0x77c   : > { %v6043_v2 = vpack.c.bf16 %v6003_v51, %v5999_v54  ;;  %v6042_v29 = vpack.c.bf16 %v6002_v37, %v5998_v47  ;;  %v5857_v30 = vmul.f32 %v14424_v22, %v5772_v26  ;;  %6582 = vmatpush1.bf16.msra.mxu0 %v10095_v28  ;;  %v5777_v34 = vmul.f32 %v14618_v31, %v14295_v9  ;;  %v16812_v54 = vld [vmem:[#allocation61_spill] sm:$0xff]  ;;  %v16813_v51 = vld [vmem:[#allocation95_spill] sm:$0xff]  ;;  %v16814_v23 = vld [vmem:[#allocation68_spill] sm:$0xff] }
 0x77d   : > { %v5776_v52 = vmul.f32 %v14618_v31, %v14291_v56  ;;  %6583 = vmatprep.subr.bf16.mxu0 %v10100_v14  ;;  %v5943_v53 = vadd.f32 %v14421_v4, %v5858_v61  ;;  %v5977_v5 = vmax.f32 %v5913_v63, 0.0  ;;  %v5981_v17 = vmax.f32 %v5917_v13, 0.0 }
 0x77e   : > { %6532 = vmatprep.mubr.bf16.mxu0 %v6043_v2  ;;  %v5942_v45 = vadd.f32 %v14427_v59, %v5857_v30  ;;  %v5862_v55 = vmul.f32 %v14416_v8, %v5777_v34  ;;  %v5827_v56 = vmul.f32 %v14444_v38, %v5742_v42  ;;  %v5831_v21 = vmul.f32 %v14444_v38, %v5746_v39 }
 0x77f   : > { %v5861_v9 = vmul.f32 %v14424_v22, %v5776_v52  ;;  %6533 = vmatmul.mubr.bf16.gmra.mrb[116].mxu0 %v6042_v29  ;;  %v6007_v49 = vmax.f32 %v5943_v53, 0.0  ;;  %v5751_v27 = vmul.f32 %v14519_v20, %v16810_v33  ;;  %v14641_v24 = vpack.c.bf16 %v5981_v17, %v5977_v5  ;;  %v16815_v29 = vld [vmem:[#allocation81_spill] sm:$0xff]  ;;  %v10104_v52 = vld [vmem:[#allocation13 + $0x1c0] ss:$8 sps:$4 sm:$0xff]  }
 0x780   : > { %v6006_v40 = vmax.f32 %v5942_v45, 0.0  ;;  %v14637_v36 = vpop.eup %10208  ;;  %6584 = vmatpush1.bf16.msra.mxu0 %v10098_v48  ;;  %v5947_v43 = vadd.f32 %v14421_v4, %v5862_v55  ;;  %v5912_v25 = vadd.f32 %v14447_v32, %v5827_v56  ;;  %v5916_v19 = vadd.f32 %v14447_v32, %v5831_v21  ;;  %v10109_v53 = vld [vmem:[#allocation13 + $0x1d4] ss:$8 sps:$4 sm:$0xff]   ;;  %v16816_v56 = vld [vmem:[#allocation98_spill] sm:$0xff] }
 0x781   : > { %v5946_v41 = vadd.f32 %v14427_v59, %v5861_v9  ;;  %6585 = vmatprep.subr.bf16.mxu0 %v10103_v1  ;;  %v5781_v28 = vmul.f32 %v14637_v36, %v16811_v62  ;;  %v5780_v47 = vmul.f32 %v14637_v36, %v16812_v54  ;;  %v5755_v37 = vmul.f32 %v14531_v7, %v16813_v51  ;;  %v16819_v54 = vld [vmem:[#allocation104_spill] sm:$0xff] }
 0x782   : > { %v6011_v35 = vmax.f32 %v5947_v43, 0.0  ;;  %v5976_v16 = vmax.f32 %v5912_v25, 0.0  ;;  %v5836_v63 = vmul.f32 %v14430_v15, %v5751_v27  ;;  %v5980_v13 = vmax.f32 %v5916_v19, 0.0  ;;  %v16817_v43 = vld [vmem:[#allocation96_spill] sm:$0xff] }
 0x783   : > { %v14651_v14 = vpop.eup %10210  ;;  %v6010_v26 = vmax.f32 %v5946_v41, 0.0  ;;  %v5866_v2 = vmul.f32 %v14416_v8, %v5781_v28  ;;  %v5865_v30 = vmul.f32 %v14424_v22, %v5780_v47  ;;  %v5840_v1 = vmul.f32 %v14430_v15, %v5755_v37  ;;  %v16818_v28 = vld [vmem:[#allocation90_spill] sm:$0xff]  ;;  %v16820_v37 = vld [vmem:[#allocation111_spill] sm:$0xff] }
 0x784   : > { %v5785_v42 = vmul.f32 %v14651_v14, %v16814_v23  ;;  %v5784_v61 = vmul.f32 %v14651_v14, %v16815_v29  ;;  %6586 = vmatpush1.bf16.msra.mxu0 %v10101_v60  ;;  %v6047_v48 = vpack.c.bf16 %v6011_v35, %v6007_v49  ;;  %v14665_v55 = vpack.c.bf16 %v5980_v13, %v5976_v16  ;;  %v10110_v23 = vld [vmem:[#allocation13 + $0x1e0] ss:$8 sps:$4 sm:$0xff]  }
 0x785   : > { %v6046_v34 = vpack.c.bf16 %v6010_v26, %v6006_v40  ;;  %6587 = vmatprep.subr.bf16.mxu0 %v10106_v10  ;;  %v5951_v5 = vadd.f32 %v14421_v4, %v5866_v2  ;;  %v5950_v39 = vadd.f32 %v14427_v59, %v5865_v30  ;;  %v5921_v9 = vadd.f32 %v14437_v6, %v5836_v63  ;;  %v16821_v2 = vld [vmem:[#allocation103_spill] sm:$0xff]  ;;  %v10115_v30 = vld [vmem:[#allocation13 + $0x1f4] ss:$8 sps:$4 sm:$0xff]  }
 0x786   : > { %v5870_v45 = vmul.f32 %v14416_v8, %v5785_v42  ;;  %v5869_v50 = vmul.f32 %v14424_v22, %v5784_v61  ;;  %6542 = vmatprep.mubr.bf16.mxu0 %v6047_v48  ;;  %v5925_v17 = vadd.f32 %v14437_v6, %v5840_v1  ;;  %v5750_v49 = vmul.f32 %v14519_v20, %v16816_v56  ;;  %v10107_v22 = vld [vmem:[#allocation13 + $0x1d0] ss:$8 sps:$4 sm:$0xff]   ;;  %v10112_v20 = vld [vmem:[#allocation13 + $0x1e4] ss:$8 sps:$4 sm:$0xff]  }
 0x787   : > { %6543 = vmatmul.mubr.bf16.gmra.mrb[120].mxu0 %v6046_v34  ;;  %v6015_v8 = vmax.f32 %v5951_v5, 0.0  ;;  %v6014_v33 = vmax.f32 %v5950_v39, 0.0  ;;  %v5985_v27 = vmax.f32 %v5921_v9, 0.0  ;;  %v5754_v41 = vmul.f32 %v14531_v7, %v16817_v43  ;;  %v16823_v5 = vld [vmem:[#allocation65_spill] sm:$0xff] }
 0x788   : > { %v5955_v40 = vadd.f32 %v14421_v4, %v5870_v45  ;;  %v5954_v21 = vadd.f32 %v14427_v59, %v5869_v50  ;;  %6588 = vmatpush1.bf16.msra.mxu0 %v10104_v52  ;;  %v5989_v60 = vmax.f32 %v5925_v17, 0.0  ;;  %v5835_v25 = vmul.f32 %v14444_v38, %v5750_v49  ;;  %v16822_v52 = vld [vmem:[#allocation106_spill] sm:$0xff]  ;;  %v16824_v17 = vld [vmem:[#allocation157_spill] sm:$0xff] }
 0x789   : > { %6589 = vmatprep.subr.bf16.mxu0 %v10109_v53  ;;  %v5759_v4 = vmul.f32 %v14545_v0, %v16818_v28  ;;  %v5763_v59 = vmul.f32 %v14556_v3, %v16819_v54  ;;  %v5839_v19 = vmul.f32 %v14444_v38, %v5754_v41  ;;  %v5758_v7 = vmul.f32 %v14545_v0, %v16820_v37  ;;  %v10113_v49 = vld [vmem:[#allocation13 + $0x1f0] ss:$8 sps:$4 sm:$0xff]  }
 0x78a   : > { %v6019_v10 = vmax.f32 %v5955_v40, 0.0  ;;  %v6018_v62 = vmax.f32 %v5954_v21, 0.0  ;;  %v14680_v47 = vpack.c.bf16 %v5989_v60, %v5985_v27  ;;  %v5920_v51 = vadd.f32 %v14447_v32, %v5835_v25  ;;  %v16825_v60 = vld [vmem:[#allocation120_spill] sm:$0xff]  ;;  %v16826_v25 = vld [vmem:[#allocation142_spill] sm:$0xff] }
 0x78b   : > { %v5844_v16 = vmul.f32 %v14430_v15, %v5759_v4  ;;  %v5848_v63 = vmul.f32 %v14430_v15, %v5763_v59  ;;  %v5924_v42 = vadd.f32 %v14447_v32, %v5839_v19  ;;  %v5762_v29 = vmul.f32 %v14556_v3, %v16821_v2  ;;  %v16828_v59 = vld [vmem:[#allocation70_spill] sm:$0xff] }
 0x78c   : > { %v6051_v35 = vpack.c.bf16 %v6019_v10, %v6015_v8  ;;  %v6050_v26 = vpack.c.bf16 %v6018_v62, %v6014_v33  ;;  %6590 = vmatpush1.bf16.msra.mxu0 %v10107_v22  ;;  %v5843_v61 = vmul.f32 %v14444_v38, %v5758_v7  ;;  %v5984_v48 = vmax.f32 %v5920_v51, 0.0  ;;  %v16827_v62 = vld [vmem:[#allocation138_spill] sm:$0xff] }
 0x78d   : > { %6591 = vmatprep.subr.bf16.mxu0 %v10112_v20  ;;  %v5929_v0 = vadd.f32 %v14437_v6, %v5844_v16  ;;  %v5933_v34 = vadd.f32 %v14437_v6, %v5848_v63  ;;  %v5767_v13 = vmul.f32 %v14579_v57, %v16822_v52  ;;  %v5988_v1 = vmax.f32 %v5924_v42, 0.0  ;;  %v16829_v16 = vld [vmem:[#allocation128_spill] sm:$0xff] }
 0x78e   : > { %6552 = vmatprep.mubr.bf16.mxu0 %v6051_v35  ;;  %v5847_v53 = vmul.f32 %v14444_v38, %v5762_v29  ;;  %v5928_v45 = vadd.f32 %v14447_v32, %v5843_v61  ;;  %v5771_v3 = vmul.f32 %v14583_v58, %v16823_v5  ;;  %v5766_v56 = vmul.f32 %v14579_v57, %v16824_v17  ;;  %v16830_v29 = vld [vmem:[#allocation60_spill] sm:$0xff] }
 0x78f   : > { %6553 = vmatmul.mubr.bf16.gmra.mrb[124].mxu0 %v6050_v26  ;;  %v5993_v50 = vmax.f32 %v5929_v0, 0.0  ;;  %v5997_v39 = vmax.f32 %v5933_v34, 0.0  ;;  %v5852_v9 = vmul.f32 %v14430_v15, %v5767_v13  ;;  %v14704_v40 = vpack.c.bf16 %v5988_v1, %v5984_v48  ;;  %v16831_v34 = vld [vmem:[#allocation150_spill] sm:$0xff] }
 0x790   : > { %6592 = vmatpush1.bf16.msra.mxu0 %v10110_v23  ;;  %6595 = vmatprep.mubr.bf16.mxu0 %v14490_v46  ;;  %v5932_v8 = vadd.f32 %v14447_v32, %v5847_v53  ;;  %v5992_v21 = vmax.f32 %v5928_v45, 0.0  ;;  %v5856_v33 = vmul.f32 %v14430_v15, %v5771_v3  ;;  %v5770_v43 = vmul.f32 %v14583_v58, %v16825_v60  ;;  %v16832_v53 = vld [vmem:[#allocation145_spill] sm:$0xff] }
 0x791   : > { %6593 = vmatprep.subr.bf16.mxu0 %v10115_v30  ;;  %v6041_v22 = vpack.c.bf16 %v5997_v39, %v5993_v50  ;;  %v5937_v27 = vadd.f32 %v14437_v6, %v5852_v9  ;;  %v5851_v57 = vmul.f32 %v14444_v38, %v5766_v56  ;;  %v5775_v10 = vmul.f32 %v14605_v18, %v16826_v25  ;;  %v16833_v9 = vld [vmem:[#allocation144_spill] sm:$0xff] }
 0x792   : > { %v5996_v41 = vmax.f32 %v5932_v8, 0.0  ;;  %v5941_v46 = vadd.f32 %v14437_v6, %v5856_v33  ;;  %v5779_v20 = vmul.f32 %v14618_v31, %v16827_v62  ;;  %v5855_v4 = vmul.f32 %v14444_v38, %v5770_v43 }
 0x793   : > { %v6001_v28 = vmax.f32 %v5937_v27, 0.0  ;;  %v5936_v54 = vadd.f32 %v14447_v32, %v5851_v57  ;;  %v5774_v19 = vmul.f32 %v14605_v18, %v16828_v59  ;;  %v5860_v37 = vmul.f32 %v14430_v15, %v5775_v10 }
 0x794   : > { %6594 = vmatpush1.bf16.msra.mxu0 %v10113_v49  ;;  %v6040_v58 = vpack.c.bf16 %v5996_v41, %v5992_v21  ;;  %v6005_v51 = vmax.f32 %v5941_v46, 0.0  ;;  %v5864_v7 = vmul.f32 %v14430_v15, %v5779_v20  ;;  %v5940_v35 = vadd.f32 %v14447_v32, %v5855_v4 }
 0x795   : > { %v6000_v26 = vmax.f32 %v5936_v54, 0.0  ;;  %v5778_v63 = vmul.f32 %v14618_v31, %v16829_v16  ;;  %v5859_v23 = vmul.f32 %v14444_v38, %v5774_v19  ;;  %v5945_v2 = vadd.f32 %v14437_v6, %v5860_v37 }
 0x796   : > { %v6045_v42 = vpack.c.bf16 %v6005_v51, %v6001_v28  ;;  %v5949_v18 = vadd.f32 %v14437_v6, %v5864_v7  ;;  %v5783_v61 = vmul.f32 %v14637_v36, %v16830_v29  ;;  %v6004_v30 = vmax.f32 %v5940_v35, 0.0 }
 0x797   : > { %6596 = vmatmul.mubr.bf16.vlgmr.msra.gmra.mrb[96].mxu0 %v14515_v44  ;;  %v5863_v48 = vmul.f32 %v14444_v38, %v5778_v63  ;;  %v5944_v0 = vadd.f32 %v14447_v32, %v5859_v23  ;;  %v5787_v31 = vmul.f32 %v14651_v14, %v16831_v34  ;;  %v6009_v52 = vmax.f32 %v5945_v2, 0.0 }
 0x798   : > { %6605 = vmatprep.mubr.bf16.mxu0 %v14554_v12  ;;  %v6013_v13 = vmax.f32 %v5949_v18, 0.0  ;;  %v5868_v1 = vmul.f32 %v14430_v15, %v5783_v61  ;;  %v5782_v45 = vmul.f32 %v14637_v36, %v16832_v53  ;;  %v6044_v5 = vpack.c.bf16 %v6004_v30, %v6000_v26 }
 0x799   : > { %v5948_v44 = vadd.f32 %v14447_v32, %v5863_v48  ;;  %v5872_v3 = vmul.f32 %v14430_v15, %v5787_v31  ;;  %v5786_v17 = vmul.f32 %v14651_v14, %v16833_v9  ;;  %v6008_v56 = vmax.f32 %v5944_v0, 0.0 }
 0x79a   : > { %v6049_v50 = vpack.c.bf16 %v6013_v13, %v6009_v52  ;;  %v5953_v39 = vadd.f32 %v14437_v6, %v5868_v1  ;;  %v5867_v12 = vmul.f32 %v14444_v38, %v5782_v45 }
 0x79b   : > { %v6012_v49 = vmax.f32 %v5948_v44, 0.0  ;;  %v5957_v8 = vadd.f32 %v14437_v6, %v5872_v3  ;;  %v5871_v21 = vmul.f32 %v14444_v38, %v5786_v17  ;;  %v6118_v38 = vld [vmem:[#allocation14] sm:$0x3]  ;;  %v16834_v6 = vld [vmem:[#allocation45_spill] sm:$0xff] }
 0x79c   : > { %v5952_v36 = vadd.f32 %v14447_v32, %v5867_v12  ;;  %v6017_v27 = vmax.f32 %v5953_v39, 0.0 }
 0x79d   : > { %v6048_v33 = vpack.c.bf16 %v6012_v49, %v6008_v56  ;;  %v6021_v60 = vmax.f32 %v5957_v8, 0.0  ;;  %v5956_v15 = vadd.f32 %v14447_v32, %v5871_v21  ;;  %v14756_v32 = vrot.slane %v6118_v38, %v16834_v6 }
 0x79e   : > { %v6016_v14 = vmax.f32 %v5952_v36, 0.0 }
 0x79f   : > { %6606 = vmatmul.mubr.bf16.gmra.mrb[100].mxu0 %v14612_v11  ;;  %v6053_v43 = vpack.c.bf16 %v6021_v60, %v6017_v27  ;;  %v6020_v57 = vmax.f32 %v5956_v15, 0.0  ;;  %v16835_v11 = vld [vmem:[#allocation46_spill] sm:$0xff] }
 0x7a0   : > { %6615 = vmatprep.mubr.bf16.mxu0 %v14641_v24  ;;  %v14759_v24 = vrot.slane %v6118_v38, %v16835_v11 }
 0x7a1   : > { %v6052_v41 = vpack.c.bf16 %v6020_v57, %v6016_v14 }
 0x7a7   : > { %6616 = vmatmul.mubr.bf16.gmra.mrb[104].mxu0 %v14665_v55 }
 0x7a8   : > { %6625 = vmatprep.mubr.bf16.mxu0 %v14680_v47 }
 0x7af   : > { %6626 = vmatmul.mubr.bf16.gmra.mrb[108].mxu0 %v14704_v40 }
 0x7b0   : > { %6635 = vmatprep.mubr.bf16.mxu0 %v6041_v22 }
 0x7b7   : > { %6636 = vmatmul.mubr.bf16.gmra.mrb[112].mxu0 %v6040_v58 }
 0x7b8   : > { %6645 = vmatprep.mubr.bf16.mxu0 %v6045_v42 }
 0x7bf   : > { %6646 = vmatmul.mubr.bf16.gmra.mrb[116].mxu0 %v6044_v5 }
 0x7c0   : > { %6655 = vmatprep.mubr.bf16.mxu0 %v6049_v50 }
 0x7c7   : > { %6656 = vmatmul.mubr.bf16.gmra.mrb[120].mxu0 %v6048_v33 }
 0x7c8   : > { %6665 = vmatprep.mubr.bf16.mxu0 %v6053_v43 }
 0x7cf   : > { %6666 = vmatmul.mubr.bf16.gmra.mrb[124].mxu0 %v6052_v41 }
 0x86a   : > { %v6597_v55 = vpop.f32.mrb[96].mxu0 }
 0x86b   : > { %v14762_v47 = vadd.f32 %v6597_v55, %v14756_v32  ;;  %v6599_v40 = vpop.f32.mrb[97].mxu0 }
 0x86c   : > { %v14765_v22 = vadd.f32 %v6599_v40, %v14759_v24  ;;  %v6601_v46 = vpop.f32.mrb[98].mxu0 }
 0x86d   : > { %v14768_v25 = vadd.f32 %v6601_v46, %v14756_v32  ;;  %v6603_v10 = vpop.f32.mrb[99].mxu0 }
 0x86e   : > { %v14771_v62 = vadd.f32 %v6603_v10, %v14759_v24  ;;  %v6678_v20 = vadd.f32 %v14765_v22, %v14762_v47 }
 0x870   : > { %6679 = vadd.xlane.f32.xlu0 %v6678_v20  ;;  %v6681_v28 = vadd.f32 %v14771_v62, %v14768_v25 }
 0x872   : > { %v6607_v4 = vpop.f32.mrb[100].mxu0  ;;  %6682 = vadd.xlane.f32.xlu1 %v6681_v28 }
 0x873   : > { %v14778_v54 = vadd.f32 %v6607_v4, %v14756_v32  ;;  %v6609_v59 = vpop.f32.mrb[101].mxu0 }
 0x874   : > { %v14781_v19 = vadd.f32 %v6609_v59, %v14759_v24  ;;  %v6611_v58 = vpop.f32.mrb[102].mxu0 }
 0x875   : > { %v14784_v51 = vadd.f32 %v6611_v58, %v14756_v32  ;;  %v6613_v37 = vpop.f32.mrb[103].mxu0 }
 0x876   : > { %v14787_v7 = vadd.f32 %v6613_v37, %v14759_v24  ;;  %v6684_v35 = vadd.f32 %v14781_v19, %v14778_v54 }
 0x878   : > { %6685 = vadd.xlane.f32.xlu0 %v6684_v35  ;;  %v6687_v26 = vadd.f32 %v14787_v7, %v14784_v51 }
 0x87a   : > { %v6617_v16 = vpop.f32.mrb[104].mxu0  ;;  %6688 = vadd.xlane.f32.xlu1 %v6687_v26 }
 0x87b   : > { %v14794_v63 = vadd.f32 %v6617_v16, %v14756_v32  ;;  %v6619_v23 = vpop.f32.mrb[105].mxu0 }
 0x87c   : > { %v14797_v42 = vadd.f32 %v6619_v23, %v14759_v24  ;;  %v6621_v2 = vpop.f32.mrb[106].mxu0 }
 0x87d   : > { %v14800_v18 = vadd.f32 %v6621_v2, %v14756_v32  ;;  %v6623_v29 = vpop.f32.mrb[107].mxu0 }
 0x87e   : > { %v14803_v61 = vadd.f32 %v6623_v29, %v14759_v24  ;;  %v6690_v30 = vadd.f32 %v14797_v42, %v14794_v63 }
 0x880   : > { %6691 = vadd.xlane.f32.xlu0 %v6690_v30  ;;  %v6693_v48 = vadd.f32 %v14803_v61, %v14800_v18 }
 0x882   : > { %v6627_v0 = vpop.f32.mrb[108].mxu0  ;;  %6694 = vadd.xlane.f32.xlu1 %v6693_v48 }
 0x883   : > { %v14810_v34 = vadd.f32 %v6627_v0, %v14756_v32  ;;  %v6629_v31 = vpop.f32.mrb[109].mxu0 }
 0x884   : > { %v14813_v52 = vadd.f32 %v6629_v31, %v14759_v24  ;;  %v6631_v13 = vpop.f32.mrb[110].mxu0 }
 0x885   : > { %v14816_v1 = vadd.f32 %v6631_v13, %v14756_v32  ;;  %v6633_v53 = vpop.f32.mrb[111].mxu0  ;;  %v10116_v13 = vld [vmem:[%s15947_s13 + $0x40] sm:$0xff]  }
 0x886   : > { %v14819_v45 = vadd.f32 %v6633_v53, %v14759_v24  ;;  %v6696_v5 = vadd.f32 %v14813_v52, %v14810_v34  ;;  %8959 = vmatprep.subr.bf16.mxu1 %v10116_v13  ;;  %v10119_v53 = vld [vmem:[%s15947_s13 + $0x8] sm:$0xff]  }
 0x888   : > { %6697 = vadd.xlane.f32.xlu0 %v6696_v5  ;;  %v6699_v44 = vadd.f32 %v14819_v45, %v14816_v1  ;;  %v10120_v5 = vld [vmem:[%s15947_s13 + $0x50] sm:$0xff]  }
 0x88a   : > { %v6637_v3 = vpop.f32.mrb[112].mxu0  ;;  %6700 = vadd.xlane.f32.xlu1 %v6699_v44  ;;  %v10121_v44 = vld [vmem:[%s15947_s13 + $0x10] sm:$0xff]  }
 0x88b   : > { %v14826_v50 = vadd.f32 %v6637_v3, %v14756_v32  ;;  %v6639_v39 = vpop.f32.mrb[113].mxu0  ;;  %v10122_v3 = vld [vmem:[%s15947_s13 + $0x58] sm:$0xff]  }
 0x88c   : > { %v14829_v9 = vadd.f32 %v6639_v39, %v14759_v24  ;;  %v6641_v17 = vpop.f32.mrb[114].mxu0  ;;  %v10123_v39 = vld [vmem:[%s15947_s13 + $0x18] sm:$0xff]  }
 0x88d   : > { %v14832_v12 = vadd.f32 %v6641_v17, %v14756_v32  ;;  %v6643_v56 = vpop.f32.mrb[115].mxu0  ;;  %v10124_v17 = vld [vmem:[%s15947_s13 + $0x60] sm:$0xff]  }
 0x88e   : > { %v14835_v49 = vadd.f32 %v6643_v56, %v14759_v24  ;;  %v6702_v8 = vadd.f32 %v14829_v9, %v14826_v50  ;;  %v10125_v56 = vld [vmem:[%s15947_s13 + $0x20] sm:$0xff]  }
 0x890   : > { %6703 = vadd.xlane.f32.xlu0 %v6702_v8  ;;  %v6705_v21 = vadd.f32 %v14835_v49, %v14832_v12 }
 0x892   : > { %v6647_v36 = vpop.f32.mrb[116].mxu0  ;;  %6706 = vadd.xlane.f32.xlu1 %v6705_v21 }
 0x893   : > { %v14842_v33 = vadd.f32 %v6647_v36, %v14756_v32  ;;  %v6649_v27 = vpop.f32.mrb[117].mxu0 }
 0x894   : > { %v14845_v60 = vadd.f32 %v6649_v27, %v14759_v24  ;;  %v6651_v15 = vpop.f32.mrb[118].mxu0 }
 0x895   : > { %v14848_v43 = vadd.f32 %v6651_v15, %v14756_v32  ;;  %v6653_v14 = vpop.f32.mrb[119].mxu0 }
 0x896   : > { %v14851_v57 = vadd.f32 %v6653_v14, %v14759_v24  ;;  %v6708_v41 = vadd.f32 %v14845_v60, %v14842_v33 }
 0x898   : > { %6709 = vadd.xlane.f32.xlu0 %v6708_v41  ;;  %v6711_v38 = vadd.f32 %v14851_v57, %v14848_v43 }
 0x89a   : > { %v6657_v55 = vpop.f32.mrb[120].mxu0  ;;  %6712 = vadd.xlane.f32.xlu1 %v6711_v38 }
 0x89b   : > { %v14858_v40 = vadd.f32 %v6657_v55, %v14756_v32  ;;  %v6659_v46 = vpop.f32.mrb[121].mxu0 }
 0x89c   : > { %v14861_v10 = vadd.f32 %v6659_v46, %v14759_v24  ;;  %v6661_v20 = vpop.f32.mrb[122].mxu0 }
 0x89d   : > { %v14864_v28 = vadd.f32 %v6661_v20, %v14756_v32  ;;  %v6663_v4 = vpop.f32.mrb[123].mxu0 }
 0x89e   : > { %v14867_v59 = vadd.f32 %v6663_v4, %v14759_v24  ;;  %v6714_v58 = vadd.f32 %v14861_v10, %v14858_v40 }
 0x8a0   : > { %6715 = vadd.xlane.f32.xlu0 %v6714_v58  ;;  %v6717_v37 = vadd.f32 %v14867_v59, %v14864_v28 }
 0x8a2   : > { %v6667_v35 = vpop.f32.mrb[124].mxu0  ;;  %6718 = vadd.xlane.f32.xlu1 %v6717_v37 }
 0x8a3   : > { %v14874_v26 = vadd.f32 %v6667_v35, %v14756_v32  ;;  %v6669_v16 = vpop.f32.mrb[125].mxu0 }
 0x8a4   : > { %v14877_v23 = vadd.f32 %v6669_v16, %v14759_v24  ;;  %v6671_v2 = vpop.f32.mrb[126].mxu0 }
 0x8a5   : > { %v14880_v29 = vadd.f32 %v6671_v2, %v14756_v32  ;;  %v6673_v30 = vpop.f32.mrb[127].mxu0  ;;  %v10117_v32 = vld [vmem:[%s15947_s13] sm:$0xff]  }
 0x8a6   : > { %v14883_v48 = vadd.f32 %v6673_v30, %v14759_v24  ;;  %v6720_v0 = vadd.f32 %v14877_v23, %v14874_v26  ;;  %v10118_v24 = vld [vmem:[%s15947_s13 + $0x48] sm:$0xff]   ;;  %8960 = vmatpush3.bf16.msra.mxu1 %v10117_v32 }
 0x8a7   : > { %8961 = vmatprep.subr.bf16.mxu1 %v10118_v24 }
 0x8a8   : > { %6721 = vadd.xlane.f32.xlu0 %v6720_v0  ;;  %v6723_v31 = vadd.f32 %v14883_v48, %v14880_v29 }
 0x8aa   : > { %6724 = vadd.xlane.f32.xlu1 %v6723_v31  ;;  %8962 = vmatpush3.bf16.msra.mxu1 %v10119_v53 }
 0x8ab   : > { %8963 = vmatprep.subr.bf16.mxu1 %v10120_v5 }
 0x8ae   : > { %8964 = vmatpush3.bf16.msra.mxu1 %v10121_v44 }
 0x8af   : > { %8965 = vmatprep.subr.bf16.mxu1 %v10122_v3 }
 0x8b2   : > { %8966 = vmatpush3.bf16.msra.mxu1 %v10123_v39 }
 0x8b3   : > { %8967 = vmatprep.subr.bf16.mxu1 %v10124_v17 }
 0x8b6   : > { %8968 = vmatpush3.bf16.msra.mxu1 %v10125_v56 }
 0x8fd   : > { %v6680_v8 = vpop.xlane.xlu0 %6679 }
 0x8fe   : > { %v14919_v21 = vmul.f32 0.004, %v6680_v8 }
 0x8ff   : > { %v6683_v36 = vpop.xlane.xlu1 %6682 }
 0x900   : > { %v14923_v27 = vsub.f32 %v14762_v47, %v14919_v21  ;;  %v14927_v15 = vsub.f32 %v14765_v22, %v14919_v21  ;;  %v14929_v14 = vmul.f32 0.004, %v6683_v36 }
 0x902   : > { %v14933_v41 = vsub.f32 %v14768_v25, %v14929_v14  ;;  %v14937_v38 = vsub.f32 %v14771_v62, %v14929_v14  ;;  %v6774_v55 = vmul.f32 %v14923_v27, %v14923_v27  ;;  %v6775_v47 = vmul.f32 %v14927_v15, %v14927_v15 }
 0x904   : > { %v6806_v46 = vadd.f32 %v6775_v47, %v6774_v55  ;;  %v6776_v22 = vmul.f32 %v14933_v41, %v14933_v41  ;;  %v6777_v20 = vmul.f32 %v14937_v38, %v14937_v38 }
 0x905   : > { %v6686_v4 = vpop.xlane.xlu0 %6685 }
 0x906   : > { %v14947_v25 = vmul.f32 0.004, %v6686_v4  ;;  %6807 = vadd.xlane.f32.xlu0 %v6806_v46  ;;  %v6809_v58 = vadd.f32 %v6777_v20, %v6776_v22 }
 0x907   : > { %v6689_v62 = vpop.xlane.xlu1 %6688 }
 0x908   : > { %v14951_v37 = vsub.f32 %v14778_v54, %v14947_v25  ;;  %v14955_v35 = vsub.f32 %v14781_v19, %v14947_v25  ;;  %v14957_v16 = vmul.f32 0.004, %v6689_v62  ;;  %6810 = vadd.xlane.f32.xlu1 %v6809_v58 }
 0x90a   : > { %v14961_v2 = vsub.f32 %v14784_v51, %v14957_v16  ;;  %v14965_v30 = vsub.f32 %v14787_v7, %v14957_v16  ;;  %v6778_v0 = vmul.f32 %v14951_v37, %v14951_v37  ;;  %v6779_v54 = vmul.f32 %v14955_v35, %v14955_v35 }
 0x90c   : > { %v6812_v31 = vadd.f32 %v6779_v54, %v6778_v0  ;;  %v6780_v19 = vmul.f32 %v14961_v2, %v14961_v2  ;;  %v6781_v13 = vmul.f32 %v14965_v30, %v14965_v30 }
 0x90d   : > { %v6692_v32 = vpop.xlane.xlu0 %6691 }
 0x90e   : > { %v14975_v51 = vmul.f32 0.004, %v6692_v32  ;;  %6813 = vadd.xlane.f32.xlu0 %v6812_v31  ;;  %v6815_v24 = vadd.f32 %v6781_v13, %v6780_v19 }
 0x90f   : > { %v6695_v7 = vpop.xlane.xlu1 %6694 }
 0x910   : > { %v14979_v53 = vsub.f32 %v14794_v63, %v14975_v51  ;;  %v14983_v5 = vsub.f32 %v14797_v42, %v14975_v51  ;;  %v14985_v44 = vmul.f32 0.004, %v6695_v7  ;;  %6816 = vadd.xlane.f32.xlu1 %v6815_v24 }
 0x912   : > { %v14989_v3 = vsub.f32 %v14800_v18, %v14985_v44  ;;  %v14993_v39 = vsub.f32 %v14803_v61, %v14985_v44  ;;  %v6782_v17 = vmul.f32 %v14979_v53, %v14979_v53  ;;  %v6783_v63 = vmul.f32 %v14983_v5, %v14983_v5 }
 0x914   : > { %v6818_v56 = vadd.f32 %v6783_v63, %v6782_v17  ;;  %v6784_v42 = vmul.f32 %v14989_v3, %v14989_v3  ;;  %v6785_v8 = vmul.f32 %v14993_v39, %v14993_v39 }
 0x915   : > { %v6698_v36 = vpop.xlane.xlu0 %6697 }
 0x916   : > { %v15003_v18 = vmul.f32 0.004, %v6698_v36  ;;  %6819 = vadd.xlane.f32.xlu0 %v6818_v56  ;;  %v6821_v55 = vadd.f32 %v6785_v8, %v6784_v42 }
 0x917   : > { %v6701_v61 = vpop.xlane.xlu1 %6700 }
 0x918   : > { %v15007_v47 = vsub.f32 %v14810_v34, %v15003_v18  ;;  %v15011_v46 = vsub.f32 %v14813_v52, %v15003_v18  ;;  %v15013_v22 = vmul.f32 0.004, %v6701_v61  ;;  %6822 = vadd.xlane.f32.xlu1 %v6821_v55 }
 0x91a   : > { %v15017_v20 = vsub.f32 %v14816_v1, %v15013_v22  ;;  %v15021_v4 = vsub.f32 %v14819_v45, %v15013_v22  ;;  %v6786_v58 = vmul.f32 %v15007_v47, %v15007_v47  ;;  %v6787_v34 = vmul.f32 %v15011_v46, %v15011_v46 }
 0x91c   : > { %v6824_v62 = vadd.f32 %v6787_v34, %v6786_v58  ;;  %v6788_v52 = vmul.f32 %v15017_v20, %v15017_v20  ;;  %v6789_v0 = vmul.f32 %v15021_v4, %v15021_v4  ;;  %v10126_v58 = vld [vmem:[%s15947_s13 + $0x68] sm:$0xff]  }
 0x91d   : > { %v6704_v54 = vpop.xlane.xlu0 %6703  ;;  %v10127_v34 = vld [vmem:[%s15947_s13 + $0x28] sm:$0xff]   ;;  %8969 = vmatprep.subr.bf16.mxu1 %v10126_v58 }
 0x91e   : > { %v15031_v1 = vmul.f32 0.004, %v6704_v54  ;;  %6825 = vadd.xlane.f32.xlu0 %v6824_v62  ;;  %v6827_v31 = vadd.f32 %v6789_v0, %v6788_v52  ;;  %8970 = vmatpush3.bf16.msra.mxu1 %v10127_v34 }
 0x91f   : > { %v6707_v45 = vpop.xlane.xlu1 %6706 }
 0x920   : > { %v15035_v19 = vsub.f32 %v14826_v50, %v15031_v1  ;;  %v15039_v13 = vsub.f32 %v14829_v9, %v15031_v1  ;;  %v15041_v32 = vmul.f32 0.004, %v6707_v45  ;;  %6828 = vadd.xlane.f32.xlu1 %v6827_v31 }
 0x922   : > { %v15045_v24 = vsub.f32 %v14832_v12, %v15041_v32  ;;  %v15049_v7 = vsub.f32 %v14835_v49, %v15041_v32  ;;  %v6790_v17 = vmul.f32 %v15035_v19, %v15035_v19  ;;  %v6791_v50 = vmul.f32 %v15039_v13, %v15039_v13 }
 0x924   : > { %v6830_v63 = vadd.f32 %v6791_v50, %v6790_v17  ;;  %v6792_v9 = vmul.f32 %v15045_v24, %v15045_v24  ;;  %v6793_v56 = vmul.f32 %v15049_v7, %v15049_v7  ;;  %v10130_v17 = vld [vmem:[%s15947_s13 + $0x78] sm:$0xff]  }
 0x925   : > { %v6710_v42 = vpop.xlane.xlu0 %6709 }
 0x926   : > { %v15059_v12 = vmul.f32 0.004, %v6710_v42  ;;  %6831 = vadd.xlane.f32.xlu0 %v6830_v63  ;;  %v6833_v8 = vadd.f32 %v6793_v56, %v6792_v9 }
 0x927   : > { %v6713_v49 = vpop.xlane.xlu1 %6712 }
 0x928   : > { %v15063_v36 = vsub.f32 %v14842_v33, %v15059_v12  ;;  %v15067_v55 = vsub.f32 %v14845_v60, %v15059_v12  ;;  %v15069_v61 = vmul.f32 0.004, %v6713_v49  ;;  %6834 = vadd.xlane.f32.xlu1 %v6833_v8  ;;  %v10128_v33 = vld [vmem:[%s15947_s13 + $0x70] sm:$0xff]   ;;  %v10131_v49 = vld [vmem:[%s15947_s13 + $0x38] sm:$0xff]  }
 0x929   : > { %8971 = vmatprep.subr.bf16.mxu1 %v10128_v33 }
 0x92a   : > { %v15082_v62 = vsub.f32 %v14848_v43, %v15069_v61  ;;  %v15086_v60 = vsub.f32 %v14851_v57, %v15069_v61  ;;  %v6794_v52 = vmul.f32 %v15063_v36, %v15063_v36  ;;  %v6795_v0 = vmul.f32 %v15067_v55, %v15067_v55  ;;  %v10129_v43 = vld [vmem:[%s15947_s13 + $0x30] sm:$0xff]  }
 0x92b   : > { %8972 = vmatpush3.bf16.msra.mxu1 %v10129_v43 }
 0x92c   : > { %v6836_v54 = vadd.f32 %v6795_v0, %v6794_v52  ;;  %v6796_v31 = vmul.f32 %v15082_v62, %v15082_v62  ;;  %v6797_v45 = vmul.f32 %v15086_v60, %v15086_v60  ;;  %8973 = vmatprep.subr.bf16.mxu1 %v10130_v17 }
 0x92d   : > { %v6716_v57 = vpop.xlane.xlu0 %6715 }
 0x92e   : > { %v15102_v50 = vmul.f32 0.004, %v6716_v57  ;;  %6837 = vadd.xlane.f32.xlu0 %v6836_v54  ;;  %v6839_v63 = vadd.f32 %v6797_v45, %v6796_v31 }
 0x92f   : > { %v6719_v9 = vpop.xlane.xlu1 %6718  ;;  %8974 = vmatpush3.bf16.msra.mxu1 %v10131_v49 }
 0x930   : > { %v15106_v56 = vsub.f32 %v14858_v40, %v15102_v50  ;;  %v15110_v42 = vsub.f32 %v14861_v10, %v15102_v50  ;;  %v15112_v8 = vmul.f32 0.004, %v6719_v9  ;;  %6840 = vadd.xlane.f32.xlu1 %v6839_v63 }
 0x932   : > { %v15119_v58 = vsub.f32 %v14864_v28, %v15112_v8  ;;  %v15123_v40 = vsub.f32 %v14867_v59, %v15112_v8  ;;  %v6798_v10 = vmul.f32 %v15106_v56, %v15106_v56  ;;  %v6799_v34 = vmul.f32 %v15110_v42, %v15110_v42 }
 0x934   : > { %v6842_v33 = vadd.f32 %v6799_v34, %v6798_v10  ;;  %v6800_v52 = vmul.f32 %v15119_v58, %v15119_v58  ;;  %v6801_v0 = vmul.f32 %v15123_v40, %v15123_v40  ;;  %v6855_v34 = vmul.f32 %v14929_v14, %v14929_v14 }
 0x935   : > { %v6722_v28 = vpop.xlane.xlu0 %6721 }
 0x936   : > { %v15133_v54 = vmul.f32 0.004, %v6722_v28  ;;  %6843 = vadd.xlane.f32.xlu0 %v6842_v33  ;;  %v6845_v59 = vadd.f32 %v6801_v0, %v6800_v52  ;;  %v6871_v28 = vmul.f32 6.0, %v6855_v34 }
 0x937   : > { %v6725_v31 = vpop.xlane.xlu1 %6724 }
 0x938   : > { %v15137_v45 = vsub.f32 %v14874_v26, %v15133_v54  ;;  %v15141_v43 = vsub.f32 %v14877_v23, %v15133_v54  ;;  %v15143_v57 = vmul.f32 0.004, %v6725_v31  ;;  %6846 = vadd.xlane.f32.xlu1 %v6845_v59 }
 0x93a   : > { %v15147_v17 = vsub.f32 %v14880_v29, %v15143_v57  ;;  %v15151_v63 = vsub.f32 %v14883_v48, %v15143_v57  ;;  %v6802_v9 = vmul.f32 %v15137_v45, %v15137_v45  ;;  %v6803_v26 = vmul.f32 %v15141_v43, %v15141_v43 }
 0x93b   : > { %v6854_v48 = vmul.f32 %v14919_v21, %v14919_v21 }
 0x93c   : > { %16836 = vst [vmem:[#allocation80_spill] sm:$0xff] %v15147_v17  ;;  %v6848_v49 = vadd.f32 %v6803_v26, %v6802_v9  ;;  %v6804_v23 = vmul.f32 %v15147_v17, %v15147_v17  ;;  %v6805_v10 = vmul.f32 %v15151_v63, %v15151_v63  ;;  %v6856_v26 = vmul.f32 %v14947_v25, %v14947_v25 }
 0x93d   : > { %v6870_v33 = vmul.f32 6.0, %v6854_v48 }
 0x93e   : > { %6849 = vadd.xlane.f32.xlu0 %v6848_v49  ;;  %v6851_v29 = vadd.f32 %v6805_v10, %v6804_v23  ;;  %v6857_v23 = vmul.f32 %v14957_v16, %v14957_v16  ;;  %v6872_v10 = vmul.f32 6.0, %v6856_v26 }
 0x940   : > { %6852 = vadd.xlane.f32.xlu1 %v6851_v29  ;;  %v6873_v48 = vmul.f32 6.0, %v6857_v23 }
 0x993   : > { %v6808_v52 = vpop.xlane.xlu0 %6807 }
 0x994   : > { %v6886_v0 = vsub.f32 %v6808_v52, %v6870_v33 }
 0x995   : > { %v6811_v59 = vpop.xlane.xlu1 %6810 }
 0x996   : > { %v6902_v31 = vmul.f32 0.004, %v6886_v0  ;;  %v6887_v9 = vsub.f32 %v6811_v59, %v6871_v28  ;;  %v6858_v0 = vmul.f32 %v14975_v51, %v14975_v51  ;;  %v6676_v28 = vld [vmem:[#allocation16] sm:$0x3] }
 0x997   : > { %v15174_v26 = vrot.slane %v6676_v28, %v16834_v6  ;;  %v15177_v23 = vrot.slane %v6676_v28, %v16835_v11  ;;  %v6860_v28 = vmul.f32 %v15003_v18, %v15003_v18 }
 0x998   : > { %v6918_v17 = vadd.f32 1e-05, %v6902_v31  ;;  %v6903_v49 = vmul.f32 0.004, %v6887_v9  ;;  %v6859_v31 = vmul.f32 %v14985_v44, %v14985_v44  ;;  %v6677_v9 = vld [vmem:[#allocation17] sm:$0x3] }
 0x99a   : > { %10212 = vrsqrt.f32 %v6918_v17  ;;  %v6919_v21 = vadd.f32 1e-05, %v6903_v49  ;;  %v6874_v17 = vmul.f32 6.0, %v6858_v0 }
 0x99b   : > { %v6814_v29 = vpop.xlane.xlu0 %6813 }
 0x99c   : > { %10214 = vrsqrt.f32 %v6919_v21  ;;  %v6888_v14 = vsub.f32 %v6814_v29, %v6872_v10  ;;  %v6875_v10 = vmul.f32 6.0, %v6859_v31 }
 0x99d   : > { %v6817_v33 = vpop.xlane.xlu1 %6816 }
 0x99e   : > { %v6904_v34 = vmul.f32 0.004, %v6888_v14  ;;  %v6889_v52 = vsub.f32 %v6817_v33, %v6873_v48  ;;  %v15182_v48 = vrot.slane %v6677_v9, %v16834_v6  ;;  %v15185_v33 = vrot.slane %v6677_v9, %v16835_v11 }
 0x9a0   : > { %v6920_v25 = vadd.f32 1e-05, %v6904_v34  ;;  %v6905_v59 = vmul.f32 0.004, %v6889_v52 }
 0x9a2   : > { %10216 = vrsqrt.f32 %v6920_v25  ;;  %v6921_v16 = vadd.f32 1e-05, %v6905_v59  ;;  %v6861_v25 = vmul.f32 %v15013_v22, %v15013_v22 }
 0x9a3   : > { %v6820_v49 = vpop.xlane.xlu0 %6819 }
 0x9a4   : > { %v10213_v21 = vpop.eup %10212  ;;  %10218 = vrsqrt.f32 %v6921_v16  ;;  %v6890_v51 = vsub.f32 %v6820_v49, %v6874_v17  ;;  %v6876_v49 = vmul.f32 6.0, %v6860_v28 }
 0x9a5   : > { %v6950_v29 = vmul.f32 %v10213_v21, %v14923_v27  ;;  %v6823_v14 = vpop.xlane.xlu1 %6822  ;;  %v6951_v44 = vmul.f32 %v10213_v21, %v14927_v15 }
 0x9a6   : > { %v10215_v34 = vpop.eup %10214  ;;  %v6906_v52 = vmul.f32 0.004, %v6890_v51  ;;  %v6891_v0 = vsub.f32 %v6823_v14, %v6875_v10  ;;  %v6877_v51 = vmul.f32 6.0, %v6861_v25  ;;  %v6862_v10 = vmul.f32 %v15031_v1, %v15031_v1 }
 0x9a7   : > { %v6993_v27 = vmul.f32 %v15174_v26, %v6950_v29  ;;  %v6952_v59 = vmul.f32 %v10215_v34, %v14933_v41  ;;  %v6953_v15 = vmul.f32 %v10215_v34, %v14937_v38  ;;  %v6994_v6 = vmul.f32 %v15177_v23, %v6951_v44 }
 0x9a8   : > { %v6922_v31 = vadd.f32 1e-05, %v6906_v52  ;;  %v6907_v11 = vmul.f32 0.004, %v6891_v0 }
 0x9a9   : > { %v6995_v16 = vmul.f32 %v15174_v26, %v6952_v59  ;;  %v6996_v17 = vmul.f32 %v15177_v23, %v6953_v15  ;;  %v7037_v9 = vadd.f32 %v15185_v33, %v6994_v6  ;;  %v7036_v18 = vadd.f32 %v15182_v48, %v6993_v27 }
 0x9aa   : > { %10220 = vrsqrt.f32 %v6922_v31  ;;  %v6923_v22 = vadd.f32 1e-05, %v6907_v11  ;;  %v6863_v31 = vmul.f32 %v15041_v32, %v15041_v32 }
 0x9ab   : > { %v6826_v21 = vpop.xlane.xlu0 %6825  ;;  %v7039_v41 = vadd.f32 %v15185_v33, %v6996_v17  ;;  %v7038_v38 = vadd.f32 %v15182_v48, %v6995_v16  ;;  %v7069_v44 = vmax.f32 %v7037_v9, 0.0  ;;  %v7068_v34 = vmax.f32 %v7036_v18, 0.0 }
 0x9ac   : > { %v10217_v29 = vpop.eup %10216  ;;  %10222 = vrsqrt.f32 %v6923_v22  ;;  %v6892_v14 = vsub.f32 %v6826_v21, %v6876_v49 }
 0x9ad   : > { %v6829_v52 = vpop.xlane.xlu1 %6828  ;;  %v7071_v0 = vmax.f32 %v7039_v41, 0.0  ;;  %v7070_v27 = vmax.f32 %v7038_v38, 0.0  ;;  %v6955_v59 = vmul.f32 %v10217_v29, %v14955_v35  ;;  %v6954_v28 = vmul.f32 %v10217_v29, %v14951_v37 }
 0x9ae   : > { %v10219_v25 = vpop.eup %10218  ;;  %v6908_v15 = vmul.f32 0.004, %v6892_v14  ;;  %v6893_v6 = vsub.f32 %v6829_v52, %v6877_v51  ;;  %v6878_v37 = vmul.f32 6.0, %v6862_v10  ;;  %v6879_v38 = vmul.f32 6.0, %v6863_v31 }
 0x9af   : > { %v7101_v11 = vpack.c.bf16 %v7071_v0, %v7069_v44  ;;  %v7100_v1 = vpack.c.bf16 %v7070_v27, %v7068_v34  ;;  %v6957_v16 = vmul.f32 %v10219_v25, %v14965_v30  ;;  %v6998_v17 = vmul.f32 %v15177_v23, %v6955_v59 }
 0x9b0   : > { %v6924_v9 = vadd.f32 1e-05, %v6908_v15  ;;  %v6909_v18 = vmul.f32 0.004, %v6893_v6  ;;  %v6956_v22 = vmul.f32 %v10219_v25, %v14961_v2  ;;  %v6997_v35 = vmul.f32 %v15174_v26, %v6954_v28 }
 0x9b1   : > { %7283 = vmatprep.mubr.bf16.mxu1 %v7101_v11  ;;  %v7000_v49 = vmul.f32 %v15177_v23, %v6957_v16  ;;  %v7041_v21 = vadd.f32 %v15185_v33, %v6998_v17  ;;  %v6864_v2 = vmul.f32 %v15059_v12, %v15059_v12  ;;  %v6865_v34 = vmul.f32 %v15069_v61, %v15069_v61 }
 0x9b2   : > { %10224 = vrsqrt.f32 %v6924_v9  ;;  %v6925_v32 = vadd.f32 1e-05, %v6909_v18  ;;  %7284 = vmatmul.mubr.bf16.vlgmr.msra.gmra.mrb[96].mxu1 %v7100_v1  ;;  %v6999_v51 = vmul.f32 %v15174_v26, %v6956_v22  ;;  %v7040_v30 = vadd.f32 %v15182_v48, %v6997_v35 }
 0x9b3   : > { %v6832_v41 = vpop.xlane.xlu0 %6831  ;;  %v7043_v29 = vadd.f32 %v15185_v33, %v7000_v49  ;;  %v7073_v0 = vmax.f32 %v7041_v21, 0.0 }
 0x9b4   : > { %v10221_v14 = vpop.eup %10220  ;;  %10226 = vrsqrt.f32 %v6925_v32  ;;  %v6894_v10 = vsub.f32 %v6832_v41, %v6878_v37  ;;  %v7042_v44 = vadd.f32 %v15182_v48, %v6999_v51  ;;  %v7072_v31 = vmax.f32 %v7040_v30, 0.0 }
 0x9b5   : > { %v6835_v52 = vpop.xlane.xlu1 %6834  ;;  %v7075_v27 = vmax.f32 %v7043_v29, 0.0  ;;  %v6959_v59 = vmul.f32 %v10221_v14, %v14983_v5  ;;  %v6958_v28 = vmul.f32 %v10221_v14, %v14979_v53  ;;  %v6866_v30 = vmul.f32 %v15102_v50, %v15102_v50 }
 0x9b6   : > { %v10223_v25 = vpop.eup %10222  ;;  %v6910_v15 = vmul.f32 0.004, %v6894_v10  ;;  %v6895_v6 = vsub.f32 %v6835_v52, %v6879_v38  ;;  %v7074_v12 = vmax.f32 %v7042_v44, 0.0 }
 0x9b7   : > { %v7103_v11 = vpack.c.bf16 %v7075_v27, %v7073_v0  ;;  %v6961_v1 = vmul.f32 %v10223_v25, %v14993_v39  ;;  %v7002_v16 = vmul.f32 %v15177_v23, %v6959_v59  ;;  %v6960_v17 = vmul.f32 %v10223_v25, %v14989_v3 }
 0x9b8   : > { %v6926_v61 = vadd.f32 1e-05, %v6910_v15  ;;  %v6911_v9 = vmul.f32 0.004, %v6895_v6  ;;  %v7102_v18 = vpack.c.bf16 %v7074_v12, %v7072_v31  ;;  %v7001_v22 = vmul.f32 %v15174_v26, %v6958_v28 }
 0x9b9   : > { %7291 = vmatprep.mubr.bf16.mxu1 %v7103_v11  ;;  %v7004_v53 = vmul.f32 %v15177_v23, %v6961_v1  ;;  %v7045_v5 = vadd.f32 %v15185_v33, %v7002_v16  ;;  %v7003_v35 = vmul.f32 %v15174_v26, %v6960_v17  ;;  %v6880_v39 = vmul.f32 6.0, %v6864_v2 }
 0x9ba   : > { %10228 = vrsqrt.f32 %v6926_v61  ;;  %v6927_v37 = vadd.f32 1e-05, %v6911_v9  ;;  %7292 = vmatmul.mubr.bf16.gmra.mrb[100].mxu1 %v7102_v18  ;;  %v7044_v49 = vadd.f32 %v15182_v48, %v7001_v22  ;;  %v6881_v3 = vmul.f32 6.0, %v6865_v34 }
 0x9bb   : > { %v6838_v21 = vpop.xlane.xlu0 %6837  ;;  %v7047_v32 = vadd.f32 %v15185_v33, %v7004_v53  ;;  %v7046_v51 = vadd.f32 %v15182_v48, %v7003_v35  ;;  %v7077_v29 = vmax.f32 %v7045_v5, 0.0  ;;  %v6867_v28 = vmul.f32 %v15112_v8, %v15112_v8 }
 0x9bc   : > { %v10225_v41 = vpop.eup %10224  ;;  %10230 = vrsqrt.f32 %v6927_v37  ;;  %v6896_v38 = vsub.f32 %v6838_v21, %v6880_v39  ;;  %v7076_v14 = vmax.f32 %v7044_v49, 0.0  ;;  %v6869_v35 = vmul.f32 %v15143_v57, %v15143_v57 }
 0x9bd   : > { %v6841_v10 = vpop.xlane.xlu1 %6840  ;;  %v7079_v44 = vmax.f32 %v7047_v32, 0.0  ;;  %v7078_v52 = vmax.f32 %v7046_v51, 0.0  ;;  %v6963_v2 = vmul.f32 %v10225_v41, %v15011_v46  ;;  %v6962_v0 = vmul.f32 %v10225_v41, %v15007_v47 }
 0x9be   : > { %v10227_v34 = vpop.eup %10226  ;;  %v6912_v27 = vmul.f32 0.004, %v6896_v38  ;;  %v6897_v59 = vsub.f32 %v6841_v10, %v6881_v3  ;;  %v6882_v47 = vmul.f32 6.0, %v6866_v30  ;;  %v6883_v9 = vmul.f32 6.0, %v6867_v28 }
 0x9bf   : > { %v7105_v25 = vpack.c.bf16 %v7079_v44, %v7077_v29  ;;  %v7104_v50 = vpack.c.bf16 %v7078_v52, %v7076_v14  ;;  %v6965_v15 = vmul.f32 %v10227_v34, %v15021_v4  ;;  %v7006_v6 = vmul.f32 %v15177_v23, %v6963_v2 }
 0x9c0   : > { %v6928_v31 = vadd.f32 1e-05, %v6912_v27  ;;  %v6913_v12 = vmul.f32 0.004, %v6897_v59  ;;  %v6964_v11 = vmul.f32 %v10227_v34, %v15017_v20  ;;  %v7005_v46 = vmul.f32 %v15174_v26, %v6962_v0 }
 0x9c1   : > { %7299 = vmatprep.mubr.bf16.mxu1 %v7105_v25  ;;  %v7008_v1 = vmul.f32 %v15177_v23, %v6965_v15  ;;  %v7049_v16 = vadd.f32 %v15185_v33, %v7006_v6  ;;  %v6868_v20 = vmul.f32 %v15133_v54, %v15133_v54 }
 0x9c2   : > { %10232 = vrsqrt.f32 %v6928_v31  ;;  %v6929_v8 = vadd.f32 1e-05, %v6913_v12  ;;  %7300 = vmatmul.mubr.bf16.gmra.mrb[104].mxu1 %v7104_v50  ;;  %v7007_v17 = vmul.f32 %v15174_v26, %v6964_v11  ;;  %v7048_v4 = vadd.f32 %v15182_v48, %v7005_v46 }
 0x9c3   : > { %v6844_v61 = vpop.xlane.xlu0 %6843  ;;  %v7051_v18 = vadd.f32 %v15185_v33, %v7008_v1  ;;  %v7081_v39 = vmax.f32 %v7049_v16, 0.0 }
 0x9c4   : > { %v10229_v22 = vpop.eup %10228  ;;  %10234 = vrsqrt.f32 %v6929_v8  ;;  %v6898_v53 = vsub.f32 %v6844_v61, %v6882_v47  ;;  %v7050_v5 = vadd.f32 %v15182_v48, %v7007_v17  ;;  %v7080_v41 = vmax.f32 %v7048_v4, 0.0 }
 0x9c5   : > { %v6847_v37 = vpop.xlane.xlu1 %6846  ;;  %v7083_v49 = vmax.f32 %v7051_v18, 0.0  ;;  %v6967_v21 = vmul.f32 %v10229_v22, %v15039_v13  ;;  %v6966_v3 = vmul.f32 %v10229_v22, %v15035_v19 }
 0x9c6   : > { %v10231_v32 = vpop.eup %10230  ;;  %v6914_v51 = vmul.f32 0.004, %v6898_v53  ;;  %v6899_v30 = vsub.f32 %v6847_v37, %v6883_v9  ;;  %v7082_v54 = vmax.f32 %v7050_v5, 0.0 }
 0x9c7   : > { %v7107_v38 = vpack.c.bf16 %v7083_v49, %v7081_v39  ;;  %v6969_v29 = vmul.f32 %v10231_v32, %v15049_v7  ;;  %v7010_v14 = vmul.f32 %v15177_v23, %v6967_v21  ;;  %v6968_v10 = vmul.f32 %v10231_v32, %v15045_v24 }
 0x9c8   : > { %v6930_v57 = vadd.f32 1e-05, %v6914_v51  ;;  %v6915_v44 = vmul.f32 0.004, %v6899_v30  ;;  %v7106_v52 = vpack.c.bf16 %v7082_v54, %v7080_v41  ;;  %v7009_v2 = vmul.f32 %v15174_v26, %v6966_v3 }
 0x9c9   : > { %7307 = vmatprep.mubr.bf16.mxu1 %v7107_v38  ;;  %v7012_v19 = vmul.f32 %v15177_v23, %v6969_v29  ;;  %v7053_v13 = vadd.f32 %v15185_v33, %v7010_v14  ;;  %v7011_v0 = vmul.f32 %v15174_v26, %v6968_v10  ;;  %v6884_v7 = vmul.f32 6.0, %v6868_v20 }
 0x9ca   : > { %10236 = vrsqrt.f32 %v6930_v57  ;;  %v6931_v34 = vadd.f32 1e-05, %v6915_v44  ;;  %7308 = vmatmul.mubr.bf16.gmra.mrb[108].mxu1 %v7106_v52  ;;  %v7052_v27 = vadd.f32 %v15182_v48, %v7009_v2  ;;  %v6885_v24 = vmul.f32 6.0, %v6869_v35 }
 0x9cb   : > { %v6850_v59 = vpop.xlane.xlu0 %6849  ;;  %v7055_v28 = vadd.f32 %v15185_v33, %v7012_v19  ;;  %v7054_v25 = vadd.f32 %v15182_v48, %v7011_v0  ;;  %v7085_v6 = vmax.f32 %v7053_v13, 0.0 }
 0x9cc   : > { %v10233_v50 = vpop.eup %10232  ;;  %10238 = vrsqrt.f32 %v6931_v34  ;;  %v6900_v15 = vsub.f32 %v6850_v59, %v6884_v7  ;;  %v7084_v31 = vmax.f32 %v7052_v27, 0.0 }
 0x9cd   : > { %v6853_v12 = vpop.xlane.xlu1 %6852  ;;  %v7087_v11 = vmax.f32 %v7055_v28, 0.0  ;;  %v7086_v46 = vmax.f32 %v7054_v25, 0.0  ;;  %v6971_v47 = vmul.f32 %v10233_v50, %v15067_v55  ;;  %v6970_v1 = vmul.f32 %v10233_v50, %v15063_v36 }
 0x9ce   : > { %v10235_v16 = vpop.eup %10234  ;;  %v6916_v8 = vmul.f32 0.004, %v6900_v15  ;;  %v6901_v17 = vsub.f32 %v6853_v12, %v6885_v24 }
 0x9cf   : > { %v7109_v4 = vpack.c.bf16 %v7087_v11, %v7085_v6  ;;  %v7108_v61 = vpack.c.bf16 %v7086_v46, %v7084_v31  ;;  %v6973_v9 = vmul.f32 %v10235_v16, %v15086_v60  ;;  %v7014_v18 = vmul.f32 %v15177_v23, %v6971_v47  ;;  %v16837_v6 = vld [vmem:[#allocation80_spill] sm:$0xff] }
 0x9d0   : > { %v6932_v20 = vadd.f32 1e-05, %v6916_v8  ;;  %v6917_v22 = vmul.f32 0.004, %v6901_v17  ;;  %v6972_v53 = vmul.f32 %v10235_v16, %v15082_v62  ;;  %v7013_v5 = vmul.f32 %v15174_v26, %v6970_v1 }
 0x9d1   : > { %7315 = vmatprep.mubr.bf16.mxu1 %v7109_v4  ;;  %v7016_v55 = vmul.f32 %v15177_v23, %v6973_v9  ;;  %v7057_v36 = vadd.f32 %v15185_v33, %v7014_v18  ;;  %v15301_v18 = vld [vmem:[#allocation19] ss:$0 sm:$0xff] }
 0x9d2   : > { %10240 = vrsqrt.f32 %v6932_v20  ;;  %v6933_v35 = vadd.f32 1e-05, %v6917_v22  ;;  %7316 = vmatmul.mubr.bf16.gmra.mrb[112].mxu1 %v7108_v61  ;;  %v7015_v37 = vmul.f32 %v15174_v26, %v6972_v53  ;;  %v7056_v60 = vadd.f32 %v15182_v48, %v7013_v5 }
 0x9d3   : > { %v7059_v39 = vadd.f32 %v15185_v33, %v7016_v55  ;;  %v7089_v21 = vmax.f32 %v7057_v36, 0.0 }
 0x9d4   : > { %v10237_v49 = vpop.eup %10236  ;;  %10242 = vrsqrt.f32 %v6933_v35  ;;  %v7058_v62 = vadd.f32 %v15182_v48, %v7015_v37  ;;  %v7088_v41 = vmax.f32 %v7056_v60, 0.0 }
 0x9d5   : > { %v7091_v3 = vmax.f32 %v7059_v39, 0.0  ;;  %v6975_v32 = vmul.f32 %v10237_v49, %v15110_v42  ;;  %v6974_v51 = vmul.f32 %v10237_v49, %v15106_v56 }
 0x9d6   : > { %v10239_v30 = vpop.eup %10238  ;;  %v7090_v54 = vmax.f32 %v7058_v62, 0.0 }
 0x9d7   : > { %v7111_v38 = vpack.c.bf16 %v7091_v3, %v7089_v21  ;;  %v6977_v29 = vmul.f32 %v10239_v30, %v15123_v40  ;;  %v7018_v14 = vmul.f32 %v15177_v23, %v6975_v32  ;;  %v6976_v10 = vmul.f32 %v10239_v30, %v15119_v58 }
 0x9d8   : > { %v7110_v57 = vpack.c.bf16 %v7090_v54, %v7088_v41  ;;  %v7017_v44 = vmul.f32 %v15174_v26, %v6974_v51 }
 0x9d9   : > { %7323 = vmatprep.mubr.bf16.mxu1 %v7111_v38  ;;  %v7020_v52 = vmul.f32 %v15177_v23, %v6977_v29  ;;  %v7061_v42 = vadd.f32 %v15185_v33, %v7018_v14  ;;  %v7019_v56 = vmul.f32 %v15174_v26, %v6976_v10 }
 0x9da   : > { %7324 = vmatmul.mubr.bf16.gmra.mrb[116].mxu1 %v7110_v57  ;;  %v7060_v2 = vadd.f32 %v15182_v48, %v7017_v44 }
 0x9db   : > { %v7063_v19 = vadd.f32 %v15185_v33, %v7020_v52  ;;  %v7062_v40 = vadd.f32 %v15182_v48, %v7019_v56  ;;  %v7093_v0 = vmax.f32 %v7061_v42, 0.0 }
 0x9dc   : > { %v10241_v13 = vpop.eup %10240  ;;  %v7092_v58 = vmax.f32 %v7060_v2, 0.0 }
 0x9dd   : > { %v7095_v34 = vmax.f32 %v7063_v19, 0.0  ;;  %v7094_v7 = vmax.f32 %v7062_v40, 0.0  ;;  %v6979_v27 = vmul.f32 %v10241_v13, %v15141_v43  ;;  %v6978_v59 = vmul.f32 %v10241_v13, %v15137_v45 }
 0x9de   : > { %v10243_v24 = vpop.eup %10242 }
 0x9df   : > { %v7113_v28 = vpack.c.bf16 %v7095_v34, %v7093_v0  ;;  %v7112_v25 = vpack.c.bf16 %v7094_v7, %v7092_v58  ;;  %v6981_v50 = vmul.f32 %v10243_v24, %v15151_v63  ;;  %v7022_v15 = vmul.f32 %v15177_v23, %v6979_v27 }
 0x9e0   : > { %v6980_v31 = vmul.f32 %v10243_v24, %v16837_v6  ;;  %v7021_v12 = vmul.f32 %v15174_v26, %v6978_v59 }
 0x9e1   : > { %7331 = vmatprep.mubr.bf16.mxu1 %v7113_v28  ;;  %v7024_v11 = vmul.f32 %v15177_v23, %v6981_v50  ;;  %v7065_v46 = vadd.f32 %v15185_v33, %v7022_v15 }
 0x9e2   : > { %7332 = vmatmul.mubr.bf16.gmra.mrb[120].mxu1 %v7112_v25  ;;  %v7023_v43 = vmul.f32 %v15174_v26, %v6980_v31  ;;  %v7064_v45 = vadd.f32 %v15182_v48, %v7021_v12 }
 0x9e3   : > { %v7067_v47 = vadd.f32 %v15185_v33, %v7024_v11  ;;  %v7097_v1 = vmax.f32 %v7065_v46, 0.0 }
 0x9e4   : > { %v7066_v63 = vadd.f32 %v15182_v48, %v7023_v43  ;;  %v7096_v8 = vmax.f32 %v7064_v45, 0.0 }
 0x9e5   : > { %v7099_v16 = vmax.f32 %v7067_v47, 0.0 }
 0x9e6   : > { %v7098_v17 = vmax.f32 %v7066_v63, 0.0 }
 0x9e7   : > { %v7115_v4 = vpack.c.bf16 %v7099_v16, %v7097_v1 }
 0x9e8   : > { %v7114_v61 = vpack.c.bf16 %v7098_v17, %v7096_v8 }
 0x9e9   : > { %7339 = vmatprep.mubr.bf16.mxu1 %v7115_v4 }
 0x9ea   : > { %7340 = vmatmul.mubr.bf16.gmra.mrb[124].mxu1 %v7114_v61 }
 0xa85   : > { %v8975_v23 = vpop.f32.mrb[96].mxu1 }
 0xa86   : > { %v8976_v9 = vpop.f32.mrb[97].mxu1 }
 0xa87   : > { %v8977_v20 = vadd.f32 %v8976_v9, %v8975_v23  ;;  %v8978_v26 = vpop.f32.mrb[98].mxu1  ;;  %v10132_v9 = vld [vmem:[%s15951_s17] sm:$0xff]  }
 0xa88   : > { %v8979_v22 = vpop.f32.mrb[99].mxu1  ;;  %9055 = vmatprep.subr.bf16.mxu1 %v10132_v9 }
 0xa89   : > { %v8980_v53 = vadd.f32 %v8979_v22, %v8978_v26  ;;  %v15304_v33 = vadd.f32 %v8977_v20, %v15301_v18  ;;  %9056 = vmatpush3.bf16.msra.mxu1 %v10132_v9 }
 0xa8b   : > { %7350 = vadd.xlane.f32.xlu0 %v15304_v33  ;;  %v15308_v48 = vadd.f32 %v8980_v53, %v15301_v18 }
 0xa8d   : > { %7352 = vadd.xlane.f32.xlu1 %v15308_v48  ;;  %v8981_v5 = vpop.f32.mrb[100].mxu1 }
 0xa8e   : > { %v8982_v55 = vpop.f32.mrb[101].mxu1 }
 0xa8f   : > { %v8983_v36 = vadd.f32 %v8982_v55, %v8981_v5  ;;  %v8984_v35 = vpop.f32.mrb[102].mxu1 }
 0xa90   : > { %v8985_v37 = vpop.f32.mrb[103].mxu1 }
 0xa91   : > { %v15312_v60 = vadd.f32 %v8983_v36, %v15301_v18  ;;  %v8986_v39 = vadd.f32 %v8985_v37, %v8984_v35 }
 0xa93   : > { %v15315_v49 = vadd.f32 %v8986_v39, %v15301_v18  ;;  %7354 = vadd.xlane.f32.xlu0 %v15312_v60 }
 0xa95   : > { %7356 = vadd.xlane.f32.xlu1 %v15315_v49  ;;  %v8987_v62 = vpop.f32.mrb[104].mxu1 }
 0xa96   : > { %v8988_v21 = vpop.f32.mrb[105].mxu1 }
 0xa97   : > { %v8989_v3 = vadd.f32 %v8988_v21, %v8987_v62  ;;  %v8990_v32 = vpop.f32.mrb[106].mxu1 }
 0xa98   : > { %v8991_v51 = vpop.f32.mrb[107].mxu1 }
 0xa99   : > { %v15320_v30 = vadd.f32 %v8989_v3, %v15301_v18  ;;  %v8992_v41 = vadd.f32 %v8991_v51, %v8990_v32 }
 0xa9b   : > { %v15323_v54 = vadd.f32 %v8992_v41, %v15301_v18  ;;  %7358 = vadd.xlane.f32.xlu0 %v15320_v30 }
 0xa9d   : > { %7360 = vadd.xlane.f32.xlu1 %v15323_v54  ;;  %v8993_v38 = vpop.f32.mrb[108].mxu1 }
 0xa9e   : > { %v8994_v29 = vpop.f32.mrb[109].mxu1 }
 0xa9f   : > { %v8995_v14 = vadd.f32 %v8994_v29, %v8993_v38  ;;  %v8996_v10 = vpop.f32.mrb[110].mxu1 }
 0xaa0   : > { %v8997_v57 = vpop.f32.mrb[111].mxu1 }
 0xaa1   : > { %v15328_v44 = vadd.f32 %v8995_v14, %v15301_v18  ;;  %v8998_v52 = vadd.f32 %v8997_v57, %v8996_v10 }
 0xaa3   : > { %v15331_v42 = vadd.f32 %v8998_v52, %v15301_v18  ;;  %7362 = vadd.xlane.f32.xlu0 %v15328_v44 }
 0xaa5   : > { %7364 = vadd.xlane.f32.xlu1 %v15331_v42  ;;  %v8999_v56 = vpop.f32.mrb[112].mxu1 }
 0xaa6   : > { %v9000_v2 = vpop.f32.mrb[113].mxu1 }
 0xaa7   : > { %v9001_v19 = vadd.f32 %v9000_v2, %v8999_v56  ;;  %v9002_v40 = vpop.f32.mrb[114].mxu1 }
 0xaa8   : > { %v9003_v13 = vpop.f32.mrb[115].mxu1 }
 0xaa9   : > { %v15336_v0 = vadd.f32 %v9001_v19, %v15301_v18  ;;  %v9004_v58 = vadd.f32 %v9003_v13, %v9002_v40  ;;  %v10133_v19 = vld [vmem:[%s15951_s17 + $0x8] sm:$0xff]  }
 0xaaa   : > { %9057 = vmatprep.subr.bf16.mxu1 %v10133_v19 }
 0xaab   : > { %v15339_v34 = vadd.f32 %v9004_v58, %v15301_v18  ;;  %7366 = vadd.xlane.f32.xlu0 %v15336_v0  ;;  %9058 = vmatpush3.bf16.msra.mxu1 %v10133_v19 }
 0xaad   : > { %7368 = vadd.xlane.f32.xlu1 %v15339_v34  ;;  %v9005_v7 = vpop.f32.mrb[116].mxu1 }
 0xaae   : > { %v9006_v27 = vpop.f32.mrb[117].mxu1 }
 0xaaf   : > { %v9007_v59 = vadd.f32 %v9006_v27, %v9005_v7  ;;  %v9008_v24 = vpop.f32.mrb[118].mxu1 }
 0xab0   : > { %v9009_v28 = vpop.f32.mrb[119].mxu1 }
 0xab1   : > { %v15344_v25 = vadd.f32 %v9007_v59, %v15301_v18  ;;  %v9010_v50 = vadd.f32 %v9009_v28, %v9008_v24 }
 0xab3   : > { %v15347_v15 = vadd.f32 %v9010_v50, %v15301_v18  ;;  %7370 = vadd.xlane.f32.xlu0 %v15344_v25 }
 0xab5   : > { %7372 = vadd.xlane.f32.xlu1 %v15347_v15  ;;  %v9011_v6 = vpop.f32.mrb[120].mxu1 }
 0xab6   : > { %v9012_v31 = vpop.f32.mrb[121].mxu1 }
 0xab7   : > { %v9013_v12 = vadd.f32 %v9012_v31, %v9011_v6  ;;  %v9014_v11 = vpop.f32.mrb[122].mxu1 }
 0xab8   : > { %v9015_v46 = vpop.f32.mrb[123].mxu1 }
 0xab9   : > { %v15352_v43 = vadd.f32 %v9013_v12, %v15301_v18  ;;  %v9016_v45 = vadd.f32 %v9015_v46, %v9014_v11 }
 0xabb   : > { %v15355_v47 = vadd.f32 %v9016_v45, %v15301_v18  ;;  %7374 = vadd.xlane.f32.xlu0 %v15352_v43 }
 0xabd   : > { %7376 = vadd.xlane.f32.xlu1 %v15355_v47  ;;  %v9017_v63 = vpop.f32.mrb[124].mxu1 }
 0xabe   : > { %v9018_v1 = vpop.f32.mrb[125].mxu1 }
 0xabf   : > { %v9019_v16 = vadd.f32 %v9018_v1, %v9017_v63  ;;  %v9020_v8 = vpop.f32.mrb[126].mxu1 }
 0xac0   : > { %v9021_v17 = vpop.f32.mrb[127].mxu1 }
 0xac1   : > { %v15360_v4 = vadd.f32 %v9019_v16, %v15301_v18  ;;  %v9022_v61 = vadd.f32 %v9021_v17, %v9020_v8 }
 0xac3   : > { %v15363_v23 = vadd.f32 %v9022_v61, %v15301_v18  ;;  %7378 = vadd.xlane.f32.xlu0 %v15360_v4  ;;  %v10136_v61 = vld [vmem:[%s15951_s17 + $0x20] sm:$0xff]  }
 0xac5   : > { %7380 = vadd.xlane.f32.xlu1 %v15363_v23 }
 0xb18   : > { %v7351_v20 = vpop.xlane.xlu0 %7350 }
 0xb19   : > { %v15370_v26 = vmul.f32 0.008, %v7351_v20 }
 0xb1a   : > { %v7353_v22 = vpop.xlane.xlu1 %7352 }
 0xb1b   : > { %v15374_v53 = vsub.f32 %v15304_v33, %v15370_v26  ;;  %v15376_v18 = vmul.f32 0.008, %v7353_v22  ;;  %v10137_v22 = vld [vmem:[%s15951_s17 + $0x28] sm:$0xff]  }
 0xb1d   : > { %v15380_v5 = vsub.f32 %v15308_v48, %v15376_v18  ;;  %v7414_v55 = vmul.f32 %v15374_v53, %v15374_v53 }
 0xb1f   : > { %7430 = vadd.xlane.f32.xlu0 %v7414_v55  ;;  %v7415_v36 = vmul.f32 %v15380_v5, %v15380_v5 }
 0xb20   : > { %v7355_v35 = vpop.xlane.xlu0 %7354 }
 0xb21   : > { %v15386_v37 = vmul.f32 0.008, %v7355_v35  ;;  %7432 = vadd.xlane.f32.xlu1 %v7415_v36 }
 0xb22   : > { %v7357_v39 = vpop.xlane.xlu1 %7356 }
 0xb23   : > { %v15390_v33 = vsub.f32 %v15312_v60, %v15386_v37  ;;  %v15392_v62 = vmul.f32 0.008, %v7357_v39 }
 0xb25   : > { %v15396_v48 = vsub.f32 %v15315_v49, %v15392_v62  ;;  %v7416_v21 = vmul.f32 %v15390_v33, %v15390_v33 }
 0xb27   : > { %7434 = vadd.xlane.f32.xlu0 %v7416_v21  ;;  %v7417_v3 = vmul.f32 %v15396_v48, %v15396_v48  ;;  %v10138_v21 = vld [vmem:[%s15951_s17 + $0x30] sm:$0xff]  }
 0xb28   : > { %v7359_v32 = vpop.xlane.xlu0 %7358 }
 0xb29   : > { %v15402_v51 = vmul.f32 0.008, %v7359_v32  ;;  %7436 = vadd.xlane.f32.xlu1 %v7417_v3  ;;  %v7462_v3 = vmul.f32 %v15370_v26, %v15370_v26  ;;  %v7463_v32 = vmul.f32 %v15376_v18, %v15376_v18 }
 0xb2a   : > { %v7361_v41 = vpop.xlane.xlu1 %7360 }
 0xb2b   : > { %v15406_v60 = vsub.f32 %v15320_v30, %v15402_v51  ;;  %v15408_v38 = vmul.f32 0.008, %v7361_v41  ;;  %v7478_v41 = vmul.f32 3.0, %v7462_v3  ;;  %v15536_v3 = vld [vmem:[#allocation22] ss:$0 sm:$0xff] }
 0xb2d   : > { %v15412_v49 = vsub.f32 %v15323_v54, %v15408_v38  ;;  %v7418_v29 = vmul.f32 %v15406_v60, %v15406_v60 }
 0xb2f   : > { %7438 = vadd.xlane.f32.xlu0 %v7418_v29  ;;  %v7419_v14 = vmul.f32 %v15412_v49, %v15412_v49 }
 0xb30   : > { %v7363_v10 = vpop.xlane.xlu0 %7362 }
 0xb31   : > { %v15418_v57 = vmul.f32 0.008, %v7363_v10  ;;  %7440 = vadd.xlane.f32.xlu1 %v7419_v14  ;;  %v7479_v10 = vmul.f32 3.0, %v7463_v32 }
 0xb32   : > { %v7365_v52 = vpop.xlane.xlu1 %7364 }
 0xb33   : > { %v15422_v30 = vsub.f32 %v15328_v44, %v15418_v57  ;;  %v15424_v56 = vmul.f32 0.008, %v7365_v52 }
 0xb35   : > { %v15428_v54 = vsub.f32 %v15331_v42, %v15424_v56  ;;  %v7420_v2 = vmul.f32 %v15422_v30, %v15422_v30 }
 0xb37   : > { %7442 = vadd.xlane.f32.xlu0 %v7420_v2  ;;  %v7421_v40 = vmul.f32 %v15428_v54, %v15428_v54  ;;  %v7464_v2 = vmul.f32 %v15386_v37, %v15386_v37 }
 0xb38   : > { %v7367_v44 = vpop.xlane.xlu0 %7366 }
 0xb39   : > { %v15437_v13 = vmul.f32 0.008, %v7367_v44  ;;  %7444 = vadd.xlane.f32.xlu1 %v7421_v40  ;;  %v7465_v44 = vmul.f32 %v15392_v62, %v15392_v62 }
 0xb3a   : > { %v7369_v58 = vpop.xlane.xlu1 %7368 }
 0xb3b   : > { %v15441_v42 = vsub.f32 %v15336_v0, %v15437_v13  ;;  %v15443_v7 = vmul.f32 0.008, %v7369_v58 }
 0xb3d   : > { %v15447_v27 = vsub.f32 %v15339_v34, %v15443_v7  ;;  %v7422_v59 = vmul.f32 %v15441_v42, %v15441_v42 }
 0xb3f   : > { %7446 = vadd.xlane.f32.xlu0 %v7422_v59  ;;  %v7423_v24 = vmul.f32 %v15447_v27, %v15447_v27 }
 0xb40   : > { %v7371_v28 = vpop.xlane.xlu0 %7370 }
 0xb41   : > { %v15453_v50 = vmul.f32 0.008, %v7371_v28  ;;  %7448 = vadd.xlane.f32.xlu1 %v7423_v24  ;;  %v7480_v24 = vmul.f32 3.0, %v7464_v2 }
 0xb42   : > { %v7373_v6 = vpop.xlane.xlu1 %7372 }
 0xb43   : > { %v15457_v0 = vsub.f32 %v15344_v25, %v15453_v50  ;;  %v15459_v31 = vmul.f32 0.008, %v7373_v6  ;;  %v10134_v25 = vld [vmem:[%s15951_s17 + $0x10] sm:$0xff]   ;;  %v7481_v6 = vmul.f32 3.0, %v7465_v44 }
 0xb44   : > { %9059 = vmatprep.subr.bf16.mxu1 %v10134_v25 }
 0xb45   : > { %v15463_v34 = vsub.f32 %v15347_v15, %v15459_v31  ;;  %v7424_v12 = vmul.f32 %v15457_v0, %v15457_v0  ;;  %v10135_v15 = vld [vmem:[%s15951_s17 + $0x18] sm:$0xff]   ;;  %9060 = vmatpush3.bf16.msra.mxu1 %v10134_v25 }
 0xb46   : > { %9061 = vmatprep.subr.bf16.mxu1 %v10135_v15 }
 0xb47   : > { %7450 = vadd.xlane.f32.xlu0 %v7424_v12  ;;  %v7425_v11 = vmul.f32 %v15463_v34, %v15463_v34 }
 0xb48   : > { %v7375_v46 = vpop.xlane.xlu0 %7374 }
 0xb49   : > { %v15469_v45 = vmul.f32 0.008, %v7375_v46  ;;  %7452 = vadd.xlane.f32.xlu1 %v7425_v11  ;;  %9062 = vmatpush3.bf16.msra.mxu1 %v10135_v15  ;;  %v7466_v11 = vmul.f32 %v15402_v51, %v15402_v51 }
 0xb4a   : > { %v7377_v63 = vpop.xlane.xlu1 %7376  ;;  %9063 = vmatprep.subr.bf16.mxu1 %v10136_v61 }
 0xb4b   : > { %v15479_v1 = vsub.f32 %v15352_v43, %v15469_v45  ;;  %v15481_v16 = vmul.f32 0.008, %v7377_v63  ;;  %v7467_v63 = vmul.f32 %v15408_v38, %v15408_v38 }
 0xb4d   : > { %v15485_v8 = vsub.f32 %v15355_v47, %v15481_v16  ;;  %v7426_v17 = vmul.f32 %v15479_v1, %v15479_v1  ;;  %9064 = vmatpush3.bf16.msra.mxu1 %v10136_v61 }
 0xb4e   : > { %9065 = vmatprep.subr.bf16.mxu1 %v10137_v22 }
 0xb4f   : > { %7454 = vadd.xlane.f32.xlu0 %v7426_v17  ;;  %v7427_v43 = vmul.f32 %v15485_v8, %v15485_v8  ;;  %v7482_v17 = vmul.f32 3.0, %v7466_v11 }
 0xb50   : > { %v7379_v9 = vpop.xlane.xlu0 %7378 }
 0xb51   : > { %v15494_v20 = vmul.f32 0.008, %v7379_v9  ;;  %7456 = vadd.xlane.f32.xlu1 %v7427_v43  ;;  %9066 = vmatpush3.bf16.msra.mxu1 %v10137_v22  ;;  %v15531_v9 = vld [vmem:[#allocation20] ss:$0 sm:$0xff]  ;;  %v7483_v22 = vmul.f32 3.0, %v7467_v63  ;;  %v7471_v63 = vmul.f32 %v15443_v7, %v15443_v7 }
 0xb52   : > { %v7381_v47 = vpop.xlane.xlu1 %7380  ;;  %9067 = vmatprep.subr.bf16.mxu1 %v10138_v21 }
 0xb53   : > { %v15501_v55 = vsub.f32 %v15360_v4, %v15494_v20  ;;  %v15503_v36 = vmul.f32 0.008, %v7381_v47 }
 0xb55   : > { %v15507_v35 = vsub.f32 %v15363_v23, %v15503_v36  ;;  %v7428_v39 = vmul.f32 %v15501_v55, %v15501_v55  ;;  %v10139_v23 = vld [vmem:[%s15951_s17 + $0x38] sm:$0xff]   ;;  %9068 = vmatpush3.bf16.msra.mxu1 %v10138_v21 }
 0xb56   : > { %9069 = vmatprep.subr.bf16.mxu1 %v10139_v23 }
 0xb57   : > { %7458 = vadd.xlane.f32.xlu0 %v7428_v39  ;;  %v7429_v4 = vmul.f32 %v15507_v35, %v15507_v35 }
 0xb59   : > { %7460 = vadd.xlane.f32.xlu1 %v7429_v4  ;;  %9070 = vmatpush3.bf16.msra.mxu1 %v10139_v23  ;;  %v7468_v4 = vmul.f32 %v15418_v57, %v15418_v57 }
 0xb5b   : > { %v7484_v57 = vmul.f32 3.0, %v7468_v4 }
 0xbac   : > { %v7431_v29 = vpop.xlane.xlu0 %7430 }
 0xbad   : > { %v7494_v14 = vsub.f32 %v7431_v29, %v7478_v41  ;;  %v7469_v29 = vmul.f32 %v15424_v56, %v15424_v56 }
 0xbae   : > { %v7433_v52 = vpop.xlane.xlu1 %7432 }
 0xbaf   : > { %v7510_v19 = vmul.f32 0.008, %v7494_v14  ;;  %v7495_v40 = vsub.f32 %v7433_v52, %v7479_v10 }
 0xbb1   : > { %v7526_v58 = vadd.f32 1e-05, %v7510_v19  ;;  %v7511_v59 = vmul.f32 0.008, %v7495_v40 }
 0xbb3   : > { %10244 = vrsqrt.f32 %v7526_v58  ;;  %v7527_v26 = vadd.f32 1e-05, %v7511_v59  ;;  %v7485_v58 = vmul.f32 3.0, %v7469_v29 }
 0xbb4   : > { %v7435_v28 = vpop.xlane.xlu0 %7434 }
 0xbb5   : > { %10246 = vrsqrt.f32 %v7527_v26  ;;  %v7496_v18 = vsub.f32 %v7435_v28, %v7480_v24 }
 0xbb6   : > { %v7437_v12 = vpop.xlane.xlu1 %7436 }
 0xbb7   : > { %v7512_v46 = vmul.f32 0.008, %v7496_v18  ;;  %v7497_v37 = vsub.f32 %v7437_v12, %v7481_v6  ;;  %v7470_v18 = vmul.f32 %v15437_v13, %v15437_v13 }
 0xbb9   : > { %v7528_v25 = vadd.f32 1e-05, %v7512_v46  ;;  %v7513_v62 = vmul.f32 0.008, %v7497_v37  ;;  %v7486_v13 = vmul.f32 3.0, %v7470_v18 }
 0xbbb   : > { %10248 = vrsqrt.f32 %v7528_v25  ;;  %v7529_v15 = vadd.f32 1e-05, %v7513_v62 }
 0xbbc   : > { %v7439_v61 = vpop.xlane.xlu0 %7438 }
 0xbbd   : > { %v10245_v43 = vpop.eup %10244  ;;  %10250 = vrsqrt.f32 %v7529_v15  ;;  %v7498_v47 = vsub.f32 %v7439_v61, %v7482_v17 }
 0xbbe   : > { %v7441_v39 = vpop.xlane.xlu1 %7440  ;;  %v7558_v51 = vmul.f32 %v10245_v43, %v15374_v53 }
 0xbbf   : > { %v10247_v21 = vpop.eup %10246  ;;  %v7514_v38 = vmul.f32 0.008, %v7498_v47  ;;  %v7499_v23 = vsub.f32 %v7441_v39, %v7483_v22  ;;  %v7487_v22 = vmul.f32 3.0, %v7471_v63 }
 0xbc0   : > { %v7559_v32 = vmul.f32 %v10247_v21, %v15380_v5  ;;  %v7580_v41 = vmul.f32 %v15531_v9, %v7558_v51 }
 0xbc1   : > { %v7530_v14 = vadd.f32 1e-05, %v7514_v38  ;;  %v7515_v10 = vmul.f32 0.008, %v7499_v23  ;;  %v7472_v38 = vmul.f32 %v15453_v50, %v15453_v50 }
 0xbc2   : > { %v7581_v52 = vmul.f32 %v15531_v9, %v7559_v32  ;;  %v7602_v53 = vadd.f32 %v15536_v3, %v7580_v41 }
 0xbc3   : > { %10252 = vrsqrt.f32 %v7530_v14  ;;  %v7531_v2 = vadd.f32 1e-05, %v7515_v10  ;;  %v7473_v10 = vmul.f32 %v15459_v31, %v15459_v31  ;;  %v7488_v50 = vmul.f32 3.0, %v7472_v38 }
 0xbc4   : > { %v7443_v19 = vpop.xlane.xlu0 %7442  ;;  %v7603_v40 = vadd.f32 %v15536_v3, %v7581_v52  ;;  %v7618_v56 = vmax.f32 %v7602_v53, 0.0  ;;  %v7477_v38 = vmul.f32 %v15503_v36, %v15503_v36 }
 0xbc5   : > { %v10249_v44 = vpop.eup %10248  ;;  %10254 = vrsqrt.f32 %v7531_v2  ;;  %v7500_v5 = vsub.f32 %v7443_v19, %v7484_v57 }
 0xbc6   : > { %v7560_v59 = vmul.f32 %v10249_v44, %v15390_v33  ;;  %v7445_v26 = vpop.xlane.xlu1 %7444  ;;  %v7619_v24 = vmax.f32 %v7603_v40, 0.0 }
 0xbc7   : > { %v10251_v28 = vpop.eup %10250  ;;  %v7516_v6 = vmul.f32 0.008, %v7500_v5  ;;  %v7501_v12 = vsub.f32 %v7445_v26, %v7485_v58  ;;  %v7489_v5 = vmul.f32 3.0, %v7473_v10 }
 0xbc8   : > { %v7582_v11 = vmul.f32 %v15531_v9, %v7560_v59  ;;  %v7561_v46 = vmul.f32 %v10251_v28, %v15396_v48  ;;  %v7634_v37 = vpack.c.bf16 %v7619_v24, %v7618_v56  ;;  %v7474_v24 = vmul.f32 %v15469_v45, %v15469_v45 }
 0xbc9   : > { %v7532_v25 = vadd.f32 1e-05, %v7516_v6  ;;  %v7517_v62 = vmul.f32 0.008, %v7501_v12 }
 0xbca   : > { %v7583_v33 = vmul.f32 %v15531_v9, %v7561_v46  ;;  %9071 = vmatprep.mubr.bf16.mxu1 %v7634_v37  ;;  %v7604_v15 = vadd.f32 %v15536_v3, %v7582_v11  ;;  %v7475_v46 = vmul.f32 %v15481_v16, %v15481_v16  ;;  %v7490_v45 = vmul.f32 3.0, %v7474_v24 }
 0xbcb   : > { %10256 = vrsqrt.f32 %v7532_v25  ;;  %v7533_v17 = vadd.f32 1e-05, %v7517_v62 }
 0xbcc   : > { %v7447_v61 = vpop.xlane.xlu0 %7446  ;;  %v7605_v43 = vadd.f32 %v15536_v3, %v7583_v33  ;;  %v7620_v51 = vmax.f32 %v7604_v15, 0.0 }
 0xbcd   : > { %v10253_v47 = vpop.eup %10252  ;;  %10258 = vrsqrt.f32 %v7533_v17  ;;  %v7502_v48 = vsub.f32 %v7447_v61, %v7486_v13  ;;  %v7491_v13 = vmul.f32 3.0, %v7475_v46 }
 0xbce   : > { %v7449_v39 = vpop.xlane.xlu1 %7448  ;;  %v7621_v7 = vmax.f32 %v7605_v43, 0.0  ;;  %v7562_v21 = vmul.f32 %v10253_v47, %v15406_v60 }
 0xbcf   : > { %v10255_v4 = vpop.eup %10254  ;;  %v7518_v23 = vmul.f32 0.008, %v7502_v48  ;;  %v7503_v32 = vsub.f32 %v7449_v39, %v7487_v22  ;;  %v7476_v22 = vmul.f32 %v15494_v20, %v15494_v20 }
 0xbd0   : > { %v7635_v41 = vpack.c.bf16 %v7621_v7, %v7620_v51  ;;  %v7563_v29 = vmul.f32 %v10255_v4, %v15412_v49  ;;  %v7584_v14 = vmul.f32 %v15531_v9, %v7562_v21 }
 0xbd1   : > { %v7534_v52 = vadd.f32 1e-05, %v7518_v23  ;;  %v7519_v53 = vmul.f32 0.008, %v7503_v32  ;;  %v7492_v20 = vmul.f32 3.0, %v7476_v22 }
 0xbd2   : > { %9072 = vmatmul.mubr.bf16.vlgmr.msra.gmra.mrb[128].mxu1 %v7635_v41  ;;  %v7585_v2 = vmul.f32 %v15531_v9, %v7563_v29  ;;  %v7606_v60 = vadd.f32 %v15536_v3, %v7584_v14 }
 0xbd3   : > { %10260 = vrsqrt.f32 %v7534_v52  ;;  %v7535_v57 = vadd.f32 1e-05, %v7519_v53  ;;  %v7493_v53 = vmul.f32 3.0, %v7477_v38 }
 0xbd4   : > { %v7451_v19 = vpop.xlane.xlu0 %7450  ;;  %v7607_v40 = vadd.f32 %v15536_v3, %v7585_v2  ;;  %v7622_v59 = vmax.f32 %v7606_v60, 0.0 }
 0xbd5   : > { %v10257_v44 = vpop.eup %10256  ;;  %10262 = vrsqrt.f32 %v7535_v57  ;;  %v7504_v49 = vsub.f32 %v7451_v19, %v7488_v50 }
 0xbd6   : > { %v7453_v58 = vpop.xlane.xlu1 %7452  ;;  %v7623_v31 = vmax.f32 %v7607_v40, 0.0  ;;  %v7564_v26 = vmul.f32 %v10257_v44, %v15422_v30 }
 0xbd7   : > { %v10259_v56 = vpop.eup %10258  ;;  %v7520_v28 = vmul.f32 0.008, %v7504_v49  ;;  %v7505_v18 = vsub.f32 %v7453_v58, %v7489_v5 }
 0xbd8   : > { %v7636_v6 = vpack.c.bf16 %v7623_v31, %v7622_v59  ;;  %v7565_v12 = vmul.f32 %v10259_v56, %v15428_v54  ;;  %v7586_v11 = vmul.f32 %v15531_v9, %v7564_v26 }
 0xbd9   : > { %v7536_v37 = vadd.f32 1e-05, %v7520_v28  ;;  %v7521_v63 = vmul.f32 0.008, %v7505_v18 }
 0xbda   : > { %9075 = vmatprep.mubr.bf16.mxu1 %v7636_v6  ;;  %v7587_v25 = vmul.f32 %v15531_v9, %v7565_v12  ;;  %v7608_v30 = vadd.f32 %v15536_v3, %v7586_v11 }
 0xbdb   : > { %10264 = vrsqrt.f32 %v7536_v37  ;;  %v7537_v62 = vadd.f32 1e-05, %v7521_v63 }
 0xbdc   : > { %v7455_v33 = vpop.xlane.xlu0 %7454  ;;  %v7609_v15 = vadd.f32 %v15536_v3, %v7587_v25  ;;  %v7624_v43 = vmax.f32 %v7608_v30, 0.0 }
 0xbdd   : > { %v10261_v17 = vpop.eup %10260  ;;  %10266 = vrsqrt.f32 %v7537_v62  ;;  %v7506_v54 = vsub.f32 %v7455_v33, %v7490_v45 }
 0xbde   : > { %v7457_v61 = vpop.xlane.xlu1 %7456  ;;  %v7625_v16 = vmax.f32 %v7609_v15, 0.0  ;;  %v7566_v47 = vmul.f32 %v10261_v17, %v15441_v42 }
 0xbdf   : > { %v10263_v48 = vpop.eup %10262  ;;  %v7522_v39 = vmul.f32 0.008, %v7506_v54  ;;  %v7507_v51 = vsub.f32 %v7457_v61, %v7491_v13 }
 0xbe0   : > { %v7637_v7 = vpack.c.bf16 %v7625_v16, %v7624_v43  ;;  %v7567_v21 = vmul.f32 %v10263_v48, %v15447_v27  ;;  %v7588_v4 = vmul.f32 %v15531_v9, %v7566_v47  ;;  %v8933_v48 = vld [vmem:[#allocation23] ss:$0 sm:$0xff] }
 0xbe1   : > { %v7538_v23 = vadd.f32 1e-05, %v7522_v39  ;;  %v7523_v32 = vmul.f32 0.008, %v7507_v51 }
 0xbe2   : > { %9076 = vmatmul.mubr.bf16.gmra.mrb[132].mxu1 %v7637_v7  ;;  %v7589_v41 = vmul.f32 %v15531_v9, %v7567_v21  ;;  %v7610_v42 = vadd.f32 %v15536_v3, %v7588_v4 }
 0xbe3   : > { %10268 = vrsqrt.f32 %v7538_v23  ;;  %v7539_v29 = vadd.f32 1e-05, %v7523_v32 }
 0xbe4   : > { %v7459_v14 = vpop.xlane.xlu0 %7458  ;;  %v7611_v10 = vadd.f32 %v15536_v3, %v7589_v41  ;;  %v7626_v60 = vmax.f32 %v7610_v42, 0.0 }
 0xbe5   : > { %v10265_v52 = vpop.eup %10264  ;;  %10270 = vrsqrt.f32 %v7539_v29  ;;  %v7508_v27 = vsub.f32 %v7459_v14, %v7492_v20 }
 0xbe6   : > { %v7461_v2 = vpop.xlane.xlu1 %7460  ;;  %v7627_v36 = vmax.f32 %v7611_v10, 0.0  ;;  %v7568_v57 = vmul.f32 %v10265_v52, %v15457_v0 }
 0xbe7   : > { %v10267_v50 = vpop.eup %10266  ;;  %v7524_v19 = vmul.f32 0.008, %v7508_v27  ;;  %v7509_v40 = vsub.f32 %v7461_v2, %v7493_v53 }
 0xbe8   : > { %v7638_v44 = vpack.c.bf16 %v7627_v36, %v7626_v60  ;;  %v7569_v49 = vmul.f32 %v10267_v50, %v15463_v34  ;;  %v7590_v5 = vmul.f32 %v15531_v9, %v7568_v57 }
 0xbe9   : > { %v7540_v58 = vadd.f32 1e-05, %v7524_v19  ;;  %v7525_v59 = vmul.f32 0.008, %v7509_v40 }
 0xbea   : > { %9079 = vmatprep.mubr.bf16.mxu1 %v7638_v44  ;;  %v7591_v31 = vmul.f32 %v15531_v9, %v7569_v49  ;;  %v7612_v26 = vadd.f32 %v15536_v3, %v7590_v5 }
 0xbeb   : > { %10272 = vrsqrt.f32 %v7540_v58  ;;  %v7541_v56 = vadd.f32 1e-05, %v7525_v59 }
 0xbec   : > { %v7613_v24 = vadd.f32 %v15536_v3, %v7591_v31  ;;  %v7628_v28 = vmax.f32 %v7612_v26, 0.0 }
 0xbed   : > { %v10269_v0 = vpop.eup %10268  ;;  %10274 = vrsqrt.f32 %v7541_v56 }
 0xbee   : > { %v7629_v18 = vmax.f32 %v7613_v24, 0.0  ;;  %v7570_v6 = vmul.f32 %v10269_v0, %v15479_v1 }
 0xbef   : > { %v10271_v34 = vpop.eup %10270 }
 0xbf0   : > { %v7639_v12 = vpack.c.bf16 %v7629_v18, %v7628_v28  ;;  %v7571_v11 = vmul.f32 %v10271_v34, %v15485_v8  ;;  %v7592_v46 = vmul.f32 %v15531_v9, %v7570_v6 }
 0xbf2   : > { %9080 = vmatmul.mubr.bf16.gmra.mrb[136].mxu1 %v7639_v12  ;;  %v7593_v37 = vmul.f32 %v15531_v9, %v7571_v11  ;;  %v7614_v63 = vadd.f32 %v15536_v3, %v7592_v46 }
 0xbf4   : > { %v7615_v25 = vadd.f32 %v15536_v3, %v7593_v37  ;;  %v7630_v62 = vmax.f32 %v7614_v63, 0.0 }
 0xbf5   : > { %v10273_v30 = vpop.eup %10272 }
 0xbf6   : > { %v7631_v45 = vmax.f32 %v7615_v25, 0.0  ;;  %v7572_v33 = vmul.f32 %v10273_v30, %v15501_v55 }
 0xbf7   : > { %v10275_v15 = vpop.eup %10274 }
 0xbf8   : > { %v7640_v1 = vpack.c.bf16 %v7631_v45, %v7630_v62  ;;  %v7573_v17 = vmul.f32 %v10275_v15, %v15507_v35  ;;  %v7594_v8 = vmul.f32 %v15531_v9, %v7572_v33 }
 0xbfa   : > { %9083 = vmatprep.mubr.bf16.mxu1 %v7640_v1  ;;  %v7595_v54 = vmul.f32 %v15531_v9, %v7573_v17  ;;  %v7616_v13 = vadd.f32 %v15536_v3, %v7594_v8 }
 0xbfc   : > { %v7617_v61 = vadd.f32 %v15536_v3, %v7595_v54  ;;  %v7632_v43 = vmax.f32 %v7616_v13, 0.0 }
 0xbfe   : > { %v7633_v16 = vmax.f32 %v7617_v61, 0.0 }
 0xc00   : > { %v7641_v47 = vpack.c.bf16 %v7633_v16, %v7632_v43 }
 0xc02   : > { %9084 = vmatmul.mubr.bf16.gmra.mrb[140].mxu1 %v7641_v47 }
 0xca5   : > { %v9073_v22 = vpop.f32.mrb[128].mxu1 }
 0xca6   : > { %v7747_v55 = vpop.f32.mrb[129].mxu1  ;;  %v7756_v21 = vadd.f32 %v9073_v22, %v8933_v48  ;;  %v10140_v22 = vld [vmem:[%s15955_s21] sm:$0xff]  }
 0xca7   : > { %v7748_v39 = vadd.f32 %v8933_v48, %v7747_v55  ;;  %v9074_v51 = vpop.f32.mrb[130].mxu1  ;;  %9087 = vmatprep.subr.bf16.mxu1 %v10140_v22 }
 0xca8   : > { %v7750_v7 = vpop.f32.mrb[131].mxu1  ;;  %v7759_v4 = vadd.f32 %v9074_v51, %v8933_v48  ;;  %9088 = vmatpush3.bf16.msra.mxu1 %v10140_v22 }
 0xca9   : > { %v7751_v35 = vadd.f32 %v8933_v48, %v7750_v7  ;;  %7812 = vadd.xlane.f32.xlu0 %v7748_v39 }
 0xcab   : > { %7814 = vadd.xlane.f32.xlu1 %v7751_v35 }
 0xcad   : > { %7816 = vadd.xlane.f32.xlu0 %v7756_v21 }
 0xcaf   : > { %7818 = vadd.xlane.f32.xlu1 %v7759_v4 }
 0xcb5   : > { %v9077_v9 = vpop.f32.mrb[132].mxu1 }
 0xcb6   : > { %v7763_v38 = vpop.f32.mrb[133].mxu1  ;;  %v7772_v42 = vadd.f32 %v9077_v9, %v8933_v48 }
 0xcb7   : > { %v7764_v3 = vadd.f32 %v8933_v48, %v7763_v38  ;;  %v9078_v23 = vpop.f32.mrb[134].mxu1 }
 0xcb8   : > { %v7766_v32 = vpop.f32.mrb[135].mxu1  ;;  %v7775_v29 = vadd.f32 %v9078_v23, %v8933_v48 }
 0xcb9   : > { %v7767_v41 = vadd.f32 %v8933_v48, %v7766_v32  ;;  %7820 = vadd.xlane.f32.xlu0 %v7764_v3 }
 0xcbb   : > { %7822 = vadd.xlane.f32.xlu1 %v7767_v41 }
 0xcbd   : > { %7824 = vadd.xlane.f32.xlu0 %v7772_v42 }
 0xcbf   : > { %7826 = vadd.xlane.f32.xlu1 %v7775_v29 }
 0xcc5   : > { %v9081_v20 = vpop.f32.mrb[136].mxu1 }
 0xcc6   : > { %v7779_v14 = vpop.f32.mrb[137].mxu1  ;;  %v15608_v2 = vadd.f32 %v9081_v20, %v8933_v48 }
 0xcc7   : > { %v15603_v10 = vadd.f32 %v8933_v48, %v7779_v14  ;;  %v9082_v52 = vpop.f32.mrb[138].mxu1  ;;  %v10141_v14 = vld [vmem:[%s15955_s21 + $0x8] sm:$0xff]  }
 0xcc8   : > { %v7782_v27 = vpop.f32.mrb[139].mxu1  ;;  %v15611_v60 = vadd.f32 %v9082_v52, %v8933_v48  ;;  %9089 = vmatprep.subr.bf16.mxu1 %v10141_v14 }
 0xcc9   : > { %v15605_v53 = vadd.f32 %v8933_v48, %v7782_v27  ;;  %7828 = vadd.xlane.f32.xlu0 %v15603_v10  ;;  %9090 = vmatpush3.bf16.msra.mxu1 %v10141_v14  ;;  %v10143_v27 = vld [vmem:[%s15955_s21 + $0x18] sm:$0xff]  }
 0xccb   : > { %7830 = vadd.xlane.f32.xlu1 %v15605_v53 }
 0xccd   : > { %7832 = vadd.xlane.f32.xlu0 %v15608_v2 }
 0xccf   : > { %7834 = vadd.xlane.f32.xlu1 %v15611_v60 }
 0xcd5   : > { %v9085_v36 = vpop.f32.mrb[140].mxu1 }
 0xcd6   : > { %v7795_v57 = vpop.f32.mrb[141].mxu1  ;;  %v15620_v49 = vadd.f32 %v9085_v36, %v8933_v48 }
 0xcd7   : > { %v15615_v50 = vadd.f32 %v8933_v48, %v7795_v57  ;;  %v9086_v19 = vpop.f32.mrb[142].mxu1 }
 0xcd8   : > { %v7798_v40 = vpop.f32.mrb[143].mxu1  ;;  %v15623_v5 = vadd.f32 %v9086_v19, %v8933_v48  ;;  %v10144_v19 = vld [vmem:[%s15955_s21 + $0x20] sm:$0xff]  }
 0xcd9   : > { %v15617_v44 = vadd.f32 %v8933_v48, %v7798_v40  ;;  %7836 = vadd.xlane.f32.xlu0 %v15615_v50 }
 0xcdb   : > { %7838 = vadd.xlane.f32.xlu1 %v15617_v44 }
 0xcdd   : > { %7840 = vadd.xlane.f32.xlu0 %v15620_v49 }
 0xcdf   : > { %7842 = vadd.xlane.f32.xlu1 %v15623_v5 }
 0xd36   : > { %v7813_v58 = vpop.xlane.xlu0 %7812 }
 0xd37   : > { %v15627_v59 = vmul.f32 0.015625, %v7813_v58 }
 0xd38   : > { %v7815_v31 = vpop.xlane.xlu1 %7814 }
 0xd39   : > { %v15630_v26 = vsub.f32 %v7748_v39, %v15627_v59  ;;  %v15632_v56 = vmul.f32 0.015625, %v7815_v31 }
 0xd3a   : > { %v7817_v24 = vpop.xlane.xlu0 %7816 }
 0xd3b   : > { %v15635_v0 = vsub.f32 %v7751_v35, %v15632_v56  ;;  %v15637_v28 = vmul.f32 0.015625, %v7817_v24  ;;  %v7876_v18 = vmul.f32 %v15630_v26, %v15630_v26 }
 0xd3c   : > { %v7819_v6 = vpop.xlane.xlu1 %7818 }
 0xd3d   : > { %v15642_v34 = vsub.f32 %v7756_v21, %v15637_v28  ;;  %v15644_v12 = vmul.f32 0.015625, %v7819_v6  ;;  %7892 = vadd.xlane.f32.xlu0 %v7876_v18  ;;  %v7877_v11 = vmul.f32 %v15635_v0, %v15635_v0 }
 0xd3f   : > { %v15649_v46 = vsub.f32 %v7759_v4, %v15644_v12  ;;  %7894 = vadd.xlane.f32.xlu1 %v7877_v11  ;;  %v7878_v37 = vmul.f32 %v15642_v34, %v15642_v34 }
 0xd41   : > { %7896 = vadd.xlane.f32.xlu0 %v7878_v37  ;;  %v7879_v63 = vmul.f32 %v15649_v46, %v15649_v46 }
 0xd43   : > { %7898 = vadd.xlane.f32.xlu1 %v7879_v63  ;;  %v10146_v63 = vld [vmem:[%s15955_s21 + $0x30] sm:$0xff]  }
 0xd46   : > { %v7821_v25 = vpop.xlane.xlu0 %7820 }
 0xd47   : > { %v15655_v30 = vmul.f32 0.015625, %v7821_v25  ;;  %v7924_v25 = vmul.f32 %v15627_v59, %v15627_v59 }
 0xd48   : > { %v7823_v62 = vpop.xlane.xlu1 %7822 }
 0xd49   : > { %v15658_v45 = vsub.f32 %v7764_v3, %v15655_v30  ;;  %v15660_v33 = vmul.f32 0.015625, %v7823_v62  ;;  %v7925_v62 = vmul.f32 %v15632_v56, %v15632_v56 }
 0xd4a   : > { %v7825_v15 = vpop.xlane.xlu0 %7824 }
 0xd4b   : > { %v15663_v1 = vsub.f32 %v7767_v41, %v15660_v33  ;;  %v15665_v17 = vmul.f32 0.015625, %v7825_v15  ;;  %v7880_v8 = vmul.f32 %v15658_v45, %v15658_v45  ;;  %v7926_v15 = vmul.f32 %v15637_v28, %v15637_v28 }
 0xd4c   : > { %v7827_v54 = vpop.xlane.xlu1 %7826 }
 0xd4d   : > { %v15670_v13 = vsub.f32 %v7772_v42, %v15665_v17  ;;  %v15672_v61 = vmul.f32 0.015625, %v7827_v54  ;;  %7900 = vadd.xlane.f32.xlu0 %v7880_v8  ;;  %v7881_v43 = vmul.f32 %v15663_v1, %v15663_v1  ;;  %v7940_v8 = vmul.f32 64.0, %v7924_v25 }
 0xd4f   : > { %v15677_v16 = vsub.f32 %v7775_v29, %v15672_v61  ;;  %7902 = vadd.xlane.f32.xlu1 %v7881_v43  ;;  %v7882_v47 = vmul.f32 %v15670_v13, %v15670_v13  ;;  %v7927_v43 = vmul.f32 %v15644_v12, %v15644_v12  ;;  %v7928_v12 = vmul.f32 %v15655_v30, %v15655_v30 }
 0xd51   : > { %7904 = vadd.xlane.f32.xlu0 %v7882_v47  ;;  %v7883_v48 = vmul.f32 %v15677_v16, %v15677_v16 }
 0xd53   : > { %7906 = vadd.xlane.f32.xlu1 %v7883_v48  ;;  %v7941_v48 = vmul.f32 64.0, %v7925_v62 }
 0xd56   : > { %v7829_v55 = vpop.xlane.xlu0 %7828 }
 0xd57   : > { %v15686_v39 = vmul.f32 0.015625, %v7829_v55 }
 0xd58   : > { %v7831_v51 = vpop.xlane.xlu1 %7830 }
 0xd59   : > { %v15690_v7 = vsub.f32 %v15603_v10, %v15686_v39  ;;  %v15692_v35 = vmul.f32 0.015625, %v7831_v51  ;;  %v10142_v10 = vld [vmem:[%s15955_s21 + $0x10] sm:$0xff]  }
 0xd5a   : > { %v7833_v21 = vpop.xlane.xlu0 %7832  ;;  %9091 = vmatprep.subr.bf16.mxu1 %v10142_v10 }
 0xd5b   : > { %v15696_v4 = vsub.f32 %v15605_v53, %v15692_v35  ;;  %v15698_v9 = vmul.f32 0.015625, %v7833_v21  ;;  %v7884_v38 = vmul.f32 %v15690_v7, %v15690_v7  ;;  %9092 = vmatpush3.bf16.msra.mxu1 %v10142_v10  ;;  %v7942_v21 = vmul.f32 64.0, %v7926_v15 }
 0xd5c   : > { %v7835_v3 = vpop.xlane.xlu1 %7834  ;;  %9093 = vmatprep.subr.bf16.mxu1 %v10143_v27 }
 0xd5d   : > { %v15704_v23 = vsub.f32 %v15608_v2, %v15698_v9  ;;  %v15706_v32 = vmul.f32 0.015625, %v7835_v3  ;;  %7908 = vadd.xlane.f32.xlu0 %v7884_v38  ;;  %v7885_v41 = vmul.f32 %v15696_v4, %v15696_v4 }
 0xd5f   : > { %v15712_v42 = vsub.f32 %v15611_v60, %v15706_v32  ;;  %7910 = vadd.xlane.f32.xlu1 %v7885_v41  ;;  %v7886_v29 = vmul.f32 %v15704_v23, %v15704_v23  ;;  %9094 = vmatpush3.bf16.msra.mxu1 %v10143_v27 }
 0xd60   : > { %9095 = vmatprep.subr.bf16.mxu1 %v10144_v19 }
 0xd61   : > { %7912 = vadd.xlane.f32.xlu0 %v7886_v29  ;;  %v7887_v20 = vmul.f32 %v15712_v42, %v15712_v42  ;;  %v7943_v29 = vmul.f32 64.0, %v7927_v43 }
 0xd63   : > { %7914 = vadd.xlane.f32.xlu1 %v7887_v20  ;;  %9096 = vmatpush3.bf16.msra.mxu1 %v10144_v19  ;;  %v7944_v19 = vmul.f32 64.0, %v7928_v12  ;;  %v7932_v12 = vmul.f32 %v15686_v39, %v15686_v39  ;;  %v7935_v39 = vmul.f32 %v15706_v32, %v15706_v32 }
 0xd65   : > { %v7951_v32 = vmul.f32 64.0, %v7935_v39 }
 0xd66   : > { %v7837_v52 = vpop.xlane.xlu0 %7836 }
 0xd67   : > { %v15727_v53 = vmul.f32 0.015625, %v7837_v52 }
 0xd68   : > { %v7839_v2 = vpop.xlane.xlu1 %7838 }
 0xd69   : > { %v15731_v60 = vsub.f32 %v15615_v50, %v15727_v53  ;;  %v15733_v36 = vmul.f32 0.015625, %v7839_v2  ;;  %v7929_v2 = vmul.f32 %v15660_v33, %v15660_v33 }
 0xd6a   : > { %v7841_v57 = vpop.xlane.xlu0 %7840 }
 0xd6b   : > { %v15740_v40 = vsub.f32 %v15617_v44, %v15733_v36  ;;  %v15742_v58 = vmul.f32 0.015625, %v7841_v57  ;;  %v7888_v31 = vmul.f32 %v15731_v60, %v15731_v60  ;;  %v10145_v44 = vld [vmem:[%s15955_s21 + $0x28] sm:$0xff]   ;;  %v7930_v57 = vmul.f32 %v15665_v17, %v15665_v17  ;;  %v15793_v17 = vld [vmem:[%s16838_s29] ss:$0 sm:$0xff]  ;;  %s10736_s29 = scalar_lea.vmem %s10735_s27, 4096 }
 0xd6c   : > { %v7843_v50 = vpop.xlane.xlu1 %7842  ;;  %9097 = vmatprep.subr.bf16.mxu1 %v10145_v44  ;;  %p10738_p3 = scmp.lt.s32.totalorder %s10736_s29, %s10730_s25 }
 0xd6d   : > { %v15748_v24 = vsub.f32 %v15620_v49, %v15742_v58  ;;  %v15750_v18 = vmul.f32 0.015625, %v7843_v50  ;;  %7916 = vadd.xlane.f32.xlu0 %v7888_v31  ;;  %v7889_v6 = vmul.f32 %v15740_v40, %v15740_v40  ;;  %9098 = vmatpush3.bf16.msra.mxu1 %v10145_v44  ;;  %v15787_v44 = vld [vmem:[#allocation25] ss:$0 sm:$0xff]  ;;  %v7946_v62 = vmul.f32 64.0, %v7930_v57 }
 0xd6e   : > { %9099 = vmatprep.subr.bf16.mxu1 %v10146_v63  ;;  %p10739_p4 = por %p10738_p3, %p10737_p2 }
 0xd6f   : > { %v15759_v11 = vsub.f32 %v15623_v5, %v15750_v18  ;;  %7918 = vadd.xlane.f32.xlu1 %v7889_v6  ;;  %v7890_v49 = vmul.f32 %v15748_v24, %v15748_v24  ;;  %v10147_v5 = vld [vmem:[%s15955_s21 + $0x38] sm:$0xff]   ;;  %v7931_v6 = vmul.f32 %v15672_v61, %v15672_v61 }
 0xd70   : > { %p10740_p7 = pnand %p10739_p4, %p10733_p10 }
 0xd71   : > { %7920 = vadd.xlane.f32.xlu0 %v7890_v49  ;;  %v7891_v37 = vmul.f32 %v15759_v11, %v15759_v11  ;;  %9100 = vmatpush3.bf16.msra.mxu1 %v10146_v63 }
 0xd72   : > { %9101 = vmatprep.subr.bf16.mxu1 %v10147_v5 }
 0xd73   : > { %7922 = vadd.xlane.f32.xlu1 %v7891_v37  ;;  %v7945_v37 = vmul.f32 64.0, %v7929_v2 }
 0xd75   : > { %9102 = vmatpush3.bf16.msra.mxu1 %v10147_v5 }
 0xdca   : > { %v7893_v54 = vpop.xlane.xlu0 %7892 }
 0xdcb   : > { %v7956_v47 = vsub.f32 %v7893_v54, %v7940_v8 }
 0xdcc   : > { %v7895_v22 = vpop.xlane.xlu1 %7894 }
 0xdcd   : > { %v7972_v55 = vmul.f32 0.015625, %v7956_v47  ;;  %v7957_v51 = vsub.f32 %v7895_v22, %v7941_v48  ;;  %v7947_v22 = vmul.f32 64.0, %v7931_v6  ;;  %v7948_v6 = vmul.f32 64.0, %v7932_v12 }
 0xdce   : > { %v7897_v38 = vpop.xlane.xlu0 %7896 }
 0xdcf   : > { %v7988_v3 = vadd.f32 1e-05, %v7972_v55  ;;  %v7973_v59 = vmul.f32 0.015625, %v7957_v51  ;;  %v7958_v41 = vsub.f32 %v7897_v38, %v7942_v21 }
 0xdd0   : > { %v7899_v56 = vpop.xlane.xlu1 %7898 }
 0xdd1   : > { %10276 = vrsqrt.f32 %v7988_v3  ;;  %v7989_v20 = vadd.f32 1e-05, %v7973_v59  ;;  %v7974_v28 = vmul.f32 0.015625, %v7958_v41  ;;  %v7959_v14 = vsub.f32 %v7899_v56, %v7943_v29 }
 0xdd3   : > { %10278 = vrsqrt.f32 %v7989_v20  ;;  %v7990_v10 = vadd.f32 1e-05, %v7974_v28  ;;  %v7975_v52 = vmul.f32 0.015625, %v7959_v14 }
 0xdd5   : > { %10280 = vrsqrt.f32 %v7990_v10  ;;  %v7991_v27 = vadd.f32 1e-05, %v7975_v52 }
 0xdd7   : > { %10282 = vrsqrt.f32 %v7991_v27 }
 0xdda   : > { %v7901_v31 = vpop.xlane.xlu0 %7900 }
 0xddb   : > { %v10277_v50 = vpop.eup %10276  ;;  %v7960_v49 = vsub.f32 %v7901_v31, %v7944_v19 }
 0xddc   : > { %v7903_v30 = vpop.xlane.xlu1 %7902  ;;  %v8020_v63 = vmul.f32 %v10277_v50, %v15630_v26  ;;  %v7934_v50 = vmul.f32 %v15698_v9, %v15698_v9 }
 0xddd   : > { %v10279_v5 = vpop.eup %10278  ;;  %v7976_v25 = vmul.f32 0.015625, %v7960_v49  ;;  %v7961_v33 = vsub.f32 %v7903_v30, %v7945_v37 }
 0xdde   : > { %v7905_v15 = vpop.xlane.xlu0 %7904  ;;  %v8021_v8 = vmul.f32 %v10279_v5, %v15635_v0  ;;  %v8042_v61 = vmul.f32 %v15787_v44, %v8020_v63 }
 0xddf   : > { %v10281_v54 = vpop.eup %10280  ;;  %v7992_v43 = vadd.f32 1e-05, %v7976_v25  ;;  %v7977_v47 = vmul.f32 0.015625, %v7961_v33  ;;  %v7962_v48 = vsub.f32 %v7905_v15, %v7946_v62 }
 0xde0   : > { %v8022_v26 = vmul.f32 %v10281_v54, %v15642_v34  ;;  %v7907_v55 = vpop.xlane.xlu1 %7906  ;;  %v8043_v51 = vmul.f32 %v15787_v44, %v8021_v8  ;;  %v8064_v21 = vadd.f32 %v15793_v17, %v8042_v61  ;;  %v7950_v8 = vmul.f32 64.0, %v7934_v50 }
 0xde1   : > { %v10283_v38 = vpop.eup %10282  ;;  %10284 = vrsqrt.f32 %v7992_v43  ;;  %v7993_v3 = vadd.f32 1e-05, %v7977_v47  ;;  %v7978_v59 = vmul.f32 0.015625, %v7962_v48  ;;  %v7963_v41 = vsub.f32 %v7907_v55, %v7947_v22 }
 0xde2   : > { %v8044_v0 = vmul.f32 %v15787_v44, %v8022_v26  ;;  %v8023_v29 = vmul.f32 %v10283_v38, %v15649_v46  ;;  %v8065_v56 = vadd.f32 %v15793_v17, %v8043_v51  ;;  %v8080_v14 = vmax.f32 %v8064_v21, 0.0 }
 0xde3   : > { %10286 = vrsqrt.f32 %v7993_v3  ;;  %v7994_v20 = vadd.f32 1e-05, %v7978_v59  ;;  %v7979_v28 = vmul.f32 0.015625, %v7963_v41  ;;  %v7933_v46 = vmul.f32 %v15692_v35, %v15692_v35 }
 0xde4   : > { %v8045_v34 = vmul.f32 %v15787_v44, %v8023_v29  ;;  %v8081_v10 = vmax.f32 %v8065_v56, 0.0  ;;  %v8066_v52 = vadd.f32 %v15793_v17, %v8044_v0 }
 0xde5   : > { %10288 = vrsqrt.f32 %v7994_v20  ;;  %v7995_v27 = vadd.f32 1e-05, %v7979_v28  ;;  %v7949_v5 = vmul.f32 64.0, %v7933_v46 }
 0xde6   : > { %v8096_v2 = vpack.c.bf16 %v8081_v10, %v8080_v14  ;;  %v8067_v57 = vadd.f32 %v15793_v17, %v8045_v34  ;;  %v8082_v19 = vmax.f32 %v8066_v52, 0.0  ;;  %v7936_v14 = vmul.f32 %v15727_v53, %v15727_v53 }
 0xde7   : > { %10290 = vrsqrt.f32 %v7995_v27  ;;  %v7939_v53 = vmul.f32 %v15750_v18, %v15750_v18 }
 0xde8   : > { %9103 = vmatprep.mubr.bf16.mxu1 %v8096_v2  ;;  %v8083_v31 = vmax.f32 %v8067_v57, 0.0  ;;  %v7938_v57 = vmul.f32 %v15742_v58, %v15742_v58  ;;  %v7952_v46 = vmul.f32 64.0, %v7936_v14 }
 0xde9   : > { %v7955_v18 = vmul.f32 64.0, %v7939_v53 }
 0xdea   : > { %v7909_v49 = vpop.xlane.xlu0 %7908  ;;  %v8097_v37 = vpack.c.bf16 %v8083_v31, %v8082_v19 }
 0xdeb   : > { %v10285_v30 = vpop.eup %10284  ;;  %v7964_v63 = vsub.f32 %v7909_v49, %v7948_v6 }
 0xdec   : > { %v7911_v25 = vpop.xlane.xlu1 %7910  ;;  %9104 = vmatmul.mubr.bf16.vlgmr.msra.gmra.mrb[144].mxu1 %v8097_v37  ;;  %v8024_v35 = vmul.f32 %v10285_v30, %v15658_v45 }
 0xded   : > { %v10287_v33 = vpop.eup %10286  ;;  %v7980_v62 = vmul.f32 0.015625, %v7964_v63  ;;  %v7965_v15 = vsub.f32 %v7911_v25, %v7949_v5  ;;  %v7954_v5 = vmul.f32 64.0, %v7938_v57 }
 0xdee   : > { %v7913_v61 = vpop.xlane.xlu0 %7912  ;;  %v8025_v9 = vmul.f32 %v10287_v33, %v15663_v1  ;;  %v8046_v54 = vmul.f32 %v15787_v44, %v8024_v35 }
 0xdef   : > { %v10289_v43 = vpop.eup %10288  ;;  %v7996_v47 = vadd.f32 1e-05, %v7980_v62  ;;  %v7981_v48 = vmul.f32 0.015625, %v7965_v15  ;;  %v7966_v22 = vsub.f32 %v7913_v61, %v7950_v8 }
 0xdf0   : > { %v7915_v26 = vpop.xlane.xlu1 %7914  ;;  %v8047_v55 = vmul.f32 %v15787_v44, %v8025_v9  ;;  %v8068_v51 = vadd.f32 %v15793_v17, %v8046_v54  ;;  %v8026_v45 = vmul.f32 %v10289_v43, %v15670_v13 }
 0xdf1   : > { %v10291_v21 = vpop.eup %10290  ;;  %10292 = vrsqrt.f32 %v7996_v47  ;;  %v7997_v38 = vadd.f32 1e-05, %v7981_v48  ;;  %v7982_v3 = vmul.f32 0.015625, %v7966_v22  ;;  %v7967_v59 = vsub.f32 %v7915_v26, %v7951_v32 }
 0xdf2   : > { %v8069_v1 = vadd.f32 %v15793_v17, %v8047_v55  ;;  %v8027_v41 = vmul.f32 %v10291_v21, %v15677_v16  ;;  %v8048_v0 = vmul.f32 %v15787_v44, %v8026_v45  ;;  %v8084_v20 = vmax.f32 %v8068_v51, 0.0 }
 0xdf3   : > { %10294 = vrsqrt.f32 %v7997_v38  ;;  %v7998_v29 = vadd.f32 1e-05, %v7982_v3  ;;  %v7983_v56 = vmul.f32 0.015625, %v7967_v59  ;;  %v7937_v16 = vmul.f32 %v15733_v36, %v15733_v36 }
 0xdf4   : > { %v8085_v28 = vmax.f32 %v8069_v1, 0.0  ;;  %v8049_v34 = vmul.f32 %v15787_v44, %v8027_v41  ;;  %v8070_v13 = vadd.f32 %v15793_v17, %v8048_v0 }
 0xdf5   : > { %10296 = vrsqrt.f32 %v7998_v29  ;;  %v7999_v10 = vadd.f32 1e-05, %v7983_v56  ;;  %v7953_v49 = vmul.f32 64.0, %v7937_v16 }
 0xdf6   : > { %v8098_v52 = vpack.c.bf16 %v8085_v28, %v8084_v20  ;;  %v8071_v12 = vadd.f32 %v15793_v17, %v8049_v34  ;;  %v8086_v27 = vmax.f32 %v8070_v13, 0.0 }
 0xdf7   : > { %10298 = vrsqrt.f32 %v7999_v10 }
 0xdf8   : > { %9107 = vmatprep.mubr.bf16.mxu1 %v8098_v52  ;;  %v8087_v2 = vmax.f32 %v8071_v12, 0.0 }
 0xdfa   : > { %v7917_v19 = vpop.xlane.xlu0 %7916  ;;  %v8099_v31 = vpack.c.bf16 %v8087_v2, %v8086_v27 }
 0xdfb   : > { %v10293_v50 = vpop.eup %10292  ;;  %v7968_v6 = vsub.f32 %v7917_v19, %v7952_v46 }
 0xdfc   : > { %v7919_v37 = vpop.xlane.xlu1 %7918  ;;  %9108 = vmatmul.mubr.bf16.gmra.mrb[148].mxu1 %v8099_v31  ;;  %v8028_v36 = vmul.f32 %v10293_v50, %v15690_v7 }
 0xdfd   : > { %v10295_v30 = vpop.eup %10294  ;;  %v7984_v39 = vmul.f32 0.015625, %v7968_v6  ;;  %v7969_v63 = vsub.f32 %v7919_v37, %v7953_v49 }
 0xdfe   : > { %v7921_v25 = vpop.xlane.xlu0 %7920  ;;  %v8029_v58 = vmul.f32 %v10295_v30, %v15696_v4  ;;  %v8050_v35 = vmul.f32 %v15787_v44, %v8028_v36 }
 0xdff   : > { %v10297_v33 = vpop.eup %10296  ;;  %v8000_v62 = vadd.f32 1e-05, %v7984_v39  ;;  %v7985_v15 = vmul.f32 0.015625, %v7969_v63  ;;  %v7970_v8 = vsub.f32 %v7921_v25, %v7954_v5 }
 0xe00   : > { %v7923_v61 = vpop.xlane.xlu1 %7922  ;;  %v8051_v9 = vmul.f32 %v15787_v44, %v8029_v58  ;;  %v8072_v54 = vadd.f32 %v15793_v17, %v8050_v35  ;;  %v8030_v7 = vmul.f32 %v10297_v33, %v15704_v23 }
 0xe01   : > { %v10299_v43 = vpop.eup %10298  ;;  %10300 = vrsqrt.f32 %v8000_v62  ;;  %v8001_v47 = vadd.f32 1e-05, %v7985_v15  ;;  %v7986_v48 = vmul.f32 0.015625, %v7970_v8  ;;  %v7971_v22 = vsub.f32 %v7923_v61, %v7955_v18 }
 0xe02   : > { %v8073_v4 = vadd.f32 %v15793_v17, %v8051_v9  ;;  %v8031_v32 = vmul.f32 %v10299_v43, %v15712_v42  ;;  %v8052_v26 = vmul.f32 %v15787_v44, %v8030_v7  ;;  %v8088_v45 = vmax.f32 %v8072_v54, 0.0 }
 0xe03   : > { %10302 = vrsqrt.f32 %v8001_v47  ;;  %v8002_v55 = vadd.f32 1e-05, %v7986_v48  ;;  %v7987_v51 = vmul.f32 0.015625, %v7971_v22 }
 0xe04   : > { %v8089_v21 = vmax.f32 %v8073_v4, 0.0  ;;  %v8053_v38 = vmul.f32 %v15787_v44, %v8031_v32  ;;  %v8074_v23 = vadd.f32 %v15793_v17, %v8052_v26 }
 0xe05   : > { %10304 = vrsqrt.f32 %v8002_v55  ;;  %v8003_v3 = vadd.f32 1e-05, %v7987_v51 }
 0xe06   : > { %v8100_v59 = vpack.c.bf16 %v8089_v21, %v8088_v45  ;;  %v8075_v1 = vadd.f32 %v15793_v17, %v8053_v38  ;;  %v8090_v41 = vmax.f32 %v8074_v23, 0.0 }
 0xe07   : > { %10306 = vrsqrt.f32 %v8003_v3 }
 0xe08   : > { %9111 = vmatprep.mubr.bf16.mxu1 %v8100_v59  ;;  %v8091_v42 = vmax.f32 %v8075_v1, 0.0 }
 0xe0a   : > { %v8101_v0 = vpack.c.bf16 %v8091_v42, %v8090_v41 }
 0xe0b   : > { %v10301_v29 = vpop.eup %10300 }
 0xe0c   : > { %9112 = vmatmul.mubr.bf16.gmra.mrb[152].mxu1 %v8101_v0  ;;  %v8032_v56 = vmul.f32 %v10301_v29, %v15731_v60 }
 0xe0d   : > { %v10303_v20 = vpop.eup %10302 }
 0xe0e   : > { %v8033_v28 = vmul.f32 %v10303_v20, %v15740_v40  ;;  %v8054_v34 = vmul.f32 %v15787_v44, %v8032_v56 }
 0xe0f   : > { %v10305_v13 = vpop.eup %10304 }
 0xe10   : > { %v8055_v14 = vmul.f32 %v15787_v44, %v8033_v28  ;;  %v8076_v10 = vadd.f32 %v15793_v17, %v8054_v34  ;;  %v8034_v52 = vmul.f32 %v10305_v13, %v15748_v24 }
 0xe11   : > { %v10307_v12 = vpop.eup %10306 }
 0xe12   : > { %v8077_v16 = vadd.f32 %v15793_v17, %v8055_v14  ;;  %v8035_v27 = vmul.f32 %v10307_v12, %v15759_v11  ;;  %v8056_v60 = vmul.f32 %v15787_v44, %v8034_v52  ;;  %v8092_v2 = vmax.f32 %v8076_v10, 0.0  ;;  %v8944_v11 = vld [vmem:[%s16840_s26] ss:$0 sm:$0xff] }
 0xe14   : > { %v8093_v40 = vmax.f32 %v8077_v16, 0.0  ;;  %v8057_v57 = vmul.f32 %v15787_v44, %v8035_v27  ;;  %v8078_v46 = vadd.f32 %v15793_v17, %v8056_v60 }
 0xe16   : > { %v8102_v19 = vpack.c.bf16 %v8093_v40, %v8092_v2  ;;  %v8079_v31 = vadd.f32 %v15793_v17, %v8057_v57  ;;  %v8094_v24 = vmax.f32 %v8078_v46, 0.0 }
 0xe18   : > { %9115 = vmatprep.mubr.bf16.mxu1 %v8102_v19  ;;  %v8095_v50 = vmax.f32 %v8079_v31, 0.0 }
 0xe1a   : > { %v8103_v53 = vpack.c.bf16 %v8095_v50, %v8094_v24 }
 0xe1c   : > { %9116 = vmatmul.mubr.bf16.gmra.mrb[156].mxu1 %v8103_v53 }
 0xebf   : > { %v9105_v6 = vpop.f32.mrb[144].mxu1 }
 0xec0   : > { %v8218_v49 = vadd.f32 %v9105_v6, %v8944_v11  ;;  %v8209_v44 = vpop.f32.mrb[145].mxu1 }
 0xec1   : > { %v8210_v37 = vadd.f32 %v8944_v11, %v8209_v44  ;;  %v9106_v36 = vpop.f32.mrb[146].mxu1 }
 0xec2   : > { %8274 = vst [vmem:[%s15864_s24 + $0x10] sm:$0xff] %v8218_v49  ;;  %v8221_v17 = vadd.f32 %v9106_v36, %v8944_v11  ;;  %v8212_v30 = vpop.f32.mrb[147].mxu1 }
 0xec3   : > { %8272 = vst [vmem:[%s15864_s24] sm:$0xff] %v8210_v37  ;;  %v8213_v39 = vadd.f32 %v8944_v11, %v8212_v30 }
 0xec4   : > { %8275 = vst [vmem:[%s15864_s24 + $0x18] sm:$0xff] %v8221_v17 }
 0xec5   : > { %8273 = vst [vmem:[%s15864_s24 + $0x8] sm:$0xff] %v8213_v39 }
 0xecf   : > { %v9109_v63 = vpop.f32.mrb[148].mxu1 }
 0xed0   : > { %v8234_v5 = vadd.f32 %v9109_v63, %v8944_v11  ;;  %v8225_v25 = vpop.f32.mrb[149].mxu1 }
 0xed1   : > { %v8226_v58 = vadd.f32 %v8944_v11, %v8225_v25  ;;  %v9110_v35 = vpop.f32.mrb[150].mxu1 }
 0xed2   : > { %8278 = vst [vmem:[%s15864_s24 + $0x30] sm:$0xff] %v8234_v5  ;;  %v8237_v33 = vadd.f32 %v9110_v35, %v8944_v11  ;;  %v8228_v62 = vpop.f32.mrb[151].mxu1 }
 0xed3   : > { %8276 = vst [vmem:[%s15864_s24 + $0x20] sm:$0xff] %v8226_v58  ;;  %v8229_v15 = vadd.f32 %v8944_v11, %v8228_v62 }
 0xed4   : > { %8279 = vst [vmem:[%s15864_s24 + $0x38] sm:$0xff] %v8237_v33 }
 0xed5   : > { %8277 = vst [vmem:[%s15864_s24 + $0x28] sm:$0xff] %v8229_v15 }
 0xedf   : > { %v9113_v8 = vpop.f32.mrb[152].mxu1 }
 0xee0   : > { %v8250_v18 = vadd.f32 %v9113_v8, %v8944_v11  ;;  %v8241_v61 = vpop.f32.mrb[153].mxu1 }
 0xee1   : > { %v8242_v9 = vadd.f32 %v8944_v11, %v8241_v61  ;;  %v9114_v54 = vpop.f32.mrb[154].mxu1 }
 0xee2   : > { %8282 = vst [vmem:[%s15864_s24 + $0x50] sm:$0xff] %v8250_v18  ;;  %v8253_v7 = vadd.f32 %v9114_v54, %v8944_v11  ;;  %v8244_v43 = vpop.f32.mrb[155].mxu1 }
 0xee3   : > { %8280 = vst [vmem:[%s15864_s24 + $0x40] sm:$0xff] %v8242_v9  ;;  %v8245_v47 = vadd.f32 %v8944_v11, %v8244_v43 }
 0xee4   : > { %8283 = vst [vmem:[%s15864_s24 + $0x58] sm:$0xff] %v8253_v7 }
 0xee5   : > { %8281 = vst [vmem:[%s15864_s24 + $0x48] sm:$0xff] %v8245_v47 }
 0xeef   : > { %v9117_v48 = vpop.f32.mrb[156].mxu1 }
 0xef0   : > { %v8266_v22 = vadd.f32 %v9117_v48, %v8944_v11  ;;  %v8257_v4 = vpop.f32.mrb[157].mxu1 }
 0xef1   : > { %v8258_v32 = vadd.f32 %v8944_v11, %v8257_v4  ;;  %v9118_v26 = vpop.f32.mrb[158].mxu1 }
 0xef2   : > { %8286 = vst [vmem:[%s15864_s24 + $0x70] sm:$0xff] %v8266_v22  ;;  %v8269_v55 = vadd.f32 %v9118_v26, %v8944_v11  ;;  %v8260_v51 = vpop.f32.mrb[159].mxu1 }
 0xef3   : > { %8284 = vst [vmem:[%s15864_s24 + $0x60] sm:$0xff] %v8258_v32  ;;  %v8261_v45 = vadd.f32 %v8944_v11, %v8260_v51 }
 0xef4   : > { %8287 = vst [vmem:[%s15864_s24 + $0x78] sm:$0xff] %v8269_v55 }
 0xef5   : > { %8285 = vst [vmem:[%s15864_s24 + $0x68] sm:$0xff] %v8261_v45 }
 0xef6   : > { %10743 = shalt.err (!%p10740_p7)
}
 0xef7   : > { %s10744_s6 = scalar_lea.hbm %s15884_s30, 2048  ;;  %s10748_s8 = scalar_lea.hbm %s16842_s2, 4096 }
 0xef8   : > { %p10745_p8 = scmp.ne.s32.totalorder %s15884_s30, %s10744_s6  ;;  %p10749_p1 = scmp.lt.u32.totalorder %s15884_s30, %s16842_s2 }
 0xef9   : > { %p10750_p0 = scmp.lt.u32.totalorder %s10748_s8, %s10744_s6  ;;  %p10752_p5 = scmp.lt.u32.totalorder %s10744_s6, %s15884_s30 }
 0xefa   : > { %p10746_p11 = pnand %p10745_p8, %p16843_p9 }
 0xefb   : > { %p10751_p6 = por %p10750_p0, %p10749_p1 }
 0xefc   : > { %p10747_p13 = pneg %p10746_p11 }
 0xefd   : > { %p10753_p12 = por %p10752_p5, %p10751_p6 }
 0xeff   : > { %p10754_p10 = pnand %p10753_p12, %p10747_p13 }
 0xf01   : > { %10757 = shalt.err (!%p10754_p10)
}
 0xf02   : > { %s10847_s24 = smov 128   ;;  %s10848_s7 = smov 8  }
 0xf03   : > { %9499 = dma.vmem_to_hbm [thread:$0]  (%p16843_p9), %s15886_s3, 2048, %s15884_s30, %s15893_s5, %s10847_s24, %s10847_s24, %s10848_s7  }
 0xf04 PF: > { %s16844_s12 = sld [smem:[#allocation39_spill]]  ;;  %s16845_s4 = sld [smem:[#allocation36_spill]] }
 0xf05   : > { %s16846_s25 = sld [smem:[#allocation43_spill]] }
 0xf0a   : > { %p9581_p2 = scmp.ge.s32.totalorder %s16844_s12, 2  ;;  %s8317_s10 = sand.u32 1, %s16845_s4  }
 0xf0b   : > { %p16847_p3 = scmp.ne.s32.totalorder %s16846_s25, 0  ;;  %s8318_s27 = scalar_lea.sflag [#allocation4], %s8317_s10 }
 0xf0d   : > { %p9548_p4 = pnand %p9581_p2, %p16847_p3 }
 0xf0f   : > { %10807 = dma.done.wait (!%p9548_p4), %s8318_s27, 2048  }
 0xf10   : > { %10809 = vsyncadd (!%p9548_p4), %s8318_s27, 4294965248  ;;  %s16848_s25 = sld [smem:[#allocation40_spill]]  ;;  %s16849_s4 = sld [smem:[#allocation37_spill]] }
 0xf11   : > { %s16850_s30 = sld [smem:[#allocation38_spill]]  ;;  %s16851_s24 = sld [smem:[#allocation41_spill]] }
 0xf16   : > { %p41_p7 = scmp.ge.s32.totalorder %s16848_s25, 4  }
 0xf18   :  { %43 = sbr.rel (!%p41_p7) target bundleno = 27 (0x1b), region = 208 }
 0xf1f   :  { %8323 = vsyncpa [#allocation3], 1 }
 0xf20   :  { %8325 = vsyncpa [#allocation3 + $0x1], 1 }
 0xf21   :  { %8326 = vsyncpa [#allocation6], 1 }
 0xf22   :  { %8327 = vsyncpa [#allocation9], 1 }
 0xf23   :  { %8328 = vsyncpa [#allocation12], 1 }
 0xf24   :  { %8329 = vsyncpa [#allocation15], 1 }
 0xf25   :  { %8330 = vsyncpa [#allocation18], 1 }
 0xf26   :  { %8331 = vsyncpa [#allocation21], 1 }
 0xf27   :  { %8332 = vsyncpa [#allocation24], 1 }
 0xf28   :  { %8333 = vsyncpa [#allocation4], 1 }
 0xf29   :  { %8335 = vsyncpa [#allocation4 + $0x1], 1 }

</bundles_post_ra>
